<compile_context>
chip_gen: v5e
topology: v5e:2x2
jax: 0.10.0
libtpu: 0.0.40
codegen_flags: <defaults>
</compile_context>

<pallas_src>
import functools

import jax
import jax.numpy as jnp
import numpy as np
from jax import lax
from jax.experimental import pallas as pl
from jax.experimental.pallas import tpu as pltpu


# ---------------------------------------------------------------------------
# Fused kernel: num_layer_ent InGram entity layers + residuals + avg readout
# ---------------------------------------------------------------------------
def encoder_entity_kernel(TH_ref, emb_rels_ref, emb_ent_ref,
                          w_fused_ref, b_fused_ref, attn_hm_ref,
                          w_res_ref, b_res_ref,
                          emb_out_ref, g_out_ref,
                          cat_ref, *, precision):
    f32 = jnp.float32
    NEG = f32(-1e30)

    M, Dr = emb_rels_ref.shape               # M = E + N (edges ++ self loops)
    N, D = emb_ent_ref.shape
    L, H, Dout = attn_hm_ref.shape
    dh = Dout // H

    def mm(a, b):        # a @ b
        return lax.dot_general(a, b, (((1,), (0,)), ((), ())),
                               preferred_element_type=f32, precision=precision)

    def mm_tn(a, b):     # a.T @ b  (scatter-add over the edge axis of one-hot `a`)
        return lax.dot_general(a, b, (((0,), (0,)), ((), ())),
                               preferred_element_type=f32, precision=precision)

    def mm_nt(a, b):     # a @ b.T
        return lax.dot_general(a, b, (((1,), (1,)), ((), ())),
                               preferred_element_type=f32, precision=precision)

    # ---- hoisted, layer-invariant quantities ---------------------------------
    TH = TH_ref[...].astype(f32)             # (2M, N) stacked [T ; Hm] (bf16 in HBM)
    T = TH[0:M, :]                           # (M, N)  tail one-hot
    # boolean tail mask tiled per head along lanes: [m, h*N + n] = (tail(m) == n)
    Tm_mask = jnp.concatenate([T] * H, axis=1) > 0.5                    # (M, H*N)
    # relation-feature lane block of the concat scratch is layer-invariant: write once
    cat_ref[:, 2 * D:] = emb_rels_ref[...]

    emb_ent = emb_ent_ref[...]               # (N, D) f32 node state

    # TODO(synk): if num_layer_ent / hidden dims grow, switch this unrolled loop to
    # lax.fori_loop with dynamic w_*_ref[l] indexing to bound live ranges.
    for l in range(L):
        w_fused = w_fused_ref[l]             # (2D+Dr, 2*Dout) [attn_proj | 0-padded aggr_proj]
        b_fused = b_fused_ref[l]             # (1, 2*Dout)
        attn_hm = attn_hm_ref[l]             # (H, Dout) head selector pre-scaled by attn_vec
        w_res = w_res_ref[l]                 # (D, D)
        b_res = b_res_ref[l]                 # (1, D)

        # e_tail / e_head gathered in ONE MXU pass over the stacked one-hot operator,
        # written into the persistent concat scratch (emb_rels block left untouched).
        eth = mm(TH, emb_ent)                # (2M, D)
        cat_ref[:, 0:D] = eth[0:M, :]        # emb_ent[tail_idxs]
        cat_ref[:, D:2 * D] = eth[M:, :]     # emb_ent[head_idxs]
        cat = cat_ref[...]                   # (M, 2D+Dr)

        # fused attn_proj + aggr_proj: one matmul, static lane-split of the result
        za = mm(cat, w_fused) + b_fused      # (M, 2*Dout)
        z = za[:, :Dout]
        agg = za[:, Dout:]
        z = jnp.where(z >= 0, z, 0.2 * z)    # LeakyReLU(0.2)

        # per-head attention logits for ALL heads at once (attn_vec folded into attn_hm)
        raw = mm_nt(z, attn_hm)              # (M, H)

        # segment amax over tail nodes for all heads with ONE masked column max.
        # Lane layout h*N + n; the per-head expansion is a lane broadcast + concat
        # (VPU/XLU only -- no MXU round-trip, no (M, N*H) one-hot operand).
        raw_rep = jnp.concatenate(
            [jnp.broadcast_to(raw[:, h:h + 1], (M, N)) for h in range(H)], axis=1)
        mx = jnp.max(jnp.where(Tm_mask, raw_rep, NEG),
                     axis=0, keepdims=True)                              # (1, H*N)
        mx_hn = jnp.concatenate(
            [mx[:, h * N:(h + 1) * N] for h in range(H)], axis=0)        # (H, N)
        gmax = mm_nt(T, mx_hn)               # (M, H) = segment max at tail(m)

        # numerically-stable softmax over the incoming edges of each tail node
        val = jnp.exp(raw - gmax)            # (M, H)
        sums = mm_tn(T, val)                 # (N, H) segment sums
        gsum = mm(T, sums)                   # (M, H) sums[tail]
        beta = val / (gsum + 1e-6)           # (M, H)

        # per-head broadcast of beta over its dh-lane block (VPU), weighted
        # aggregation, scatter-add into tail nodes.
        beta_exp = jnp.concatenate(
            [jnp.broadcast_to(beta[:, h:h + 1], (M, dh)) for h in range(H)], axis=1)
        aggr = beta_exp * agg                # (M, Dout)
        output = mm_tn(T, aggr)              # (N, Dout) index_add over tails

        # Encoder_Entity glue (res_ent=True): emb = relu(layer) + relu(res_proj(emb))
        emb_ent = (jnp.maximum(output, 0.0)
                   + jnp.maximum(mm(emb_ent, w_res) + b_res, 0.0))

    emb_out_ref[...] = emb_ent
    g_out_ref[...] = jnp.mean(emb_ent, axis=0, keepdims=True)    # AvgPooling readout


# ---------------------------------------------------------------------------
# Wrapper: host-side glue (operators, fused/stacked weights) + single pallas_call
# ---------------------------------------------------------------------------
def _vmem_limit_bytes(arrays, extra_bytes=0):
    """VMEM limit derived from actual buffer sizes (review: no hard-coded 32 MiB)."""
    total = int(extra_bytes)
    for x in arrays:
        total += int(np.prod(x.shape)) * np.dtype(x.dtype).itemsize
    # ~4x headroom for in-kernel intermediates + pipelined DMA buffers; clamp so the
    # same code keeps headroom inside v7x's 64 MiB physical VMEM (128 MiB v5e/v6e).
    return int(min(max(4 * total, 8 * 1024 * 1024), 48 * 1024 * 1024))


@functools.partial(jax.jit, static_argnums=(6, 7))
def encoder_entity_pallas(emb_ent, emb_rel, heads, tails, rels, layer_params,
                          num_head, precision=None):
    """Forward pass of Encoder_Entity (res_ent=True) on a single graph."""
    N, D = emb_ent.shape
    Dr = emb_rel.shape[1]
    E = heads.shape[0]
    M = E + N
    Dout = layer_params[0]["w_att"].shape[1]
    assert Dout == D and Dout % num_head == 0
    dh = Dout // num_head
    f32 = jnp.float32

    # ---- graph operators (glue, fused by jit) --------------------------------
    # NOTE: self-loops are always appended (as in the module), so every node has at
    # least one tail edge and the in-kernel segment max is finite.
    arange_n = jnp.arange(N, dtype=tails.dtype)
    idx = jnp.concatenate([tails, arange_n, heads, arange_n])
    # stacked [T ; Hm] one-hot gather operator, bf16 (0/1 exact) to halve DMA bytes
    TH = jax.nn.one_hot(idx, N, dtype=jnp.bfloat16)                      # (2M, N)

    # ---- relation features (layer-invariant) moved out of the kernel ---------
    rel_edge = emb_rel[rels]                                             # (E, Dr)
    ent_freq = jnp.zeros((N,), f32).at[tails].add(jnp.ones((E,), f32))[:, None]
    self_rel = jnp.zeros((N, Dr), f32).at[tails].add(rel_edge) / (ent_freq + 1e-6)
    emb_rels = jnp.concatenate([rel_edge, self_rel], axis=0)             # (M, Dr)

    # ---- stacked per-layer parameters -----------------------------------------
    head_mask = jnp.repeat(jnp.eye(num_head, dtype=f32), dh, axis=1)     # (H, Dout)
    zeros_tail = jnp.zeros((D, Dout), f32)
    # fused [attn_proj | zero-padded aggr_proj] so both use ONE matmul on the shared
    # concatenated [e_tail | e_head | emb_rels] activation.
    w_fused = jnp.stack([
        jnp.concatenate(
            [lp["w_att"], jnp.concatenate([zeros_tail, lp["w_agg"]], axis=0)], axis=1)
        for lp in layer_params])                                         # (L, 2D+Dr, 2*Dout)
    b_fused = jnp.stack([jnp.concatenate([lp["b_att"], lp["b_agg"]], axis=1)
                         for lp in layer_params])                        # (L, 1, 2*Dout)
    attn_hm = jnp.stack([head_mask * lp["attn_vec"] for lp in layer_params])  # (L, H, Dout)
    w_res = jnp.stack([lp["w_res"] for lp in layer_params])              # (L, D, D)
    b_res = jnp.stack([lp["b_res"] for lp in layer_params])              # (L, 1, D)

    operands = (TH, emb_rels, emb_ent, w_fused, b_fused, attn_hm, w_res, b_res)
    out_shape = (jax.ShapeDtypeStruct((N, Dout), f32),
                 jax.ShapeDtypeStruct((1, Dout), f32))
    scratch_bytes = M * (2 * D + Dr) * 4                                 # concat scratch

    vmem = pl.BlockSpec(memory_space=pltpu.MemorySpace.VMEM)
    return pl.pallas_call(
        functools.partial(encoder_entity_kernel, precision=precision),
        out_shape=out_shape,
        in_specs=[vmem] * len(operands),
        out_specs=(vmem, vmem),
        scratch_shapes=[pltpu.VMEM((M, 2 * D + Dr), f32)],
        compiler_params=pltpu.CompilerParams(
            vmem_limit_bytes=_vmem_limit_bytes(list(operands) + list(out_shape),
                                               scratch_bytes)),
    )(*operands)


# ---------------------------------------------------------------------------
# Pure-JAX reference (mirrors the PyTorch code, exact index-based gathers)
# ---------------------------------------------------------------------------
def encoder_entity_ref(emb_ent, emb_rel, heads, tails, rels, layer_params, num_head):
    N, D = emb_ent.shape
    Dr = emb_rel.shape[1]
    E = heads.shape[0]
    Dout = layer_params[0]["w_att"].shape[1]
    dh = Dout // num_head
    for lp in layer_params:
        ones = jnp.ones((E,), jnp.float32)
        ent_freq = jnp.zeros((N,), jnp.float32).at[tails].add(ones)[:, None]
        self_rel = (jnp.zeros((N, Dr), jnp.float32).at[tails].add(emb_rel[rels])
                    / (ent_freq + 1e-6))
        emb_rels = jnp.concatenate([emb_rel[rels], self_rel], axis=0)
        hf = jnp.concatenate([heads, jnp.arange(N, dtype=heads.dtype)])
        tf_ = jnp.concatenate([tails, jnp.arange(N, dtype=tails.dtype)])
        cat_att = jnp.concatenate([emb_ent[tf_], emb_ent[hf], emb_rels], axis=-1)
        z = cat_att @ lp["w_att"] + lp["b_att"]
        z = jnp.where(z >= 0, z, 0.2 * z)
        M = z.shape[0]
        zr = z.reshape(M, num_head, dh)
        attn_raw = (zr * lp["attn_vec"].reshape(1, num_head, dh)).sum(-1, keepdims=True)
        amax = jnp.full((N, num_head, 1), -jnp.inf, jnp.float32).at[tf_].max(attn_raw)
        attn_val = jnp.exp(attn_raw - amax[tf_])
        asum = jnp.zeros((N, num_head, 1), jnp.float32).at[tf_].add(attn_val)
        beta = attn_val / (asum[tf_] + 1e-6)
        cat = jnp.concatenate([emb_ent[hf], emb_rels], axis=-1)
        aggr = beta * (cat @ lp["w_agg"] + lp["b_agg"]).reshape(M, num_head, dh)
        out = jnp.zeros((N, num_head, dh), jnp.float32).at[tf_].add(aggr).reshape(N, Dout)
        h = jnp.maximum(out, 0.0)
        emb_ent = h + jnp.maximum(emb_ent @ lp["w_res"] + lp["b_res"], 0.0)
    g_out = jnp.mean(emb_ent, axis=0, keepdims=True)
    return emb_ent, g_out


# ---------------------------------------------------------------------------
# Main
# ---------------------------------------------------------------------------
def _xavier(key, shape, fan_in, fan_out, gain=np.sqrt(2.0)):
    std = gain * np.sqrt(2.0 / (fan_in + fan_out))
    return (std * jax.random.normal(key, shape)).astype(jnp.float32)


if __name__ == "__main__":
    # config (args.*): hid_dim_ent=32, hid_dim_rel=16, num_head=4, num_layer_ent=2,
    # res_ent=True; graph: 16 nodes, 48 edges, 8 relation types.
    N, E, R = 16, 48, 8
    D, Dr = 32, 16
    num_head, num_layers = 4, 2
    dh = D // num_head

    key = jax.random.PRNGKey(0)
    keys = jax.random.split(key, 8 + 6 * num_layers)
    emb_ent0 = jax.random.normal(keys[0], (N, D), jnp.float32)
    emb_rel = jax.random.normal(keys[1], (R, Dr), jnp.float32)
    heads = jax.random.randint(keys[2], (E,), 0, N, jnp.int32)
    tails = jax.random.randint(keys[3], (E,), 0, N, jnp.int32)
    rels = jax.random.randint(keys[4], (E,), 0, R, jnp.int32)

    layer_params = []
    for l in range(num_layers):
        k = keys[8 + 6 * l: 8 + 6 * (l + 1)]
        layer_params.append({
            # stored transposed w.r.t. torch (x @ W convention)
            "w_att": _xavier(k[0], (2 * D + Dr, D), 2 * D + Dr, D),
            "b_att": jnp.zeros((1, D), jnp.float32),
            "attn_vec": _xavier(k[1], (1, D), num_head * dh, dh),
            "w_agg": _xavier(k[2], (D + Dr, D), D + Dr, D),
            "b_agg": jnp.zeros((1, D), jnp.float32),
            "w_res": _xavier(k[3], (D, D), D, D),
            "b_res": jnp.zeros((1, D), jnp.float32),
        })

    def rel_l2(a, b):
        return float(np.linalg.norm(a - b) / (np.linalg.norm(b) + 1e-12))

    # exact-index reference, (effectively) full-f32 matmul precision
    with jax.default_matmul_precision("highest"):
        emb_ref, g_ref = encoder_entity_ref(emb_ent0, emb_rel, heads, tails, rels,
                                            layer_params, num_head)
    emb_ref = np.asarray(jax.block_until_ready(emb_ref))
    g_ref = np.asarray(g_ref)

    # 1) validation run with precision=HIGHEST: tight tolerances catch any head/lane
    #    permutation or block-offset bug (per the correctness review).
    emb_hi, g_hi = encoder_entity_pallas(emb_ent0, emb_rel, heads, tails, rels,
                                         layer_params, num_head, lax.Precision.HIGHEST)
    emb_hi = np.asarray(jax.block_until_ready(emb_hi))
    g_hi = np.asarray(jax.block_until_ready(g_hi))
    assert emb_hi.shape == (N, D) and g_hi.shape == (1, D)
    assert rel_l2(emb_hi, emb_ref) < 1e-3, ("emb rel-L2 (HIGHEST)", rel_l2(emb_hi, emb_ref))
    assert rel_l2(g_hi, g_ref) < 1e-3, ("g rel-L2 (HIGHEST)", rel_l2(g_hi, g_ref))
    np.testing.assert_allclose(emb_hi, emb_ref, rtol=2e-3, atol=2e-3)
    np.testing.assert_allclose(g_hi, g_ref, rtol=2e-3, atol=2e-3)

    # 2) production run with compiler-default precision (bf16 MXU passes): loose check.
    emb_out, g_out = encoder_entity_pallas(emb_ent0, emb_rel, heads, tails, rels,
                                           layer_params, num_head, None)
    emb_out = np.asarray(jax.block_until_ready(emb_out))
    g_out = np.asarray(jax.block_until_ready(g_out))
    assert emb_out.shape == (N, D) and g_out.shape == (1, D)
    assert rel_l2(emb_out, emb_ref) < 5e-2, ("emb rel-L2", rel_l2(emb_out, emb_ref))
    assert rel_l2(g_out, g_ref) < 5e-2, ("g_out rel-L2", rel_l2(g_out, g_ref))
    np.testing.assert_allclose(emb_out, emb_ref, rtol=2e-1, atol=1e-1)
    np.testing.assert_allclose(g_out, g_ref, rtol=2e-1, atol=1e-1)
    print("KERNEL_OK")
</pallas_src>

<mosaic_0001>
module attributes {stable_mosaic.version = 11 : i64} {
  func.func @encoder_entity_kernel(%arg0: memref<128x16xbf16, #tpu.memory_space<vmem>>, %arg1: memref<64x16xf32, #tpu.memory_space<vmem>>, %arg2: memref<16x32xf32, #tpu.memory_space<vmem>>, %arg3: memref<2x80x64xf32, #tpu.memory_space<vmem>>, %arg4: memref<2x1x64xf32, #tpu.memory_space<vmem>>, %arg5: memref<2x4x32xf32, #tpu.memory_space<vmem>>, %arg6: memref<2x32x32xf32, #tpu.memory_space<vmem>>, %arg7: memref<2x1x32xf32, #tpu.memory_space<vmem>>, %arg8: memref<16x32xf32, #tpu.memory_space<vmem>>, %arg9: memref<1x32xf32, #tpu.memory_space<vmem>>, %arg10: memref<64x80xf32, #tpu.memory_space<vmem>>) attributes {dimension_semantics = [], scalar_prefetch = 0 : i64, scratch_operands = 1 : i64, tpu.core_type = #tpu.core_type<tc>} {
    %c0 = arith.constant 0 : index
    %c0_0 = arith.constant 0 : index
    %0 = vector.load %arg0[%c0, %c0_0] : memref<128x16xbf16, #tpu.memory_space<vmem>>, vector<128x16xbf16>
    %1 = arith.extf %0 : vector<128x16xbf16> to vector<128x16xf32>
    %2 = vector.extract_strided_slice %1 {offsets = [0, 0], sizes = [64, 16], strides = [1, 1]} : vector<128x16xf32> to vector<64x16xf32>
    %3 = tpu.concatenate %2, %2, %2, %2 in 1 : vector<64x16xf32>, vector<64x16xf32>, vector<64x16xf32>, vector<64x16xf32> -> vector<64x64xf32>
    %cst = arith.constant 5.000000e-01 : f32
    %4 = vector.broadcast %cst : f32 to vector<64x64xf32>
    %5 = arith.cmpf ogt, %3, %4 : vector<64x64xf32>
    %c0_1 = arith.constant 0 : index
    %c0_2 = arith.constant 0 : index
    %6 = vector.load %arg1[%c0_1, %c0_2] : memref<64x16xf32, #tpu.memory_space<vmem>>, vector<64x16xf32>
    %c0_3 = arith.constant 0 : index
    %c64 = arith.constant 64 : index
    %7 = vector.load %arg10[%c0_3, %c64] : memref<64x80xf32, #tpu.memory_space<vmem>>, vector<64x16xf32>
    tpu.vector_store %arg10[%c0_3, %c64], %6 {strides = array<i32>} : memref<64x80xf32, #tpu.memory_space<vmem>>, vector<64x16xf32>,
    %c0_4 = arith.constant 0 : index
    %c0_5 = arith.constant 0 : index
    %8 = vector.load %arg2[%c0_4, %c0_5] : memref<16x32xf32, #tpu.memory_space<vmem>>, vector<16x32xf32>
    %c0_6 = arith.constant 0 : index
    %c0_7 = arith.constant 0 : index
    %c0_8 = arith.constant 0 : index
    %9 = vector.load %arg3[%c0_6, %c0_7, %c0_8] : memref<2x80x64xf32, #tpu.memory_space<vmem>>, vector<1x80x64xf32>
    %10 = vector.shape_cast %9 : vector<1x80x64xf32> to vector<80x64xf32>
    %c0_9 = arith.constant 0 : index
    %c0_10 = arith.constant 0 : index
    %c0_11 = arith.constant 0 : index
    %11 = vector.load %arg4[%c0_9, %c0_10, %c0_11] : memref<2x1x64xf32, #tpu.memory_space<vmem>>, vector<1x1x64xf32>
    %12 = vector.shape_cast %11 : vector<1x1x64xf32> to vector<1x64xf32>
    %c0_12 = arith.constant 0 : index
    %c0_13 = arith.constant 0 : index
    %c0_14 = arith.constant 0 : index
    %13 = vector.load %arg5[%c0_12, %c0_13, %c0_14] : memref<2x4x32xf32, #tpu.memory_space<vmem>>, vector<1x4x32xf32>
    %14 = vector.shape_cast %13 : vector<1x4x32xf32> to vector<4x32xf32>
    %c0_15 = arith.constant 0 : index
    %c0_16 = arith.constant 0 : index
    %c0_17 = arith.constant 0 : index
    %15 = vector.load %arg6[%c0_15, %c0_16, %c0_17] : memref<2x32x32xf32, #tpu.memory_space<vmem>>, vector<1x32x32xf32>
    %16 = vector.shape_cast %15 : vector<1x32x32xf32> to vector<32x32xf32>
    %c0_18 = arith.constant 0 : index
    %c0_19 = arith.constant 0 : index
    %c0_20 = arith.constant 0 : index
    %17 = vector.load %arg7[%c0_18, %c0_19, %c0_20] : memref<2x1x32xf32, #tpu.memory_space<vmem>>, vector<1x1x32xf32>
    %18 = vector.shape_cast %17 : vector<1x1x32xf32> to vector<1x32xf32>
    %cst_21 = arith.constant dense<0.000000e+00> : vector<128x32xf32>
    %19 = tpu.matmul %1, %8, %cst_21 {dimension_numbers = #tpu.dot_dimension_numbers<[1], [0], [0], [1], [0, 0, 1, 1], [], []>, precision = #tpu.contract_precision<fp32>} : vector<128x16xf32>, vector<16x32xf32>, vector<128x32xf32> -> vector<128x32xf32>
    %20 = vector.extract_strided_slice %19 {offsets = [0, 0], sizes = [64, 32], strides = [1, 1]} : vector<128x32xf32> to vector<64x32xf32>
    %c0_22 = arith.constant 0 : index
    %c0_23 = arith.constant 0 : index
    %21 = vector.load %arg10[%c0_22, %c0_23] : memref<64x80xf32, #tpu.memory_space<vmem>>, vector<64x32xf32>
    tpu.vector_store %arg10[%c0_22, %c0_23], %20 {strides = array<i32>} : memref<64x80xf32, #tpu.memory_space<vmem>>, vector<64x32xf32>,
    %22 = vector.extract_strided_slice %19 {offsets = [64, 0], sizes = [64, 32], strides = [1, 1]} : vector<128x32xf32> to vector<64x32xf32>
    %c0_24 = arith.constant 0 : index
    %c32 = arith.constant 32 : index
    %23 = vector.load %arg10[%c0_24, %c32] : memref<64x80xf32, #tpu.memory_space<vmem>>, vector<64x32xf32>
    tpu.vector_store %arg10[%c0_24, %c32], %22 {strides = array<i32>} : memref<64x80xf32, #tpu.memory_space<vmem>>, vector<64x32xf32>,
    %c0_25 = arith.constant 0 : index
    %c0_26 = arith.constant 0 : index
    %24 = vector.load %arg10[%c0_25, %c0_26] : memref<64x80xf32, #tpu.memory_space<vmem>>, vector<64x80xf32>
    %cst_27 = arith.constant dense<0.000000e+00> : vector<64x64xf32>
    %25 = tpu.matmul %24, %10, %cst_27 {dimension_numbers = #tpu.dot_dimension_numbers<[1], [0], [0], [1], [0, 0, 1, 1], [], []>, precision = #tpu.contract_precision<fp32>} : vector<64x80xf32>, vector<80x64xf32>, vector<64x64xf32> -> vector<64x64xf32>
    %26 = vector.broadcast %12 : vector<1x64xf32> to vector<64x64xf32>
    %27 = arith.addf %25, %26 : vector<64x64xf32>
    %28 = vector.extract_strided_slice %27 {offsets = [0, 0], sizes = [64, 32], strides = [1, 1]} : vector<64x64xf32> to vector<64x32xf32>
    %29 = vector.extract_strided_slice %27 {offsets = [0, 32], sizes = [64, 32], strides = [1, 1]} : vector<64x64xf32> to vector<64x32xf32>
    %cst_28 = arith.constant 0.000000e+00 : f32
    %30 = vector.broadcast %cst_28 : f32 to vector<64x32xf32>
    %31 = arith.cmpf oge, %28, %30 : vector<64x32xf32>
    %cst_29 = arith.constant 2.000000e-01 : f32
    %32 = vector.broadcast %cst_29 : f32 to vector<64x32xf32>
    %33 = arith.mulf %32, %28 : vector<64x32xf32>
    %34 = arith.select %31, %28, %33 : vector<64x32xi1>, vector<64x32xf32>
    %cst_30 = arith.constant dense<0.000000e+00> : vector<64x4xf32>
    %35 = tpu.matmul %34, %14, %cst_30 {dimension_numbers = #tpu.dot_dimension_numbers<[1], [1], [0], [0], [0, 0, 1, 0], [], []>, precision = #tpu.contract_precision<fp32>} : vector<64x32xf32>, vector<4x32xf32>, vector<64x4xf32> -> vector<64x4xf32>
    %36 = vector.extract_strided_slice %35 {offsets = [0, 0], sizes = [64, 1], strides = [1, 1]} : vector<64x4xf32> to vector<64x1xf32>
    %37 = vector.shape_cast %36 : vector<64x1xf32> to vector<64x1xf32>
    %38 = vector.broadcast %37 : vector<64x1xf32> to vector<64x16xf32>
    %39 = vector.extract_strided_slice %35 {offsets = [0, 1], sizes = [64, 1], strides = [1, 1]} : vector<64x4xf32> to vector<64x1xf32>
    %40 = vector.shape_cast %39 : vector<64x1xf32> to vector<64x1xf32>
    %41 = vector.broadcast %40 : vector<64x1xf32> to vector<64x16xf32>
    %42 = vector.extract_strided_slice %35 {offsets = [0, 2], sizes = [64, 1], strides = [1, 1]} : vector<64x4xf32> to vector<64x1xf32>
    %43 = vector.shape_cast %42 : vector<64x1xf32> to vector<64x1xf32>
    %44 = vector.broadcast %43 : vector<64x1xf32> to vector<64x16xf32>
    %45 = vector.extract_strided_slice %35 {offsets = [0, 3], sizes = [64, 1], strides = [1, 1]} : vector<64x4xf32> to vector<64x1xf32>
    %46 = vector.shape_cast %45 : vector<64x1xf32> to vector<64x1xf32>
    %47 = vector.broadcast %46 : vector<64x1xf32> to vector<64x16xf32>
    %48 = tpu.concatenate %38, %41, %44, %47 in 1 : vector<64x16xf32>, vector<64x16xf32>, vector<64x16xf32>, vector<64x16xf32> -> vector<64x64xf32>
    %cst_31 = arith.constant -1.000000e+30 : f32
    %49 = vector.broadcast %cst_31 : f32 to vector<64x64xf32>
    %50 = arith.select %5, %48, %49 : vector<64x64xi1>, vector<64x64xf32>
    %cst_32 = arith.constant dense<0xFF800000> : vector<64xf32>
    %51 = vector.multi_reduction <maximumf>, %50, %cst_32 [0] : vector<64x64xf32> to vector<64xf32>
    %52 = vector.shape_cast %51 : vector<64xf32> to vector<1x64xf32>
    %53 = vector.extract_strided_slice %52 {offsets = [0, 0], sizes = [1, 16], strides = [1, 1]} : vector<1x64xf32> to vector<1x16xf32>
    %54 = vector.extract_strided_slice %52 {offsets = [0, 16], sizes = [1, 16], strides = [1, 1]} : vector<1x64xf32> to vector<1x16xf32>
    %55 = vector.extract_strided_slice %52 {offsets = [0, 32], sizes = [1, 16], strides = [1, 1]} : vector<1x64xf32> to vector<1x16xf32>
    %56 = vector.extract_strided_slice %52 {offsets = [0, 48], sizes = [1, 16], strides = [1, 1]} : vector<1x64xf32> to vector<1x16xf32>
    %57 = tpu.concatenate %53, %54, %55, %56 in 0 : vector<1x16xf32>, vector<1x16xf32>, vector<1x16xf32>, vector<1x16xf32> -> vector<4x16xf32>
    %cst_33 = arith.constant dense<0.000000e+00> : vector<64x4xf32>
    %58 = tpu.matmul %2, %57, %cst_33 {dimension_numbers = #tpu.dot_dimension_numbers<[1], [1], [0], [0], [0, 0, 1, 0], [], []>, precision = #tpu.contract_precision<fp32>} : vector<64x16xf32>, vector<4x16xf32>, vector<64x4xf32> -> vector<64x4xf32>
    %59 = arith.subf %35, %58 : vector<64x4xf32>
    %60 = math.exp %59 : vector<64x4xf32>
    %cst_34 = arith.constant dense<0.000000e+00> : vector<16x4xf32>
    %61 = tpu.matmul %2, %60, %cst_34 {dimension_numbers = #tpu.dot_dimension_numbers<[0], [0], [1], [1], [0, 1, 1, 1], [], []>, precision = #tpu.contract_precision<fp32>} : vector<64x16xf32>, vector<64x4xf32>, vector<16x4xf32> -> vector<16x4xf32>
    %cst_35 = arith.constant dense<0.000000e+00> : vector<64x4xf32>
    %62 = tpu.matmul %2, %61, %cst_35 {dimension_numbers = #tpu.dot_dimension_numbers<[1], [0], [0], [1], [0, 0, 1, 1], [], []>, precision = #tpu.contract_precision<fp32>} : vector<64x16xf32>, vector<16x4xf32>, vector<64x4xf32> -> vector<64x4xf32>
    %cst_36 = arith.constant 9.99999997E-7 : f32
    %63 = vector.broadcast %cst_36 : f32 to vector<64x4xf32>
    %64 = arith.addf %62, %63 : vector<64x4xf32>
    %65 = arith.divf %60, %64 : vector<64x4xf32>
    %66 = vector.extract_strided_slice %65 {offsets = [0, 0], sizes = [64, 1], strides = [1, 1]} : vector<64x4xf32> to vector<64x1xf32>
    %67 = vector.shape_cast %66 : vector<64x1xf32> to vector<64x1xf32>
    %68 = vector.broadcast %67 : vector<64x1xf32> to vector<64x8xf32>
    %69 = vector.extract_strided_slice %65 {offsets = [0, 1], sizes = [64, 1], strides = [1, 1]} : vector<64x4xf32> to vector<64x1xf32>
    %70 = vector.shape_cast %69 : vector<64x1xf32> to vector<64x1xf32>
    %71 = vector.broadcast %70 : vector<64x1xf32> to vector<64x8xf32>
    %72 = vector.extract_strided_slice %65 {offsets = [0, 2], sizes = [64, 1], strides = [1, 1]} : vector<64x4xf32> to vector<64x1xf32>
    %73 = vector.shape_cast %72 : vector<64x1xf32> to vector<64x1xf32>
    %74 = vector.broadcast %73 : vector<64x1xf32> to vector<64x8xf32>
    %75 = vector.extract_strided_slice %65 {offsets = [0, 3], sizes = [64, 1], strides = [1, 1]} : vector<64x4xf32> to vector<64x1xf32>
    %76 = vector.shape_cast %75 : vector<64x1xf32> to vector<64x1xf32>
    %77 = vector.broadcast %76 : vector<64x1xf32> to vector<64x8xf32>
    %78 = tpu.concatenate %68, %71, %74, %77 in 1 : vector<64x8xf32>, vector<64x8xf32>, vector<64x8xf32>, vector<64x8xf32> -> vector<64x32xf32>
    %79 = arith.mulf %78, %29 : vector<64x32xf32>
    %cst_37 = arith.constant dense<0.000000e+00> : vector<16x32xf32>
    %80 = tpu.matmul %2, %79, %cst_37 {dimension_numbers = #tpu.dot_dimension_numbers<[0], [0], [1], [1], [0, 1, 1, 1], [], []>, precision = #tpu.contract_precision<fp32>} : vector<64x16xf32>, vector<64x32xf32>, vector<16x32xf32> -> vector<16x32xf32>
    %cst_38 = arith.constant 0.000000e+00 : f32
    %81 = vector.broadcast %cst_38 : f32 to vector<16x32xf32>
    %82 = arith.maximumf %80, %81 : vector<16x32xf32>
    %cst_39 = arith.constant dense<0.000000e+00> : vector<16x32xf32>
    %83 = tpu.matmul %8, %16, %cst_39 {dimension_numbers = #tpu.dot_dimension_numbers<[1], [0], [0], [1], [0, 0, 1, 1], [], []>, precision = #tpu.contract_precision<fp32>} : vector<16x32xf32>, vector<32x32xf32>, vector<16x32xf32> -> vector<16x32xf32>
    %84 = vector.broadcast %18 : vector<1x32xf32> to vector<16x32xf32>
    %85 = arith.addf %83, %84 : vector<16x32xf32>
    %cst_40 = arith.constant 0.000000e+00 : f32
    %86 = vector.broadcast %cst_40 : f32 to vector<16x32xf32>
    %87 = arith.maximumf %85, %86 : vector<16x32xf32>
    %88 = arith.addf %82, %87 : vector<16x32xf32>
    %c1 = arith.constant 1 : index
    %c0_41 = arith.constant 0 : index
    %c0_42 = arith.constant 0 : index
    %89 = vector.load %arg3[%c1, %c0_41, %c0_42] : memref<2x80x64xf32, #tpu.memory_space<vmem>>, vector<1x80x64xf32>
    %90 = vector.shape_cast %89 : vector<1x80x64xf32> to vector<80x64xf32>
    %c1_43 = arith.constant 1 : index
    %c0_44 = arith.constant 0 : index
    %c0_45 = arith.constant 0 : index
    %91 = vector.load %arg4[%c1_43, %c0_44, %c0_45] : memref<2x1x64xf32, #tpu.memory_space<vmem>>, vector<1x1x64xf32>
    %92 = vector.shape_cast %91 : vector<1x1x64xf32> to vector<1x64xf32>
    %c1_46 = arith.constant 1 : index
    %c0_47 = arith.constant 0 : index
    %c0_48 = arith.constant 0 : index
    %93 = vector.load %arg5[%c1_46, %c0_47, %c0_48] : memref<2x4x32xf32, #tpu.memory_space<vmem>>, vector<1x4x32xf32>
    %94 = vector.shape_cast %93 : vector<1x4x32xf32> to vector<4x32xf32>
    %c1_49 = arith.constant 1 : index
    %c0_50 = arith.constant 0 : index
    %c0_51 = arith.constant 0 : index
    %95 = vector.load %arg6[%c1_49, %c0_50, %c0_51] : memref<2x32x32xf32, #tpu.memory_space<vmem>>, vector<1x32x32xf32>
    %96 = vector.shape_cast %95 : vector<1x32x32xf32> to vector<32x32xf32>
    %c1_52 = arith.constant 1 : index
    %c0_53 = arith.constant 0 : index
    %c0_54 = arith.constant 0 : index
    %97 = vector.load %arg7[%c1_52, %c0_53, %c0_54] : memref<2x1x32xf32, #tpu.memory_space<vmem>>, vector<1x1x32xf32>
    %98 = vector.shape_cast %97 : vector<1x1x32xf32> to vector<1x32xf32>
    %cst_55 = arith.constant dense<0.000000e+00> : vector<128x32xf32>
    %99 = tpu.matmul %1, %88, %cst_55 {dimension_numbers = #tpu.dot_dimension_numbers<[1], [0], [0], [1], [0, 0, 1, 1], [], []>, precision = #tpu.contract_precision<fp32>} : vector<128x16xf32>, vector<16x32xf32>, vector<128x32xf32> -> vector<128x32xf32>
    %100 = vector.extract_strided_slice %99 {offsets = [0, 0], sizes = [64, 32], strides = [1, 1]} : vector<128x32xf32> to vector<64x32xf32>
    %c0_56 = arith.constant 0 : index
    %c0_57 = arith.constant 0 : index
    %101 = vector.load %arg10[%c0_56, %c0_57] : memref<64x80xf32, #tpu.memory_space<vmem>>, vector<64x32xf32>
    tpu.vector_store %arg10[%c0_56, %c0_57], %100 {strides = array<i32>} : memref<64x80xf32, #tpu.memory_space<vmem>>, vector<64x32xf32>,
    %102 = vector.extract_strided_slice %99 {offsets = [64, 0], sizes = [64, 32], strides = [1, 1]} : vector<128x32xf32> to vector<64x32xf32>
    %c0_58 = arith.constant 0 : index
    %c32_59 = arith.constant 32 : index
    %103 = vector.load %arg10[%c0_58, %c32_59] : memref<64x80xf32, #tpu.memory_space<vmem>>, vector<64x32xf32>
    tpu.vector_store %arg10[%c0_58, %c32_59], %102 {strides = array<i32>} : memref<64x80xf32, #tpu.memory_space<vmem>>, vector<64x32xf32>,
    %c0_60 = arith.constant 0 : index
    %c0_61 = arith.constant 0 : index
    %104 = vector.load %arg10[%c0_60, %c0_61] : memref<64x80xf32, #tpu.memory_space<vmem>>, vector<64x80xf32>
    %cst_62 = arith.constant dense<0.000000e+00> : vector<64x64xf32>
    %105 = tpu.matmul %104, %90, %cst_62 {dimension_numbers = #tpu.dot_dimension_numbers<[1], [0], [0], [1], [0, 0, 1, 1], [], []>, precision = #tpu.contract_precision<fp32>} : vector<64x80xf32>, vector<80x64xf32>, vector<64x64xf32> -> vector<64x64xf32>
    %106 = vector.broadcast %92 : vector<1x64xf32> to vector<64x64xf32>
    %107 = arith.addf %105, %106 : vector<64x64xf32>
    %108 = vector.extract_strided_slice %107 {offsets = [0, 0], sizes = [64, 32], strides = [1, 1]} : vector<64x64xf32> to vector<64x32xf32>
    %109 = vector.extract_strided_slice %107 {offsets = [0, 32], sizes = [64, 32], strides = [1, 1]} : vector<64x64xf32> to vector<64x32xf32>
    %cst_63 = arith.constant 0.000000e+00 : f32
    %110 = vector.broadcast %cst_63 : f32 to vector<64x32xf32>
    %111 = arith.cmpf oge, %108, %110 : vector<64x32xf32>
    %cst_64 = arith.constant 2.000000e-01 : f32
    %112 = vector.broadcast %cst_64 : f32 to vector<64x32xf32>
    %113 = arith.mulf %112, %108 : vector<64x32xf32>
    %114 = arith.select %111, %108, %113 : vector<64x32xi1>, vector<64x32xf32>
    %cst_65 = arith.constant dense<0.000000e+00> : vector<64x4xf32>
    %115 = tpu.matmul %114, %94, %cst_65 {dimension_numbers = #tpu.dot_dimension_numbers<[1], [1], [0], [0], [0, 0, 1, 0], [], []>, precision = #tpu.contract_precision<fp32>} : vector<64x32xf32>, vector<4x32xf32>, vector<64x4xf32> -> vector<64x4xf32>
    %116 = vector.extract_strided_slice %115 {offsets = [0, 0], sizes = [64, 1], strides = [1, 1]} : vector<64x4xf32> to vector<64x1xf32>
    %117 = vector.shape_cast %116 : vector<64x1xf32> to vector<64x1xf32>
    %118 = vector.broadcast %117 : vector<64x1xf32> to vector<64x16xf32>
    %119 = vector.extract_strided_slice %115 {offsets = [0, 1], sizes = [64, 1], strides = [1, 1]} : vector<64x4xf32> to vector<64x1xf32>
    %120 = vector.shape_cast %119 : vector<64x1xf32> to vector<64x1xf32>
    %121 = vector.broadcast %120 : vector<64x1xf32> to vector<64x16xf32>
    %122 = vector.extract_strided_slice %115 {offsets = [0, 2], sizes = [64, 1], strides = [1, 1]} : vector<64x4xf32> to vector<64x1xf32>
    %123 = vector.shape_cast %122 : vector<64x1xf32> to vector<64x1xf32>
    %124 = vector.broadcast %123 : vector<64x1xf32> to vector<64x16xf32>
    %125 = vector.extract_strided_slice %115 {offsets = [0, 3], sizes = [64, 1], strides = [1, 1]} : vector<64x4xf32> to vector<64x1xf32>
    %126 = vector.shape_cast %125 : vector<64x1xf32> to vector<64x1xf32>
    %127 = vector.broadcast %126 : vector<64x1xf32> to vector<64x16xf32>
    %128 = tpu.concatenate %118, %121, %124, %127 in 1 : vector<64x16xf32>, vector<64x16xf32>, vector<64x16xf32>, vector<64x16xf32> -> vector<64x64xf32>
    %cst_66 = arith.constant -1.000000e+30 : f32
    %129 = vector.broadcast %cst_66 : f32 to vector<64x64xf32>
    %130 = arith.select %5, %128, %129 : vector<64x64xi1>, vector<64x64xf32>
    %cst_67 = arith.constant dense<0xFF800000> : vector<64xf32>
    %131 = vector.multi_reduction <maximumf>, %130, %cst_67 [0] : vector<64x64xf32> to vector<64xf32>
    %132 = vector.shape_cast %131 : vector<64xf32> to vector<1x64xf32>
    %133 = vector.extract_strided_slice %132 {offsets = [0, 0], sizes = [1, 16], strides = [1, 1]} : vector<1x64xf32> to vector<1x16xf32>
    %134 = vector.extract_strided_slice %132 {offsets = [0, 16], sizes = [1, 16], strides = [1, 1]} : vector<1x64xf32> to vector<1x16xf32>
    %135 = vector.extract_strided_slice %132 {offsets = [0, 32], sizes = [1, 16], strides = [1, 1]} : vector<1x64xf32> to vector<1x16xf32>
    %136 = vector.extract_strided_slice %132 {offsets = [0, 48], sizes = [1, 16], strides = [1, 1]} : vector<1x64xf32> to vector<1x16xf32>
    %137 = tpu.concatenate %133, %134, %135, %136 in 0 : vector<1x16xf32>, vector<1x16xf32>, vector<1x16xf32>, vector<1x16xf32> -> vector<4x16xf32>
    %cst_68 = arith.constant dense<0.000000e+00> : vector<64x4xf32>
    %138 = tpu.matmul %2, %137, %cst_68 {dimension_numbers = #tpu.dot_dimension_numbers<[1], [1], [0], [0], [0, 0, 1, 0], [], []>, precision = #tpu.contract_precision<fp32>} : vector<64x16xf32>, vector<4x16xf32>, vector<64x4xf32> -> vector<64x4xf32>
    %139 = arith.subf %115, %138 : vector<64x4xf32>
    %140 = math.exp %139 : vector<64x4xf32>
    %cst_69 = arith.constant dense<0.000000e+00> : vector<16x4xf32>
    %141 = tpu.matmul %2, %140, %cst_69 {dimension_numbers = #tpu.dot_dimension_numbers<[0], [0], [1], [1], [0, 1, 1, 1], [], []>, precision = #tpu.contract_precision<fp32>} : vector<64x16xf32>, vector<64x4xf32>, vector<16x4xf32> -> vector<16x4xf32>
    %cst_70 = arith.constant dense<0.000000e+00> : vector<64x4xf32>
    %142 = tpu.matmul %2, %141, %cst_70 {dimension_numbers = #tpu.dot_dimension_numbers<[1], [0], [0], [1], [0, 0, 1, 1], [], []>, precision = #tpu.contract_precision<fp32>} : vector<64x16xf32>, vector<16x4xf32>, vector<64x4xf32> -> vector<64x4xf32>
    %cst_71 = arith.constant 9.99999997E-7 : f32
    %143 = vector.broadcast %cst_71 : f32 to vector<64x4xf32>
    %144 = arith.addf %142, %143 : vector<64x4xf32>
    %145 = arith.divf %140, %144 : vector<64x4xf32>
    %146 = vector.extract_strided_slice %145 {offsets = [0, 0], sizes = [64, 1], strides = [1, 1]} : vector<64x4xf32> to vector<64x1xf32>
    %147 = vector.shape_cast %146 : vector<64x1xf32> to vector<64x1xf32>
    %148 = vector.broadcast %147 : vector<64x1xf32> to vector<64x8xf32>
    %149 = vector.extract_strided_slice %145 {offsets = [0, 1], sizes = [64, 1], strides = [1, 1]} : vector<64x4xf32> to vector<64x1xf32>
    %150 = vector.shape_cast %149 : vector<64x1xf32> to vector<64x1xf32>
    %151 = vector.broadcast %150 : vector<64x1xf32> to vector<64x8xf32>
    %152 = vector.extract_strided_slice %145 {offsets = [0, 2], sizes = [64, 1], strides = [1, 1]} : vector<64x4xf32> to vector<64x1xf32>
    %153 = vector.shape_cast %152 : vector<64x1xf32> to vector<64x1xf32>
    %154 = vector.broadcast %153 : vector<64x1xf32> to vector<64x8xf32>
    %155 = vector.extract_strided_slice %145 {offsets = [0, 3], sizes = [64, 1], strides = [1, 1]} : vector<64x4xf32> to vector<64x1xf32>
    %156 = vector.shape_cast %155 : vector<64x1xf32> to vector<64x1xf32>
    %157 = vector.broadcast %156 : vector<64x1xf32> to vector<64x8xf32>
    %158 = tpu.concatenate %148, %151, %154, %157 in 1 : vector<64x8xf32>, vector<64x8xf32>, vector<64x8xf32>, vector<64x8xf32> -> vector<64x32xf32>
    %159 = arith.mulf %158, %109 : vector<64x32xf32>
    %cst_72 = arith.constant dense<0.000000e+00> : vector<16x32xf32>
    %160 = tpu.matmul %2, %159, %cst_72 {dimension_numbers = #tpu.dot_dimension_numbers<[0], [0], [1], [1], [0, 1, 1, 1], [], []>, precision = #tpu.contract_precision<fp32>} : vector<64x16xf32>, vector<64x32xf32>, vector<16x32xf32> -> vector<16x32xf32>
    %cst_73 = arith.constant 0.000000e+00 : f32
    %161 = vector.broadcast %cst_73 : f32 to vector<16x32xf32>
    %162 = arith.maximumf %160, %161 : vector<16x32xf32>
    %cst_74 = arith.constant dense<0.000000e+00> : vector<16x32xf32>
    %163 = tpu.matmul %88, %96, %cst_74 {dimension_numbers = #tpu.dot_dimension_numbers<[1], [0], [0], [1], [0, 0, 1, 1], [], []>, precision = #tpu.contract_precision<fp32>} : vector<16x32xf32>, vector<32x32xf32>, vector<16x32xf32> -> vector<16x32xf32>
    %164 = vector.broadcast %98 : vector<1x32xf32> to vector<16x32xf32>
    %165 = arith.addf %163, %164 : vector<16x32xf32>
    %cst_75 = arith.constant 0.000000e+00 : f32
    %166 = vector.broadcast %cst_75 : f32 to vector<16x32xf32>
    %167 = arith.maximumf %165, %166 : vector<16x32xf32>
    %168 = arith.addf %162, %167 : vector<16x32xf32>
    %c0_76 = arith.constant 0 : index
    %c0_77 = arith.constant 0 : index
    %169 = vector.load %arg8[%c0_76, %c0_77] : memref<16x32xf32, #tpu.memory_space<vmem>>, vector<16x32xf32>
    tpu.vector_store %arg8[%c0_76, %c0_77], %168 {strides = array<i32>} : memref<16x32xf32, #tpu.memory_space<vmem>>, vector<16x32xf32>,
    %cst_78 = arith.constant dense<0.000000e+00> : vector<32xf32>
    %170 = vector.multi_reduction <add>, %168, %cst_78 [0] : vector<16x32xf32> to vector<32xf32>
    %171 = vector.shape_cast %170 : vector<32xf32> to vector<1x32xf32>
    %cst_79 = arith.constant 1.600000e+01 : f32
    %172 = vector.broadcast %cst_79 : f32 to vector<1x32xf32>
    %173 = arith.divf %171, %172 : vector<1x32xf32>
    %c0_80 = arith.constant 0 : index
    %c0_81 = arith.constant 0 : index
    %174 = vector.load %arg9[%c0_80, %c0_81] : memref<1x32xf32, #tpu.memory_space<vmem>>, vector<1x32xf32>
    tpu.vector_store %arg9[%c0_80, %c0_81], %173 {strides = array<i32>} : memref<1x32xf32, #tpu.memory_space<vmem>>, vector<1x32xf32>,
    return
  }
}

</mosaic_0001>

<bundles_post_ra>
// kernel: encoder_entity_pallas.1
= control target key start
LH: loop header
LB: loop body
LE: loop exit
PB: predicated region body
PF: predicated region fallthrough
CT: control target
= control target key end

     0   :  { %15 = vsyncpa [#allocation4], 0  ;;  %vm145_vm0 = vcmask 130048   ;;  %s11554_s0 = inlined_call_operand.vmem [shape: bf16[128,16], index: 0, kind: input, shape index: {}]   ;;  %s11555_s1 = inlined_call_operand.vmem [shape: f32[64,16], index: 1, kind: input, shape index: {}]   ;;  %s11556_s2 = inlined_call_operand.vmem [shape: f32[16,32], index: 2, kind: input, shape index: {}]   ;;  %s11557_s3 = inlined_call_operand.vmem [shape: f32[2,80,64], index: 3, kind: input, shape index: {}]   ;;  %s11558_s4 = inlined_call_operand.vmem [shape: f32[2,1,64], index: 4, kind: input, shape index: {}]   ;;  %s11559_s5 = inlined_call_operand.vmem [shape: f32[2,4,32], index: 5, kind: input, shape index: {}]   ;;  %s11560_s6 = inlined_call_operand.vmem [shape: f32[2,32,32], index: 6, kind: input, shape index: {}]   ;;  %s11561_s7 = inlined_call_operand.vmem [shape: f32[2,1,32], index: 7, kind: input, shape index: {}]   ;;  %s11562_s8 = inlined_call_operand.hbm [shape: f32[16,32], index: 8, kind: output, shape index: {0}]   ;;  %s11563_s9 = inlined_call_operand.hbm [shape: f32[1,32], index: 9, kind: output, shape index: {1}]  }
   0x1   :  { %v230_v0 = vld [vmem:[%s11556_s2 + $0x8] sm:$0xff]  ;;  %v229_v1 = vld [vmem:[%s11556_s2] sm:$0xff] }
   0x2   :  { %v7933_v2 = vld [vmem:[%s11554_s0] sm:$0xff]   ;;  %v302_v3 = vand.u32 4294901760, %v230_v0  ;;  %v304_v4 = vand.u32 4294901760, %v229_v1  ;;  %v7964_v7 = vld [vmem:[%s11554_s0 + $0x8] sm:$0xff]  }
   0x3   :  { %v8364_v5 = vunpack.c.l.bf16 %v7933_v2  ;;  %v8366_v6 = vunpack.c.h.bf16 %v7933_v2 }
   0x4   :  { %v450_v8 = vsub.f32 %v230_v0, %v302_v3  ;;  %303 = vmatpush.msra.mxu0 %v302_v3  ;;  %v456_v9 = vsub.f32 %v229_v1, %v304_v4  ;;  %642 = vmatpush.msra.mxu3 %v302_v3 }
   0x5   :  { %11768 = vst [vmem:[#allocation9_spill] sm:$0xff] %v8364_v5 }
   0x6   :  { %11769 = vst [vmem:[#allocation10_spill] sm:$0xff] %v8366_v6 }
   0x7   :  { %16 = vsyncpa [#allocation6], 0  ;;  %v248_v10 = vsel %vm145_vm0, %v8364_v5, 0  ;;  %v250_v11 = vsel %vm145_vm0, %v8366_v6, 0  ;;  %542 = vmatpush.msra.mxu2 %v450_v8  ;;  %305 = vmatpush.msra.mxu0 %v304_v4  ;;  %v451_v13 = vand.u32 4294901760, %v450_v8  ;;  %v457_v14 = vand.u32 4294901760, %v456_v9 }
   0x8   :  { %v8375_v12 = vsub.f32 %v248_v10, %v248_v10  ;;  %v8377_v15 = vsub.f32 %v250_v11, %v250_v11  ;;  %644 = vmatpush.msra.mxu3 %v304_v4  ;;  %v8379_v16 = vunpack.c.l.bf16 %v7964_v7  ;;  %v8402_v28 = vunpack.c.h.bf16 %v7964_v7  ;;  %v7965_v32 = vld [vmem:[%s11554_s0 + $0x10] sm:$0xff]   ;;  %v7966_v45 = vld [vmem:[%s11554_s0 + $0x18] sm:$0xff]   ;;  %v7967_v58 = vld [vmem:[%s11554_s0 + $0x20] sm:$0xff]   ;;  %s8289_s30 = smov 64   ;;  %s8290_s14 = smov 32  }
   0x9   :  { %545 = vmatpush.msra.mxu2 %v456_v9  ;;  %v452_v17 = vsub.f32 %v450_v8, %v451_v13  ;;  %v458_v19 = vsub.f32 %v456_v9, %v457_v14  ;;  %759 = vmatpush.msrb.mxu0 %v451_v13  ;;  %v8423_v35 = vunpack.c.l.bf16 %v7965_v32  ;;  %v8441_v41 = vunpack.c.h.bf16 %v7965_v32  ;;  %v7968_v9 = vld [vmem:[%s11554_s0 + $0x28] sm:$0xff]   ;;  %v7969_v32 = vld [vmem:[%s11554_s0 + $0x30] sm:$0xff]   ;;  %s8291_s27 = smov 16   ;;  %s8292_s28 = smov 48  }
   0xa   :  { %11770 = vst [vmem:[#allocation11_spill] sm:$0xff] %v8375_v12  ;;  %v8382_v18 = vand.u32 4294901760, %v8375_v12  ;;  %548 = vmatmul.f32.vlgmr.msra.gmra.mxu2 %v8375_v12  ;;  %v8389_v23 = vand.u32 4294901760, %v8377_v15  ;;  %v252_v24 = vsel %vm145_vm0, %v8379_v16, 0  ;;  %v254_v31 = vsel %vm145_vm0, %v8402_v28, 0  ;;  %s8298_s29 = smov 96  }
   0xb   :  { %11771 = vst [vmem:[#allocation12_spill] sm:$0xff] %v8377_v15  ;;  %v453_v20 = vand.u32 4294901760, %v452_v17  ;;  %v459_v22 = vand.u32 4294901760, %v458_v19  ;;  %763 = vmatpush.msrb.mxu0 %v457_v14  ;;  %v8398_v27 = vsub.f32 %v252_v24, %v252_v24  ;;  %v8419_v34 = vsub.f32 %v254_v31, %v254_v31  ;;  %s8299_s10 = smov 112   ;;  %s8303_s15 = smov 8  }
   0xc   :  { %11772 = vst [vmem:[#allocation13_spill] sm:$0xff] %v8379_v16  ;;  %v309_v21 = vsub.f32 %v8375_v12, %v8382_v18  ;;  %648 = vmatmul.f32.vlgmr.msra.gmra.mxu3 %v8382_v18  ;;  %v317_v26 = vsub.f32 %v8377_v15, %v8389_v23  ;;  %v256_v38 = vsel %vm145_vm0, %v8423_v35, 0  ;;  %v258_v44 = vsel %vm145_vm0, %v8441_v41, 0  ;;  %s7709_s19 = sshll.u32 %s11563_s9, 4  ;;  %s7710_s19 = int_to_ptr.hbm [resolvable:$true] %s7709_s19 }
   0xd   :  { %11773 = vst [vmem:[#allocation14_spill] sm:$0xff] %v8382_v18  ;;  %454 = vmatpush.msra.mxu1 %v453_v20  ;;  %v8409_v30 = vand.u32 4294901760, %v8398_v27  ;;  %v8430_v37 = vand.u32 4294901760, %v8419_v34  ;;  %v8437_v40 = vsub.f32 %v256_v38, %v256_v38  ;;  %v8458_v47 = vsub.f32 %v258_v44, %v258_v44 }
   0xe   :  { %11774 = vst [vmem:[#allocation15_spill] sm:$0xff] %v8389_v23  ;;  %v8393_v25 = vand.u32 4294901760, %v309_v21  ;;  %v8405_v29 = vand.u32 4294901760, %v317_v26  ;;  %v8462_v48 = vunpack.c.l.bf16 %v7966_v45  ;;  %v8480_v54 = vunpack.c.h.bf16 %v7966_v45 }
   0xf   :  { %460 = vmatpush.msra.mxu1 %v459_v22  ;;  %11776 = vst [vmem:[#allocation17_spill] sm:$0xff] %v8398_v27  ;;  %v325_v33 = vsub.f32 %v8398_v27, %v8409_v30  ;;  %v333_v39 = vsub.f32 %v8419_v34, %v8430_v37  ;;  %v8448_v43 = vand.u32 4294901760, %v8437_v40  ;;  %v8469_v50 = vand.u32 4294901760, %v8458_v47 }
  0x10   :  { %11775 = vst [vmem:[#allocation16_spill] sm:$0xff] %v8393_v25  ;;  %311 = vmatmul.f32.vlgmr.msra.gmra.mxu0 %v8393_v25  ;;  %7723 = vmatmul.msk.f32.vlgmr.msra.gmra.mxu1 %vm145_vm0, %v8364_v5  ;;  %v260_v51 = vsel %vm145_vm0, %v8462_v48, 0  ;;  %v262_v57 = vsel %vm145_vm0, %v8480_v54, 0  ;;  %v8501_v61 = vunpack.c.l.bf16 %v7967_v58  ;;  %v8540_v13 = vunpack.c.l.bf16 %v7968_v9 }
  0x11   :  { %11777 = vst [vmem:[#allocation18_spill] sm:$0xff] %v8402_v28  ;;  %844 = vmatpush.msrb.mxu1 %v302_v3  ;;  %v8426_v36 = vand.u32 4294901760, %v325_v33  ;;  %v8444_v42 = vand.u32 4294901760, %v333_v39  ;;  %v341_v46 = vsub.f32 %v8437_v40, %v8448_v43  ;;  %v349_v52 = vsub.f32 %v8458_v47, %v8469_v50 }
  0x12   :  { %553 = vmatmul.f32.gmra.mxu2 %v8377_v15  ;;  %11778 = vst [vmem:[#allocation19_spill] sm:$0xff] %v8405_v29  ;;  %v8476_v53 = vsub.f32 %v260_v51, %v260_v51  ;;  %v8497_v60 = vsub.f32 %v262_v57, %v262_v57  ;;  %v265_v0 = vsel %vm145_vm0, %v8501_v61, 0  ;;  %v8519_v3 = vunpack.c.h.bf16 %v7967_v58 }
  0x13   :  { %11779 = vst [vmem:[#allocation20_spill] sm:$0xff] %v8409_v30  ;;  %846 = vmatpush.msrb.mxu1 %v304_v4  ;;  %v8465_v49 = vand.u32 4294901760, %v341_v46  ;;  %v8483_v55 = vand.u32 4294901760, %v349_v52  ;;  %v8515_v2 = vsub.f32 %v265_v0, %v265_v0  ;;  %v271_v19 = vsel %vm145_vm0, %v8540_v13, 0 }
  0x14   :  { %654 = vmatmul.f32.gmra.mxu3 %v8389_v23  ;;  %11780 = vst [vmem:[#allocation21_spill] sm:$0xff] %v8419_v34  ;;  %v8487_v56 = vand.u32 4294901760, %v8476_v53  ;;  %v8508_v63 = vand.u32 4294901760, %v8497_v60  ;;  %v268_v8 = vsel %vm145_vm0, %v8519_v3, 0  ;;  %v8554_v21 = vsub.f32 %v271_v19, %v271_v19 }
  0x15   :  { %11781 = vst [vmem:[#allocation22_spill] sm:$0xff] %v8423_v35  ;;  %v8526_v7 = vand.u32 4294901760, %v8515_v2  ;;  %v8536_v11 = vsub.f32 %v268_v8, %v268_v8  ;;  %v8558_v22 = vunpack.c.h.bf16 %v7968_v9  ;;  %v8579_v39 = vunpack.c.l.bf16 %v7969_v32 }
  0x16   :  { %11782 = vst [vmem:[#allocation23_spill] sm:$0xff] %v8426_v36  ;;  %v357_v59 = vsub.f32 %v8476_v53, %v8487_v56  ;;  %v365_v1 = vsub.f32 %v8497_v60, %v8508_v63  ;;  %v8565_v26 = vand.u32 4294901760, %v8554_v21  ;;  %v8597_v57 = vunpack.c.h.bf16 %v7969_v32 }
  0x17   :  { %11783 = vst [vmem:[#allocation24_spill] sm:$0xff] %v8430_v37  ;;  %v373_v10 = vsub.f32 %v8515_v2, %v8526_v7  ;;  %v8547_v17 = vand.u32 4294901760, %v8536_v11  ;;  %v274_v31 = vsel %vm145_vm0, %v8558_v22, 0  ;;  %v277_v46 = vsel %vm145_vm0, %v8579_v39, 0 }
  0x18   :  { %319 = vmatmul.f32.gmra.mxu0 %v8405_v29  ;;  %7724 = vmatmul.msk.f32.gmra.mxu1 %vm145_vm0, %v8366_v6  ;;  %11784 = vst [vmem:[#allocation25_spill] sm:$0xff] %v8437_v40  ;;  %v8504_v62 = vand.u32 4294901760, %v357_v59  ;;  %v8522_v4 = vand.u32 4294901760, %v365_v1  ;;  %v389_v33 = vsub.f32 %v8554_v21, %v8565_v26  ;;  %v8575_v38 = vsub.f32 %v274_v31, %v274_v31  ;;  %v7970_v1 = vld [vmem:[%s11554_s0 + $0x38] sm:$0xff]   ;;  %s8297_s0 = smov 80  }
  0x19   :  { %11785 = vst [vmem:[#allocation26_spill] sm:$0xff] %v8441_v41  ;;  %v8543_v14 = vand.u32 4294901760, %v373_v10  ;;  %v381_v20 = vsub.f32 %v8536_v11, %v8547_v17  ;;  %v8593_v52 = vsub.f32 %v277_v46, %v277_v46  ;;  %v280_v0 = vsel %vm145_vm0, %v8597_v57, 0 }
  0x1a   :  { %558 = vmatmul.f32.gmra.mxu2 %v8398_v27  ;;  %11786 = vst [vmem:[#allocation27_spill] sm:$0xff] %v8444_v42  ;;  %v8582_v44 = vand.u32 4294901760, %v389_v33  ;;  %v8586_v45 = vand.u32 4294901760, %v8575_v38  ;;  %v8614_v9 = vsub.f32 %v280_v0, %v280_v0  ;;  %v8618_v10 = vunpack.c.l.bf16 %v7970_v1 }
  0x1b   :  { %11787 = vst [vmem:[#allocation28_spill] sm:$0xff] %v8448_v43  ;;  %v8561_v24 = vand.u32 4294901760, %v381_v20  ;;  %v8604_v59 = vand.u32 4294901760, %v8593_v52  ;;  %v8636_v46 = vunpack.c.h.bf16 %v7970_v1  ;;  %vm220_vm1 = vcmask 654848  }
  0x1c   :  { %660 = vmatmul.f32.gmra.mxu3 %v8409_v30  ;;  %11788 = vst [vmem:[#allocation29_spill] sm:$0xff] %v8458_v47  ;;  %v397_v51 = vsub.f32 %v8575_v38, %v8586_v45  ;;  %v8625_v20 = vand.u32 4294901760, %v8614_v9  ;;  %v283_v31 = vsel %vm145_vm0, %v8618_v10, 0  ;;  %vm154_vm2 = vcmask 261120  }
  0x1d   :  { %11789 = vst [vmem:[#allocation30_spill] sm:$0xff] %v8462_v48  ;;  %v405_v8 = vsub.f32 %v8593_v52, %v8604_v59  ;;  %v8632_v33 = vsub.f32 %v283_v31, %v283_v31  ;;  %vm952_vm3 = vcmask 523520   ;;  %vm972_vm4 = vcmask 654336  }
  0x1e   :  { %11790 = vst [vmem:[#allocation31_spill] sm:$0xff] %v8465_v49  ;;  %v8600_v58 = vand.u32 4294901760, %v397_v51  ;;  %v413_v32 = vsub.f32 %v8614_v9, %v8625_v20  ;;  %vm163_vm13 = vcmask 392192  }
  0x1f   :  { %11791 = vst [vmem:[#allocation32_spill] sm:$0xff] %v8469_v50  ;;  %v8621_v19 = vand.u32 4294901760, %v405_v8  ;;  %v8643_v0 = vand.u32 4294901760, %v8632_v33  ;;  %v286_v8 = vsel %vm145_vm0, %v8636_v46, 0 }
  0x20   :  { %327 = vmatmul.f32.gmra.mxu0 %v8426_v36  ;;  %7725 = vmatmul.msk.f32.gmra.mxu1 %vm145_vm0, %v8379_v16  ;;  %11792 = vst [vmem:[#allocation33_spill] sm:$0xff] %v8476_v53  ;;  %v8639_v51 = vand.u32 4294901760, %v413_v32 }
  0x21   :  { %11793 = vst [vmem:[#allocation34_spill] sm:$0xff] %v8480_v54  ;;  %v421_v31 = vsub.f32 %v8632_v33, %v8643_v0 }
  0x22   :  { %563 = vmatmul.f32.gmra.mxu2 %v8419_v34  ;;  %11794 = vst [vmem:[#allocation35_spill] sm:$0xff] %v8483_v55 }
  0x23   :  { %11795 = vst [vmem:[#allocation36_spill] sm:$0xff] %v8487_v56  ;;  %v8655_v1 = vand.u32 4294901760, %v421_v31 }
  0x24   :  { %666 = vmatmul.f32.gmra.mxu3 %v8430_v37  ;;  %11796 = vst [vmem:[#allocation37_spill] sm:$0xff] %v8497_v60 }
  0x25   :  { %11797 = vst [vmem:[#allocation38_spill] sm:$0xff] %v8501_v61 }
  0x26   :  { %11798 = vst [vmem:[#allocation39_spill] sm:$0xff] %v8504_v62 }
  0x27   :  { %11799 = vst [vmem:[#allocation40_spill] sm:$0xff] %v8508_v63 }
  0x28   :  { %335 = vmatmul.f32.gmra.mxu0 %v8444_v42  ;;  %7726 = vmatmul.msk.f32.gmra.mxu1 %vm145_vm0, %v8402_v28  ;;  %11800 = vst [vmem:[#allocation41_spill] sm:$0xff] %v8515_v2 }
  0x29   :  { %11801 = vst [vmem:[#allocation42_spill] sm:$0xff] %v8519_v3 }
  0x2a   :  { %568 = vmatmul.f32.gmra.mxu2 %v8437_v40  ;;  %11802 = vst [vmem:[#allocation43_spill] sm:$0xff] %v8522_v4 }
  0x2b   :  { %11803 = vst [vmem:[#allocation44_spill] sm:$0xff] %v8526_v7 }
  0x2c   :  { %672 = vmatmul.f32.gmra.mxu3 %v8448_v43  ;;  %11804 = vst [vmem:[#allocation45_spill] sm:$0xff] %v8536_v11 }
  0x2d   :  { %11805 = vst [vmem:[#allocation46_spill] sm:$0xff] %v8540_v13 }
  0x2e   :  { %11806 = vst [vmem:[#allocation47_spill] sm:$0xff] %v8543_v14 }
  0x2f   :  { %11807 = vst [vmem:[#allocation48_spill] sm:$0xff] %v8547_v17 }
  0x30   :  { %343 = vmatmul.f32.gmra.mxu0 %v8465_v49  ;;  %7727 = vmatmul.msk.f32.gmra.mxu1 %vm145_vm0, %v8423_v35  ;;  %11808 = vst [vmem:[#allocation49_spill] sm:$0xff] %v8554_v21 }
  0x31   :  { %11809 = vst [vmem:[#allocation50_spill] sm:$0xff] %v8558_v22 }
  0x32   :  { %573 = vmatmul.f32.gmra.mxu2 %v8458_v47  ;;  %11810 = vst [vmem:[#allocation51_spill] sm:$0xff] %v8561_v24 }
  0x33   :  { %11811 = vst [vmem:[#allocation52_spill] sm:$0xff] %v8565_v26 }
  0x34   :  { %678 = vmatmul.f32.gmra.mxu3 %v8469_v50  ;;  %11812 = vst [vmem:[#allocation53_spill] sm:$0xff] %v8575_v38 }
  0x35   :  { %11813 = vst [vmem:[#allocation54_spill] sm:$0xff] %v8579_v39 }
  0x36   :  { %11814 = vst [vmem:[#allocation55_spill] sm:$0xff] %v8582_v44 }
  0x37   :  { %11815 = vst [vmem:[#allocation56_spill] sm:$0xff] %v8586_v45 }
  0x38   :  { %351 = vmatmul.f32.gmra.mxu0 %v8483_v55  ;;  %7728 = vmatmul.msk.f32.gmra.mxu1 %vm145_vm0, %v8441_v41  ;;  %11816 = vst [vmem:[#allocation57_spill] sm:$0xff] %v8593_v52 }
  0x39   :  { %11817 = vst [vmem:[#allocation58_spill] sm:$0xff] %v8597_v57 }
  0x3a   :  { %578 = vmatmul.f32.gmra.mxu2 %v8476_v53  ;;  %11818 = vst [vmem:[#allocation59_spill] sm:$0xff] %v8600_v58 }
  0x3b   :  { %11819 = vst [vmem:[#allocation60_spill] sm:$0xff] %v8604_v59 }
  0x3c   :  { %684 = vmatmul.f32.gmra.mxu3 %v8487_v56  ;;  %11820 = vst [vmem:[#allocation61_spill] sm:$0xff] %v8614_v9 }
  0x3d   :  { %11821 = vst [vmem:[#allocation62_spill] sm:$0xff] %v8618_v10 }
  0x3e   :  { %11822 = vst [vmem:[#allocation63_spill] sm:$0xff] %v8621_v19 }
  0x3f   :  { %11823 = vst [vmem:[#allocation64_spill] sm:$0xff] %v8625_v20 }
  0x40   :  { %359 = vmatmul.f32.gmra.mxu0 %v8504_v62  ;;  %7729 = vmatmul.msk.f32.gmra.mxu1 %vm145_vm0, %v8462_v48  ;;  %11824 = vst [vmem:[#allocation65_spill] sm:$0xff] %v8632_v33 }
  0x41   :  { %11825 = vst [vmem:[#allocation66_spill] sm:$0xff] %v8636_v46 }
  0x42   :  { %583 = vmatmul.f32.gmra.mxu2 %v8497_v60  ;;  %11826 = vst [vmem:[#allocation67_spill] sm:$0xff] %v8639_v51 }
  0x43   :  { %11827 = vst [vmem:[#allocation68_spill] sm:$0xff] %v8643_v0 }
  0x44   :  { %690 = vmatmul.f32.gmra.mxu3 %v8508_v63  ;;  %11829 = vst [vmem:[#allocation70_spill] sm:$0xff] %v8655_v1 }
  0x48   :  { %367 = vmatmul.f32.gmra.mxu0 %v8522_v4  ;;  %7730 = vmatmul.msk.f32.gmra.mxu1 %vm145_vm0, %v8480_v54 }
  0x4a   :  { %588 = vmatmul.f32.gmra.mxu2 %v8515_v2 }
  0x4c   :  { %696 = vmatmul.f32.gmra.mxu3 %v8526_v7 }
  0x50   :  { %375 = vmatmul.f32.gmra.mxu0 %v8543_v14  ;;  %7731 = vmatmul.msk.f32.gmra.mxu1 %vm145_vm0, %v8501_v61 }
  0x52   :  { %593 = vmatmul.f32.gmra.mxu2 %v8536_v11 }
  0x54   :  { %702 = vmatmul.f32.gmra.mxu3 %v8547_v17 }
  0x58   :  { %383 = vmatmul.f32.gmra.mxu0 %v8561_v24  ;;  %7732 = vmatmul.msk.f32.gmra.mxu1 %vm145_vm0, %v8519_v3 }
  0x5a   :  { %598 = vmatmul.f32.gmra.mxu2 %v8554_v21 }
  0x5c   :  { %708 = vmatmul.f32.gmra.mxu3 %v8565_v26 }
  0x60   :  { %391 = vmatmul.f32.gmra.mxu0 %v8582_v44  ;;  %7733 = vmatmul.msk.f32.gmra.mxu1 %vm145_vm0, %v8540_v13 }
  0x62   :  { %603 = vmatmul.f32.gmra.mxu2 %v8575_v38 }
  0x64   :  { %714 = vmatmul.f32.gmra.mxu3 %v8586_v45 }
  0x68   :  { %399 = vmatmul.f32.gmra.mxu0 %v8600_v58  ;;  %7734 = vmatmul.msk.f32.gmra.mxu1 %vm145_vm0, %v8558_v22 }
  0x6a   :  { %608 = vmatmul.f32.gmra.mxu2 %v8593_v52 }
  0x6c   :  { %720 = vmatmul.f32.gmra.mxu3 %v8604_v59  ;;  %v8650_v59 = vsub.f32 %v286_v8, %v286_v8 }
  0x6e   :  { %11828 = vst [vmem:[#allocation69_spill] sm:$0xff] %v8650_v59  ;;  %v8659_v32 = vand.u32 4294901760, %v8650_v59 }
  0x70   :  { %407 = vmatmul.f32.gmra.mxu0 %v8621_v19  ;;  %7735 = vmatmul.msk.f32.gmra.mxu1 %vm145_vm0, %v8579_v39  ;;  %11830 = vst [vmem:[#allocation71_spill] sm:$0xff] %v8659_v32  ;;  %v429_v8 = vsub.f32 %v8650_v59, %v8659_v32 }
  0x72   :  { %613 = vmatmul.f32.gmra.mxu2 %v8614_v9  ;;  %v8671_v31 = vand.u32 4294901760, %v429_v8 }
  0x74   :  { %726 = vmatmul.f32.gmra.mxu3 %v8625_v20  ;;  %v180_v20 = vld [vmem:[%s11555_s1] sm:$0xff]  ;;  %11831 = vst [vmem:[#allocation72_spill] sm:$0xff] %v8671_v31 }
  0x75   :  { %196 = vrot.lane.b32.xlu0 %v180_v20, %s8289_s30 }
  0x78   :  { %415 = vmatmul.f32.gmra.mxu0 %v8639_v51  ;;  %7736 = vmatmul.msk.f32.gmra.mxu1 %vm145_vm0, %v8597_v57 }
  0x7a   :  { %618 = vmatmul.f32.gmra.mxu2 %v8632_v33 }
  0x7c   :  { %732 = vmatmul.f32.gmra.mxu3 %v8643_v0  ;;  %v181_v0 = vld [vmem:[%s11555_s1 + $0x8] sm:$0xff] }
  0x7d   :  { %198 = vrot.lane.b32.xlu1 %v181_v0, %s8289_s30 }
  0x80   :  { %423 = vmatmul.f32.gmra.mxu0 %v8655_v1  ;;  %7737 = vmatmul.msk.f32.gmra.mxu1 %vm145_vm0, %v8618_v10  ;;  %v182_v1 = vld [vmem:[%s11555_s1 + $0x10] sm:$0xff] }
  0x81   :  { %200 = vrot.lane.b32.xlu2 %v182_v1, %s8289_s30 }
  0x82   :  { %623 = vmatmul.f32.gmra.mxu2 %v8650_v59 }
  0x84   :  { %738 = vmatmul.f32.gmra.mxu3 %v8659_v32 }
  0x88   :  { %431 = vmatmul.f32.gmra.mxu0 %v8671_v31  ;;  %7738 = vmatmul.msk.f32.gmra.mxu1 %vm145_vm0, %v8636_v46 }
  0x8d   :  { %v8681_v20 = vpop.f32.mrf.mxu0  ;;  %v8683_v33 = vpop.f32.mrf.mxu1 }
  0x8e   :  { %v549_v14 = vpop.f32.mrf.mxu2 }
  0x90   :  { %7739 = vmatmul.msk.f32.vlgmr.msrb.gmra.mxu0 %vm145_vm0, %v8364_v5  ;;  %7755 = vmatmul.msk.f32.vlgmr.msrb.gmra.mxu1 %vm145_vm0, %v8364_v5 }
  0x95   :  { %v8689_v8 = vpop.f32.mrf.mxu0  ;;  %v8691_v32 = vpop.f32.mrf.mxu1 }
  0x96   :  { %v554_v4 = vpop.f32.mrf.mxu2 }
  0x98   :  { %7740 = vmatmul.msk.f32.gmra.mxu0 %vm145_vm0, %v8366_v6  ;;  %7756 = vmatmul.msk.f32.gmra.mxu1 %vm145_vm0, %v8366_v6 }
  0x9d   :  { %v8697_v0 = vpop.f32.mrf.mxu0  ;;  %v8699_v59 = vpop.f32.mrf.mxu1 }
  0x9e   :  { %v559_v47 = vpop.f32.mrf.mxu2 }
  0xa0   :  { %7741 = vmatmul.msk.f32.gmra.mxu0 %vm145_vm0, %v8379_v16  ;;  %7757 = vmatmul.msk.f32.gmra.mxu1 %vm145_vm0, %v8379_v16 }
  0xa5   :  { %v8705_v31 = vpop.f32.mrf.mxu0  ;;  %v8710_v9 = vpop.f32.mrf.mxu1 }
  0xa6   :  { %v8810_v40 = vpop.f32.mrf.mxu2 }
  0xa8   :  { %7742 = vmatmul.msk.f32.gmra.mxu0 %vm145_vm0, %v8402_v28  ;;  %7758 = vmatmul.msk.f32.gmra.mxu1 %vm145_vm0, %v8402_v28 }
  0xad   :  { %v8717_v51 = vpop.f32.mrf.mxu0  ;;  %v8719_v52 = vpop.f32.mrf.mxu1 }
  0xae   :  { %v8824_v42 = vpop.f32.mrf.mxu2 }
  0xb0   :  { %7743 = vmatmul.msk.f32.gmra.mxu0 %vm145_vm0, %v8423_v35  ;;  %7759 = vmatmul.msk.f32.gmra.mxu1 %vm145_vm0, %v8423_v35 }
  0xb5   :  { %v8725_v19 = vpop.f32.mrf.mxu0  ;;  %v8727_v45 = vpop.f32.mrf.mxu1 }
  0xb8   :  { %7744 = vmatmul.msk.f32.gmra.mxu0 %vm145_vm0, %v8441_v41  ;;  %7760 = vmatmul.msk.f32.gmra.mxu1 %vm145_vm0, %v8441_v41 }
  0xbd   :  { %v8733_v1 = vpop.f32.mrf.mxu0  ;;  %v8735_v38 = vpop.f32.mrf.mxu1 }
  0xc0   :  { %7745 = vmatmul.msk.f32.gmra.mxu0 %vm145_vm0, %v8462_v48  ;;  %7761 = vmatmul.msk.f32.gmra.mxu1 %vm145_vm0, %v8462_v48 }
  0xc5   :  { %v8741_v58 = vpop.f32.mrf.mxu0  ;;  %v8743_v26 = vpop.f32.mrf.mxu1 }
  0xc8   :  { %7746 = vmatmul.msk.f32.gmra.mxu0 %vm145_vm0, %v8480_v54  ;;  %7762 = vmatmul.msk.f32.gmra.mxu1 %vm145_vm0, %v8480_v54 }
  0xcd   :  { %v8749_v21 = vpop.f32.mrf.mxu0  ;;  %v8751_v44 = vpop.f32.mrf.mxu1 }
  0xd0   :  { %7747 = vmatmul.msk.f32.gmra.mxu0 %vm145_vm0, %v8501_v61  ;;  %7763 = vmatmul.msk.f32.gmra.mxu1 %vm145_vm0, %v8501_v61 }
  0xd5   :  { %v8757_v17 = vpop.f32.mrf.mxu0  ;;  %v8759_v11 = vpop.f32.mrf.mxu1 }
  0xd6   :  { %v500_v18 = vadd.f32 %v8759_v11, %v8757_v17  ;;  %v183_v11 = vld [vmem:[%s11555_s1 + $0x18] sm:$0xff] }
  0xd8   :  { %7748 = vmatmul.msk.f32.gmra.mxu0 %vm145_vm0, %v8519_v3  ;;  %7764 = vmatmul.msk.f32.gmra.mxu1 %vm145_vm0, %v8519_v3  ;;  %v649_v3 = vpop.f32.mrf.mxu3 }
  0xdb   :  { %v201_v55 = vpop.permute.xlu2 %200 }
  0xdc   :  { %223 = vst.msk [vmem:[#allocation2 + $0x10] sm:$0xff] %vm220_vm1, %v201_v55  ;;  %v468_v55 = vadd.f32 %v8691_v32, %v8689_v8 }
  0xdd   :  { %v8765_v24 = vpop.f32.mrf.mxu0  ;;  %v8767_v7 = vpop.f32.mrf.mxu1 }
  0xde   :  { %v555_v27 = vadd.f32 %v554_v4, %v468_v55 }
  0xe0   :  { %7749 = vmatmul.msk.f32.gmra.mxu0 %vm145_vm0, %v8540_v13  ;;  %7765 = vmatmul.msk.f32.gmra.mxu1 %vm145_vm0, %v8540_v13  ;;  %v655_v53 = vpop.f32.mrf.mxu3 }
  0xe1   :  { %v656_v30 = vadd.f32 %v655_v53, %v555_v27 }
  0xe5   :  { %v8773_v61 = vpop.f32.mrf.mxu0  ;;  %v8775_v2 = vpop.f32.mrf.mxu1 }
  0xe7   :  { %v197_v13 = vpop.permute.xlu0 %196 }
  0xe8   :  { %7750 = vmatmul.msk.f32.gmra.mxu0 %vm145_vm0, %v8558_v22  ;;  %7766 = vmatmul.msk.f32.gmra.mxu1 %vm145_vm0, %v8558_v22  ;;  %221 = vst.msk [vmem:[#allocation2] sm:$0xff] %vm220_vm1, %v197_v13  ;;  %v661_v13 = vpop.f32.mrf.mxu3 }
  0xed   :  { %v8781_v60 = vpop.f32.mrf.mxu0  ;;  %v8783_v63 = vpop.f32.mrf.mxu1 }
  0xef   :  { %v199_v62 = vpop.permute.xlu1 %198 }
  0xf0   :  { %7751 = vmatmul.msk.f32.gmra.mxu0 %vm145_vm0, %v8579_v39  ;;  %7767 = vmatmul.msk.f32.gmra.mxu1 %vm145_vm0, %v8579_v39  ;;  %222 = vst.msk [vmem:[#allocation2 + $0x8] sm:$0xff] %vm220_vm1, %v199_v62  ;;  %v8818_v34 = vpop.f32.mrf.mxu3 }
  0xf5   :  { %v8790_v56 = vpop.f32.mrf.mxu0  ;;  %v8792_v22 = vpop.f32.mrf.mxu1 }
  0xf8   :  { %7752 = vmatmul.msk.f32.gmra.mxu0 %vm145_vm0, %v8597_v57  ;;  %7768 = vmatmul.msk.f32.gmra.mxu1 %vm145_vm0, %v8597_v57  ;;  %v464_v57 = vadd.f32 %v8683_v33, %v8681_v20 }
  0xfa   :  { %v550_v49 = vadd.f32 %v549_v14, %v464_v57  ;;  %v8827_v57 = vpop.f32.mrf.mxu3 }
  0xfd   :  { %v8799_v50 = vpop.f32.mrf.mxu0  ;;  %v8801_v39 = vpop.f32.mrf.mxu1 }
 0x100   :  { %7753 = vmatmul.msk.f32.gmra.mxu0 %vm145_vm0, %v8618_v10  ;;  %7769 = vmatmul.msk.f32.gmra.mxu1 %vm145_vm0, %v8618_v10  ;;  %v650_v10 = vadd.f32 %v649_v3, %v550_v49 }
 0x102   :  { %v8834_v4 = vpop.f32.mrf.mxu3 }
 0x105   :  { %v8812_v62 = vpop.f32.mrf.mxu0  ;;  %v8814_v43 = vpop.f32.mrf.mxu1 }
 0x108   :  { %7754 = vmatmul.msk.f32.gmra.mxu0 %vm145_vm0, %v8636_v46  ;;  %7770 = vmatmul.msk.f32.gmra.mxu1 %vm145_vm0, %v8636_v46  ;;  %v472_v46 = vadd.f32 %v8699_v59, %v8697_v0 }
 0x10a   :  { %v560_v32 = vadd.f32 %v559_v47, %v472_v46 }
 0x10d   :  { %v766_v33 = vpop.f32.mrf.mxu0  ;;  %v849_v37 = vpop.f32.mrf.mxu1 }
 0x10e   :  { %v767_v20 = vadd.f32 %v766_v33, %v650_v10  ;;  %v8831_v10 = vpop.f32.mrf.mxu2  ;;  %v662_v33 = vadd.f32 %v661_v13, %v560_v32 }
 0x110   :  { %v850_v14 = vadd.f32 %v849_v37, %v767_v20 }
 0x112   :  { %912 = vst.msk [vmem:[#allocation2] sm:$0xff] %vm154_vm2, %v850_v14 }
 0x115   :  { %v770_v49 = vpop.f32.mrf.mxu0  ;;  %v853_v36 = vpop.f32.mrf.mxu1 }
 0x116   :  { %v771_v3 = vadd.f32 %v770_v49, %v656_v30  ;;  %v8837_v27 = vpop.f32.mrf.mxu2 }
 0x118   :  { %v854_v8 = vadd.f32 %v853_v36, %v771_v3  ;;  %v8843_v36 = vpop.f32.mrf.mxu3 }
 0x11a   :  { %913 = vst.msk [vmem:[#allocation2 + $0x8] sm:$0xff] %vm154_vm2, %v854_v8 }
 0x11d   :  { %v774_v37 = vpop.f32.mrf.mxu0  ;;  %v857_v20 = vpop.f32.mrf.mxu1 }
 0x11e   :  { %v775_v55 = vadd.f32 %v774_v37, %v662_v33  ;;  %v8845_v47 = vpop.f32.mrf.mxu2 }
 0x120   :  { %v858_v14 = vadd.f32 %v857_v20, %v775_v55  ;;  %v8851_v0 = vpop.f32.mrf.mxu3  ;;  %v496_v55 = vadd.f32 %v8751_v44, %v8749_v21  ;;  %v504_v44 = vadd.f32 %v8767_v7, %v8765_v24 }
 0x122   :  { %914 = vst.msk [vmem:[#allocation2 + $0x10] sm:$0xff] %vm154_vm2, %v858_v14 }
 0x125   :  { %v8839_v53 = vpop.f32.mrf.mxu0  ;;  %v8841_v30 = vpop.f32.mrf.mxu1 }
 0x126   :  { %v589_v3 = vpop.f32.mrf.mxu2 }
 0x127   :  { %v590_v23 = vadd.f32 %v589_v3, %v496_v55 }
 0x128   :  { %v697_v32 = vpop.f32.mrf.mxu3 }
 0x129   :  { %v698_v12 = vadd.f32 %v697_v32, %v590_v23 }
 0x12d   :  { %v8847_v59 = vpop.f32.mrf.mxu0  ;;  %v8849_v46 = vpop.f32.mrf.mxu1 }
 0x12e   :  { %v594_v37 = vpop.f32.mrf.mxu2 }
 0x12f   :  { %v595_v35 = vadd.f32 %v594_v37, %v500_v18  ;;  %v508_v18 = vadd.f32 %v8775_v2, %v8773_v61 }
 0x130   :  { %v703_v20 = vpop.f32.mrf.mxu3 }
 0x131   :  { %v704_v21 = vadd.f32 %v703_v20, %v595_v35  ;;  %v512_v20 = vadd.f32 %v8783_v63, %v8781_v60  ;;  %v239_v60 = vld [vmem:[%s11557_s3 + $0x40] sm:$0xff] }
 0x135   :  { %v8853_v13 = vpop.f32.mrf.mxu0  ;;  %v8855_v49 = vpop.f32.mrf.mxu1 }
 0x136   :  { %v599_v29 = vpop.f32.mrf.mxu2 }
 0x138   :  { %v709_v41 = vpop.f32.mrf.mxu3 }
 0x13d   :  { %v8857_v8 = vpop.f32.mrf.mxu0  ;;  %v8859_v33 = vpop.f32.mrf.mxu1 }
 0x13e   :  { %v604_v48 = vpop.f32.mrf.mxu2 }
 0x13f   :  { %v605_v24 = vadd.f32 %v604_v48, %v508_v18  ;;  %v240_v48 = vld [vmem:[%s11557_s3 + $0x48] sm:$0xff] }
 0x140   :  { %v715_v17 = vpop.f32.mrf.mxu3  ;;  %v8893_v63 = vand.u32 4294901760, %v240_v48 }
 0x142   :  { %1004 = vmatpush.msrb.mxu2 %v8893_v63  ;;  %1425 = vmatpush.msra.mxu1 %v8893_v63 }
 0x145   :  { %v8863_v14 = vpop.f32.mrf.mxu0  ;;  %v8865_v15 = vpop.f32.mrf.mxu1 }
 0x146   :  { %v609_v7 = vpop.f32.mrf.mxu2 }
 0x147   :  { %v610_v61 = vadd.f32 %v609_v7, %v512_v20 }
 0x148   :  { %v721_v37 = vpop.f32.mrf.mxu3 }
 0x14d   :  { %v798_v25 = vpop.f32.mrf.mxu0  ;;  %v881_v16 = vpop.f32.mrf.mxu1 }
 0x14e   :  { %v799_v28 = vadd.f32 %v798_v25, %v698_v12  ;;  %v600_v12 = vadd.f32 %v599_v29, %v504_v44  ;;  %v716_v29 = vadd.f32 %v715_v17, %v605_v24 }
 0x150   :  { %v882_v54 = vadd.f32 %v881_v16, %v799_v28  ;;  %v710_v16 = vadd.f32 %v709_v41, %v600_v12  ;;  %v184_v41 = vld [vmem:[%s11555_s1 + $0x20] sm:$0xff]  ;;  %v722_v12 = vadd.f32 %v721_v37, %v610_v61 }
 0x152   :  { %928 = vrot.lane.b32.xlu0 %v882_v54, %s8290_s14 }
 0x155   :  { %v802_v3 = vpop.f32.mrf.mxu0  ;;  %v885_v23 = vpop.f32.mrf.mxu1 }
 0x156   :  { %v803_v55 = vadd.f32 %v802_v3, %v704_v21 }
 0x158   :  { %v886_v25 = vadd.f32 %v885_v23, %v803_v55  ;;  %v614_v55 = vpop.f32.mrf.mxu2  ;;  %v8895_v23 = vand.u32 4294901760, %v239_v60 }
 0x15a   :  { %930 = vrot.lane.b32.xlu1 %v886_v25, %s8290_s14  ;;  %202 = vrot.lane.b32.xlu0 %v183_v11, %s8289_s30  ;;  %v238_v11 = vld [vmem:[%s11557_s3 + $0x38] sm:$0xff]  ;;  %v516_v25 = vadd.f32 %v8792_v22, %v8790_v56  ;;  %v237_v56 = vld [vmem:[%s11557_s3 + $0x30] sm:$0xff] }
 0x15b   :  { %v8902_v17 = vand.u32 4294901760, %v238_v11  ;;  %v185_v22 = vld [vmem:[%s11555_s1 + $0x28] sm:$0xff]  ;;  %1006 = vmatpush.msrb.mxu2 %v8895_v23  ;;  %1427 = vmatpush.msra.mxu1 %v8895_v23 }
 0x15d   :  { %v806_v28 = vpop.f32.mrf.mxu0  ;;  %v889_v54 = vpop.f32.mrf.mxu1  ;;  %v8913_v24 = vsub.f32 %v238_v11, %v8902_v17  ;;  %1008 = vmatpush.msrb.mxu2 %v8902_v17  ;;  %v520_v11 = vadd.f32 %v8801_v39, %v8799_v50  ;;  %1429 = vmatpush.msra.mxu1 %v8902_v17  ;;  %v524_v39 = vadd.f32 %v8814_v43, %v8812_v62 }
 0x15e   :  { %v807_v35 = vadd.f32 %v806_v28, %v710_v16  ;;  %v727_v16 = vpop.f32.mrf.mxu3  ;;  %v8906_v28 = vsub.f32 %v240_v48, %v8893_v63 }
 0x160   :  { %v890_v32 = vadd.f32 %v889_v54, %v807_v35  ;;  %v8909_v35 = vsub.f32 %v239_v60, %v8895_v23 }
 0x162   :  { %932 = vrot.lane.b32.xlu2 %v890_v32, %s8290_s14  ;;  %v1096_v32 = vand.u32 4294901760, %v8906_v28  ;;  %v1102_v37 = vand.u32 4294901760, %v8909_v35 }
 0x164   :  { %1348 = vmatpush.msra.mxu0 %v1096_v32 }
 0x165   :  { %v810_v21 = vpop.f32.mrf.mxu0  ;;  %v893_v3 = vpop.f32.mrf.mxu1 }
 0x166   :  { %v811_v44 = vadd.f32 %v810_v21, %v716_v29  ;;  %v615_v29 = vadd.f32 %v614_v55, %v516_v25  ;;  %v1108_v21 = vand.u32 4294901760, %v8913_v24  ;;  %1352 = vmatpush.msra.mxu0 %v1102_v37 }
 0x168   :  { %v894_v2 = vadd.f32 %v893_v3, %v811_v44  ;;  %v1097_v44 = vsub.f32 %v8906_v28, %v1096_v32  ;;  %v1103_v3 = vsub.f32 %v8909_v35, %v1102_v37  ;;  %v1109_v61 = vsub.f32 %v8913_v24, %v1108_v21  ;;  %1356 = vmatpush.msra.mxu0 %v1108_v21 }
 0x169   :  { %v728_v60 = vadd.f32 %v727_v16, %v615_v29 }
 0x16a   :  { %204 = vrot.lane.b32.xlu2 %v184_v41, %s8289_s30  ;;  %934 = vrot.lane.b32.xlu1 %v894_v2, %s8290_s14  ;;  %v8929_v41 = vand.u32 4294901760, %v237_v56  ;;  %v619_v2 = vpop.f32.mrf.mxu2  ;;  %v1098_v55 = vand.u32 4294901760, %v1097_v44  ;;  %v1104_v48 = vand.u32 4294901760, %v1103_v3  ;;  %v1110_v25 = vand.u32 4294901760, %v1109_v61  ;;  %v187_v44 = vld [vmem:[%s11555_s1 + $0x38] sm:$0xff] }
 0x16b   :  { %v620_v16 = vadd.f32 %v619_v2, %v520_v11 }
 0x16c   :  { %1010 = vmatpush.msrb.mxu2 %v8929_v41  ;;  %1099 = vmatpush.msrb.mxu3 %v1098_v55  ;;  %v8953_v62 = vsub.f32 %v237_v56, %v8929_v41 }
 0x16d   :  { %v814_v18 = vpop.f32.mrf.mxu0  ;;  %v897_v7 = vpop.f32.mrf.mxu1  ;;  %1431 = vmatpush.msra.mxu1 %v8929_v41 }
 0x16e   :  { %v815_v54 = vadd.f32 %v814_v18, %v722_v12  ;;  %1105 = vmatpush.msrb.mxu3 %v1104_v48 }
 0x170   :  { %v898_v20 = vadd.f32 %v897_v7, %v815_v54  ;;  %v733_v7 = vpop.f32.mrf.mxu3  ;;  %1111 = vmatpush.msrb.mxu3 %v1110_v25  ;;  %v1114_v25 = vand.u32 4294901760, %v8953_v62 }
 0x171   :  { %v734_v50 = vadd.f32 %v733_v7, %v620_v16  ;;  %v234_v16 = vld [vmem:[%s11557_s3 + $0x18] sm:$0xff] }
 0x172   :  { %206 = vrot.lane.b32.xlu1 %v185_v22, %s8289_s30  ;;  %936 = vrot.lane.b32.xlu0 %v898_v20, %s8290_s14  ;;  %v186_v22 = vld [vmem:[%s11555_s1 + $0x30] sm:$0xff]  ;;  %v624_v37 = vpop.f32.mrf.mxu2  ;;  %v1115_v7 = vsub.f32 %v8953_v62, %v1114_v25  ;;  %s7695_s1 = sshll.u32 %s11562_s8, 4  ;;  %s8304_s8 = smov [#allocation5]   ;;  %s7696_s1 = int_to_ptr.hbm [resolvable:$true] %s7695_s1 }
 0x173   :  { %v625_v3 = vadd.f32 %v624_v37, %v524_v39  ;;  %1360 = vmatpush.msra.mxu0 %v1114_v25  ;;  %v8978_v37 = vand.u32 4294901760, %v234_v16  ;;  %s7707_s16 = sshll.u32 %s8304_s8, 4  ;;  %s7708_s16 = int_to_ptr.vmem [resolvable:$true] %s7707_s16 }
 0x175   :  { %v818_v12 = vpop.f32.mrf.mxu0  ;;  %v901_v54 = vpop.f32.mrf.mxu1 }
 0x176   :  { %v819_v18 = vadd.f32 %v818_v12, %v728_v60  ;;  %v236_v12 = vld [vmem:[%s11557_s3 + $0x28] sm:$0xff] }
 0x178   :  { %v902_v32 = vadd.f32 %v901_v54, %v819_v18  ;;  %v739_v2 = vpop.f32.mrf.mxu3  ;;  %v8959_v18 = vand.u32 4294901760, %v236_v12  ;;  %v235_v54 = vld [vmem:[%s11557_s3 + $0x20] sm:$0xff] }
 0x179   :  { %v740_v55 = vadd.f32 %v739_v2, %v625_v3  ;;  %v8969_v56 = vand.u32 4294901760, %v235_v54 }
 0x17a   :  { %938 = vrot.lane.b32.xlu2 %v902_v32, %s8290_s14  ;;  %208 = vrot.lane.b32.xlu0 %v186_v22, %s8289_s30  ;;  %v8966_v22 = vsub.f32 %v236_v12, %v8959_v18  ;;  %v1116_v32 = vand.u32 4294901760, %v1115_v7 }
 0x17b   :  { %1433 = vmatpush.msra.mxu1 %v8959_v18  ;;  %1012 = vmatpush.msrb.mxu2 %v8959_v18  ;;  %v1125_v39 = vsub.f32 %v235_v54, %v8969_v56 }
 0x17c   :  { %1117 = vmatpush.msrb.mxu3 %v1116_v32 }
 0x17d   :  { %v822_v29 = vpop.f32.mrf.mxu0  ;;  %v905_v21 = vpop.f32.mrf.mxu1  ;;  %1435 = vmatpush.msra.mxu1 %v8969_v56  ;;  %1014 = vmatpush.msrb.mxu2 %v8969_v56 }
 0x17e   :  { %v823_v20 = vadd.f32 %v822_v29, %v734_v50  ;;  %v1120_v50 = vand.u32 4294901760, %v8966_v22  ;;  %v233_v29 = vld [vmem:[%s11557_s3 + $0x10] sm:$0xff] }
 0x17f   :  { %v8986_v3 = vand.u32 4294901760, %v233_v29  ;;  %1437 = vmatpush.msra.mxu1 %v8978_v37  ;;  %1016 = vmatpush.msrb.mxu2 %v8978_v37 }
 0x180   :  { %v906_v61 = vadd.f32 %v905_v21, %v823_v20  ;;  %v1121_v20 = vsub.f32 %v8966_v22, %v1120_v50  ;;  %1364 = vmatpush.msra.mxu0 %v1120_v50  ;;  %v1126_v21 = vand.u32 4294901760, %v1125_v39 }
 0x181   :  { %1439 = vmatpush.msra.mxu1 %v8986_v3  ;;  %1018 = vmatpush.msrb.mxu2 %v8986_v3 }
 0x182   :  { %210 = vrot.lane.b32.xlu2 %v187_v44, %s8289_s30  ;;  %940 = vrot.lane.b32.xlu1 %v906_v61, %s8290_s14  ;;  %v1131_v44 = vsub.f32 %v234_v16, %v8978_v37  ;;  %v232_v61 = vld [vmem:[%s11557_s3 + $0x8] sm:$0xff]  ;;  %v1122_v2 = vand.u32 4294901760, %v1121_v20  ;;  %s8302_s30 = smov 128  }
 0x183   :  { %1368 = vmatpush.msra.mxu0 %v1126_v21 }
 0x184   :  { %1123 = vmatpush.msrb.mxu3 %v1122_v2 }
 0x185   :  { %v826_v48 = vpop.f32.mrf.mxu0  ;;  %v909_v11 = vpop.f32.mrf.mxu1 }
 0x186   :  { %v827_v60 = vadd.f32 %v826_v48, %v740_v55  ;;  %v1127_v55 = vsub.f32 %v1125_v39, %v1126_v21  ;;  %v1132_v48 = vand.u32 4294901760, %v1131_v44 }
 0x188   :  { %v910_v43 = vadd.f32 %v909_v11, %v827_v60  ;;  %v1137_v60 = vsub.f32 %v233_v29, %v8986_v3  ;;  %v1019_v11 = vand.u32 4294901760, %v232_v61  ;;  %v1128_v12 = vand.u32 4294901760, %v1127_v55  ;;  %1372 = vmatpush.msra.mxu0 %v1132_v48 }
 0x189   :  { %v1133_v25 = vsub.f32 %v1131_v44, %v1132_v48 }
 0x18a   :  { %942 = vrot.lane.b32.xlu0 %v910_v43, %s8290_s14  ;;  %v231_v43 = vld [vmem:[%s11557_s3] sm:$0xff]  ;;  %v1138_v54 = vand.u32 4294901760, %v1137_v60  ;;  %v1143_v16 = vsub.f32 %v232_v61, %v1019_v11  ;;  %1441 = vmatpush.msra.mxu1 %v1019_v11 }
 0x18b   :  { %v1021_v7 = vand.u32 4294901760, %v231_v43  ;;  %1020 = vmatpush.msrb.mxu2 %v1019_v11  ;;  %1129 = vmatpush.msrb.mxu3 %v1128_v12  ;;  %v1134_v32 = vand.u32 4294901760, %v1133_v25 }
 0x18c   :  { %v1139_v50 = vsub.f32 %v1137_v60, %v1138_v54  ;;  %1376 = vmatpush.msra.mxu0 %v1138_v54  ;;  %v1144_v20 = vand.u32 4294901760, %v1143_v16 }
 0x18d   :  { %v1149_v29 = vsub.f32 %v231_v43, %v1021_v7  ;;  %1443 = vmatpush.msra.mxu1 %v1021_v7  ;;  %1022 = vmatpush.msrb.mxu2 %v1021_v7 }
 0x18e   :  { %1135 = vmatpush.msrb.mxu3 %v1134_v32  ;;  %v1140_v21 = vand.u32 4294901760, %v1139_v50  ;;  %v1145_v2 = vsub.f32 %v1143_v16, %v1144_v20  ;;  %1380 = vmatpush.msra.mxu0 %v1144_v20 }
 0x18f   :  { %v1150_v6 = vand.u32 4294901760, %v1149_v29  ;;  %1195 = vmatpush.msra.mxu2 %v8906_v28  ;;  %v480_v28 = vadd.f32 %v8719_v52, %v8717_v51  ;;  %v476_v51 = vadd.f32 %v8710_v9, %v8705_v31 }
 0x190   :  { %1141 = vmatpush.msrb.mxu3 %v1140_v21  ;;  %v1146_v61 = vand.u32 4294901760, %v1145_v2 }
 0x191   :  { %v1151_v55 = vsub.f32 %v1149_v29, %v1150_v6  ;;  %1198 = vmatpush.msra.mxu2 %v8909_v35  ;;  %1384 = vmatpush.msra.mxu0 %v1150_v6  ;;  %v570_v6 = vadd.f32 %v8824_v42, %v480_v28  ;;  %v565_v42 = vadd.f32 %v8810_v40, %v476_v51 }
 0x192   :  { %1147 = vmatpush.msrb.mxu3 %v1146_v61 }
 0x193   :  { %v1152_v48 = vand.u32 4294901760, %v1151_v55  ;;  %1201 = vmatpush.msra.mxu2 %v8913_v24  ;;  %v674_v52 = vadd.f32 %v8827_v57, %v570_v6  ;;  %v668_v9 = vadd.f32 %v8818_v34, %v565_v42 }
 0x195   :  { %1204 = vmatpush.msra.mxu2 %v8953_v62  ;;  %1153 = vmatpush.msrb.mxu3 %v1152_v48  ;;  %v779_v31 = vadd.f32 %v8839_v53, %v668_v9 }
 0x197   :  { %1271 = vmatpush.msra.mxu3 %v8893_v63  ;;  %1207 = vmatpush.msra.mxu2 %v8966_v22  ;;  %v862_v40 = vadd.f32 %v8841_v30, %v779_v31 }
 0x199   :  { %1273 = vmatpush.msra.mxu3 %v8895_v23  ;;  %1210 = vmatpush.msra.mxu2 %v1125_v39  ;;  %v783_v23 = vadd.f32 %v8847_v59, %v674_v52 }
 0x19b   :  { %1275 = vmatpush.msra.mxu3 %v8902_v17  ;;  %1213 = vmatpush.msra.mxu2 %v1131_v44  ;;  %v866_v17 = vadd.f32 %v8849_v46, %v783_v23  ;;  %v492_v46 = vadd.f32 %v8743_v26, %v8741_v58 }
 0x19d   :  { %1277 = vmatpush.msra.mxu3 %v8929_v41  ;;  %1216 = vmatpush.msra.mxu2 %v1137_v60  ;;  %v585_v53 = vadd.f32 %v8845_v47, %v492_v46 }
 0x19f   :  { %1279 = vmatpush.msra.mxu3 %v8959_v18  ;;  %1219 = vmatpush.msra.mxu2 %v1143_v16  ;;  %v692_v44 = vadd.f32 %v8851_v0, %v585_v53  ;;  %v488_v16 = vadd.f32 %v8735_v38, %v8733_v1 }
 0x1a1   :  { %1281 = vmatpush.msra.mxu3 %v8969_v56  ;;  %1222 = vmatpush.msra.mxu2 %v1149_v29  ;;  %v795_v60 = vadd.f32 %v8863_v14, %v692_v44  ;;  %v580_v29 = vadd.f32 %v8837_v27, %v488_v16 }
 0x1a3   :  { %1283 = vmatpush.msra.mxu3 %v8978_v37  ;;  %v484_v37 = vadd.f32 %v8727_v45, %v8725_v19  ;;  %v878_v45 = vadd.f32 %v8865_v15, %v795_v60  ;;  %v686_v1 = vadd.f32 %v8843_v36, %v580_v29 }
 0x1a5   :  { %1285 = vmatpush.msra.mxu3 %v8986_v3  ;;  %v575_v25 = vadd.f32 %v8831_v10, %v484_v37  ;;  %v791_v2 = vadd.f32 %v8857_v8, %v686_v1 }
 0x1a7   :  { %1287 = vmatpush.msra.mxu3 %v1019_v11  ;;  %v680_v10 = vadd.f32 %v8834_v4, %v575_v25  ;;  %v874_v36 = vadd.f32 %v8859_v33, %v791_v2  ;;  %v9123_v2 = vld [vmem:[%s11558_s4] ss:$0 sm:$0xff] }
 0x1a9   :  { %1289 = vmatpush.msra.mxu3 %v1021_v7  ;;  %v787_v15 = vadd.f32 %v8853_v13, %v680_v10  ;;  %v242_v10 = vld [vmem:[%s11559_s5] sm:$0xf] }
 0x1aa   :  { %v1526_v16 = vsel %vm154_vm2, %v242_v10, 0 }
 0x1ab   :  { %v870_v4 = vadd.f32 %v8855_v49, %v787_v15 }
 0x1bc   :  { %v933_v63 = vpop.permute.xlu2 %932 }
 0x1bd   :  { %955 = vst.msk [vmem:[#allocation2 + $0x10] sm:$0xff] %vm952_vm3, %v933_v63 }
 0x1c4   :  { %v205_v35 = vpop.permute.xlu2 %204  ;;  %v929_v24 = vpop.permute.xlu0 %928  ;;  %v963_v30 = vld [vmem:[#allocation2 + $0x10] sm:$0xff] }
 0x1c5   :  { %225 = vst.msk [vmem:[#allocation2 + $0x20] sm:$0xff] %vm220_vm1, %v205_v35  ;;  %v980_v39 = vsel %vm972_vm4, %v963_v30, 0 }
 0x1c6   :  { %916 = vst.msk [vmem:[#allocation2 + $0x20] sm:$0xff] %vm154_vm2, %v866_v17  ;;  %v1039_v12 = vand.u32 4294901760, %v980_v39 }
 0x1c7   :  { %953 = vst.msk [vmem:[#allocation2] sm:$0xff] %vm952_vm3, %v929_v24 }
 0x1c8   :  { %v9055_v7 = vsub.f32 %v980_v39, %v1039_v12 }
 0x1ca   :  { %v1041_v50 = vand.u32 4294901760, %v9055_v7 }
 0x1cc   :  { %v931_v57 = vpop.permute.xlu1 %930  ;;  %v203_v59 = vpop.permute.xlu0 %202  ;;  %v1042_v38 = vsub.f32 %v9055_v7, %v1041_v50 }
 0x1cd   :  { %954 = vst.msk [vmem:[#allocation2 + $0x8] sm:$0xff] %vm952_vm3, %v931_v57 }
 0x1ce   :  { %224 = vst.msk [vmem:[#allocation2 + $0x18] sm:$0xff] %vm220_vm1, %v203_v59  ;;  %v961_v41 = vld [vmem:[#allocation2] sm:$0xff]  ;;  %v1043_v49 = vand.u32 4294901760, %v1042_v38 }
 0x1cf   :  { %915 = vst.msk [vmem:[#allocation2 + $0x18] sm:$0xff] %vm154_vm2, %v862_v40  ;;  %v974_v34 = vsel %vm972_vm4, %v961_v41, 0 }
 0x1d0   :  { %v1023_v62 = vand.u32 4294901760, %v974_v34 }
 0x1d2   :  { %1155 = vmatmul.f32.vlgmr.msrb.gmra.mxu3 %v1023_v62  ;;  %1386 = vmatmul.f32.vlgmr.msra.gmra.mxu0 %v1023_v62  ;;  %v9035_v18 = vsub.f32 %v974_v34, %v1023_v62 }
 0x1d3   :  { %1445 = vmatmul.f32.vlgmr.msra.gmra.mxu1 %v1023_v62 }
 0x1d4   :  { %v939_v22 = vpop.permute.xlu2 %938  ;;  %v1025_v26 = vand.u32 4294901760, %v9035_v18  ;;  %v962_v58 = vld [vmem:[#allocation2 + $0x8] sm:$0xff] }
 0x1d5   :  { %v977_v56 = vsel %vm972_vm4, %v962_v58, 0 }
 0x1d6   :  { %v1026_v47 = vsub.f32 %v9035_v18, %v1025_v26  ;;  %v1031_v3 = vand.u32 4294901760, %v977_v56 }
 0x1d8   :  { %v1027_v11 = vand.u32 4294901760, %v1026_v47  ;;  %v9047_v43 = vsub.f32 %v977_v56, %v1031_v3 }
 0x1da   :  { %1028 = vmatmul.f32.vlgmr.msrb.gmra.mxu2 %v1027_v11  ;;  %1159 = vmatmul.f32.gmra.mxu3 %v1031_v3  ;;  %v1033_v54 = vand.u32 4294901760, %v9047_v43 }
 0x1db   :  { %1390 = vmatmul.f32.gmra.mxu0 %v1031_v3  ;;  %1449 = vmatmul.f32.gmra.mxu1 %v1031_v3 }
 0x1dc   :  { %v211_v19 = vpop.permute.xlu2 %210  ;;  %v935_v0 = vpop.permute.xlu1 %934  ;;  %v1034_v14 = vsub.f32 %v9047_v43, %v1033_v54 }
 0x1dd   :  { %228 = vst.msk [vmem:[#allocation2 + $0x38] sm:$0xff] %vm220_vm1, %v211_v19 }
 0x1de   :  { %919 = vst.msk [vmem:[#allocation2 + $0x38] sm:$0xff] %vm154_vm2, %v878_v45  ;;  %v1035_v32 = vand.u32 4294901760, %v1034_v14 }
 0x1df   :  { %956 = vst.msk [vmem:[#allocation2 + $0x18] sm:$0xff] %vm952_vm3, %v935_v0 }
 0x1e2   :  { %1036 = vmatmul.f32.gmra.mxu2 %v1035_v32  ;;  %1163 = vmatmul.f32.gmra.mxu3 %v1039_v12  ;;  %v1543_v32 = vand.u32 4294901760, %v1526_v16 }
 0x1e3   :  { %1394 = vmatmul.f32.gmra.mxu0 %v1039_v12  ;;  %1453 = vmatmul.f32.gmra.mxu1 %v1039_v12 }
 0x1e4   :  { %v207_v20 = vpop.permute.xlu1 %206  ;;  %v937_v21 = vpop.permute.xlu0 %936  ;;  %v1626_v15 = vsub.f32 %v1526_v16, %v1543_v32  ;;  %1739 = vmatpush.xpose.msrb.mxu1 %v1543_v32  ;;  %1544 = vmatpush.xpose.msrb.mxu2 %v1543_v32 }
 0x1e5   :  { %226 = vst.msk [vmem:[#allocation2 + $0x28] sm:$0xff] %vm220_vm1, %v207_v20 }
 0x1e6   :  { %917 = vst.msk [vmem:[#allocation2 + $0x28] sm:$0xff] %vm154_vm2, %v870_v4  ;;  %v964_v13 = vld [vmem:[#allocation2 + $0x18] sm:$0xff]  ;;  %1681 = vmatpush.xpose.msrb.mxu0 %v1626_v15 }
 0x1e7   :  { %958 = vst.msk [vmem:[#allocation2 + $0x28] sm:$0xff] %vm952_vm3, %v939_v22  ;;  %v983_v27 = vsel %vm972_vm4, %v964_v13, 0 }
 0x1e8   :  { %957 = vst.msk [vmem:[#allocation2 + $0x20] sm:$0xff] %vm952_vm3, %v937_v21  ;;  %v1047_v55 = vand.u32 4294901760, %v983_v27 }
 0x1ea   :  { %1044 = vmatmul.f32.gmra.mxu2 %v1043_v49  ;;  %1167 = vmatmul.f32.gmra.mxu3 %v1047_v55  ;;  %v9077_v61 = vsub.f32 %v983_v27, %v1047_v55 }
 0x1eb   :  { %1398 = vmatmul.f32.gmra.mxu0 %v1047_v55  ;;  %1457 = vmatmul.f32.gmra.mxu1 %v1047_v55 }
 0x1ec   :  { %v209_v48 = vpop.permute.xlu0 %208  ;;  %v1049_v28 = vand.u32 4294901760, %v9077_v61 }
 0x1ed   :  { %227 = vst.msk [vmem:[#allocation2 + $0x30] sm:$0xff] %vm220_vm1, %v209_v48 }
 0x1ee   :  { %918 = vst.msk [vmem:[#allocation2 + $0x30] sm:$0xff] %vm154_vm2, %v874_v36  ;;  %v1050_v8 = vsub.f32 %v9077_v61, %v1049_v28  ;;  %v966_v6 = vld [vmem:[#allocation2 + $0x28] sm:$0xff] }
 0x1ef   :  { %v965_v63 = vld [vmem:[#allocation2 + $0x20] sm:$0xff]  ;;  %v989_v52 = vsel %vm972_vm4, %v966_v6, 0 }
 0x1f0   :  { %v1051_v51 = vand.u32 4294901760, %v1050_v8  ;;  %v986_v23 = vsel %vm972_vm4, %v965_v63, 0  ;;  %v1063_v17 = vand.u32 4294901760, %v989_v52 }
 0x1f1   :  { %v1055_v42 = vand.u32 4294901760, %v986_v23 }
 0x1f2   :  { %1052 = vmatmul.f32.gmra.mxu2 %v1051_v51  ;;  %v1064_v9 = vsub.f32 %v989_v52, %v1063_v17 }
 0x1f3   :  { %1171 = vmatmul.f32.gmra.mxu3 %v1055_v42  ;;  %1402 = vmatmul.f32.gmra.mxu0 %v1055_v42  ;;  %v1056_v33 = vsub.f32 %v986_v23, %v1055_v42 }
 0x1f4   :  { %1461 = vmatmul.f32.gmra.mxu1 %v1055_v42  ;;  %v941_v35 = vpop.permute.xlu1 %940  ;;  %v1065_v59 = vand.u32 4294901760, %v1064_v9 }
 0x1f5   :  { %959 = vst.msk [vmem:[#allocation2 + $0x30] sm:$0xff] %vm952_vm3, %v941_v35  ;;  %v1057_v24 = vand.u32 4294901760, %v1056_v33 }
 0x1f6   :  { %v1066_v41 = vsub.f32 %v1064_v9, %v1065_v59 }
 0x1f7   :  { %v1058_v31 = vsub.f32 %v1056_v33, %v1057_v24 }
 0x1f8   :  { %v1067_v30 = vand.u32 4294901760, %v1066_v41 }
 0x1f9   :  { %v1059_v57 = vand.u32 4294901760, %v1058_v31 }
 0x1fb   :  { %1060 = vmatmul.f32.gmra.mxu2 %v1059_v57  ;;  %1175 = vmatmul.f32.gmra.mxu3 %v1063_v17 }
 0x1fc   :  { %1406 = vmatmul.f32.gmra.mxu0 %v1063_v17  ;;  %1465 = vmatmul.f32.gmra.mxu1 %v1063_v17  ;;  %v943_v40 = vpop.permute.xlu0 %942  ;;  %v967_v46 = vld [vmem:[#allocation2 + $0x30] sm:$0xff] }
 0x1fd   :  { %960 = vst.msk [vmem:[#allocation2 + $0x38] sm:$0xff] %vm952_vm3, %v943_v40  ;;  %v992_v34 = vsel %vm972_vm4, %v967_v46, 0 }
 0x1fe   :  { %v1071_v62 = vand.u32 4294901760, %v992_v34 }
 0x200   :  { %v1072_v53 = vsub.f32 %v992_v34, %v1071_v62 }
 0x202   :  { %v1073_v22 = vand.u32 4294901760, %v1072_v53 }
 0x203   :  { %1068 = vmatmul.f32.gmra.mxu2 %v1067_v30  ;;  %1179 = vmatmul.f32.gmra.mxu3 %v1071_v62 }
 0x204   :  { %1410 = vmatmul.f32.gmra.mxu0 %v1071_v62  ;;  %1469 = vmatmul.f32.gmra.mxu1 %v1071_v62  ;;  %v1074_v58 = vsub.f32 %v1072_v53, %v1073_v22  ;;  %v968_v56 = vld [vmem:[#allocation2 + $0x38] sm:$0xff] }
 0x205   :  { %v995_v39 = vsel %vm972_vm4, %v968_v56, 0 }
 0x206   :  { %v1079_v37 = vand.u32 4294901760, %v995_v39  ;;  %v1075_v44 = vand.u32 4294901760, %v1074_v58 }
 0x208   :  { %v1080_v47 = vsub.f32 %v995_v39, %v1079_v37 }
 0x20a   :  { %v1081_v3 = vand.u32 4294901760, %v1080_v47 }
 0x20b   :  { %1076 = vmatmul.f32.gmra.mxu2 %v1075_v44  ;;  %1183 = vmatmul.f32.gmra.mxu3 %v1079_v37 }
 0x20c   :  { %1414 = vmatmul.f32.gmra.mxu0 %v1079_v37  ;;  %1473 = vmatmul.f32.gmra.mxu1 %v1079_v37  ;;  %v1082_v60 = vsub.f32 %v1080_v47, %v1081_v3 }
 0x20e   :  { %v1083_v11 = vand.u32 4294901760, %v1082_v60 }
 0x213   :  { %1084 = vmatmul.f32.gmra.mxu2 %v1083_v11  ;;  %1293 = vmatmul.f32.vlgmr.msra.gmra.mxu3 %v1025_v26 }
 0x21b   :  { %1225 = vmatmul.f32.vlgmr.msra.gmra.mxu2 %v9035_v18  ;;  %1299 = vmatmul.f32.gmra.mxu3 %v1033_v54 }
 0x223   :  { %1230 = vmatmul.f32.gmra.mxu2 %v9047_v43  ;;  %1305 = vmatmul.f32.gmra.mxu3 %v1041_v50  ;;  %v1627_v50 = vand.u32 4294901760, %v1626_v15 }
 0x225   :  { %v1628_v20 = vsub.f32 %v1626_v15, %v1627_v50  ;;  %1807 = vmatpush.xpose.msra.mxu2 %v1627_v50 }
 0x227   :  { %v1629_v21 = vand.u32 4294901760, %v1628_v20 }
 0x229   :  { %1630 = vmatpush.xpose.msrb.mxu3 %v1629_v21 }
 0x22b   :  { %1235 = vmatmul.f32.gmra.mxu2 %v9055_v7  ;;  %1311 = vmatmul.f32.gmra.mxu3 %v1049_v28 }
 0x22d   :  { %1857 = vmatpush.xpose.msra.mxu3 %v1543_v32 }
 0x233   :  { %1240 = vmatmul.f32.gmra.mxu2 %v9077_v61  ;;  %1317 = vmatmul.f32.gmra.mxu3 %v1057_v24 }
 0x23b   :  { %1245 = vmatmul.f32.gmra.mxu2 %v1056_v33  ;;  %1323 = vmatmul.f32.gmra.mxu3 %v1065_v59 }
 0x243   :  { %1250 = vmatmul.f32.gmra.mxu2 %v1064_v9  ;;  %1329 = vmatmul.f32.gmra.mxu3 %v1073_v22 }
 0x24b   :  { %1255 = vmatmul.f32.gmra.mxu2 %v1072_v53  ;;  %1335 = vmatmul.f32.gmra.mxu3 %v1081_v3 }
 0x24f   :  { %v1387_v13 = vpop.f32.mrf.mxu0 }
 0x250   :  { %v1446_v27 = vpop.f32.mrf.mxu1 }
 0x253   :  { %1260 = vmatmul.f32.gmra.mxu2 %v1080_v47 }
 0x255   :  { %v1156_v18 = vpop.f32.mrf.mxu3 }
 0x258   :  { %v1391_v36 = vpop.f32.mrf.mxu0  ;;  %v1450_v63 = vpop.f32.mrf.mxu1 }
 0x25d   :  { %v1029_v26 = vpop.f32.mrf.mxu2  ;;  %v1160_v12 = vpop.f32.mrf.mxu3 }
 0x25e   :  { %v1030_v61 = vadd.f32 %v9123_v2, %v1029_v26 }
 0x260   :  { %v1157_v48 = vadd.f32 %v1156_v18, %v1030_v61  ;;  %v1395_v31 = vpop.f32.mrf.mxu0  ;;  %v1454_v46 = vpop.f32.mrf.mxu1 }
 0x265   :  { %v1037_v43 = vpop.f32.mrf.mxu2  ;;  %v1164_v25 = vpop.f32.mrf.mxu3 }
 0x266   :  { %v1038_v52 = vadd.f32 %v9123_v2, %v1037_v43 }
 0x268   :  { %v1161_v17 = vadd.f32 %v1160_v12, %v1038_v52  ;;  %v1399_v18 = vpop.f32.mrf.mxu0 }
 0x26d   :  { %v1045_v54 = vpop.f32.mrf.mxu2  ;;  %v9100_v45 = vpop.f32.mrf.mxu3 }
 0x26e   :  { %v1046_v57 = vadd.f32 %v9123_v2, %v1045_v54  ;;  %v1458_v54 = vpop.f32.mrf.mxu1 }
 0x270   :  { %v1165_v30 = vadd.f32 %v1164_v25, %v1046_v57 }
 0x275   :  { %v1053_v19 = vpop.f32.mrf.mxu2 }
 0x276   :  { %v9102_v0 = vpop.f32.mrf.mxu3  ;;  %v1054_v47 = vadd.f32 %v9123_v2, %v1053_v19  ;;  %v1462_v52 = vpop.f32.mrf.mxu1 }
 0x278   :  { %v1169_v19 = vadd.f32 %v9100_v45, %v1054_v47 }
 0x27e   :  { %v9104_v14 = vpop.f32.mrf.mxu2  ;;  %v9106_v7 = vpop.f32.mrf.mxu3 }
 0x27f   :  { %v1062_v21 = vadd.f32 %v9123_v2, %v9104_v14 }
 0x281   :  { %v1173_v14 = vadd.f32 %v9102_v0, %v1062_v21 }
 0x286   :  { %v9112_v29 = vpop.f32.mrf.mxu2  ;;  %v9114_v4 = vpop.f32.mrf.mxu3 }
 0x28e   :  { %v9116_v38 = vpop.f32.mrf.mxu2  ;;  %v9118_v1 = vpop.f32.mrf.mxu3 }
 0x296   :  { %v9125_v49 = vpop.f32.mrf.mxu2  ;;  %v1294_v55 = vpop.f32.mrf.mxu3 }
 0x29e   :  { %v1226_v28 = vpop.f32.mrf.mxu2  ;;  %v1300_v8 = vpop.f32.mrf.mxu3 }
 0x29f   :  { %v1227_v6 = vadd.f32 %v1226_v28, %v1157_v48 }
 0x2a1   :  { %v1295_v51 = vadd.f32 %v1294_v55, %v1227_v6 }
 0x2a3   :  { %v1388_v23 = vadd.f32 %v1387_v13, %v1295_v51 }
 0x2a5   :  { %v9129_v42 = vadd.f32 %v1446_v27, %v1388_v23 }
 0x2a6   :  { %v1231_v33 = vpop.f32.mrf.mxu2  ;;  %v1306_v35 = vpop.f32.mrf.mxu3 }
 0x2a7   :  { %11832 = vst [vmem:[#allocation73_spill] sm:$0xff] %v9129_v42  ;;  %vm1477_vm5 = vcmp.ge.f32.partialorder %v9129_v42, 0.0  ;;  %v1485_v24 = vmul.f32 0.2, %v9129_v42  ;;  %v1232_v9 = vadd.f32 %v1231_v33, %v1161_v17 }
 0x2a9   :  { %v1301_v59 = vadd.f32 %v1300_v8, %v1232_v9  ;;  %v1493_v40 = vsel %vm1477_vm5, %v9129_v42, %v1485_v24  ;;  %v1403_v8 = vpop.f32.mrf.mxu0 }
 0x2aa   :  { %v1502_v41 = vsel %vm154_vm2, %v1493_v40, 0 }
 0x2ab   :  { %v1392_v34 = vadd.f32 %v1391_v36, %v1301_v59  ;;  %v9136_v62 = vand.u32 4294901760, %v1502_v41 }
 0x2ad   :  { %v9138_v53 = vadd.f32 %v1450_v63, %v1392_v34  ;;  %1632 = vmatmul.f32.vlgmr.msrb.gmra.mxu3 %v9136_v62  ;;  %v1546_v22 = vsub.f32 %v1502_v41, %v9136_v62 }
 0x2ae   :  { %v1236_v58 = vpop.f32.mrf.mxu2  ;;  %v1312_v44 = vpop.f32.mrf.mxu3 }
 0x2af   :  { %11833 = vst [vmem:[#allocation74_spill] sm:$0xff] %v9138_v53  ;;  %v1237_v56 = vadd.f32 %v1236_v58, %v1165_v30  ;;  %1684 = vmatmul.f32.vlgmr.msrb.gmra.mxu0 %v1546_v22  ;;  %v1547_v39 = vand.u32 4294901760, %v1546_v22  ;;  %vm1478_vm6 = vcmp.ge.f32.partialorder %v9138_v53, 0.0  ;;  %v1486_v37 = vmul.f32 0.2, %v9138_v53 }
 0x2b1   :  { %v1307_v3 = vadd.f32 %v1306_v35, %v1237_v56  ;;  %1743 = vmatmul.f32.vlgmr.msrb.gmra.mxu1 %v1547_v39  ;;  %v1548_v60 = vsub.f32 %v1546_v22, %v1547_v39  ;;  %v1494_v11 = vsel %vm1478_vm6, %v9138_v53, %v1486_v37  ;;  %v1070_v35 = vadd.f32 %v9123_v2, %v9112_v29  ;;  %v1407_v30 = vpop.f32.mrf.mxu0  ;;  %v1466_v37 = vpop.f32.mrf.mxu1 }
 0x2b2   :  { %v1505_v26 = vsel %vm154_vm2, %v1494_v11, 0 }
 0x2b3   :  { %v1396_v12 = vadd.f32 %v1395_v31, %v1307_v3  ;;  %v1549_v43 = vand.u32 4294901760, %v1548_v60  ;;  %v9147_v25 = vand.u32 4294901760, %v1505_v26  ;;  %v1177_v34 = vadd.f32 %v9106_v7, %v1070_v35 }
 0x2b5   :  { %v9149_v10 = vadd.f32 %v1454_v46, %v1396_v12  ;;  %1550 = vmatmul.f32.vlgmr.msrb.gmra.mxu2 %v1549_v43  ;;  %1636 = vmatmul.f32.gmra.mxu3 %v9147_v25  ;;  %v1554_v16 = vsub.f32 %v1505_v26, %v9147_v25 }
 0x2b6   :  { %v1241_v32 = vpop.f32.mrf.mxu2  ;;  %v1318_v61 = vpop.f32.mrf.mxu3 }
 0x2b7   :  { %v1242_v15 = vadd.f32 %v1241_v32, %v1169_v19  ;;  %1689 = vmatmul.f32.gmra.mxu0 %v1554_v16  ;;  %v1555_v50 = vand.u32 4294901760, %v1554_v16  ;;  %vm1479_vm7 = vcmp.ge.f32.partialorder %v9149_v10, 0.0  ;;  %v1487_v20 = vmul.f32 0.2, %v9149_v10 }
 0x2b9   :  { %v1313_v13 = vadd.f32 %v1312_v44, %v1242_v15  ;;  %1749 = vmatmul.f32.gmra.mxu1 %v1555_v50  ;;  %v1556_v27 = vsub.f32 %v1554_v16, %v1555_v50  ;;  %v1495_v55 = vsel %vm1479_vm7, %v9149_v10, %v1487_v20  ;;  %v1078_v44 = vadd.f32 %v9123_v2, %v9116_v38  ;;  %v1411_v50 = vpop.f32.mrf.mxu0 }
 0x2ba   :  { %v1508_v45 = vsel %vm154_vm2, %v1495_v55, 0  ;;  %v1086_v20 = vadd.f32 %v9123_v2, %v9125_v49  ;;  %vm2059_vm7 = vcmask 523264  }
 0x2bb   :  { %v1400_v36 = vadd.f32 %v1399_v18, %v1313_v13  ;;  %v1557_v48 = vand.u32 4294901760, %v1556_v27  ;;  %v9160_v28 = vand.u32 4294901760, %v1508_v45  ;;  %v1181_v43 = vadd.f32 %v9114_v4, %v1078_v44  ;;  %v1470_v27 = vpop.f32.mrf.mxu1 }
 0x2bd   :  { %v9162_v6 = vadd.f32 %v1458_v54, %v1400_v36  ;;  %1558 = vmatmul.f32.gmra.mxu2 %v1557_v48  ;;  %1640 = vmatmul.f32.gmra.mxu3 %v9160_v28  ;;  %v1562_v63 = vsub.f32 %v1508_v45, %v9160_v28 }
 0x2be   :  { %v1246_v51 = vpop.f32.mrf.mxu2  ;;  %v1324_v46 = vpop.f32.mrf.mxu3 }
 0x2bf   :  { %v1247_v23 = vadd.f32 %v1246_v51, %v1173_v14  ;;  %1694 = vmatmul.f32.gmra.mxu0 %v1562_v63  ;;  %v1563_v17 = vand.u32 4294901760, %v1562_v63  ;;  %vm1480_vm8 = vcmp.ge.f32.partialorder %v9162_v6, 0.0  ;;  %v1488_v33 = vmul.f32 0.2, %v9162_v6 }
 0x2c1   :  { %v1319_v24 = vadd.f32 %v1318_v61, %v1247_v23  ;;  %1755 = vmatmul.f32.gmra.mxu1 %v1563_v17  ;;  %v1564_v9 = vsub.f32 %v1562_v63, %v1563_v17  ;;  %v1496_v31 = vsel %vm1480_vm8, %v9162_v6, %v1488_v33  ;;  %v1415_v35 = vpop.f32.mrf.mxu0 }
 0x2c2   :  { %v1511_v0 = vsel %vm154_vm2, %v1496_v31, 0 }
 0x2c3   :  { %v1404_v57 = vadd.f32 %v1403_v8, %v1319_v24  ;;  %v1565_v59 = vand.u32 4294901760, %v1564_v9  ;;  %v9173_v40 = vand.u32 4294901760, %v1511_v0  ;;  %v1185_v8 = vadd.f32 %v9118_v1, %v1086_v20 }
 0x2c5   :  { %v9175_v41 = vadd.f32 %v1462_v52, %v1404_v57  ;;  %1566 = vmatmul.f32.gmra.mxu2 %v1565_v59  ;;  %1644 = vmatmul.f32.gmra.mxu3 %v9173_v40  ;;  %v1570_v29 = vsub.f32 %v1511_v0, %v9173_v40  ;;  %v1474_v0 = vpop.f32.mrf.mxu1 }
 0x2c6   :  { %v1251_v22 = vpop.f32.mrf.mxu2  ;;  %v1330_v54 = vpop.f32.mrf.mxu3 }
 0x2c7   :  { %v1252_v58 = vadd.f32 %v1251_v22, %v1177_v34  ;;  %1699 = vmatmul.f32.gmra.mxu0 %v1570_v29  ;;  %v1571_v56 = vand.u32 4294901760, %v1570_v29  ;;  %vm1481_vm9 = vcmp.ge.f32.partialorder %v9175_v41, 0.0  ;;  %v1489_v39 = vmul.f32 0.2, %v9175_v41 }
 0x2c9   :  { %v1325_v47 = vadd.f32 %v1324_v46, %v1252_v58  ;;  %1761 = vmatmul.f32.gmra.mxu1 %v1571_v56  ;;  %v1572_v3 = vsub.f32 %v1570_v29, %v1571_v56  ;;  %v1497_v7 = vsel %vm1481_vm9, %v9175_v41, %v1489_v39 }
 0x2ca   :  { %v1514_v60 = vsel %vm154_vm2, %v1497_v7, 0 }
 0x2cb   :  { %v1408_v11 = vadd.f32 %v1407_v30, %v1325_v47  ;;  %v1573_v18 = vand.u32 4294901760, %v1572_v3  ;;  %v9186_v26 = vand.u32 4294901760, %v1514_v60  ;;  %v11836_v3 = vld [vmem:[#allocation34_spill] sm:$0xff] }
 0x2cd   :  { %v9188_v12 = vadd.f32 %v1466_v37, %v1408_v11  ;;  %1574 = vmatmul.f32.gmra.mxu2 %v1573_v18  ;;  %1648 = vmatmul.f32.gmra.mxu3 %v9186_v26  ;;  %v1578_v38 = vsub.f32 %v1514_v60, %v9186_v26  ;;  %v11837_v60 = vld [vmem:[#allocation22_spill] sm:$0xff] }
 0x2ce   :  { %v1256_v19 = vpop.f32.mrf.mxu2  ;;  %v1336_v51 = vpop.f32.mrf.mxu3 }
 0x2cf   :  { %v1257_v16 = vadd.f32 %v1256_v19, %v1181_v43  ;;  %1704 = vmatmul.f32.gmra.mxu0 %v1578_v38  ;;  %v1579_v32 = vand.u32 4294901760, %v1578_v38  ;;  %vm1482_vm10 = vcmp.ge.f32.partialorder %v9188_v12, 0.0  ;;  %v1490_v15 = vmul.f32 0.2, %v9188_v12  ;;  %v11840_v43 = vld [vmem:[#allocation18_spill] sm:$0xff] }
 0x2d1   :  { %v1331_v21 = vadd.f32 %v1330_v54, %v1257_v16  ;;  %1767 = vmatmul.f32.gmra.mxu1 %v1579_v32  ;;  %v1580_v13 = vsub.f32 %v1578_v38, %v1579_v32  ;;  %v1498_v4 = vsel %vm1482_vm10, %v9188_v12, %v1490_v15 }
 0x2d2   :  { %v1517_v55 = vsel %vm154_vm2, %v1498_v4, 0 }
 0x2d3   :  { %v1412_v61 = vadd.f32 %v1411_v50, %v1331_v21  ;;  %v1581_v45 = vand.u32 4294901760, %v1580_v13  ;;  %v1585_v36 = vand.u32 4294901760, %v1517_v55 }
 0x2d5   :  { %v9199_v48 = vadd.f32 %v1470_v27, %v1412_v61  ;;  %1582 = vmatmul.f32.gmra.mxu2 %v1581_v45  ;;  %1652 = vmatmul.f32.gmra.mxu3 %v1585_v36  ;;  %v1586_v14 = vsub.f32 %v1517_v55, %v1585_v36  ;;  %v11670_v27 = vmov 2   ;;  %v11672_v55 = vmov 0  }
 0x2d6   :  { %v1261_v63 = vpop.f32.mrf.mxu2  ;;  %8050 = vset.pattern.permute.xlu1 %v11670_v27  ;;  %8048 = vset.pattern.permute.xlu0 %v11672_v55 }
 0x2d7   :  { %v1262_v2 = vadd.f32 %v1261_v63, %v1185_v8  ;;  %1709 = vmatmul.f32.gmra.mxu0 %v1586_v14  ;;  %v1587_v49 = vand.u32 4294901760, %v1586_v14  ;;  %vm1483_vm11 = vcmp.ge.f32.partialorder %v9199_v48, 0.0  ;;  %v1491_v52 = vmul.f32 0.2, %v9199_v48  ;;  %8054 = vset.pattern.permute.xlu2 %v11670_v27 }
 0x2d9   :  { %v1337_v23 = vadd.f32 %v1336_v51, %v1262_v2  ;;  %1773 = vmatmul.f32.gmra.mxu1 %v1587_v49  ;;  %v1588_v17 = vsub.f32 %v1586_v14, %v1587_v49  ;;  %v1499_v33 = vsel %vm1483_vm11, %v9199_v48, %v1491_v52  ;;  %vm11708_vm11 = vcmask 1040384  }
 0x2da   :  { %v1520_v24 = vsel %vm154_vm2, %v1499_v33, 0 }
 0x2db   :  { %v1416_v9 = vadd.f32 %v1415_v35, %v1337_v23  ;;  %v1589_v1 = vand.u32 4294901760, %v1588_v17  ;;  %v1593_v31 = vand.u32 4294901760, %v1520_v24 }
 0x2dd   :  { %v9206_v57 = vadd.f32 %v1474_v0, %v1416_v9  ;;  %1590 = vmatmul.f32.gmra.mxu2 %v1589_v1  ;;  %1656 = vmatmul.f32.gmra.mxu3 %v1593_v31  ;;  %v1594_v59 = vsub.f32 %v1520_v24, %v1593_v31 }
 0x2df   :  { %1714 = vmatmul.f32.gmra.mxu0 %v1594_v59  ;;  %v1595_v46 = vand.u32 4294901760, %v1594_v59  ;;  %vm1484_vm12 = vcmp.ge.f32.partialorder %v9206_v57, 0.0  ;;  %v1492_v34 = vmul.f32 0.2, %v9206_v57 }
 0x2e1   :  { %1779 = vmatmul.f32.gmra.mxu1 %v1595_v46  ;;  %v1596_v29 = vsub.f32 %v1594_v59, %v1595_v46  ;;  %v1500_v30 = vsel %vm1484_vm12, %v9206_v57, %v1492_v34  ;;  %vm11707_vm12 = vcmask 1041408  }
 0x2e2   :  { %v1523_v22 = vsel %vm154_vm2, %v1500_v30, 0 }
 0x2e3   :  { %v1597_v58 = vand.u32 4294901760, %v1596_v29  ;;  %v1601_v56 = vand.u32 4294901760, %v1523_v22 }
 0x2e5   :  { %1598 = vmatmul.f32.gmra.mxu2 %v1597_v58  ;;  %1660 = vmatmul.f32.gmra.mxu3 %v1601_v56  ;;  %v1602_v39 = vsub.f32 %v1523_v22, %v1601_v56 }
 0x2e7   :  { %1719 = vmatmul.f32.gmra.mxu0 %v1602_v39  ;;  %v1603_v37 = vand.u32 4294901760, %v1602_v39 }
 0x2e9   :  { %1785 = vmatmul.f32.gmra.mxu1 %v1603_v37  ;;  %v1604_v44 = vsub.f32 %v1602_v39, %v1603_v37 }
 0x2eb   :  { %v1605_v47 = vand.u32 4294901760, %v1604_v44  ;;  %v11666_v44 = vmov 3  }
 0x2ed   :  { %1606 = vmatmul.f32.gmra.mxu2 %v1605_v47  ;;  %1859 = vmatmul.f32.vlgmr.msra.gmra.mxu3 %v9136_v62 }
 0x2f5   :  { %1809 = vmatmul.f32.vlgmr.msra.gmra.mxu2 %v9136_v62  ;;  %1863 = vmatmul.f32.gmra.mxu3 %v9147_v25  ;;  %v11834_v62 = vld [vmem:[#allocation10_spill] sm:$0xff] }
 0x2fd   :  { %1813 = vmatmul.f32.gmra.mxu2 %v9147_v25  ;;  %1867 = vmatmul.f32.gmra.mxu3 %v9160_v28  ;;  %v7988_v25 = vpack.i.bf16 %v11834_v62, %v8364_v5 }
 0x2ff   :  { %7989 = vrot.lane.b32.xlu1 %v7988_v25, %s8291_s27 }
 0x305   :  { %1817 = vmatmul.f32.gmra.mxu2 %v9160_v28  ;;  %1871 = vmatmul.f32.gmra.mxu3 %v9173_v40  ;;  %v11835_v28 = vld [vmem:[#allocation30_spill] sm:$0xff] }
 0x306   :  { %v8003_v7 = vpack.i.bf16 %v11836_v3, %v11835_v28 }
 0x308   :  { %8004 = vrot.lane.b32.xlu1 %v8003_v7, %s8291_s27 }
 0x30d   :  { %1821 = vmatmul.f32.gmra.mxu2 %v9173_v40  ;;  %1875 = vmatmul.f32.gmra.mxu3 %v9186_v26  ;;  %v11838_v40 = vld [vmem:[#allocation26_spill] sm:$0xff] }
 0x30e   :  { %v7998_v11 = vpack.i.bf16 %v11838_v40, %v11837_v60 }
 0x310   :  { %7999 = vrot.lane.b32.xlu0 %v7998_v11, %s8291_s27  ;;  %8019 = vrot.lane.b32.xlu1 %v7998_v11, %s8290_s14 }
 0x315   :  { %1825 = vmatmul.f32.gmra.mxu2 %v9186_v26  ;;  %1879 = vmatmul.f32.gmra.mxu3 %v1585_v36  ;;  %v11839_v26 = vld [vmem:[#allocation13_spill] sm:$0xff] }
 0x316   :  { %v8013_v38 = vpack.i.bf16 %v11840_v43, %v11839_v26 }
 0x318   :  { %8014 = vrot.lane.b32.xlu0 %v8013_v38, %s8290_s14  ;;  %8034 = vrot.lane.b32.xlu1 %v8013_v38, %s8292_s28 }
 0x319   :  { %7994 = vrot.lane.b32.xlu2 %v8013_v38, %s8291_s27 }
 0x31d   :  { %1829 = vmatmul.f32.gmra.mxu2 %v1585_v36  ;;  %1883 = vmatmul.f32.gmra.mxu3 %v1593_v31 }
 0x320   :  { %8029 = vrot.lane.b32.xlu0 %v7988_v25, %s8292_s28 }
 0x321   :  { %8009 = vrot.lane.b32.xlu2 %v7988_v25, %s8290_s14  ;;  %v11668_v25 = vmov 1  }
 0x325   :  { %1833 = vmatmul.f32.gmra.mxu2 %v1593_v31  ;;  %1887 = vmatmul.f32.gmra.mxu3 %v1601_v56 }
 0x328   :  { %8044 = vrot.lane.b32.xlu0 %v8003_v7, %s8292_s28 }
 0x329   :  { %8024 = vrot.lane.b32.xlu2 %v8003_v7, %s8290_s14 }
 0x32c   :  { %v1685_v36 = vpop.f32.mrf.mxu0 }
 0x32d   :  { %1837 = vmatmul.f32.gmra.mxu2 %v1601_v56 }
 0x32e   :  { %v1744_v8 = vpop.f32.mrf.mxu1 }
 0x330   :  { %v1633_v18 = vpop.f32.mrf.mxu3 }
 0x331   :  { %8039 = vrot.lane.b32.xlu2 %v7998_v11, %s8292_s28 }
 0x334   :  { %v1690_v2 = vpop.f32.mrf.mxu0 }
 0x336   :  { %v1750_v23 = vpop.f32.mrf.mxu1 }
 0x338   :  { %v1551_v54 = vpop.f32.mrf.mxu2  ;;  %v1637_v19 = vpop.f32.mrf.mxu3 }
 0x339   :  { %v1634_v49 = vadd.f32 %v1633_v18, %v1551_v54 }
 0x33b   :  { %v1686_v17 = vadd.f32 %v1685_v36, %v1634_v49 }
 0x33c   :  { %v1695_v33 = vpop.f32.mrf.mxu0 }
 0x33d   :  { %v1745_v24 = vadd.f32 %v1744_v8, %v1686_v17 }
 0x33e   :  { %v1756_v46 = vpop.f32.mrf.mxu1 }
 0x340   :  { %v1559_v16 = vpop.f32.mrf.mxu2  ;;  %v1641_v32 = vpop.f32.mrf.mxu3 }
 0x341   :  { %v1638_v35 = vadd.f32 %v1637_v19, %v1559_v16 }
 0x343   :  { %v1691_v0 = vadd.f32 %v1690_v2, %v1638_v35 }
 0x344   :  { %v1700_v22 = vpop.f32.mrf.mxu0 }
 0x345   :  { %v1751_v34 = vadd.f32 %v1750_v23, %v1691_v0 }
 0x346   :  { %v1762_v47 = vpop.f32.mrf.mxu1 }
 0x348   :  { %v1567_v15 = vpop.f32.mrf.mxu2  ;;  %v9232_v50 = vpop.f32.mrf.mxu3 }
 0x349   :  { %v1642_v29 = vadd.f32 %v1641_v32, %v1567_v15 }
 0x34b   :  { %v1696_v37 = vadd.f32 %v1695_v33, %v1642_v29 }
 0x34c   :  { %v1705_v38 = vpop.f32.mrf.mxu0 }
 0x34d   :  { %v1757_v7 = vadd.f32 %v1756_v46, %v1696_v37 }
 0x34e   :  { %v1768_v16 = vpop.f32.mrf.mxu1 }
 0x350   :  { %v9235_v20 = vpop.f32.mrf.mxu2  ;;  %v9237_v21 = vpop.f32.mrf.mxu3 }
 0x351   :  { %v1646_v15 = vadd.f32 %v9232_v50, %v9235_v20 }
 0x353   :  { %v1701_v36 = vadd.f32 %v1700_v22, %v1646_v15 }
 0x354   :  { %v1710_v8 = vpop.f32.mrf.mxu0 }
 0x355   :  { %v1763_v50 = vadd.f32 %v1762_v47, %v1701_v36 }
 0x356   :  { %v1774_v20 = vpop.f32.mrf.mxu1 }
 0x358   :  { %v9240_v13 = vpop.f32.mrf.mxu2  ;;  %v9242_v4 = vpop.f32.mrf.mxu3 }
 0x359   :  { %v1650_v23 = vadd.f32 %v9237_v21, %v9240_v13 }
 0x35c   :  { %v9287_v35 = vpop.f32.mrf.mxu0 }
 0x35e   :  { %v9300_v29 = vpop.f32.mrf.mxu1 }
 0x360   :  { %v1591_v61 = vpop.f32.mrf.mxu2  ;;  %v9247_v45 = vpop.f32.mrf.mxu3 }
 0x361   :  { %v1654_v49 = vadd.f32 %v9242_v4, %v1591_v61  ;;  %v1706_v61 = vadd.f32 %v1705_v38, %v1650_v23 }
 0x363   :  { %v1711_v33 = vadd.f32 %v1710_v8, %v1654_v49  ;;  %v1769_v21 = vadd.f32 %v1768_v16, %v1706_v61 }
 0x364   :  { %v1720_v37 = vpop.f32.mrf.mxu0 }
 0x368   :  { %v9249_v14 = vpop.f32.mrf.mxu2  ;;  %v9251_v63 = vpop.f32.mrf.mxu3 }
 0x370   :  { %v9253_v52 = vpop.f32.mrf.mxu2  ;;  %v1860_v51 = vpop.f32.mrf.mxu3 }
 0x371   :  { %v9285_v17 = vpop.permute.xlu1 %7989  ;;  %v1662_v22 = vadd.f32 %v9251_v63, %v9253_v52  ;;  %v1786_v63 = vpop.f32.mrf.mxu1 }
 0x378   :  { %v1810_v9 = vpop.f32.mrf.mxu2  ;;  %v1864_v1 = vpop.f32.mrf.mxu3 }
 0x379   :  { %v1811_v31 = vadd.f32 %v1810_v9, %v1745_v24  ;;  %v1775_v9 = vadd.f32 %v1774_v20, %v1711_v33 }
 0x37a   :  { %v9296_v0 = vpop.permute.xlu1 %8004 }
 0x37b   :  { %v9255_v59 = vadd.f32 %v1860_v51, %v1811_v31  ;;  %v8007_v53 = vunpack.i.h.bf16 %v9296_v0 }
 0x37d   :  { %11841 = vst [vmem:[#allocation75_spill] sm:$0xff] %v9255_v59  ;;  %1964 = vperm.xlu1 %8050, %v9255_v59   ;;  %1893 = vperm.xlu0 %8048, %v9255_v59  }
 0x380   :  { %v1814_v30 = vpop.f32.mrf.mxu2  ;;  %v1868_v56 = vpop.f32.mrf.mxu3 }
 0x381   :  { %v1815_v58 = vadd.f32 %v1814_v30, %v1751_v34 }
 0x382   :  { %v8000_v30 = vpop.permute.xlu0 %7999 }
 0x383   :  { %v9259_v39 = vadd.f32 %v1864_v1, %v1815_v58 }
 0x385   :  { %11842 = vst [vmem:[#allocation76_spill] sm:$0xff] %v9259_v39  ;;  %1968 = vperm.xlu2 %8054, %v9259_v39   ;;  %8051 = vset.pattern.permute.xlu1 %v11666_v44 }
 0x386   :  { %8049 = vset.pattern.permute.xlu0 %v11668_v25  ;;  %1996 = vperm.xlu1 %8051, %v9255_v59  }
 0x387   :  { %1932 = vperm.xlu0 %8049, %v9255_v59  }
 0x388   :  { %v1818_v11 = vpop.f32.mrf.mxu2  ;;  %v1872_v54 = vpop.f32.mrf.mxu3 }
 0x389   :  { %v1819_v18 = vadd.f32 %v1818_v11, %v1757_v7  ;;  %v8020_v7 = vpop.permute.xlu1 %8019  ;;  %v1721_v11 = vadd.f32 %v1720_v37, %v1662_v22 }
 0x38a   :  { %v8015_v16 = vpop.permute.xlu0 %8014  ;;  %v8021_v22 = vunpack.i.l.bf16 %v8020_v7 }
 0x38b   :  { %v9267_v19 = vadd.f32 %v1868_v56, %v1819_v18  ;;  %v7995_v18 = vpop.permute.xlu2 %7994  ;;  %v8016_v15 = vunpack.i.l.bf16 %v8015_v16 }
 0x38c   :  { %v7996_v38 = vunpack.i.l.bf16 %v7995_v18  ;;  %v7997_v52 = vunpack.i.h.bf16 %v7995_v18 }
 0x38d   :  { %8055 = vset.pattern.permute.xlu2 %v11666_v44  ;;  %11843 = vst [vmem:[#allocation77_spill] sm:$0xff] %v9267_v19 }
 0x38e   :  { %2000 = vperm.xlu2 %8055, %v9259_v39   ;;  %8052 = vset.pattern.permute.xlu1 %v11672_v55  ;;  %v148_v8 = vsel %vm145_vm0, %v11839_v26, %v7996_v38  ;;  %v149_v49 = vsel %vm145_vm0, %v11840_v43, %v7997_v52 }
 0x38f   :  { %8058 = vset.pattern.permute.xlu0 %v11670_v27  ;;  %1898 = vperm.xlu1 %8052, %v9259_v39   ;;  %v157_v33 = vsel %vm154_vm2, %v148_v8, %v8016_v15 }
 0x390   :  { %1972 = vperm.xlu0 %8058, %v9267_v19   ;;  %v1822_v32 = vpop.f32.mrf.mxu2  ;;  %v1876_v2 = vpop.f32.mrf.mxu3 }
 0x391   :  { %v1823_v4 = vadd.f32 %v1822_v32, %v1763_v50 }
 0x393   :  { %v9289_v24 = vadd.f32 %v1872_v54, %v1823_v4  ;;  %v1787_v54 = vadd.f32 %v1786_v63, %v1721_v11  ;;  %v9346_v38 = vpop.permute.xlu2 %8009 }
 0x395   :  { %11844 = vst [vmem:[#allocation78_spill] sm:$0xff] %v9289_v24 }
 0x396   :  { %8056 = vset.pattern.permute.xlu2 %v11672_v55 }
 0x397   :  { %1903 = vperm.xlu2 %8056, %v9267_v19   ;;  %8053 = vset.pattern.permute.xlu1 %v11668_v25 }
 0x398   :  { %8059 = vset.pattern.permute.xlu0 %v11666_v44  ;;  %v1826_v51 = vpop.f32.mrf.mxu2  ;;  %1936 = vperm.xlu1 %8053, %v9259_v39   ;;  %v1880_v1 = vpop.f32.mrf.mxu3 }
 0x399   :  { %2004 = vperm.xlu0 %8059, %v9267_v19   ;;  %v1827_v46 = vadd.f32 %v1826_v51, %v1769_v21  ;;  %v8035_v51 = vpop.permute.xlu1 %8034  ;;  %v8001_v21 = vunpack.i.l.bf16 %v8000_v30 }
 0x39a   :  { %v8037_v23 = vunpack.i.h.bf16 %v8035_v51  ;;  %v8036_v50 = vunpack.i.l.bf16 %v8035_v51 }
 0x39b   :  { %v9305_v58 = vadd.f32 %v1876_v2, %v1827_v46  ;;  %v8017_v2 = vunpack.i.h.bf16 %v8015_v16  ;;  %v8022_v46 = vunpack.i.h.bf16 %v8020_v7  ;;  %v150_v11 = vsel %vm145_vm0, %v11837_v60, %v8001_v21  ;;  %v9362_v63 = vpop.permute.xlu2 %8024 }
 0x39c   :  { %v9325_v61 = vsel %vm163_vm13, %v157_v33, %v8036_v50  ;;  %v8026_v42 = vunpack.i.l.bf16 %v9362_v63 }
 0x39d   :  { %11846 = vst [vmem:[#allocation80_spill] sm:$0xff] %v9305_v58  ;;  %vm11710_vm1 = vcmp.gt.f32.partialorder %v9325_v61, 0.5 }
 0x39e   :  { %11848 = vst [vmem:[#allocation82_spill] sm:$0xff] %v9325_v61 }
 0x39f   :  { %8057 = vset.pattern.permute.xlu2 %v11668_v25 }
 0x3a0   :  { %v1830_v31 = vpop.f32.mrf.mxu2  ;;  %1940 = vperm.xlu2 %8057, %v9267_v19   ;;  %8060 = vset.pattern.permute.xlu1 %v11672_v55  ;;  %v1884_v47 = vpop.f32.mrf.mxu3 }
 0x3a1   :  { %v1831_v13 = vadd.f32 %v1830_v31, %v1775_v9  ;;  %1908 = vperm.xlu1 %8060, %v9289_v24   ;;  %8068 = vset.pattern.permute.xlu0 %v11672_v55  ;;  %v158_v9 = vsel %vm154_vm2, %v149_v49, %v8017_v2  ;;  %v8002_v31 = vunpack.i.h.bf16 %v8000_v30 }
 0x3a3   :  { %v9298_v34 = vadd.f32 %v1880_v1, %v1831_v13  ;;  %v9330_v1 = vsel %vm163_vm13, %v158_v9, %v8037_v23  ;;  %v1658_v13 = vadd.f32 %v9247_v45, %v9249_v14  ;;  %v151_v37 = vsel %vm145_vm0, %v11838_v40, %v8002_v31 }
 0x3a4   :  { %11849 = vst [vmem:[#allocation83_spill] sm:$0xff] %v9330_v1  ;;  %v9350_v45 = vsel %vm154_vm2, %v150_v11, %v8021_v22  ;;  %v9353_v14 = vsel %vm154_vm2, %v151_v37, %v8022_v46  ;;  %vm11709_vm9 = vcmp.gt.f32.partialorder %v9330_v1, 0.5 }
 0x3a5   :  { %11845 = vst [vmem:[#allocation79_spill] sm:$0xff] %v9298_v34  ;;  %1918 = vperm.xlu0 %8068, %v9298_v34   ;;  %v1716_v18 = vadd.f32 %v9287_v35, %v1658_v13 }
 0x3a7   :  { %v1781_v30 = vadd.f32 %v9300_v29, %v1716_v18  ;;  %v9369_v29 = vpop.permute.xlu2 %8039 }
 0x3a8   :  { %v1834_v56 = vpop.f32.mrf.mxu2  ;;  %8064 = vset.pattern.permute.xlu2 %v11672_v55  ;;  %v1888_v20 = vpop.f32.mrf.mxu3 }
 0x3a9   :  { %1913 = vperm.xlu2 %8064, %v9305_v58   ;;  %8061 = vset.pattern.permute.xlu1 %v11668_v25  ;;  %v1835_v7 = vadd.f32 %v1834_v56, %v1781_v30  ;;  %v8030_v56 = vpop.permute.xlu0 %8029 }
 0x3aa   :  { %1944 = vperm.xlu1 %8061, %v9289_v24   ;;  %v8032_v39 = vunpack.i.h.bf16 %v8030_v56  ;;  %v8031_v19 = vunpack.i.l.bf16 %v8030_v56 }
 0x3ab   :  { %v9360_v35 = vadd.f32 %v1884_v47, %v1835_v7 }
 0x3ad   :  { %8069 = vset.pattern.permute.xlu0 %v11668_v25  ;;  %11850 = vst [vmem:[#allocation84_spill] sm:$0xff] %v9360_v35 }
 0x3ae   :  { %1952 = vperm.xlu0 %8069, %v9298_v34  }
 0x3b0   :  { %v1838_v32 = vpop.f32.mrf.mxu2 }
 0x3b1   :  { %v1839_v36 = vadd.f32 %v1838_v32, %v1787_v54  ;;  %8065 = vset.pattern.permute.xlu2 %v11668_v25  ;;  %v9380_v52 = vpop.permute.xlu0 %8044 }
 0x3b2   :  { %1948 = vperm.xlu2 %8065, %v9305_v58   ;;  %8062 = vset.pattern.permute.xlu1 %v11670_v27  ;;  %v8047_v56 = vunpack.i.h.bf16 %v9380_v52 }
 0x3b3   :  { %1976 = vperm.xlu1 %8062, %v9289_v24   ;;  %v9322_v4 = vadd.f32 %v1888_v20, %v1839_v36 }
 0x3b5   :  { %11847 = vst [vmem:[#allocation81_spill] sm:$0xff] %v9322_v4 }
 0x3b6   :  { %8078 = vset.pattern.permute.xlu0 %v11670_v27 }
 0x3b7   :  { %1992 = vperm.xlu0 %8078, %v9322_v4  }
 0x3ba   :  { %8066 = vset.pattern.permute.xlu2 %v11670_v27 }
 0x3bb   :  { %1980 = vperm.xlu2 %8066, %v9305_v58   ;;  %8063 = vset.pattern.permute.xlu1 %v11666_v44 }
 0x3bc   :  { %2008 = vperm.xlu1 %8063, %v9289_v24  }
 0x3bf   :  { %8079 = vset.pattern.permute.xlu0 %v11666_v44 }
 0x3c0   :  { %2024 = vperm.xlu0 %8079, %v9322_v4  }
 0x3c3   :  { %8067 = vset.pattern.permute.xlu2 %v11666_v44 }
 0x3c4   :  { %2012 = vperm.xlu2 %8067, %v9305_v58   ;;  %8070 = vset.pattern.permute.xlu1 %v11670_v27 }
 0x3c5   :  { %1984 = vperm.xlu1 %8070, %v9298_v34  }
 0x3c8   :  { %8081 = vset.pattern.permute.xlu0 %v11668_v25 }
 0x3cc   :  { %8074 = vset.pattern.permute.xlu2 %v11670_v27 }
 0x3cd   :  { %1988 = vperm.xlu2 %8074, %v9360_v35   ;;  %8071 = vset.pattern.permute.xlu1 %v11672_v55 }
 0x3ce   :  { %1923 = vperm.xlu1 %8071, %v9360_v35  }
 0x3d5   :  { %8075 = vset.pattern.permute.xlu2 %v11672_v55 }
 0x3d6   :  { %8072 = vset.pattern.permute.xlu1 %v11668_v25  ;;  %1928 = vperm.xlu2 %8075, %v9322_v4  }
 0x3d7   :  { %1956 = vperm.xlu1 %8072, %v9360_v35  }
 0x3de   :  { %8076 = vset.pattern.permute.xlu2 %v11668_v25  ;;  %v8011_v25 = vunpack.i.l.bf16 %v9346_v38 }
 0x3df   :  { %v9375_v47 = vpop.permute.xlu2 %1968  ;;  %8073 = vset.pattern.permute.xlu1 %v11666_v44  ;;  %1960 = vperm.xlu2 %8076, %v9322_v4  }
 0x3e0   :  { %2016 = vperm.xlu1 %8073, %v9298_v34  }
 0x3e7   :  { %8077 = vset.pattern.permute.xlu2 %v11666_v44  ;;  %v8012_v44 = vunpack.i.h.bf16 %v9346_v38 }
 0x3e8   :  { %v9383_v54 = vpop.permute.xlu2 %2000  ;;  %2020 = vperm.xlu2 %8077, %v9360_v35  }
 0x3ef   :  { %v1965_v16 = vpop.permute.xlu1 %1964  ;;  %v1894_v32 = vpop.permute.xlu0 %1893 }
 0x3f0   :  { %8080 = vset.pattern.permute.xlu2 %v11672_v55 }
 0x3f1   :  { %v9387_v15 = vpop.permute.xlu2 %1903 }
 0x3f8   :  { %v1997_v36 = vpop.permute.xlu1 %1996 }
 0x3f9   :  { %v1933_v8 = vpop.permute.xlu0 %1932 }
 0x3fa   :  { %v2027_v2 = vsel %vm145_vm0, %v1894_v32, %v1933_v8  ;;  %v1941_v51 = vpop.permute.xlu2 %1940  ;;  %v7992_v8 = vunpack.i.h.bf16 %v9285_v17 }
 0x3fb   :  { %v2035_v49 = vsel %vm154_vm2, %v2027_v2, %v1965_v16  ;;  %v7991_v2 = vunpack.i.l.bf16 %v9285_v17 }
 0x3fc   :  { %v9392_v23 = vsel %vm163_vm13, %v2035_v49, %v1997_v36  ;;  %v8006_v49 = vunpack.i.l.bf16 %v9296_v0  ;;  %v147_v27 = vsel %vm145_vm0, %v11834_v62, %v7992_v8  ;;  %v8027_v8 = vunpack.i.h.bf16 %v9362_v63 }
 0x3fd   :  { %v146_v55 = vsel %vm145_vm0, %v8364_v5, %v7991_v2  ;;  %v156_v35 = vsel %vm154_vm2, %v147_v27, %v8012_v44  ;;  %v8046_v2 = vunpack.i.l.bf16 %v9380_v52  ;;  %v153_v0 = vsel %vm145_vm0, %v11836_v3, %v8007_v53 }
 0x3fe   :  { %v152_v17 = vsel %vm145_vm0, %v11835_v28, %v8006_v49  ;;  %v155_v38 = vsel %vm154_vm2, %v146_v55, %v8011_v25  ;;  %v9425_v34 = vsel %vm163_vm13, %v156_v35, %v8032_v39  ;;  %v162_v55 = vsel %vm154_vm2, %v153_v0, %v8027_v8 }
 0x3ff   :  { %v161_v58 = vsel %vm154_vm2, %v152_v17, %v8026_v42  ;;  %11851 = vst [vmem:[#allocation85_spill] sm:$0xff] %v9425_v34  ;;  %v9428_v49 = vsel %vm163_vm13, %v155_v38, %v8031_v19  ;;  %v8041_v27 = vunpack.i.l.bf16 %v9369_v29  ;;  %vm11711_vm14 = vcmp.gt.f32.partialorder %v9425_v34, 0.5 }
 0x400   :  { %11852 = vst [vmem:[#allocation86_spill] sm:$0xff] %v9428_v49  ;;  %v9434_v44 = vsel %vm163_vm13, %v161_v58, %v8046_v2  ;;  %vm172_vm15 = vcmp.gt.f32.partialorder %v9428_v49, 0.5  ;;  %v8042_v42 = vunpack.i.h.bf16 %v9369_v29  ;;  %v9443_v19 = vsel %vm163_vm13, %v162_v55, %v8047_v56 }
 0x401   :  { %v1899_v50 = vpop.permute.xlu1 %1898  ;;  %11853 = vst [vmem:[#allocation87_spill] sm:$0xff] %v9434_v44  ;;  %vm178_vm5 = vcmp.gt.f32.partialorder %v9434_v44, 0.5  ;;  %v2029_v35 = vsel %vm145_vm0, %v9387_v15, %v1941_v51  ;;  %v9453_v29 = vsel %vm163_vm13, %v9350_v45, %v8041_v27  ;;  %vm11684_vm6 = vcmp.gt.f32.partialorder %v9443_v19, 0.5 }
 0x402   :  { %v1973_v13 = vpop.permute.xlu0 %1972  ;;  %11854 = vst [vmem:[#allocation88_spill] sm:$0xff] %v9443_v19  ;;  %vm176_vm8 = vcmp.gt.f32.partialorder %v9453_v29, 0.5 }
 0x403   :  { %v1914_v20 = vpop.permute.xlu2 %1913  ;;  %11855 = vst [vmem:[#allocation89_spill] sm:$0xff] %v9453_v29 }
 0x40a   :  { %v1937_v33 = vpop.permute.xlu1 %1936 }
 0x40b   :  { %v2005_v11 = vpop.permute.xlu0 %2004  ;;  %v2028_v53 = vsel %vm145_vm0, %v1899_v50, %v1937_v33  ;;  %v2037_v33 = vsel %vm154_vm2, %v2029_v35, %v1973_v13 }
 0x40c   :  { %v1949_v9 = vpop.permute.xlu2 %1948  ;;  %v2045_v15 = vsel %vm163_vm13, %v2037_v33, %v2005_v11  ;;  %v2051_v11 = vsel %vm172_vm15, %v9392_v23, -1e+30 }
 0x40d   :  { %v2031_v63 = vsel %vm145_vm0, %v1914_v20, %v1949_v9  ;;  %v2060_v55 = vsel %vm2059_vm7, %v2051_v11, -inf  ;;  %v11865_v11 = vld [vmem:[#allocation17_spill] sm:$0xff] }
 0x413   :  { %v9394_v31 = vpop.permute.xlu1 %1908 }
 0x415   :  { %v1981_v21 = vpop.permute.xlu2 %1980 }
 0x417   :  { %v9396_v30 = vpop.permute.xlu0 %1918 }
 0x41c   :  { %v1945_v46 = vpop.permute.xlu1 %1944 }
 0x41d   :  { %v2030_v51 = vsel %vm145_vm0, %v9394_v31, %v1945_v46  ;;  %v2053_v46 = vsel %vm11710_vm1, %v2045_v15, -1e+30 }
 0x41e   :  { %v2013_v22 = vpop.permute.xlu2 %2012 }
 0x420   :  { %v9402_v36 = vpop.permute.xlu0 %1952 }
 0x425   :  { %v1977_v37 = vpop.permute.xlu1 %1976 }
 0x426   :  { %v2038_v9 = vsel %vm154_vm2, %v2030_v51, %v1977_v37 }
 0x427   :  { %v1989_v18 = vpop.permute.xlu2 %1988 }
 0x429   :  { %v1993_v24 = vpop.permute.xlu0 %1992 }
 0x42e   :  { %v9398_v7 = vpop.permute.xlu1 %2008 }
 0x42f   :  { %v2046_v31 = vsel %vm163_vm13, %v2038_v9, %v9398_v7  ;;  %v11858_v9 = vld [vmem:[#allocation14_spill] sm:$0xff] }
 0x430   :  { %v1929_v16 = vpop.permute.xlu2 %1928 }
 0x437   :  { %v9400_v32 = vpop.permute.xlu1 %1984 }
 0x439   :  { %v1961_v59 = vpop.permute.xlu2 %1960 }
 0x43a   :  { %v2034_v25 = vsel %vm145_vm0, %v1929_v16, %v1961_v59  ;;  %v2036_v16 = vsel %vm154_vm2, %v2028_v53, %v9375_v47 }
 0x43b   :  { %v2042_v58 = vsel %vm154_vm2, %v2034_v25, %v1993_v24  ;;  %v2039_v24 = vsel %vm154_vm2, %v2031_v63, %v1981_v21  ;;  %v9472_v21 = vsel %vm163_vm13, %v9353_v14, %v8042_v42  ;;  %v2044_v13 = vsel %vm163_vm13, %v2036_v16, %v9383_v54 }
 0x43c   :  { %v2047_v45 = vsel %vm163_vm13, %v2039_v24, %v2013_v22  ;;  %11856 = vst [vmem:[#allocation90_spill] sm:$0xff] %v9472_v21  ;;  %v2032_v14 = vsel %vm145_vm0, %v9396_v30, %v9402_v36  ;;  %vm177_vm10 = vcmp.gt.f32.partialorder %v9472_v21, 0.5  ;;  %v2052_v30 = vsel %vm11711_vm14, %v2044_v13, -1e+30  ;;  %v11859_v13 = vld [vmem:[#allocation11_spill] sm:$0xff] }
 0x43d   :  { %v2055_v22 = vsel %vm176_vm8, %v2047_v45, -1e+30  ;;  %v2040_v7 = vsel %vm154_vm2, %v2032_v14, %v9400_v32  ;;  %v2062_v36 = vsel %vm2059_vm7, %v2053_v46, -inf  ;;  %v2061_v27 = vsel %vm2059_vm7, %v2052_v30, -inf  ;;  %v11860_v46 = vld [vmem:[#allocation19_spill] sm:$0xff] }
 0x43e   :  { %v2064_v8 = vsel %vm2059_vm7, %v2055_v22, -inf  ;;  %v11861_v22 = vld [vmem:[#allocation15_spill] sm:$0xff] }
 0x43f   :  { %v2065_v42 = vmax.f32 %v2060_v55, %v2064_v8  ;;  %v11863_v14 = vld [vmem:[#allocation23_spill] sm:$0xff]  ;;  %v11871_v8 = vld [vmem:[#allocation25_spill] sm:$0xff]  ;;  %v11876_v55 = vld [vmem:[#allocation36_spill] sm:$0xff] }
 0x440   :  { %v1924_v4 = vpop.permute.xlu1 %1923  ;;  %v11869_v30 = vld [vmem:[#allocation31_spill] sm:$0xff] }
 0x442   :  { %v2021_v52 = vpop.permute.xlu2 %2020 }
 0x449   :  { %v1957_v39 = vpop.permute.xlu1 %1956 }
 0x44a   :  { %v2033_v59 = vsel %vm145_vm0, %v1924_v4, %v1957_v39  ;;  %v2025_v4 = vpop.permute.xlu0 %2024 }
 0x44b   :  { %v2041_v50 = vsel %vm154_vm2, %v2033_v59, %v1989_v18  ;;  %v2050_v20 = vsel %vm163_vm13, %v2042_v58, %v2025_v4  ;;  %v2054_v18 = vsel %vm11709_vm9, %v2046_v31, -1e+30 }
 0x44c   :  { %v2049_v17 = vsel %vm163_vm13, %v2041_v50, %v2021_v52  ;;  %v2058_v37 = vsel %vm11684_vm6, %v2050_v20, -1e+30  ;;  %v2063_v32 = vsel %vm2059_vm7, %v2054_v18, -inf  ;;  %vm11706_vm6 = vcmask 1042432   ;;  %v11857_v20 = vld [vmem:[#allocation16_spill] sm:$0xff]  ;;  %v11866_v18 = vld [vmem:[#allocation27_spill] sm:$0xff] }
 0x44d   :  { %v2057_v47 = vsel %vm178_vm5, %v2049_v17, -1e+30  ;;  %v2070_v2 = vsel %vm2059_vm7, %v2058_v37, -inf  ;;  %v11862_v37 = vld [vmem:[#allocation12_spill] sm:$0xff] }
 0x44e   :  { %v2068_v54 = vsel %vm2059_vm7, %v2057_v47, -inf  ;;  %v2071_v53 = vmax.f32 %v2063_v32, %v2070_v2  ;;  %v11872_v2 = vld [vmem:[#allocation35_spill] sm:$0xff]  ;;  %v11877_v32 = vld [vmem:[#allocation33_spill] sm:$0xff] }
 0x44f   :  { %v2069_v56 = vmax.f32 %v2062_v36, %v2068_v54  ;;  %v11864_v54 = vld [vmem:[#allocation20_spill] sm:$0xff] }
 0x450   :  { %v11870_v36 = vld [vmem:[#allocation28_spill] sm:$0xff] }
 0x451   :  { %v2073_v59 = vmax.f32 %v2069_v56, %v2071_v53  ;;  %v11874_v56 = vld [vmem:[#allocation29_spill] sm:$0xff]  ;;  %v11881_v53 = vmov 0  }
 0x452   :  { %v2017_v38 = vpop.permute.xlu1 %2016 }
 0x453   :  { %v2048_v0 = vsel %vm163_vm13, %v2040_v7, %v2017_v38  ;;  %v11867_v7 = vld [vmem:[#allocation24_spill] sm:$0xff]  ;;  %v11868_v38 = vld [vmem:[#allocation21_spill] sm:$0xff] }
 0x454   :  { %v2056_v23 = vsel %vm177_vm10, %v2048_v0, -1e+30  ;;  %v11873_v0 = vld [vmem:[#allocation32_spill] sm:$0xff] }
 0x455   :  { %v2066_v25 = vsel %vm2059_vm7, %v2056_v23, -inf  ;;  %v11875_v23 = vld [vmem:[#allocation39_spill] sm:$0xff] }
 0x456   :  { %v2067_v39 = vmax.f32 %v2061_v27, %v2066_v25  ;;  %v11878_v27 = vld [vmem:[#allocation43_spill] sm:$0xff]  ;;  %v11879_v25 = vld [vmem:[#allocation40_spill] sm:$0xff] }
 0x458   :  { %v2072_v58 = vmax.f32 %v2065_v42, %v2067_v39  ;;  %v11880_v42 = vld [vmem:[#allocation37_spill] sm:$0xff] }
 0x45a   :  { %v2074_v35 = vmax.f32 %v2072_v58, %v2073_v59 }
 0x45c   :  { %v2075_v63 = vrot.slane %v2074_v35, 4 }
 0x45e   :  { %v2076_v52 = vmax.f32 %v2074_v35, %v2075_v63 }
 0x460   :  { %v2077_v50 = vrot.slane %v2076_v52, 2 }
 0x462   :  { %v2078_v33 = vmax.f32 %v2076_v52, %v2077_v50 }
 0x464   :  { %v2079_v16 = vrot.slane %v2078_v33, 1 }
 0x466   :  { %v2080_v24 = vmax.f32 %v2078_v33, %v2079_v16 }
 0x468   :  { %2088 = vrot.lane.b32.xlu0 %v2080_v24, %s8297_s0  ;;  %2085 = vrot.lane.b32.xlu2 %v2080_v24, %s8298_s29 }
 0x469   :  { %2082 = vrot.lane.b32.xlu1 %v2080_v24, %s8299_s10 }
 0x470   :  { %3471 = vrot.lane.b32.xlu0 %v9199_v48, %s8298_s29  ;;  %3473 = vrot.lane.b32.xlu2 %v9206_v57, %s8298_s29 }
 0x478   :  { %3463 = vrot.lane.b32.xlu0 %v9149_v10, %s8298_s29  ;;  %3469 = vrot.lane.b32.xlu2 %v9188_v12, %s8298_s29 }
 0x480   :  { %3465 = vrot.lane.b32.xlu2 %v9162_v6, %s8298_s29 }
 0x49e   :  { %2487 = vxpose.xlu1.b32.start [1/8] (short) (narrow) %v8364_v5, 16 }
 0x4a6   :  { %2488 = vxpose.xlu1.b32.cont [2/8] (short) (narrow) %v11834_v62, 16 }
 0x4ae   :  { %2489 = vxpose.xlu1.b32.cont [3/8] (short) (narrow) %v11839_v26, 16 }
 0x4b6   :  { %2490 = vxpose.xlu1.b32.cont [4/8] (short) (narrow) %v11840_v43, 16 }
 0x4be   :  { %2491 = vxpose.xlu1.b32.cont [5/8] (short) (narrow) %v11837_v60, 16 }
 0x4c2   :  { %v2086_v6 = vpop.permute.xlu2 %2085 }
 0x4c6   :  { %2492 = vxpose.xlu1.b32.cont [6/8] (short) (narrow) %v11838_v40, 16 }
 0x4ce   :  { %2493 = vxpose.xlu1.b32.cont [7/8] (short) (narrow) %v11835_v28, 16 }
 0x4d6   :  { %2494 = vxpose.xlu1.b32.end [8/8] (short) (narrow) %v11836_v3, 16 }
 0x4da   :  { %v2089_v48 = vpop.permute.xlu0 %2088 }
 0x4db   :  { %v2083_v10 = vpop.permute.xlu1 %2082 }
 0x4dc   :  { %v2092_v12 = vsel %vm11708_vm11, %v2080_v24, %v2083_v10 }
 0x4dd   :  { %v2094_v57 = vsel %vm11707_vm12, %v2092_v12, %v2086_v6 }
 0x4de   :  { %v2096_v4 = vsel %vm11706_vm6, %v2094_v57, %v2089_v48 }
 0x4df   :  { %v2098_v17 = vsel %vm145_vm0, %v2096_v4, 0 }
 0x4e0   :  { %v2115_v15 = vand.u32 4294901760, %v2098_v17 }
 0x4e2   :  { %2116 = vmatpush.xpose.msra.mxu0 %v2115_v15  ;;  %2311 = vmatpush.xpose.msrb.mxu3 %v2115_v15  ;;  %v2198_v51 = vsub.f32 %v2098_v17, %v2115_v15 }
 0x4e4   :  { %2253 = vmatpush.xpose.msrb.mxu2 %v2198_v51  ;;  %v2199_v45 = vand.u32 4294901760, %v2198_v51 }
 0x4e5   :  { %2122 = vmatmul.f32.vlgmr.msra.gmra.mxu0 %v11857_v20  ;;  %2315 = vmatmul.f32.vlgmr.msrb.gmra.mxu3 %v11858_v9 }
 0x4e6   :  { %2379 = vmatpush.xpose.msrb.mxu0 %v2199_v45  ;;  %v2200_v47 = vsub.f32 %v2198_v51, %v2199_v45 }
 0x4e7   :  { %2256 = vmatmul.f32.vlgmr.msrb.gmra.mxu2 %v11859_v13 }
 0x4e8   :  { %v2201_v31 = vand.u32 4294901760, %v2200_v47 }
 0x4ea   :  { %2202 = vmatpush.xpose.msra.mxu1 %v2201_v31 }
 0x4ed   :  { %2130 = vmatmul.f32.gmra.mxu0 %v11860_v46  ;;  %7771 = vmatmul.msk.f32.vlgmr.msra.gmra.mxu1 %vm145_vm0, %v8364_v5 }
 0x4ee   :  { %2429 = vmatpush.xpose.msrb.mxu1 %v2115_v15  ;;  %2321 = vmatmul.f32.gmra.mxu3 %v11861_v22 }
 0x4ef   :  { %2261 = vmatmul.f32.gmra.mxu2 %v11862_v37 }
 0x4f5   :  { %2138 = vmatmul.f32.gmra.mxu0 %v11863_v14  ;;  %7772 = vmatmul.msk.f32.gmra.mxu1 %vm145_vm0, %v11834_v62 }
 0x4f6   :  { %2327 = vmatmul.f32.gmra.mxu3 %v11864_v54 }
 0x4f7   :  { %2266 = vmatmul.f32.gmra.mxu2 %v11865_v11 }
 0x4fd   :  { %2146 = vmatmul.f32.gmra.mxu0 %v11866_v18  ;;  %7773 = vmatmul.msk.f32.gmra.mxu1 %vm145_vm0, %v11839_v26 }
 0x4fe   :  { %2333 = vmatmul.f32.gmra.mxu3 %v11867_v7 }
 0x4ff   :  { %2271 = vmatmul.f32.gmra.mxu2 %v11868_v38 }
 0x505   :  { %2154 = vmatmul.f32.gmra.mxu0 %v11869_v30  ;;  %7774 = vmatmul.msk.f32.gmra.mxu1 %vm145_vm0, %v11840_v43 }
 0x506   :  { %2339 = vmatmul.f32.gmra.mxu3 %v11870_v36 }
 0x507   :  { %2276 = vmatmul.f32.gmra.mxu2 %v11871_v8 }
 0x50d   :  { %2162 = vmatmul.f32.gmra.mxu0 %v11872_v2  ;;  %7775 = vmatmul.msk.f32.gmra.mxu1 %vm145_vm0, %v11837_v60 }
 0x50e   :  { %2345 = vmatmul.f32.gmra.mxu3 %v11873_v0 }
 0x50f   :  { %2281 = vmatmul.f32.gmra.mxu2 %v11874_v56 }
 0x515   :  { %2170 = vmatmul.f32.gmra.mxu0 %v11875_v23  ;;  %7776 = vmatmul.msk.f32.gmra.mxu1 %vm145_vm0, %v11838_v40 }
 0x516   :  { %2351 = vmatmul.f32.gmra.mxu3 %v11876_v55 }
 0x517   :  { %2286 = vmatmul.f32.gmra.mxu2 %v11877_v32 }
 0x51d   :  { %2178 = vmatmul.f32.gmra.mxu0 %v11878_v27  ;;  %7777 = vmatmul.msk.f32.gmra.mxu1 %vm145_vm0, %v11835_v28 }
 0x51e   :  { %2357 = vmatmul.f32.gmra.mxu3 %v11879_v25 }
 0x51f   :  { %2291 = vmatmul.f32.gmra.mxu2 %v11880_v42 }
 0x525   :  { %7778 = vmatmul.msk.f32.gmra.mxu1 %vm145_vm0, %v11836_v3  ;;  %7779 = vmatmul.msk.f32.vlgmr.msrb.gmra.mxu0 %vm145_vm0, %v8364_v5 }
 0x529   :  { %8115 = vset.pattern.permute.xlu1 %v11881_v53 }
 0x52d   :  { %7780 = vmatmul.msk.f32.gmra.mxu0 %vm145_vm0, %v11834_v62  ;;  %7787 = vmatmul.msk.f32.vlgmr.msrb.gmra.mxu1 %vm145_vm0, %v8364_v5 }
 0x530   :  { %3467 = vrot.lane.b32.xlu1 %v9175_v41, %s8298_s29 }
 0x535   :  { %7781 = vmatmul.msk.f32.gmra.mxu0 %vm145_vm0, %v11839_v26  ;;  %7788 = vmatmul.msk.f32.gmra.mxu1 %vm145_vm0, %v11834_v62 }
 0x53d   :  { %7782 = vmatmul.msk.f32.gmra.mxu0 %vm145_vm0, %v11840_v43  ;;  %7789 = vmatmul.msk.f32.gmra.mxu1 %vm145_vm0, %v11839_v26 }
 0x545   :  { %7783 = vmatmul.msk.f32.gmra.mxu0 %vm145_vm0, %v11837_v60  ;;  %7790 = vmatmul.msk.f32.gmra.mxu1 %vm145_vm0, %v11840_v43 }
 0x54d   :  { %7784 = vmatmul.msk.f32.gmra.mxu0 %vm145_vm0, %v11838_v40  ;;  %7791 = vmatmul.msk.f32.gmra.mxu1 %vm145_vm0, %v11837_v60 }
 0x555   :  { %7785 = vmatmul.msk.f32.gmra.mxu0 %vm145_vm0, %v11835_v28  ;;  %7792 = vmatmul.msk.f32.gmra.mxu1 %vm145_vm0, %v11838_v40 }
 0x55d   :  { %7786 = vmatmul.msk.f32.gmra.mxu0 %vm145_vm0, %v11836_v3  ;;  %7793 = vmatmul.msk.f32.gmra.mxu1 %vm145_vm0, %v11835_v28 }
 0x562   :  { %v2123_v41 = vpop.f32.mrf.mxu0 }
 0x565   :  { %7794 = vmatmul.msk.f32.gmra.mxu1 %vm145_vm0, %v11836_v3 }
 0x568   :  { %v9610_v48 = vpop.f32.mrf.mxu3 }
 0x56a   :  { %v2131_v39 = vpop.f32.mrf.mxu0  ;;  %v2205_v58 = vpop.f32.mrf.mxu1 }
 0x56b   :  { %v2257_v10 = vpop.f32.mrf.mxu2  ;;  %v2206_v54 = vadd.f32 %v2205_v58, %v2123_v41  ;;  %v11887_v41 = vld [vmem:[#allocation76_spill] sm:$0xff] }
 0x571   :  { %v2322_v15 = vpop.f32.mrf.mxu3 }
 0x572   :  { %v2139_v59 = vpop.f32.mrf.mxu0  ;;  %v2209_v35 = vpop.f32.mrf.mxu1 }
 0x573   :  { %v2262_v17 = vpop.f32.mrf.mxu2  ;;  %v2210_v30 = vadd.f32 %v2209_v35, %v2131_v39 }
 0x575   :  { %v2263_v37 = vadd.f32 %v2262_v17, %v2210_v30 }
 0x579   :  { %v2328_v31 = vpop.f32.mrf.mxu3 }
 0x57a   :  { %v2147_v63 = vpop.f32.mrf.mxu0  ;;  %v2213_v52 = vpop.f32.mrf.mxu1 }
 0x57b   :  { %v2267_v47 = vpop.f32.mrf.mxu2  ;;  %v2214_v36 = vadd.f32 %v2213_v52, %v2139_v59  ;;  %v2258_v59 = vadd.f32 %v2257_v10, %v2206_v54  ;;  %v11884_v54 = vld [vmem:[#allocation84_spill] sm:$0xff]  ;;  %v11888_v10 = vld [vmem:[#allocation75_spill] sm:$0xff] }
 0x57d   :  { %v2268_v11 = vadd.f32 %v2267_v47, %v2214_v36 }
 0x581   :  { %v2334_v21 = vpop.f32.mrf.mxu3 }
 0x582   :  { %v2155_v50 = vpop.f32.mrf.mxu0  ;;  %v2217_v33 = vpop.f32.mrf.mxu1 }
 0x583   :  { %v2272_v61 = vpop.f32.mrf.mxu2  ;;  %v2218_v56 = vadd.f32 %v2217_v33, %v2147_v63 }
 0x585   :  { %v2273_v38 = vadd.f32 %v2272_v61, %v2218_v56 }
 0x589   :  { %v2340_v3 = vpop.f32.mrf.mxu3 }
 0x58a   :  { %v2163_v16 = vpop.f32.mrf.mxu0  ;;  %v2221_v24 = vpop.f32.mrf.mxu1 }
 0x58b   :  { %v2277_v49 = vpop.f32.mrf.mxu2  ;;  %v2222_v23 = vadd.f32 %v2221_v24, %v2155_v50  ;;  %v2335_v50 = vadd.f32 %v2334_v21, %v2273_v38  ;;  %v2317_v21 = vadd.f32 %v9610_v48, %v2258_v59  ;;  %v11885_v38 = vld [vmem:[#allocation78_spill] sm:$0xff] }
 0x58d   :  { %v2278_v8 = vadd.f32 %v2277_v49, %v2222_v23  ;;  %v2329_v49 = vadd.f32 %v2328_v31, %v2268_v11 }
 0x58f   :  { %v2341_v14 = vadd.f32 %v2340_v3, %v2278_v8  ;;  %v11882_v3 = vld [vmem:[#allocation79_spill] sm:$0xff] }
 0x591   :  { %v2346_v27 = vpop.f32.mrf.mxu3 }
 0x592   :  { %v2171_v6 = vpop.f32.mrf.mxu0  ;;  %v2225_v12 = vpop.f32.mrf.mxu1 }
 0x593   :  { %v2282_v28 = vpop.f32.mrf.mxu2  ;;  %v2226_v40 = vadd.f32 %v2225_v12, %v2163_v16  ;;  %v11889_v12 = vld [vmem:[#allocation81_spill] sm:$0xff] }
 0x595   :  { %v2283_v60 = vadd.f32 %v2282_v28, %v2226_v40 }
 0x597   :  { %v2347_v26 = vadd.f32 %v2346_v27, %v2283_v60  ;;  %v11886_v27 = vld [vmem:[#allocation77_spill] sm:$0xff] }
 0x599   :  { %v2352_v43 = vpop.f32.mrf.mxu3 }
 0x59a   :  { %v2179_v57 = vpop.f32.mrf.mxu0  ;;  %v2229_v4 = vpop.f32.mrf.mxu1 }
 0x59b   :  { %v2287_v0 = vpop.f32.mrf.mxu2  ;;  %v2230_v2 = vadd.f32 %v2229_v4, %v2171_v6 }
 0x59d   :  { %v2288_v18 = vadd.f32 %v2287_v0, %v2230_v2  ;;  %v2323_v0 = vadd.f32 %v2322_v15, %v2263_v37 }
 0x59f   :  { %v2353_v24 = vadd.f32 %v2352_v43, %v2288_v18 }
 0x5a1   :  { %v2358_v36 = vpop.f32.mrf.mxu3 }
 0x5a2   :  { %v2233_v51 = vpop.f32.mrf.mxu1  ;;  %v9612_v45 = vpop.f32.mrf.mxu0 }
 0x5a3   :  { %v2234_v16 = vadd.f32 %v2233_v51, %v2179_v57  ;;  %v2292_v63 = vpop.f32.mrf.mxu2  ;;  %v2503_v57 = vpop.trf.xlu1 }
 0x5a5   :  { %v2293_v61 = vadd.f32 %v2292_v63, %v2234_v16 }
 0x5aa   :  { %v2386_v19 = vpop.f32.mrf.mxu0  ;;  %v9614_v1 = vpop.f32.mrf.mxu1 }
 0x5ab   :  { %v2387_v18 = vadd.f32 %v2386_v19, %v2323_v0 }
 0x5b2   :  { %v2390_v34 = vpop.f32.mrf.mxu0  ;;  %v2436_v44 = vpop.f32.mrf.mxu1 }
 0x5b3   :  { %v2391_v60 = vadd.f32 %v2390_v34, %v2329_v49  ;;  %v2437_v34 = vadd.f32 %v2436_v44, %v2387_v18  ;;  %v2504_v49 = vpop.trf.xlu1 }
 0x5b5   :  { %v2464_v58 = vsub.f32 %v11887_v41, %v2437_v34 }
 0x5ba   :  { %v2394_v29 = vpop.f32.mrf.mxu0  ;;  %v2440_v53 = vpop.f32.mrf.mxu1 }
 0x5bb   :  { %v2395_v23 = vadd.f32 %v2394_v29, %v2335_v50  ;;  %v2441_v43 = vadd.f32 %v2440_v53, %v2391_v60  ;;  %v2383_v29 = vadd.f32 %v9612_v45, %v2317_v21  ;;  %v2520_v45 = vsel %vm2059_vm7, %v2503_v57, 0 }
 0x5c2   :  { %v2398_v25 = vpop.f32.mrf.mxu0  ;;  %v2444_v42 = vpop.f32.mrf.mxu1 }
 0x5c3   :  { %v2399_v28 = vadd.f32 %v2398_v25, %v2341_v14  ;;  %v2445_v56 = vadd.f32 %v2444_v42, %v2395_v23  ;;  %v11883_v14 = vld [vmem:[#allocation80_spill] sm:$0xff]  ;;  %v2465_v25 = vsub.f32 %v11886_v27, %v2441_v43 }
 0x5c5   :  { %v2466_v37 = vsub.f32 %v11885_v38, %v2445_v56  ;;  %v2475_v44 = vmul.f32 1.442695, %v2465_v25 }
 0x5c7   :  { %v2477_v52 = vmul.f32 1.442695, %v2466_v37 }
 0x5ca   :  { %v2402_v55 = vpop.f32.mrf.mxu0  ;;  %v2448_v32 = vpop.f32.mrf.mxu1 }
 0x5cb   :  { %v2403_v22 = vadd.f32 %v2402_v55, %v2347_v26  ;;  %v2449_v39 = vadd.f32 %v2448_v32, %v2399_v28  ;;  %v2433_v32 = vadd.f32 %v9614_v1, %v2383_v29  ;;  %v2473_v1 = vmul.f32 1.442695, %v2464_v58 }
 0x5cd   :  { %v2463_v6 = vsub.f32 %v11888_v10, %v2433_v32 }
 0x5cf   :  { %v2471_v15 = vmul.f32 1.442695, %v2463_v6 }
 0x5d2   :  { %v2452_v7 = vpop.f32.mrf.mxu1  ;;  %v2406_v62 = vpop.f32.mrf.mxu0 }
 0x5d3   :  { %v2453_v40 = vadd.f32 %v2452_v7, %v2403_v22  ;;  %v2407_v35 = vadd.f32 %v2406_v62, %v2353_v24  ;;  %v2467_v22 = vsub.f32 %v11883_v14, %v2449_v39  ;;  %v2359_v62 = vadd.f32 %v2358_v36, %v2293_v61 }
 0x5d4   :  { %v9642_v24 = vand.u32 4294901760, %v2520_v45 }
 0x5d5   :  { %v2468_v26 = vsub.f32 %v11882_v3, %v2453_v40  ;;  %v2479_v42 = vmul.f32 1.442695, %v2467_v22 }
 0x5d6   :  { %11890 = vst [vmem:[#allocation79_spill] sm:$0xff] %v9642_v24  ;;  %v9668_v60 = vsub.f32 %v2520_v45, %v9642_v24 }
 0x5d7   :  { %v2481_v8 = vmul.f32 1.442695, %v2468_v26 }
 0x5d8   :  { %11891 = vst [vmem:[#allocation80_spill] sm:$0xff] %v9668_v60  ;;  %v9697_v14 = vand.u32 4294901760, %v9668_v60 }
 0x5da   :  { %v2456_v2 = vpop.f32.mrf.mxu1  ;;  %v2410_v7 = vpop.f32.mrf.mxu0  ;;  %11892 = vst [vmem:[#allocation84_spill] sm:$0xff] %v9697_v14  ;;  %v2552_v32 = vsub.f32 %v9668_v60, %v9697_v14 }
 0x5db   :  { %v2457_v30 = vadd.f32 %v2456_v2, %v2407_v35  ;;  %v2411_v53 = vadd.f32 %v2410_v7, %v2359_v62  ;;  %v2523_v2 = vsel %vm2059_vm7, %v2504_v49, 0 }
 0x5dc   :  { %v9699_v22 = vand.u32 4294901760, %v2523_v2 }
 0x5dd   :  { %v2469_v11 = vsub.f32 %v11884_v54, %v2457_v30 }
 0x5de   :  { %11893 = vst [vmem:[#allocation78_spill] sm:$0xff] %v9699_v22 }
 0x5df   :  { %v2483_v55 = vmul.f32 1.442695, %v2469_v11 }
 0x5e1   :  { %8169 = vpow2.f32 %v2483_v55  ;;  %v9726_v55 = vsub.f32 %v2523_v2, %v9699_v22 }
 0x5e2   :  { %v2460_v19 = vpop.f32.mrf.mxu1  ;;  %8171 = vpow2.f32 %v2481_v8 }
 0x5e3   :  { %v2461_v33 = vadd.f32 %v2460_v19, %v2411_v53  ;;  %8173 = vpow2.f32 %v2479_v42  ;;  %11894 = vst [vmem:[#allocation77_spill] sm:$0xff] %v9726_v55 }
 0x5e4   :  { %8175 = vpow2.f32 %v2477_v52  ;;  %v9741_v52 = vand.u32 4294901760, %v9726_v55 }
 0x5e5   :  { %v2470_v48 = vsub.f32 %v11889_v12, %v2461_v33  ;;  %8177 = vpow2.f32 %v2475_v44  ;;  %v9743_v33 = vand.u32 4294901760, %v2552_v32 }
 0x5e6   :  { %11895 = vst [vmem:[#allocation76_spill] sm:$0xff] %v9741_v52  ;;  %v2560_v57 = vsub.f32 %v9726_v55, %v9741_v52 }
 0x5e7   :  { %v9627_v4 = vpop.eup %8169  ;;  %v2485_v17 = vmul.f32 1.442695, %v2470_v48  ;;  %11896 = vst [vmem:[#allocation75_spill] sm:$0xff] %v9743_v33 }
 0x5e8   :  { %v9629_v51 = vpop.eup %8171  ;;  %v9633_v47 = vand.u32 4294901760, %v9627_v4  ;;  %v9754_v45 = vand.u32 4294901760, %v2560_v57  ;;  %v11904_v57 = vld [vmem:[#allocation27_spill] sm:$0xff] }
 0x5e9   :  { %8179 = vpow2.f32 %v2485_v17  ;;  %v9635_v31 = vpop.eup %8173  ;;  %v9638_v16 = vand.u32 4294901760, %v9629_v51 }
 0x5ea   :  { %8181 = vpow2.f32 %v2473_v1  ;;  %v9640_v50 = vpop.eup %8175  ;;  %v9647_v28 = vand.u32 4294901760, %v9635_v31  ;;  %v9651_v40 = vsub.f32 %v9627_v4, %v9633_v47  ;;  %11897 = vst [vmem:[#allocation81_spill] sm:$0xff] %v9754_v45 }
 0x5eb   :  { %8183 = vpow2.f32 %v2471_v15  ;;  %v9644_v63 = vpop.eup %8177  ;;  %v9659_v39 = vand.u32 4294901760, %v9640_v50  ;;  %v9663_v35 = vsub.f32 %v9629_v51, %v9638_v16 }
 0x5ec   :  { %v9679_v56 = vand.u32 4294901760, %v9644_v63  ;;  %v2582_v3 = vand.u32 4294901760, %v9651_v40  ;;  %v9684_v26 = vsub.f32 %v9635_v31, %v9647_v28 }
 0x5ed   :  { %v2588_v43 = vand.u32 4294901760, %v9663_v35  ;;  %v9694_v18 = vsub.f32 %v9640_v50, %v9659_v39 }
 0x5ee   :  { %v2583_v29 = vsub.f32 %v9651_v40, %v2582_v3  ;;  %v2594_v62 = vand.u32 4294901760, %v9684_v26  ;;  %v9714_v7 = vsub.f32 %v9644_v63, %v9679_v56 }
 0x5ef   :  { %v9653_v59 = vpop.eup %8179  ;;  %v2589_v38 = vsub.f32 %v9663_v35, %v2588_v43  ;;  %v2600_v37 = vand.u32 4294901760, %v9694_v18 }
 0x5f0   :  { %v9656_v23 = vand.u32 4294901760, %v9653_v59  ;;  %v9665_v61 = vpop.eup %8181  ;;  %v2584_v27 = vand.u32 4294901760, %v2583_v29  ;;  %v2595_v25 = vsub.f32 %v9684_v26, %v2594_v62  ;;  %v2606_v42 = vand.u32 4294901760, %v9714_v7 }
 0x5f1   :  { %v9671_v0 = vpop.eup %8183  ;;  %v9689_v21 = vand.u32 4294901760, %v9665_v61  ;;  %v2590_v19 = vand.u32 4294901760, %v2589_v38  ;;  %v2601_v41 = vsub.f32 %v9694_v18, %v2600_v37 }
 0x5f2   :  { %2534 = vmatpush.msra.mxu2 %v9656_v23  ;;  %v9676_v36 = vsub.f32 %v9653_v59, %v9656_v23  ;;  %v9702_v54 = vand.u32 4294901760, %v9671_v0  ;;  %v2596_v10 = vand.u32 4294901760, %v2595_v25  ;;  %v2607_v6 = vsub.f32 %v9714_v7, %v2606_v42 }
 0x5f3   :  { %v9723_v8 = vsub.f32 %v9665_v61, %v9689_v21  ;;  %v2602_v12 = vand.u32 4294901760, %v2601_v41 }
 0x5f4   :  { %2536 = vmatpush.msra.mxu2 %v9633_v47  ;;  %v2576_v30 = vand.u32 4294901760, %v9676_v36  ;;  %v2617_v53 = vsub.f32 %v9671_v0, %v9702_v54  ;;  %v2608_v1 = vand.u32 4294901760, %v2607_v6  ;;  %v11900_v6 = vld [vmem:[#allocation23_spill] sm:$0xff] }
 0x5f5   :  { %v2612_v58 = vand.u32 4294901760, %v9723_v8 }
 0x5f6   :  { %2538 = vmatpush.msra.mxu2 %v9638_v16  ;;  %v2577_v11 = vsub.f32 %v9676_v36, %v2576_v30  ;;  %v2618_v44 = vand.u32 4294901760, %v2617_v53 }
 0x5f7   :  { %v2613_v48 = vsub.f32 %v9723_v8, %v2612_v58 }
 0x5f8   :  { %2540 = vmatpush.msra.mxu2 %v9647_v28  ;;  %v2578_v34 = vand.u32 4294901760, %v2577_v11  ;;  %v2619_v17 = vsub.f32 %v2617_v53, %v2618_v44 }
 0x5f9   :  { %v2614_v15 = vand.u32 4294901760, %v2613_v48  ;;  %v11903_v48 = vld [vmem:[#allocation20_spill] sm:$0xff] }
 0x5fa   :  { %2542 = vmatpush.msra.mxu2 %v9659_v39  ;;  %2579 = vmatpush.msra.mxu3 %v2578_v34  ;;  %v2620_v49 = vand.u32 4294901760, %v2619_v17  ;;  %v11906_v17 = vld [vmem:[#allocation21_spill] sm:$0xff] }
 0x5fc   :  { %2544 = vmatpush.msra.mxu2 %v9679_v56  ;;  %2585 = vmatpush.msra.mxu3 %v2584_v27 }
 0x5fe   :  { %2546 = vmatpush.msra.mxu2 %v9689_v21  ;;  %2591 = vmatpush.msra.mxu3 %v2590_v19 }
 0x600   :  { %2548 = vmatpush.msra.mxu2 %v9702_v54  ;;  %2597 = vmatpush.msra.mxu3 %v2596_v10  ;;  %v11899_v10 = vld [vmem:[#allocation15_spill] sm:$0xff] }
 0x601   :  { %2554 = vmatmul.f32.vlgmr.msra.gmra.mxu2 %v9743_v33 }
 0x602   :  { %2641 = vmatpush.msrb.mxu2 %v9676_v36  ;;  %2603 = vmatpush.msra.mxu3 %v2602_v12  ;;  %v11902_v12 = vld [vmem:[#allocation17_spill] sm:$0xff] }
 0x604   :  { %2644 = vmatpush.msrb.mxu2 %v9651_v40  ;;  %2609 = vmatpush.msra.mxu3 %v2608_v1  ;;  %v11905_v1 = vld [vmem:[#allocation13_spill] sm:$0xff] }
 0x606   :  { %2647 = vmatpush.msrb.mxu2 %v9663_v35  ;;  %2615 = vmatpush.msra.mxu3 %v2614_v15  ;;  %v11907_v15 = vld [vmem:[#allocation24_spill] sm:$0xff] }
 0x608   :  { %2650 = vmatpush.msrb.mxu2 %v9684_v26  ;;  %2621 = vmatpush.msra.mxu3 %v2620_v49  ;;  %v11908_v49 = vld [vmem:[#allocation31_spill] sm:$0xff] }
 0x609   :  { %2562 = vmatmul.f32.gmra.mxu2 %v9754_v45  ;;  %2623 = vmatmul.f32.vlgmr.msra.gmra.mxu3 %v9642_v24 }
 0x60a   :  { %2653 = vmatpush.msrb.mxu2 %v9694_v18  ;;  %2683 = vmatpush.msrb.mxu3 %v9656_v23 }
 0x60c   :  { %2656 = vmatpush.msrb.mxu2 %v9714_v7  ;;  %2685 = vmatpush.msrb.mxu3 %v9633_v47 }
 0x60e   :  { %2659 = vmatpush.msrb.mxu2 %v9723_v8  ;;  %2687 = vmatpush.msrb.mxu3 %v9638_v16 }
 0x610   :  { %2662 = vmatpush.msrb.mxu2 %v2617_v53  ;;  %2689 = vmatpush.msrb.mxu3 %v9647_v28 }
 0x611   :  { %2627 = vmatmul.f32.gmra.mxu3 %v9699_v22  ;;  %2665 = vmatmul.f32.vlgmr.msrb.gmra.mxu2 %v9668_v60 }
 0x612   :  { %2722 = vmatpush.msra.mxu2 %v2576_v30  ;;  %2691 = vmatpush.msrb.mxu3 %v9659_v39 }
 0x614   :  { %2726 = vmatpush.msra.mxu2 %v2582_v3  ;;  %2693 = vmatpush.msrb.mxu3 %v9679_v56 }
 0x616   :  { %2730 = vmatpush.msra.mxu2 %v2588_v43  ;;  %2695 = vmatpush.msrb.mxu3 %v9689_v21 }
 0x618   :  { %2734 = vmatpush.msra.mxu2 %v2594_v62  ;;  %2697 = vmatpush.msrb.mxu3 %v9702_v54 }
 0x619   :  { %2670 = vmatmul.f32.gmra.mxu2 %v9726_v55  ;;  %2701 = vmatmul.f32.vlgmr.msrb.gmra.mxu3 %v9697_v14 }
 0x61a   :  { %2738 = vmatpush.msra.mxu2 %v2600_v37  ;;  %2769 = vmatpush.msra.mxu3 %v9656_v23 }
 0x61c   :  { %2742 = vmatpush.msra.mxu2 %v2606_v42  ;;  %2771 = vmatpush.msra.mxu3 %v9633_v47 }
 0x61e   :  { %2746 = vmatpush.msra.mxu2 %v2612_v58  ;;  %2773 = vmatpush.msra.mxu3 %v9638_v16  ;;  %v11898_v58 = vld [vmem:[#allocation12_spill] sm:$0xff] }
 0x620   :  { %2750 = vmatpush.msra.mxu2 %v2618_v44  ;;  %2775 = vmatpush.msra.mxu3 %v9647_v28  ;;  %v11901_v44 = vld [vmem:[#allocation10_spill] sm:$0xff] }
 0x621   :  { %2707 = vmatmul.f32.gmra.mxu3 %v9741_v52  ;;  %2752 = vmatmul.f32.vlgmr.msra.gmra.mxu2 %v9642_v24 }
 0x622   :  { %2777 = vmatpush.msra.mxu3 %v9659_v39 }
 0x624   :  { %2779 = vmatpush.msra.mxu3 %v9679_v56 }
 0x626   :  { %2781 = vmatpush.msra.mxu3 %v9689_v21 }
 0x628   :  { %2783 = vmatpush.msra.mxu3 %v9702_v54 }
 0x629   :  { %2756 = vmatmul.f32.gmra.mxu2 %v9699_v22  ;;  %2785 = vmatmul.f32.vlgmr.msra.gmra.mxu3 %v9642_v24 }
 0x631   :  { %2789 = vmatmul.f32.gmra.mxu3 %v9699_v22 }
 0x684   :  { %v2555_v47 = vpop.f32.mrf.mxu2 }
 0x68c   :  { %v2563_v16 = vpop.f32.mrf.mxu2  ;;  %v2624_v28 = vpop.f32.mrf.mxu3 }
 0x68d   :  { %v2625_v36 = vadd.f32 %v2624_v28, %v2555_v47  ;;  %v11909_v47 = vld [vmem:[#allocation18_spill] sm:$0xff]  ;;  %v11911_v28 = vld [vmem:[#allocation28_spill] sm:$0xff] }
 0x694   :  { %v2628_v40 = vpop.f32.mrf.mxu3  ;;  %v2666_v23 = vpop.f32.mrf.mxu2 }
 0x695   :  { %v2667_v3 = vadd.f32 %v2666_v23, %v2625_v36  ;;  %v2629_v43 = vadd.f32 %v2628_v40, %v2563_v16  ;;  %v11910_v16 = vld [vmem:[#allocation25_spill] sm:$0xff]  ;;  %v11912_v40 = vld [vmem:[#allocation35_spill] sm:$0xff]  ;;  %v11913_v23 = vld [vmem:[#allocation22_spill] sm:$0xff] }
 0x696   :  { %v11917_v36 = vld [vmem:[#allocation26_spill] sm:$0xff] }
 0x69c   :  { %v2671_v39 = vpop.f32.mrf.mxu2  ;;  %v2702_v35 = vpop.f32.mrf.mxu3 }
 0x69d   :  { %v2703_v26 = vadd.f32 %v2702_v35, %v2667_v3  ;;  %v2672_v54 = vadd.f32 %v2671_v39, %v2629_v43  ;;  %v11914_v39 = vld [vmem:[#allocation29_spill] sm:$0xff]  ;;  %v11915_v35 = vld [vmem:[#allocation32_spill] sm:$0xff] }
 0x69e   :  { %v11919_v3 = vld [vmem:[#allocation36_spill] sm:$0xff] }
 0x69f   :  { %v11923_v43 = vld [vmem:[#allocation40_spill] sm:$0xff] }
 0x6a4   :  { %v2708_v2 = vpop.f32.mrf.mxu3  ;;  %v2753_v56 = vpop.f32.mrf.mxu2 }
 0x6a5   :  { %v2754_v30 = vadd.f32 %v2753_v56, %v2703_v26  ;;  %v2709_v29 = vadd.f32 %v2708_v2, %v2672_v54  ;;  %v11916_v2 = vld [vmem:[#allocation39_spill] sm:$0xff]  ;;  %v11918_v56 = vld [vmem:[#allocation33_spill] sm:$0xff] }
 0x6a6   :  { %v11920_v26 = vld [vmem:[#allocation43_spill] sm:$0xff] }
 0x6ac   :  { %v2786_v21 = vpop.f32.mrf.mxu3  ;;  %v2757_v11 = vpop.f32.mrf.mxu2 }
 0x6ad   :  { %v2787_v18 = vadd.f32 %v2786_v21, %v2754_v30  ;;  %v2758_v7 = vadd.f32 %v2757_v11, %v2709_v29  ;;  %v11921_v30 = vld [vmem:[#allocation30_spill] sm:$0xff]  ;;  %v11922_v21 = vld [vmem:[#allocation37_spill] sm:$0xff] }
 0x6af   :  { %v2809_v62 = vand.u32 4294901760, %v2787_v18 }
 0x6b1   :  { %v2897_v38 = vsub.f32 %v2787_v18, %v2809_v62  ;;  %v11924_v18 = vld [vmem:[#allocation34_spill] sm:$0xff] }
 0x6b3   :  { %v2898_v27 = vand.u32 4294901760, %v2897_v38 }
 0x6b4   :  { %v2790_v34 = vpop.f32.mrf.mxu3 }
 0x6b5   :  { %v2791_v37 = vadd.f32 %v2790_v34, %v2758_v7  ;;  %v2899_v53 = vsub.f32 %v2897_v38, %v2898_v27 }
 0x6b7   :  { %v2807_v8 = vand.u32 4294901760, %v2791_v37  ;;  %v2900_v41 = vand.u32 4294901760, %v2899_v53 }
 0x6b9   :  { %v2891_v32 = vsub.f32 %v2791_v37, %v2807_v8  ;;  %2808 = vmatpush.msrb.mxu2 %v2807_v8  ;;  %3011 = vmatpush.msra.mxu1 %v2807_v8 }
 0x6bb   :  { %2810 = vmatpush.msrb.mxu2 %v2809_v62  ;;  %2951 = vmatpush.msra.mxu0 %v2891_v32  ;;  %v2892_v25 = vand.u32 4294901760, %v2891_v32 }
 0x6bc   :  { %3013 = vmatpush.msra.mxu1 %v2809_v62  ;;  %2816 = vmatmul.f32.vlgmr.msrb.gmra.mxu2 %v11857_v20 }
 0x6bd   :  { %2954 = vmatpush.msra.mxu0 %v2897_v38  ;;  %3080 = vmatpush.msra.mxu2 %v2892_v25  ;;  %v2893_v42 = vsub.f32 %v2891_v32, %v2892_v25 }
 0x6be   :  { %2957 = vmatmul.f32.vlgmr.msra.gmra.mxu0 %v11859_v13  ;;  %3017 = vmatmul.f32.vlgmr.msra.gmra.mxu1 %v11858_v9 }
 0x6bf   :  { %3084 = vmatpush.msra.mxu2 %v2898_v27  ;;  %v2894_v19 = vand.u32 4294901760, %v2893_v42 }
 0x6c1   :  { %2895 = vmatpush.msrb.mxu3 %v2894_v19 }
 0x6c3   :  { %2901 = vmatpush.msrb.mxu3 %v2900_v41 }
 0x6c4   :  { %2824 = vmatmul.f32.gmra.mxu2 %v11860_v46  ;;  %7795 = vmatmul.msk.f32.vlgmr.msrb.gmra.mxu3 %vm145_vm0, %v8364_v5 }
 0x6c5   :  { %3133 = vmatpush.msra.mxu3 %v2807_v8 }
 0x6c6   :  { %2962 = vmatmul.f32.gmra.mxu0 %v11898_v58  ;;  %3023 = vmatmul.f32.gmra.mxu1 %v11899_v10 }
 0x6c7   :  { %3135 = vmatpush.msra.mxu3 %v2809_v62 }
 0x6cc   :  { %2832 = vmatmul.f32.gmra.mxu2 %v11900_v6  ;;  %7796 = vmatmul.msk.f32.gmra.mxu3 %vm145_vm0, %v11901_v44 }
 0x6ce   :  { %2967 = vmatmul.f32.gmra.mxu0 %v11902_v12  ;;  %3029 = vmatmul.f32.gmra.mxu1 %v11903_v48 }
 0x6d4   :  { %2840 = vmatmul.f32.gmra.mxu2 %v11904_v57  ;;  %7797 = vmatmul.msk.f32.gmra.mxu3 %vm145_vm0, %v11905_v1 }
 0x6d6   :  { %2972 = vmatmul.f32.gmra.mxu0 %v11906_v17  ;;  %3035 = vmatmul.f32.gmra.mxu1 %v11907_v15 }
 0x6dc   :  { %2848 = vmatmul.f32.gmra.mxu2 %v11908_v49  ;;  %7798 = vmatmul.msk.f32.gmra.mxu3 %vm145_vm0, %v11909_v47 }
 0x6de   :  { %2977 = vmatmul.f32.gmra.mxu0 %v11910_v16  ;;  %3041 = vmatmul.f32.gmra.mxu1 %v11911_v28 }
 0x6e4   :  { %2856 = vmatmul.f32.gmra.mxu2 %v11912_v40  ;;  %7799 = vmatmul.msk.f32.gmra.mxu3 %vm145_vm0, %v11913_v23 }
 0x6e6   :  { %2982 = vmatmul.f32.gmra.mxu0 %v11914_v39  ;;  %3047 = vmatmul.f32.gmra.mxu1 %v11915_v35 }
 0x6ec   :  { %2864 = vmatmul.f32.gmra.mxu2 %v11916_v2  ;;  %7800 = vmatmul.msk.f32.gmra.mxu3 %vm145_vm0, %v11917_v36 }
 0x6ee   :  { %2987 = vmatmul.f32.gmra.mxu0 %v11918_v56  ;;  %3053 = vmatmul.f32.gmra.mxu1 %v11919_v3 }
 0x6f4   :  { %2872 = vmatmul.f32.gmra.mxu2 %v11920_v26  ;;  %7801 = vmatmul.msk.f32.gmra.mxu3 %vm145_vm0, %v11921_v30 }
 0x6f6   :  { %2992 = vmatmul.f32.gmra.mxu0 %v11922_v21  ;;  %3059 = vmatmul.f32.gmra.mxu1 %v11923_v43 }
 0x6fc   :  { %7802 = vmatmul.msk.f32.gmra.mxu3 %vm145_vm0, %v11924_v18  ;;  %7803 = vmatmul.msk.f32.vlgmr.msra.gmra.mxu2 %vm145_vm0, %v8364_v5 }
 0x704   :  { %7804 = vmatmul.msk.f32.gmra.mxu2 %vm145_vm0, %v11901_v44  ;;  %7811 = vmatmul.msk.f32.vlgmr.msra.gmra.mxu3 %vm145_vm0, %v8364_v5 }
 0x70c   :  { %7805 = vmatmul.msk.f32.gmra.mxu2 %vm145_vm0, %v11905_v1  ;;  %7812 = vmatmul.msk.f32.gmra.mxu3 %vm145_vm0, %v11901_v44 }
 0x714   :  { %7806 = vmatmul.msk.f32.gmra.mxu2 %vm145_vm0, %v11909_v47  ;;  %7813 = vmatmul.msk.f32.gmra.mxu3 %vm145_vm0, %v11905_v1 }
 0x71c   :  { %7807 = vmatmul.msk.f32.gmra.mxu2 %vm145_vm0, %v11913_v23  ;;  %7814 = vmatmul.msk.f32.gmra.mxu3 %vm145_vm0, %v11909_v47 }
 0x724   :  { %7808 = vmatmul.msk.f32.gmra.mxu2 %vm145_vm0, %v11917_v36  ;;  %7815 = vmatmul.msk.f32.gmra.mxu3 %vm145_vm0, %v11913_v23 }
 0x72c   :  { %7809 = vmatmul.msk.f32.gmra.mxu2 %vm145_vm0, %v11921_v30  ;;  %7816 = vmatmul.msk.f32.gmra.mxu3 %vm145_vm0, %v11917_v36 }
 0x734   :  { %7810 = vmatmul.msk.f32.gmra.mxu2 %vm145_vm0, %v11924_v18  ;;  %7817 = vmatmul.msk.f32.gmra.mxu3 %vm145_vm0, %v11921_v30 }
 0x73b   :  { %v2958_v53 = vpop.f32.mrf.mxu0  ;;  %v3018_v43 = vpop.f32.mrf.mxu1 }
 0x73c   :  { %7818 = vmatmul.msk.f32.gmra.mxu3 %vm145_vm0, %v11924_v18 }
 0x73f   :  { %v2817_v54 = vpop.f32.mrf.mxu2 }
 0x740   :  { %v2818_v18 = vadd.f32 1e-06, %v2817_v54 }
 0x743   :  { %v2963_v30 = vpop.f32.mrf.mxu0  ;;  %v3024_v2 = vpop.f32.mrf.mxu1 }
 0x747   :  { %v2825_v11 = vpop.f32.mrf.mxu2  ;;  %v2904_v29 = vpop.f32.mrf.mxu3 }
 0x748   :  { %v2905_v21 = vadd.f32 %v2904_v29, %v2818_v18  ;;  %v2826_v56 = vadd.f32 1e-06, %v2825_v11 }
 0x74a   :  { %v2959_v36 = vadd.f32 %v2958_v53, %v2905_v21 }
 0x74b   :  { %v2968_v15 = vpop.f32.mrf.mxu0  ;;  %v3030_v18 = vpop.f32.mrf.mxu1 }
 0x74c   :  { %v3019_v35 = vadd.f32 %v3018_v43, %v2959_v36 }
 0x74f   :  { %v2833_v62 = vpop.f32.mrf.mxu2  ;;  %v2908_v7 = vpop.f32.mrf.mxu3 }
 0x750   :  { %v2909_v39 = vadd.f32 %v2908_v7, %v2826_v56  ;;  %v2834_v16 = vadd.f32 1e-06, %v2833_v62 }
 0x752   :  { %v2964_v47 = vadd.f32 %v2963_v30, %v2909_v39 }
 0x754   :  { %v3025_v54 = vadd.f32 %v3024_v2, %v2964_v47 }
 0x757   :  { %v2841_v34 = vpop.f32.mrf.mxu2  ;;  %v2912_v38 = vpop.f32.mrf.mxu3 }
 0x758   :  { %v2913_v17 = vadd.f32 %v2912_v38, %v2834_v16  ;;  %v2842_v11 = vadd.f32 1e-06, %v2841_v34  ;;  %v3036_v16 = vpop.f32.mrf.mxu1 }
 0x75a   :  { %v2969_v21 = vadd.f32 %v2968_v15, %v2913_v17 }
 0x75f   :  { %v2849_v37 = vpop.f32.mrf.mxu2  ;;  %v2916_v8 = vpop.f32.mrf.mxu3 }
 0x760   :  { %v2917_v43 = vadd.f32 %v2916_v8, %v2842_v11  ;;  %v2850_v62 = vadd.f32 1e-06, %v2849_v37 }
 0x767   :  { %v9868_v32 = vpop.f32.mrf.mxu2  ;;  %v9870_v27 = vpop.f32.mrf.mxu3 }
 0x76f   :  { %v9872_v25 = vpop.f32.mrf.mxu2  ;;  %v9874_v42 = vpop.f32.mrf.mxu3 }
 0x777   :  { %v9876_v19 = vpop.f32.mrf.mxu2  ;;  %v9878_v41 = vpop.f32.mrf.mxu3 }
 0x77f   :  { %v9880_v26 = vpop.f32.mrf.mxu3  ;;  %v3087_v3 = vpop.f32.mrf.mxu2 }
 0x780   :  { %v3088_v23 = vadd.f32 %v3087_v3, %v3019_v35  ;;  %v2973_v35 = vpop.f32.mrf.mxu0  ;;  %v3031_v3 = vadd.f32 %v3030_v18, %v2969_v21 }
 0x781   :  { %v2974_v7 = vadd.f32 %v2973_v35, %v2917_v43 }
 0x783   :  { %v3037_v18 = vadd.f32 %v3036_v16, %v2974_v7 }
 0x787   :  { %v3091_v40 = vpop.f32.mrf.mxu2  ;;  %v3138_v28 = vpop.f32.mrf.mxu3 }
 0x788   :  { %v3139_v49 = vadd.f32 %v3138_v28, %v3088_v23  ;;  %v3092_v29 = vadd.f32 %v3091_v40, %v3025_v54 }
 0x78a   :  { %8185 = vrcp.f32 %v3139_v49  ;;  %v3180_v39 = vand.u32 2147483648, %v3139_v49  ;;  %v3178_v23 = vand.u32 2147483647, %v3139_v49  ;;  %vm3174_vm12 = vweird.f32 %v3139_v49 }
 0x78c   :  { %vm3179_vm9 = vcmp.eq.f32.partialorder %v3178_v23, 8.507059e+37 }
 0x78f   :  { %v3095_v1 = vpop.f32.mrf.mxu2  ;;  %v3142_v57 = vpop.f32.mrf.mxu3 }
 0x790   :  { %v8186_v48 = vpop.eup %8185  ;;  %v3143_v53 = vadd.f32 %v3142_v57, %v3092_v29  ;;  %v3096_v47 = vadd.f32 %v3095_v1, %v3031_v3  ;;  %v3181_v57 = vor.u32 1.1754944e-38, %v3180_v39  ;;  %v2978_v29 = vpop.f32.mrf.mxu0 }
 0x791   :  { %v3170_v36 = vmul.f32 %v8186_v48, %v3139_v49  ;;  %vm3175_vm6 = vweird.f32 %v8186_v48  ;;  %v2921_v49 = vadd.f32 %v9870_v27, %v2850_v62  ;;  %v3042_v27 = vpop.f32.mrf.mxu1  ;;  %v2858_v62 = vadd.f32 1e-06, %v9868_v32 }
 0x792   :  { %8187 = vrcp.f32 %v3143_v53  ;;  %vm3176_vm11 = vmor %vm3174_vm12, %vm3175_vm6  ;;  %v3195_v37 = vand.u32 2147483648, %v3143_v53 }
 0x793   :  { %v3171_v56 = vsub.f32 1.0, %v3170_v36  ;;  %v2979_v3 = vadd.f32 %v2978_v29, %v2921_v49 }
 0x794   :  { %v3196_v43 = vor.u32 1.1754944e-38, %v3195_v37  ;;  %v2866_v37 = vadd.f32 1e-06, %v9872_v25 }
 0x795   :  { %v3172_v28 = vmul.f32 %v8186_v48, %v3171_v56 }
 0x796   :  { %v2929_v25 = vadd.f32 %v9878_v41, %v2866_v37 }
 0x797   :  { %v3146_v2 = vpop.f32.mrf.mxu3  ;;  %v3173_v40 = vadd.f32 %v8186_v48, %v3172_v28  ;;  %v3099_v34 = vpop.f32.mrf.mxu2 }
 0x798   :  { %v8188_v30 = vpop.eup %8187  ;;  %v9882_v17 = vadd.f32 %v3146_v2, %v3096_v47  ;;  %v3100_v21 = vadd.f32 %v3099_v34, %v3037_v18  ;;  %v3043_v2 = vadd.f32 %v3042_v27, %v2979_v3 }
 0x799   :  { %v3185_v15 = vmul.f32 %v8188_v30, %v3143_v53  ;;  %v3177_v38 = vsel %vm3176_vm11, %v8186_v48, %v3173_v40  ;;  %vm3190_vm6 = vweird.f32 %v8188_v30  ;;  %v3193_v48 = vand.u32 2147483647, %v3143_v53  ;;  %v3048_v18 = vpop.f32.mrf.mxu1 }
 0x79a   :  { %8189 = vrcp.f32 %v9882_v17  ;;  %v3182_v8 = vsel %vm3179_vm9, %v3181_v57, %v3177_v38  ;;  %vm3189_vm9 = vweird.f32 %v3143_v53  ;;  %v11925_v53 = vmov 2   ;;  %v2983_v38 = vpop.f32.mrf.mxu0 }
 0x79b   :  { %v3186_v54 = vsub.f32 1.0, %v3185_v15  ;;  %v9886_v1 = vmul.f32 %v9671_v0, %v3182_v8  ;;  %vm3191_vm11 = vmor %vm3189_vm9, %vm3190_vm6  ;;  %vm3194_vm12 = vcmp.eq.f32.partialorder %v3193_v48, 8.507059e+37  ;;  %v3210_v32 = vand.u32 2147483648, %v9882_v17 }
 0x79c   :  { %vm3204_vm9 = vweird.f32 %v9882_v17 }
 0x79d   :  { %v3187_v11 = vmul.f32 %v8188_v30, %v3186_v54  ;;  %3330 = vperm.xlu0 %8081, %v9886_v1   ;;  %3291 = vperm.xlu2 %8080, %v9886_v1   ;;  %v3211_v27 = vor.u32 1.1754944e-38, %v3210_v32 }
 0x79f   :  { %v3150_v36 = vpop.f32.mrf.mxu3  ;;  %v3188_v35 = vadd.f32 %v8188_v30, %v3187_v11  ;;  %v3103_v47 = vpop.f32.mrf.mxu2  ;;  %v11926_v11 = vmov 1  }
 0x7a0   :  { %v8190_v56 = vpop.eup %8189  ;;  %v9891_v0 = vadd.f32 %v3150_v36, %v3100_v21  ;;  %v3104_v7 = vadd.f32 %v3103_v47, %v3043_v2 }
 0x7a1   :  { %v3200_v39 = vmul.f32 %v8190_v56, %v9882_v17  ;;  %v3192_v28 = vsel %vm3191_vm11, %v8188_v30, %v3188_v35  ;;  %vm3205_vm6 = vweird.f32 %v8190_v56 }
 0x7a2   :  { %8191 = vrcp.f32 %v9891_v0  ;;  %v3197_v23 = vsel %vm3194_vm12, %v3196_v43, %v3192_v28  ;;  %vm3206_vm11 = vmor %vm3204_vm9, %vm3205_vm6  ;;  %v2988_v28 = vpop.f32.mrf.mxu0  ;;  %vm3219_vm6 = vweird.f32 %v9891_v0  ;;  %v3223_v41 = vand.u32 2147483647, %v9891_v0 }
 0x7a3   :  { %v3198_v16 = vmul.f32 %v9665_v61, %v3197_v23  ;;  %v3201_v40 = vsub.f32 1.0, %v3200_v39  ;;  %v2925_v61 = vadd.f32 %v9874_v42, %v2858_v62  ;;  %v3208_v42 = vand.u32 2147483647, %v9882_v17 }
 0x7a4   :  { %v2989_v17 = vadd.f32 %v2988_v28, %v2929_v25 }
 0x7a5   :  { %8082 = vset.pattern.permute.xlu0 %v11925_v53  ;;  %3296 = vperm.xlu2 %8080, %v3198_v16   ;;  %v3202_v30 = vmul.f32 %v8190_v56, %v3201_v40  ;;  %v2984_v29 = vadd.f32 %v2983_v38, %v2925_v61  ;;  %vm3209_vm12 = vcmp.eq.f32.partialorder %v3208_v42, 8.507059e+37 }
 0x7a6   :  { %3362 = vperm.xlu0 %8082, %v9886_v1  }
 0x7a7   :  { %v3154_v57 = vpop.f32.mrf.mxu3  ;;  %v3203_v54 = vadd.f32 %v8190_v56, %v3202_v30  ;;  %v3107_v48 = vpop.f32.mrf.mxu2  ;;  %v3049_v39 = vadd.f32 %v3048_v18, %v2984_v29 }
 0x7a8   :  { %v8192_v15 = vpop.eup %8191  ;;  %v9899_v34 = vadd.f32 %v3154_v57, %v3104_v7  ;;  %v11927_v7 = vmov 3   ;;  %v3225_v57 = vand.u32 2147483648, %v9891_v0  ;;  %v3054_v30 = vpop.f32.mrf.mxu1 }
 0x7a9   :  { %v3215_v8 = vmul.f32 %v8192_v15, %v9891_v0  ;;  %v3207_v36 = vsel %vm3206_vm11, %v8190_v56, %v3203_v54  ;;  %v3108_v47 = vadd.f32 %v3107_v48, %v3049_v39  ;;  %vm3220_vm1 = vweird.f32 %v8192_v15 }
 0x7aa   :  { %8193 = vrcp.f32 %v9899_v34  ;;  %v3212_v23 = vsel %vm3209_vm12, %v3211_v27, %v3207_v36  ;;  %vm3221_vm9 = vmor %vm3219_vm6, %vm3220_vm1  ;;  %v3055_v54 = vadd.f32 %v3054_v30, %v2989_v17  ;;  %vm3224_vm11 = vcmp.eq.f32.partialorder %v3223_v41, 8.507059e+37 }
 0x7ab   :  { %v3216_v49 = vsub.f32 1.0, %v3215_v8  ;;  %v9916_v56 = vmul.f32 %v9644_v63, %v3212_v23  ;;  %v3226_v63 = vor.u32 1.1754944e-38, %v3225_v57  ;;  %v3240_v0 = vand.u32 2147483648, %v9899_v34 }
 0x7ac   :  { %vm3234_vm1 = vweird.f32 %v9899_v34  ;;  %v2874_v48 = vadd.f32 1e-06, %v9876_v19  ;;  %v11928_v41 = vmov 0  }
 0x7ad   :  { %8084 = vset.pattern.permute.xlu2 %v11925_v53  ;;  %v3217_v35 = vmul.f32 %v8192_v15, %v3216_v49 }
 0x7ae   :  { %8083 = vset.pattern.permute.xlu0 %v11926_v11  ;;  %3366 = vperm.xlu2 %8084, %v3198_v16  }
 0x7af   :  { %3334 = vperm.xlu0 %8083, %v3198_v16   ;;  %v3158_v43 = vpop.f32.mrf.mxu3  ;;  %v3218_v40 = vadd.f32 %v8192_v15, %v3217_v35  ;;  %v3111_v8 = vpop.f32.mrf.mxu2  ;;  %v3241_v35 = vor.u32 1.1754944e-38, %v3240_v0 }
 0x7b0   :  { %v8194_v21 = vpop.eup %8193  ;;  %v9912_v62 = vadd.f32 %v3158_v43, %v3108_v47  ;;  %v3112_v49 = vadd.f32 %v3111_v8, %v3055_v54  ;;  %v2993_v43 = vpop.f32.mrf.mxu0 }
 0x7b1   :  { %v3230_v3 = vmul.f32 %v8194_v21, %v9899_v34  ;;  %v3222_v61 = vsel %vm3221_vm9, %v8192_v15, %v3218_v40  ;;  %vm3235_vm12 = vweird.f32 %v8194_v21  ;;  %v3238_v15 = vand.u32 2147483647, %v9899_v34  ;;  %v3060_v28 = vpop.f32.mrf.mxu1  ;;  %v9960_v0 = vpop.permute.xlu2 %3473 }
 0x7b2   :  { %8195 = vrcp.f32 %v9912_v62  ;;  %v3227_v32 = vsel %vm3224_vm11, %v3226_v63, %v3222_v61  ;;  %vm3236_vm6 = vmor %vm3234_vm1, %vm3235_vm12  ;;  %v3255_v30 = vand.u32 2147483648, %v9912_v62  ;;  %vm3249_vm12 = vweird.f32 %v9912_v62 }
 0x7b3   :  { %v3231_v2 = vsub.f32 1.0, %v3230_v3  ;;  %v9929_v29 = vmul.f32 %v9640_v50, %v3227_v32  ;;  %vm3239_vm9 = vcmp.eq.f32.partialorder %v3238_v15, 8.507059e+37  ;;  %v2933_v3 = vadd.f32 %v9880_v26, %v2874_v48 }
 0x7b4   :  { %v3256_v54 = vor.u32 1.1754944e-38, %v3255_v30 }
 0x7b5   :  { %v3232_v38 = vmul.f32 %v8194_v21, %v3231_v2  ;;  %v2994_v25 = vadd.f32 %v2993_v43, %v2933_v3 }
 0x7b6   :  { %8085 = vset.pattern.permute.xlu2 %v11927_v7 }
 0x7b7   :  { %8087 = vset.pattern.permute.xlu0 %v11925_v53  ;;  %3398 = vperm.xlu2 %8085, %v3198_v16   ;;  %v3162_v18 = vpop.f32.mrf.mxu3  ;;  %v3233_v37 = vadd.f32 %v8194_v21, %v3232_v38  ;;  %v3115_v23 = vpop.f32.mrf.mxu2  ;;  %v3061_v26 = vadd.f32 %v3060_v28, %v2994_v25  ;;  %v3253_v38 = vand.u32 2147483647, %v9912_v62 }
 0x7b8   :  { %3370 = vperm.xlu0 %8087, %v9916_v56   ;;  %v9924_v16 = vadd.f32 %v3162_v18, %v3112_v49  ;;  %v8196_v42 = vpop.eup %8195 }
 0x7b9   :  { %v3237_v36 = vsel %vm3236_vm6, %v8194_v21, %v3233_v37  ;;  %v3245_v50 = vmul.f32 %v8196_v42, %v9912_v62  ;;  %v3116_v40 = vadd.f32 %v3115_v23, %v3061_v26  ;;  %vm3250_vm11 = vweird.f32 %v8196_v42 }
 0x7ba   :  { %8197 = vrcp.f32 %v9924_v16  ;;  %v3242_v34 = vsel %vm3239_vm9, %v3241_v35, %v3237_v36  ;;  %vm3251_vm1 = vmor %vm3249_vm12, %vm3250_vm11  ;;  %vm3254_vm6 = vcmp.eq.f32.partialorder %v3253_v38, 8.507059e+37  ;;  %v3270_v49 = vand.u32 2147483648, %v9924_v16 }
 0x7bb   :  { %v3246_v27 = vsub.f32 1.0, %v3245_v50  ;;  %v9941_v19 = vmul.f32 %v9635_v31, %v3242_v34  ;;  %vm3264_vm14 = vweird.f32 %v9924_v16  ;;  %v3268_v62 = vand.u32 2147483647, %v9924_v16 }
 0x7bd   :  { %v3247_v21 = vmul.f32 %v8196_v42, %v3246_v27  ;;  %vm3269_vm12 = vcmp.eq.f32.partialorder %v3268_v62, 8.507059e+37 }
 0x7bf   :  { %8086 = vset.pattern.permute.xlu2 %v11926_v11  ;;  %v3166_v2 = vpop.f32.mrf.mxu3  ;;  %v3248_v57 = vadd.f32 %v8196_v42, %v3247_v21  ;;  %v9977_v21 = vpop.permute.xlu0 %3471 }
 0x7c0   :  { %8090 = vset.pattern.permute.xlu0 %v11926_v11  ;;  %3338 = vperm.xlu2 %8086, %v9916_v56   ;;  %v8198_v39 = vpop.eup %8197  ;;  %v3167_v31 = vadd.f32 %v3166_v2, %v3116_v40 }
 0x7c1   :  { %3342 = vperm.xlu0 %8090, %v9929_v29   ;;  %v3260_v47 = vmul.f32 %v8198_v39, %v9924_v16  ;;  %v3252_v61 = vsel %vm3251_vm1, %v8196_v42, %v3248_v57  ;;  %vm3265_vm9 = vweird.f32 %v8198_v39  ;;  %v3271_v42 = vor.u32 1.1754944e-38, %v3270_v49  ;;  %v9966_v16 = vpop.permute.xlu2 %3469 }
 0x7c2   :  { %8199 = vrcp.f32 %v3167_v31  ;;  %v3257_v63 = vsel %vm3254_vm6, %v3256_v54, %v3252_v61  ;;  %vm3266_vm11 = vmor %vm3264_vm14, %vm3265_vm9  ;;  %v3285_v34 = vand.u32 2147483648, %v3167_v31  ;;  %vm3279_vm1 = vweird.f32 %v3167_v31 }
 0x7c3   :  { %v3261_v17 = vsub.f32 1.0, %v3260_v47  ;;  %v3258_v32 = vmul.f32 %v9629_v51, %v3257_v63  ;;  %v3283_v43 = vand.u32 2147483647, %v3167_v31 }
 0x7c4   :  { %v3286_v27 = vor.u32 1.1754944e-38, %v3285_v34 }
 0x7c5   :  { %v3262_v8 = vmul.f32 %v8198_v39, %v3261_v17  ;;  %vm3284_vm9 = vcmp.eq.f32.partialorder %v3283_v43, 8.507059e+37 }
 0x7c7   :  { %v3263_v18 = vadd.f32 %v8198_v39, %v3262_v8  ;;  %v9984_v47 = vpop.permute.xlu0 %3463 }
 0x7c8   :  { %8088 = vset.pattern.permute.xlu2 %v11927_v7  ;;  %v8200_v37 = vpop.eup %8199 }
 0x7c9   :  { %3346 = vperm.xlu0 %8090, %v9941_v19   ;;  %3402 = vperm.xlu2 %8088, %v9916_v56   ;;  %v3267_v15 = vsel %vm3266_vm11, %v8198_v39, %v3263_v18  ;;  %v3275_v48 = vmul.f32 %v8200_v37, %v3167_v31  ;;  %vm3280_vm14 = vweird.f32 %v8200_v37  ;;  %v9971_v39 = vpop.permute.xlu2 %3465  ;;  %vm3425_vm11 = vcmask 64512  }
 0x7ca   :  { %v3272_v51 = vsel %vm3269_vm12, %v3271_v42, %v3267_v15  ;;  %vm3281_vm6 = vmor %vm3279_vm1, %vm3280_vm14  ;;  %vm3442_vm12 = vcmask 195584  }
 0x7cb   :  { %v3276_v36 = vsub.f32 1.0, %v3275_v48  ;;  %v3273_v35 = vmul.f32 %v9627_v4, %v3272_v51  ;;  %v11930_v48 = vld [vmem:[#allocation74_spill] sm:$0xff] }
 0x7cd   :  { %v3277_v50 = vmul.f32 %v8200_v37, %v3276_v36 }
 0x7cf   :  { %v3278_v3 = vadd.f32 %v8200_v37, %v3277_v50 }
 0x7d1   :  { %8094 = vset.pattern.permute.xlu0 %v11925_v53  ;;  %8089 = vset.pattern.permute.xlu2 %v11928_v41  ;;  %v3282_v4 = vsel %vm3281_vm6, %v8200_v37, %v3278_v3 }
 0x7d2   :  { %3378 = vperm.xlu0 %8094, %v9941_v19   ;;  %3306 = vperm.xlu2 %8089, %v9929_v29  }
 0x7da   :  { %8097 = vset.pattern.permute.xlu0 %v11926_v11  ;;  %8091 = vset.pattern.permute.xlu2 %v11925_v53 }
 0x7db   :  { %3350 = vperm.xlu0 %8097, %v3258_v32   ;;  %3374 = vperm.xlu2 %8091, %v9929_v29  }
 0x7e3   :  { %3354 = vperm.xlu0 %8097, %v3273_v35   ;;  %8092 = vset.pattern.permute.xlu2 %v11927_v7 }
 0x7e4   :  { %3406 = vperm.xlu2 %8092, %v9929_v29   ;;  %v3287_v29 = vsel %vm3284_vm9, %v3286_v27, %v3282_v4 }
 0x7e5   :  { %v3288_v25 = vmul.f32 %v9653_v59, %v3287_v29  ;;  %v11929_v59 = vld [vmem:[#allocation73_spill] sm:$0xff] }
 0x7eb   :  { %8101 = vset.pattern.permute.xlu0 %v11925_v53 }
 0x7ec   :  { %3386 = vperm.xlu0 %8101, %v3273_v35   ;;  %8093 = vset.pattern.permute.xlu2 %v11928_v41 }
 0x7ed   :  { %3311 = vperm.xlu2 %8093, %v9941_v19  }
 0x7f4   :  { %8104 = vset.pattern.permute.xlu0 %v11926_v11 }
 0x7f5   :  { %3358 = vperm.xlu0 %8104, %v3288_v25   ;;  %8095 = vset.pattern.permute.xlu2 %v11927_v7 }
 0x7f6   :  { %3410 = vperm.xlu2 %8095, %v9941_v19  }
 0x7f7   :  { %v3292_v28 = vpop.permute.xlu2 %3291 }
 0x7fd   :  { %8105 = vset.pattern.permute.xlu0 %v11928_v41 }
 0x7fe   :  { %3301 = vperm.xlu0 %8105, %v9916_v56   ;;  %8096 = vset.pattern.permute.xlu2 %v11928_v41 }
 0x7ff   :  { %3316 = vperm.xlu2 %8096, %v3258_v32   ;;  %v3297_v23 = vpop.permute.xlu2 %3296 }
 0x806   :  { %3459 = vrot.lane.b32.xlu0 %v11929_v59, %s8298_s29 }
 0x807   :  { %8098 = vset.pattern.permute.xlu2 %v11925_v53 }
 0x808   :  { %3382 = vperm.xlu2 %8098, %v3258_v32   ;;  %v3367_v19 = vpop.permute.xlu2 %3366 }
 0x80f   :  { %v3331_v26 = vpop.permute.xlu0 %3330 }
 0x810   :  { %8099 = vset.pattern.permute.xlu2 %v11927_v7  ;;  %v3426_v56 = vsel %vm3425_vm11, %v3292_v28, %v3331_v26 }
 0x811   :  { %3414 = vperm.xlu2 %8099, %v3258_v32   ;;  %v3399_v2 = vpop.permute.xlu2 %3398 }
 0x818   :  { %v3363_v40 = vpop.permute.xlu0 %3362 }
 0x819   :  { %v9990_v17 = vsel %vm145_vm0, %v3426_v56, %v3363_v40  ;;  %8100 = vset.pattern.permute.xlu2 %v11928_v41 }
 0x81a   :  { %3321 = vperm.xlu2 %8100, %v3273_v35   ;;  %v3339_v57 = vpop.permute.xlu2 %3338 }
 0x821   :  { %v3335_v31 = vpop.permute.xlu0 %3334 }
 0x822   :  { %v3427_v30 = vsel %vm3425_vm11, %v3297_v23, %v3335_v31  ;;  %8102 = vset.pattern.permute.xlu2 %v11927_v7 }
 0x823   :  { %3418 = vperm.xlu2 %8102, %v3273_v35   ;;  %v3403_v38 = vpop.permute.xlu2 %3402  ;;  %v3435_v8 = vsel %vm145_vm0, %v3427_v30, %v3367_v19 }
 0x824   :  { %v9997_v61 = vsel %vm3442_vm12, %v3435_v8, %v3399_v2 }
 0x82a   :  { %v3371_v54 = vpop.permute.xlu0 %3370 }
 0x82b   :  { %8103 = vset.pattern.permute.xlu2 %v11928_v41 }
 0x82c   :  { %3326 = vperm.xlu2 %8103, %v3288_v25   ;;  %v3307_v63 = vpop.permute.xlu2 %3306 }
 0x833   :  { %v3343_v18 = vpop.permute.xlu0 %3342 }
 0x834   :  { %v3429_v49 = vsel %vm3425_vm11, %v3307_v63, %v3343_v18  ;;  %8106 = vset.pattern.permute.xlu2 %v11925_v53 }
 0x835   :  { %3390 = vperm.xlu2 %8106, %v3288_v25   ;;  %v3375_v32 = vpop.permute.xlu2 %3374 }
 0x836   :  { %v3437_v62 = vsel %vm145_vm0, %v3429_v49, %v3375_v32 }
 0x83b   :  { %v3347_v42 = vpop.permute.xlu0 %3346 }
 0x83d   :  { %8107 = vset.pattern.permute.xlu2 %v11927_v7 }
 0x83e   :  { %3422 = vperm.xlu2 %8107, %v3288_v25   ;;  %v3407_v37 = vpop.permute.xlu2 %3406 }
 0x83f   :  { %v3446_v15 = vsel %vm3442_vm12, %v3437_v62, %v3407_v37  ;;  %v3468_v37 = vpop.permute.xlu1 %3467 }
 0x844   :  { %v3379_v35 = vpop.permute.xlu0 %3378 }
 0x846   :  { %3461 = vrot.lane.b32.xlu2 %v11930_v48, %s8298_s29 }
 0x847   :  { %v3312_v51 = vpop.permute.xlu2 %3311 }
 0x848   :  { %v3430_v36 = vsel %vm3425_vm11, %v3312_v51, %v3347_v42 }
 0x849   :  { %v3438_v50 = vsel %vm145_vm0, %v3430_v36, %v3379_v35  ;;  %v3486_v35 = vmul.f32 %v9971_v39, %v3446_v15 }
 0x84d   :  { %v3351_v27 = vpop.permute.xlu0 %3350 }
 0x84e   :  { %3394 = vperm.xlu2 %8107, %v9886_v1  }
 0x850   :  { %v3411_v3 = vpop.permute.xlu2 %3410 }
 0x851   :  { %v3447_v34 = vsel %vm3442_vm12, %v3438_v50, %v3411_v3 }
 0x852   :  { %v3487_v42 = vmul.f32 %v3468_v37, %v3447_v34 }
 0x855   :  { %v3355_v25 = vpop.permute.xlu0 %3354 }
 0x856   :  { %8111 = vset.pattern.permute.xlu2 %v11928_v41 }
 0x859   :  { %v3317_v43 = vpop.permute.xlu2 %3316 }
 0x85a   :  { %v3431_v40 = vsel %vm3425_vm11, %v3317_v43, %v3351_v27  ;;  %v10038_v43 = vand.u32 4294901760, %v3486_v35 }
 0x85e   :  { %v3387_v23 = vpop.permute.xlu0 %3386 }
 0x862   :  { %v3383_v4 = vpop.permute.xlu2 %3382 }
 0x863   :  { %v3439_v8 = vsel %vm145_vm0, %v3431_v40, %v3383_v4 }
 0x867   :  { %v3359_v19 = vpop.permute.xlu0 %3358 }
 0x86b   :  { %v3415_v29 = vpop.permute.xlu2 %3414 }
 0x86c   :  { %v3448_v63 = vsel %vm3442_vm12, %v3439_v8, %v3415_v29 }
 0x86d   :  { %v3488_v32 = vmul.f32 %v9966_v16, %v3448_v63  ;;  %v10031_v16 = vand.u32 4294901760, %v3487_v42 }
 0x86f   :  { %v10027_v50 = vand.u32 4294901760, %v3488_v32  ;;  %v10046_v4 = vsub.f32 %v3487_v42, %v10031_v16 }
 0x870   :  { %v3302_v2 = vpop.permute.xlu0 %3301 }
 0x871   :  { %v3428_v18 = vsel %vm3425_vm11, %v3302_v2, %v3339_v57  ;;  %v10041_v39 = vsub.f32 %v3488_v32, %v10027_v50 }
 0x872   :  { %v3436_v62 = vsel %vm145_vm0, %v3428_v18, %v3371_v54 }
 0x873   :  { %v3445_v51 = vsel %vm3442_vm12, %v3436_v62, %v3403_v38 }
 0x874   :  { %v3322_v28 = vpop.permute.xlu2 %3321  ;;  %v3485_v54 = vmul.f32 %v9984_v47, %v3445_v51 }
 0x875   :  { %v3432_v1 = vsel %vm3425_vm11, %v3322_v28, %v3355_v25 }
 0x876   :  { %v3440_v56 = vsel %vm145_vm0, %v3432_v1, %v3387_v23  ;;  %v10053_v29 = vand.u32 4294901760, %v3485_v54  ;;  %v3554_v23 = vand.u32 4294901760, %v10041_v39  ;;  %v3560_v1 = vand.u32 4294901760, %v10046_v4 }
 0x878   :  { %v10071_v2 = vsub.f32 %v3485_v54, %v10053_v29  ;;  %v3555_v40 = vsub.f32 %v10041_v39, %v3554_v23  ;;  %v3561_v63 = vsub.f32 %v10046_v4, %v3560_v1  ;;  %v3460_v42 = vpop.permute.xlu0 %3459 }
 0x87a   :  { %v3572_v18 = vand.u32 4294901760, %v10071_v2  ;;  %v3556_v32 = vand.u32 4294901760, %v3555_v40 }
 0x87d   :  { %v3419_v59 = vpop.permute.xlu2 %3418 }
 0x87e   :  { %v3449_v31 = vsel %vm3442_vm12, %v3440_v56, %v3419_v59 }
 0x87f   :  { %v3489_v49 = vmul.f32 %v9977_v21, %v3449_v31 }
 0x881   :  { %v10022_v48 = vand.u32 4294901760, %v3489_v49 }
 0x883   :  { %v10035_v34 = vsub.f32 %v3489_v49, %v10022_v48 }
 0x885   :  { %v3548_v47 = vand.u32 4294901760, %v10035_v34 }
 0x886   :  { %v3327_v26 = vpop.permute.xlu2 %3326 }
 0x887   :  { %v3433_v36 = vsel %vm3425_vm11, %v3327_v26, %v3359_v19  ;;  %v3549_v26 = vsub.f32 %v10035_v34, %v3548_v47 }
 0x889   :  { %v3550_v8 = vand.u32 4294901760, %v3549_v26 }
 0x88f   :  { %v3391_v30 = vpop.permute.xlu2 %3390 }
 0x890   :  { %v3441_v57 = vsel %vm145_vm0, %v3433_v36, %v3391_v30 }
 0x898   :  { %v3423_v3 = vpop.permute.xlu2 %3422 }
 0x899   :  { %v3450_v21 = vsel %vm3442_vm12, %v3441_v57, %v3423_v3  ;;  %v3573_v57 = vsub.f32 %v10071_v2, %v3572_v18 }
 0x89a   :  { %v3490_v38 = vmul.f32 %v9960_v0, %v3450_v21  ;;  %v10056_v0 = vsub.f32 %v3486_v35, %v10038_v43  ;;  %v3562_v35 = vand.u32 4294901760, %v3561_v63 }
 0x89c   :  { %v10043_v15 = vand.u32 4294901760, %v3490_v38  ;;  %v3566_v31 = vand.u32 4294901760, %v10056_v0 }
 0x89e   :  { %v10049_v27 = vsub.f32 %v3490_v38, %v10043_v15  ;;  %3500 = vmatpush.msrb.mxu0 %v10043_v15  ;;  %v3567_v62 = vsub.f32 %v10056_v0, %v3566_v31 }
 0x8a0   :  { %v3542_v25 = vand.u32 4294901760, %v10049_v27  ;;  %3502 = vmatpush.msrb.mxu0 %v10022_v48  ;;  %v3462_v28 = vpop.permute.xlu2 %3461  ;;  %v3568_v21 = vand.u32 4294901760, %v3567_v62 }
 0x8a1   :  { %v3484_v59 = vmul.f32 %v3462_v28, %v9997_v61 }
 0x8a2   :  { %3504 = vmatpush.msrb.mxu0 %v10027_v50  ;;  %v3543_v19 = vsub.f32 %v10049_v27, %v3542_v25 }
 0x8a3   :  { %v10073_v56 = vand.u32 4294901760, %v3484_v59 }
 0x8a4   :  { %3506 = vmatpush.msrb.mxu0 %v10031_v16  ;;  %v3544_v61 = vand.u32 4294901760, %v3543_v19 }
 0x8a5   :  { %v10081_v30 = vsub.f32 %v3484_v59, %v10073_v56 }
 0x8a6   :  { %3508 = vmatpush.msrb.mxu0 %v10038_v43  ;;  %3545 = vmatpush.msrb.mxu1 %v3544_v61  ;;  %v246_v61 = vld [vmem:[%s11560_s6 + $0x18] sm:$0xff] }
 0x8a7   :  { %v3578_v37 = vand.u32 4294901760, %v10081_v30  ;;  %v10122_v40 = vand.u32 4294901760, %v246_v61 }
 0x8a8   :  { %3551 = vmatpush.msrb.mxu1 %v3550_v8  ;;  %v3395_v49 = vpop.permute.xlu2 %3394  ;;  %3510 = vmatpush.msrb.mxu0 %v10053_v29  ;;  %v8235_v8 = vld [vmem:[%s11556_s2] sm:$0xff] }
 0x8a9   :  { %v3443_v51 = vsel %vm3442_vm12, %v9990_v17, %v3395_v49  ;;  %v3579_v54 = vsub.f32 %v10081_v30, %v3578_v37  ;;  %v3574_v17 = vand.u32 4294901760, %v3573_v57  ;;  %v3765_v63 = vsel %vm154_vm2, %v8235_v8, 0  ;;  %v245_v49 = vld [vmem:[%s11560_s6 + $0x10] sm:$0xff]  ;;  %3900 = vmatpush.msrb.mxu3 %v10122_v40 }
 0x8aa   :  { %v3483_v36 = vmul.f32 %v3460_v42, %v3443_v51  ;;  %3512 = vmatpush.msrb.mxu0 %v10073_v56  ;;  %3557 = vmatpush.msrb.mxu1 %v3556_v32  ;;  %v244_v32 = vld [vmem:[%s11560_s6 + $0x8] sm:$0xff]  ;;  %v10136_v62 = vand.u32 4294901760, %v245_v49  ;;  %v10139_v42 = vsub.f32 %v246_v61, %v10122_v40  ;;  %v243_v51 = vld [vmem:[%s11560_s6] sm:$0xff] }
 0x8ab   :  { %v3580_v28 = vand.u32 4294901760, %v3579_v54 }
 0x8ac   :  { %v10099_v3 = vand.u32 4294901760, %v3483_v36  ;;  %3563 = vmatpush.msrb.mxu1 %v3562_v35  ;;  %v10149_v35 = vand.u32 4294901760, %v244_v32  ;;  %3866 = vmatpush.msrb.mxu2 %v10139_v42  ;;  %v10153_v57 = vsub.f32 %v245_v49, %v10136_v62 }
 0x8ad   :  { %3902 = vmatpush.msrb.mxu3 %v10136_v62 }
 0x8ae   :  { %v10105_v38 = vsub.f32 %v3483_v36, %v10099_v3  ;;  %3514 = vmatpush.msrb.mxu0 %v10099_v3  ;;  %3569 = vmatpush.msrb.mxu1 %v3568_v21  ;;  %v10147_v36 = vand.u32 4294901760, %v3765_v63  ;;  %v10158_v21 = vand.u32 4294901760, %v243_v51 }
 0x8af   :  { %3520 = vmatmul.f32.vlgmr.msrb.gmra.mxu0 %v9743_v33  ;;  %3869 = vmatpush.msrb.mxu2 %v10153_v57 }
 0x8b0   :  { %3607 = vmatpush.msra.mxu0 %v10049_v27  ;;  %3575 = vmatpush.msrb.mxu1 %v3574_v17  ;;  %v3584_v59 = vand.u32 4294901760, %v10105_v38  ;;  %v3791_v54 = vsub.f32 %v3765_v63, %v10147_v36  ;;  %v10169_v17 = vsub.f32 %v244_v32, %v10149_v35  ;;  %v3838_v27 = vsub.f32 %v243_v51, %v10158_v21 }
 0x8b1   :  { %3904 = vmatpush.msrb.mxu3 %v10149_v35 }
 0x8b2   :  { %3610 = vmatpush.msra.mxu0 %v10035_v34  ;;  %3581 = vmatpush.msrb.mxu1 %v3580_v28  ;;  %v3585_v19 = vsub.f32 %v10105_v38, %v3584_v59  ;;  %v8236_v28 = vld [vmem:[%s11556_s2 + $0x8] sm:$0xff] }
 0x8b3   :  { %3872 = vmatpush.msrb.mxu2 %v10169_v17  ;;  %3906 = vmatpush.msrb.mxu3 %v10158_v21 }
 0x8b4   :  { %3613 = vmatpush.msra.mxu0 %v10041_v39  ;;  %v3586_v26 = vand.u32 4294901760, %v3585_v19  ;;  %v3768_v19 = vsel %vm154_vm2, %v8236_v28, 0  ;;  %v3821_v39 = vand.u32 4294901760, %v10139_v42 }
 0x8b5   :  { %3875 = vmatpush.msrb.mxu2 %v3838_v27 }
 0x8b6   :  { %3616 = vmatpush.msra.mxu0 %v10046_v4  ;;  %3587 = vmatpush.msrb.mxu1 %v3586_v26  ;;  %v10185_v26 = vand.u32 4294901760, %v3768_v19 }
 0x8b7   :  { %3528 = vmatmul.f32.gmra.mxu0 %v9754_v45  ;;  %3589 = vmatmul.f32.vlgmr.msrb.gmra.mxu1 %v9642_v24 }
 0x8b8   :  { %3619 = vmatpush.msra.mxu0 %v10056_v0  ;;  %3649 = vmatpush.msra.mxu1 %v10043_v15  ;;  %v3799_v34 = vsub.f32 %v3768_v19, %v10185_v26 }
 0x8b9   :  { %3878 = vmatmul.f32.vlgmr.msrb.gmra.mxu2 %v3791_v54 }
 0x8ba   :  { %3622 = vmatpush.msra.mxu0 %v10071_v2  ;;  %3651 = vmatpush.msra.mxu1 %v10022_v48  ;;  %v3800_v4 = vand.u32 4294901760, %v3799_v34 }
 0x8bc   :  { %3625 = vmatpush.msra.mxu0 %v10081_v30  ;;  %3653 = vmatpush.msra.mxu1 %v10027_v50  ;;  %v3801_v30 = vsub.f32 %v3799_v34, %v3800_v4 }
 0x8be   :  { %3628 = vmatpush.msra.mxu0 %v10105_v38  ;;  %3655 = vmatpush.msra.mxu1 %v10031_v16 }
 0x8bf   :  { %3593 = vmatmul.f32.gmra.mxu1 %v9699_v22  ;;  %3631 = vmatmul.f32.vlgmr.msra.gmra.mxu0 %v9668_v60 }
 0x8c0   :  { %3688 = vmatpush.msrb.mxu0 %v3542_v25  ;;  %3657 = vmatpush.msra.mxu1 %v10038_v43  ;;  %v3792_v25 = vand.u32 4294901760, %v3791_v54 }
 0x8c1   :  { %3883 = vmatmul.f32.gmra.mxu2 %v3799_v34 }
 0x8c2   :  { %3692 = vmatpush.msrb.mxu0 %v3548_v47  ;;  %3659 = vmatpush.msra.mxu1 %v10053_v29  ;;  %v3833_v47 = vand.u32 4294901760, %v10169_v17  ;;  %v3793_v2 = vsub.f32 %v3791_v54, %v3792_v25 }
 0x8c3   :  { %3910 = vmatmul.f32.vlgmr.msrb.gmra.mxu3 %v3792_v25 }
 0x8c4   :  { %3696 = vmatpush.msrb.mxu0 %v3554_v23  ;;  %3661 = vmatpush.msra.mxu1 %v10073_v56 }
 0x8c6   :  { %3700 = vmatpush.msrb.mxu0 %v3560_v1  ;;  %3663 = vmatpush.msra.mxu1 %v10099_v3 }
 0x8c7   :  { %3636 = vmatmul.f32.gmra.mxu0 %v9726_v55  ;;  %3667 = vmatmul.f32.vlgmr.msra.gmra.mxu1 %v9697_v14 }
 0x8c8   :  { %3704 = vmatpush.msrb.mxu0 %v3566_v31  ;;  %3735 = vmatpush.msrb.mxu1 %v10043_v15  ;;  %v3827_v15 = vand.u32 4294901760, %v10153_v57  ;;  %v3794_v31 = vand.u32 4294901760, %v3793_v2 }
 0x8ca   :  { %3708 = vmatpush.msrb.mxu0 %v3572_v18  ;;  %3737 = vmatpush.msrb.mxu1 %v10022_v48  ;;  %v3822_v48 = vsub.f32 %v10139_v42, %v3821_v39  ;;  %v3802_v18 = vand.u32 4294901760, %v3801_v30 }
 0x8cb   :  { %3916 = vmatmul.f32.gmra.mxu3 %v3800_v4 }
 0x8cc   :  { %3712 = vmatpush.msrb.mxu0 %v3578_v37  ;;  %3739 = vmatpush.msrb.mxu1 %v10027_v50  ;;  %v3828_v50 = vsub.f32 %v10153_v57, %v3827_v15  ;;  %v3823_v0 = vand.u32 4294901760, %v3822_v48 }
 0x8ce   :  { %3716 = vmatpush.msrb.mxu0 %v3584_v59  ;;  %3741 = vmatpush.msrb.mxu1 %v10031_v16  ;;  %v3839_v16 = vand.u32 4294901760, %v3838_v27  ;;  %v3829_v23 = vand.u32 4294901760, %v3828_v50 }
 0x8cf   :  { %3673 = vmatmul.f32.gmra.mxu1 %v9741_v52  ;;  %3718 = vmatmul.f32.vlgmr.msrb.gmra.mxu0 %v9642_v24 }
 0x8d0   :  { %3783 = vmatpush.msra.mxu0 %v10122_v40  ;;  %3743 = vmatpush.msrb.mxu1 %v10038_v43  ;;  %v3834_v43 = vsub.f32 %v10169_v17, %v3833_v47  ;;  %v3840_v1 = vsub.f32 %v3838_v27, %v3839_v16 }
 0x8d2   :  { %3745 = vmatpush.msrb.mxu1 %v10053_v29  ;;  %3785 = vmatpush.msra.mxu0 %v10136_v62  ;;  %v3835_v29 = vand.u32 4294901760, %v3834_v43 }
 0x8d4   :  { %3747 = vmatpush.msrb.mxu1 %v10073_v56  ;;  %3787 = vmatpush.msra.mxu0 %v10149_v35  ;;  %v3841_v56 = vand.u32 4294901760, %v3840_v1 }
 0x8d6   :  { %3749 = vmatpush.msrb.mxu1 %v10099_v3  ;;  %3789 = vmatpush.msra.mxu0 %v10158_v21 }
 0x8d7   :  { %3722 = vmatmul.f32.gmra.mxu0 %v9699_v22  ;;  %3751 = vmatmul.f32.vlgmr.msrb.gmra.mxu1 %v9642_v24 }
 0x8d8   :  { %3824 = vmatpush.msra.mxu1 %v3823_v0  ;;  %3935 = vmatpush.msrb.mxu0 %v3821_v39 }
 0x8da   :  { %3830 = vmatpush.msra.mxu1 %v3829_v23  ;;  %3939 = vmatpush.msrb.mxu0 %v3827_v15 }
 0x8dc   :  { %3836 = vmatpush.msra.mxu1 %v3835_v29  ;;  %3943 = vmatpush.msrb.mxu0 %v3833_v47 }
 0x8de   :  { %3842 = vmatpush.msra.mxu1 %v3841_v56  ;;  %3947 = vmatpush.msrb.mxu0 %v3839_v16 }
 0x8df   :  { %3755 = vmatmul.f32.gmra.mxu1 %v9699_v22  ;;  %3795 = vmatmul.f32.vlgmr.msra.gmra.mxu0 %v3794_v31 }
 0x8e0   :  { %3970 = vmatpush.msrb.mxu1 %v10122_v40 }
 0x8e2   :  { %3972 = vmatpush.msrb.mxu1 %v10136_v62 }
 0x8e4   :  { %3974 = vmatpush.msrb.mxu1 %v10149_v35  ;;  %v8166_v35 = vld [vmem:[%s11561_s7] ss:$0 sm:$0xff] }
 0x8e6   :  { %3976 = vmatpush.msrb.mxu1 %v10158_v21 }
 0x8e7   :  { %3803 = vmatmul.f32.gmra.mxu0 %v3802_v18  ;;  %3844 = vmatmul.f32.vlgmr.msra.gmra.mxu1 %v10147_v36 }
 0x8ef   :  { %3848 = vmatmul.f32.gmra.mxu1 %v10185_v26  ;;  %3949 = vmatmul.f32.vlgmr.msrb.gmra.mxu0 %v10147_v36 }
 0x8f7   :  { %3953 = vmatmul.f32.gmra.mxu0 %v10185_v26  ;;  %3978 = vmatmul.f32.vlgmr.msrb.gmra.mxu1 %v10147_v36 }
 0x8ff   :  { %3982 = vmatmul.f32.gmra.mxu1 %v10185_v26 }
 0x92c   :  { %v3521_v37 = vpop.f32.mrf.mxu0 }
 0x934   :  { %v3529_v3 = vpop.f32.mrf.mxu0  ;;  %v3590_v38 = vpop.f32.mrf.mxu1 }
 0x935   :  { %v3591_v28 = vadd.f32 %v3590_v38, %v3521_v37 }
 0x93c   :  { %v3594_v59 = vpop.f32.mrf.mxu1  ;;  %v3632_v61 = vpop.f32.mrf.mxu0 }
 0x93d   :  { %v3879_v54 = vpop.f32.mrf.mxu2  ;;  %v3633_v25 = vadd.f32 %v3632_v61, %v3591_v28  ;;  %v3595_v16 = vadd.f32 %v3594_v59, %v3529_v3 }
 0x944   :  { %v3637_v40 = vpop.f32.mrf.mxu0  ;;  %v3668_v8 = vpop.f32.mrf.mxu1 }
 0x945   :  { %v3669_v4 = vadd.f32 %v3668_v8, %v3633_v25  ;;  %v3884_v50 = vpop.f32.mrf.mxu2  ;;  %v3638_v1 = vadd.f32 %v3637_v40, %v3595_v16  ;;  %v11934_v25 = vld [vmem:[#allocation27_spill] sm:$0xff]  ;;  %v11943_v16 = vld [vmem:[#allocation22_spill] sm:$0xff] }
 0x946   :  { %v3911_v19 = vpop.f32.mrf.mxu3 }
 0x94c   :  { %v3674_v63 = vpop.f32.mrf.mxu1  ;;  %v3719_v49 = vpop.f32.mrf.mxu0 }
 0x94d   :  { %v3720_v15 = vadd.f32 %v3719_v49, %v3669_v4  ;;  %v3675_v31 = vadd.f32 %v3674_v63, %v3638_v1  ;;  %v11938_v4 = vld [vmem:[#allocation31_spill] sm:$0xff]  ;;  %v11947_v1 = vld [vmem:[#allocation26_spill] sm:$0xff] }
 0x94e   :  { %v3917_v56 = vpop.f32.mrf.mxu3 }
 0x954   :  { %v3723_v32 = vpop.f32.mrf.mxu0  ;;  %v3752_v62 = vpop.f32.mrf.mxu1 }
 0x955   :  { %v3753_v0 = vadd.f32 %v3752_v62, %v3720_v15  ;;  %v3724_v38 = vadd.f32 %v3723_v32, %v3675_v31  ;;  %v11939_v15 = vld [vmem:[#allocation18_spill] sm:$0xff] }
 0x956   :  { %v11951_v31 = vld [vmem:[#allocation30_spill] sm:$0xff] }
 0x957   :  { %v3759_v30 = vmax.f32 %v3753_v0, 0.0  ;;  %v11944_v0 = vld [vmem:[#allocation29_spill] sm:$0xff] }
 0x95c   :  { %v3756_v42 = vpop.f32.mrf.mxu1  ;;  %v3796_v51 = vpop.f32.mrf.mxu0 }
 0x95d   :  { %v3797_v21 = vadd.f32 %v8166_v35, %v3796_v51  ;;  %v3757_v8 = vadd.f32 %v3756_v42, %v3724_v38  ;;  %v11955_v38 = vld [vmem:[#allocation34_spill] sm:$0xff] }
 0x95f   :  { %v3760_v59 = vmax.f32 %v3757_v8, 0.0  ;;  %v11957_v8 = vld [vmem:[#allocation44_spill] sm:$0xff] }
 0x964   :  { %v3804_v36 = vpop.f32.mrf.mxu0  ;;  %v3845_v57 = vpop.f32.mrf.mxu1 }
 0x965   :  { %v3846_v17 = vadd.f32 %v3845_v57, %v3797_v21  ;;  %v3805_v26 = vadd.f32 %v8166_v35, %v3804_v36 }
 0x967   :  { %v3880_v34 = vadd.f32 %v3879_v54, %v3846_v17 }
 0x969   :  { %v3912_v48 = vadd.f32 %v3911_v19, %v3880_v34  ;;  %v11936_v34 = vld [vmem:[#allocation21_spill] sm:$0xff] }
 0x96c   :  { %v3849_v27 = vpop.f32.mrf.mxu1  ;;  %v3950_v39 = vpop.f32.mrf.mxu0 }
 0x96d   :  { %v3850_v47 = vadd.f32 %v3849_v27, %v3805_v26  ;;  %v3951_v43 = vadd.f32 %v3950_v39, %v3912_v48  ;;  %v11933_v27 = vld [vmem:[#allocation20_spill] sm:$0xff]  ;;  %v11935_v26 = vld [vmem:[#allocation13_spill] sm:$0xff] }
 0x96e   :  { %v11937_v39 = vld [vmem:[#allocation24_spill] sm:$0xff]  ;;  %v11940_v48 = vld [vmem:[#allocation25_spill] sm:$0xff] }
 0x96f   :  { %v3885_v29 = vadd.f32 %v3884_v50, %v3850_v47  ;;  %v11941_v47 = vld [vmem:[#allocation28_spill] sm:$0xff]  ;;  %v11942_v50 = vld [vmem:[#allocation35_spill] sm:$0xff] }
 0x971   :  { %v3918_v61 = vadd.f32 %v3917_v56, %v3885_v29  ;;  %v11948_v29 = vld [vmem:[#allocation33_spill] sm:$0xff]  ;;  %v11950_v56 = vld [vmem:[#allocation43_spill] sm:$0xff] }
 0x974   :  { %v3979_v23 = vpop.f32.mrf.mxu1  ;;  %v3954_v37 = vpop.f32.mrf.mxu0 }
 0x975   :  { %v3980_v2 = vadd.f32 %v3979_v23, %v3951_v43  ;;  %v3955_v49 = vadd.f32 %v3954_v37, %v3918_v61  ;;  %v11945_v43 = vld [vmem:[#allocation32_spill] sm:$0xff]  ;;  %v11946_v23 = vld [vmem:[#allocation39_spill] sm:$0xff]  ;;  %v11956_v61 = vld [vmem:[#allocation41_spill] sm:$0xff] }
 0x976   :  { %v11954_v37 = vld [vmem:[#allocation47_spill] sm:$0xff] }
 0x977   :  { %v3986_v18 = vmax.f32 %v3980_v2, 0.0  ;;  %v11949_v2 = vld [vmem:[#allocation36_spill] sm:$0xff] }
 0x979   :  { %v10238_v51 = vadd.f32 %v3986_v18, %v3759_v30  ;;  %v11952_v30 = vld [vmem:[#allocation37_spill] sm:$0xff]  ;;  %v11953_v18 = vld [vmem:[#allocation40_spill] sm:$0xff] }
 0x97b   :  { %11931 = vst [vmem:[#allocation73_spill] sm:$0xff] %v10238_v51  ;;  %v4028_v3 = vand.u32 4294901760, %v10238_v51 }
 0x97c   :  { %v3983_v35 = vpop.f32.mrf.mxu1 }
 0x97d   :  { %v3984_v36 = vadd.f32 %v3983_v35, %v3955_v49  ;;  %v4180_v57 = vsub.f32 %v10238_v51, %v4028_v3  ;;  %v11958_v49 = vld [vmem:[#allocation51_spill] sm:$0xff]  ;;  %v11959_v35 = vld [vmem:[#allocation38_spill] sm:$0xff] }
 0x97f   :  { %v3987_v62 = vmax.f32 %v3984_v36, 0.0  ;;  %v4181_v21 = vand.u32 4294901760, %v4180_v57  ;;  %v11960_v36 = vld [vmem:[#allocation45_spill] sm:$0xff] }
 0x981   :  { %v10241_v40 = vadd.f32 %v3987_v62, %v3760_v59  ;;  %v4182_v17 = vsub.f32 %v4180_v57, %v4181_v21  ;;  %v11962_v59 = vld [vmem:[#allocation55_spill] sm:$0xff]  ;;  %v11963_v62 = vld [vmem:[#allocation42_spill] sm:$0xff] }
 0x983   :  { %11932 = vst [vmem:[#allocation74_spill] sm:$0xff] %v10241_v40  ;;  %v4026_v63 = vand.u32 4294901760, %v10241_v40  ;;  %v4183_v19 = vand.u32 4294901760, %v4182_v17  ;;  %v11970_v17 = vld [vmem:[#allocation63_spill] sm:$0xff] }
 0x985   :  { %4027 = vmatpush.msra.mxu2 %v4026_v63  ;;  %4366 = vmatpush.msra.mxu1 %v4026_v63  ;;  %v4174_v32 = vsub.f32 %v10241_v40, %v4026_v63 }
 0x987   :  { %4029 = vmatpush.msra.mxu2 %v4028_v3  ;;  %4266 = vmatpush.msra.mxu0 %v4174_v32  ;;  %v4175_v42 = vand.u32 4294901760, %v4174_v32 }
 0x988   :  { %4368 = vmatpush.msra.mxu1 %v4028_v3  ;;  %4035 = vmatmul.f32.vlgmr.msra.gmra.mxu2 %v11857_v20 }
 0x989   :  { %4269 = vmatpush.msra.mxu0 %v4180_v57  ;;  %4483 = vmatpush.msrb.mxu2 %v4175_v42  ;;  %v4176_v54 = vsub.f32 %v4174_v32, %v4175_v42  ;;  %v11964_v57 = vld [vmem:[#allocation49_spill] sm:$0xff]  ;;  %v11966_v32 = vld [vmem:[#allocation59_spill] sm:$0xff] }
 0x98a   :  { %4272 = vmatmul.f32.vlgmr.msra.gmra.mxu0 %v11859_v13  ;;  %4372 = vmatmul.f32.vlgmr.msra.gmra.mxu1 %v11858_v9  ;;  %v11968_v42 = vld [vmem:[#allocation53_spill] sm:$0xff] }
 0x98b   :  { %4487 = vmatpush.msrb.mxu2 %v4181_v21  ;;  %v4177_v28 = vand.u32 4294901760, %v4176_v54  ;;  %v11967_v21 = vld [vmem:[#allocation46_spill] sm:$0xff]  ;;  %v11969_v54 = vld [vmem:[#allocation56_spill] sm:$0xff] }
 0x98d   :  { %4178 = vmatpush.msra.mxu3 %v4177_v28  ;;  %v11971_v28 = vld [vmem:[#allocation50_spill] sm:$0xff] }
 0x98f   :  { %4184 = vmatpush.msra.mxu3 %v4183_v19  ;;  %v11972_v19 = vld [vmem:[#allocation57_spill] sm:$0xff] }
 0x990   :  { %4043 = vmatmul.f32.gmra.mxu2 %v11860_v46  ;;  %7836 = vmatmul.msk.f32.vlgmr.msra.gmra.mxu3 %vm145_vm0, %v8364_v5 }
 0x991   :  { %4568 = vmatpush.msrb.mxu3 %v4026_v63  ;;  %v11965_v63 = vld [vmem:[#allocation52_spill] sm:$0xff] }
 0x992   :  { %4277 = vmatmul.f32.gmra.mxu0 %v11898_v58  ;;  %4378 = vmatmul.f32.gmra.mxu1 %v11899_v10 }
 0x993   :  { %4570 = vmatpush.msrb.mxu3 %v4028_v3  ;;  %v11961_v3 = vld [vmem:[#allocation48_spill] sm:$0xff] }
 0x998   :  { %4051 = vmatmul.f32.gmra.mxu2 %v11900_v6  ;;  %7837 = vmatmul.msk.f32.gmra.mxu3 %vm145_vm0, %v11901_v44 }
 0x99a   :  { %4282 = vmatmul.f32.gmra.mxu0 %v11902_v12  ;;  %4384 = vmatmul.f32.gmra.mxu1 %v11933_v27 }
 0x9a0   :  { %4059 = vmatmul.f32.gmra.mxu2 %v11934_v25  ;;  %7838 = vmatmul.msk.f32.gmra.mxu3 %vm145_vm0, %v11935_v26 }
 0x9a2   :  { %4287 = vmatmul.f32.gmra.mxu0 %v11936_v34  ;;  %4390 = vmatmul.f32.gmra.mxu1 %v11937_v39 }
 0x9a8   :  { %4067 = vmatmul.f32.gmra.mxu2 %v11938_v4  ;;  %7839 = vmatmul.msk.f32.gmra.mxu3 %vm145_vm0, %v11939_v15 }
 0x9aa   :  { %4292 = vmatmul.f32.gmra.mxu0 %v11940_v48  ;;  %4396 = vmatmul.f32.gmra.mxu1 %v11941_v47 }
 0x9b0   :  { %4075 = vmatmul.f32.gmra.mxu2 %v11942_v50  ;;  %7840 = vmatmul.msk.f32.gmra.mxu3 %vm145_vm0, %v11943_v16 }
 0x9b2   :  { %4297 = vmatmul.f32.gmra.mxu0 %v11944_v0  ;;  %4402 = vmatmul.f32.gmra.mxu1 %v11945_v43 }
 0x9b8   :  { %4083 = vmatmul.f32.gmra.mxu2 %v11946_v23  ;;  %7841 = vmatmul.msk.f32.gmra.mxu3 %vm145_vm0, %v11947_v1 }
 0x9ba   :  { %4302 = vmatmul.f32.gmra.mxu0 %v11948_v29  ;;  %4408 = vmatmul.f32.gmra.mxu1 %v11949_v2 }
 0x9c0   :  { %4091 = vmatmul.f32.gmra.mxu2 %v11950_v56  ;;  %7842 = vmatmul.msk.f32.gmra.mxu3 %vm145_vm0, %v11951_v31 }
 0x9c2   :  { %4307 = vmatmul.f32.gmra.mxu0 %v11952_v30  ;;  %4414 = vmatmul.f32.gmra.mxu1 %v11953_v18 }
 0x9c8   :  { %4099 = vmatmul.f32.gmra.mxu2 %v11954_v37  ;;  %7843 = vmatmul.msk.f32.gmra.mxu3 %vm145_vm0, %v11955_v38  ;;  %v11973_v37 = vld [vmem:[#allocation60_spill] sm:$0xff] }
 0x9ca   :  { %4312 = vmatmul.f32.gmra.mxu0 %v11956_v61  ;;  %4420 = vmatmul.f32.gmra.mxu1 %v11957_v8  ;;  %v11974_v61 = vld [vmem:[#allocation67_spill] sm:$0xff]  ;;  %v11975_v8 = vld [vmem:[#allocation54_spill] sm:$0xff] }
 0x9d0   :  { %4107 = vmatmul.f32.gmra.mxu2 %v11958_v49  ;;  %7844 = vmatmul.msk.f32.gmra.mxu3 %vm145_vm0, %v11959_v35  ;;  %v11976_v49 = vld [vmem:[#allocation61_spill] sm:$0xff] }
 0x9d2   :  { %4317 = vmatmul.f32.gmra.mxu0 %v11960_v36  ;;  %4426 = vmatmul.f32.gmra.mxu1 %v11961_v3  ;;  %v11977_v36 = vld [vmem:[#allocation64_spill] sm:$0xff]  ;;  %v11978_v3 = vld [vmem:[#allocation70_spill] sm:$0xff] }
 0x9d8   :  { %4115 = vmatmul.f32.gmra.mxu2 %v11962_v59  ;;  %7845 = vmatmul.msk.f32.gmra.mxu3 %vm145_vm0, %v11963_v62  ;;  %v11979_v59 = vld [vmem:[#allocation58_spill] sm:$0xff] }
 0x9da   :  { %4322 = vmatmul.f32.gmra.mxu0 %v11964_v57  ;;  %4432 = vmatmul.f32.gmra.mxu1 %v11965_v63  ;;  %v11980_v57 = vld [vmem:[#allocation65_spill] sm:$0xff]  ;;  %v11981_v63 = vld [vmem:[#allocation68_spill] sm:$0xff] }
 0x9e0   :  { %4123 = vmatmul.f32.gmra.mxu2 %v11966_v32  ;;  %7846 = vmatmul.msk.f32.gmra.mxu3 %vm145_vm0, %v11967_v21  ;;  %v11982_v32 = vld [vmem:[#allocation72_spill] sm:$0xff] }
 0x9e2   :  { %4327 = vmatmul.f32.gmra.mxu0 %v11968_v42  ;;  %4438 = vmatmul.f32.gmra.mxu1 %v11969_v54  ;;  %v11983_v42 = vld [vmem:[#allocation62_spill] sm:$0xff]  ;;  %v11984_v54 = vld [vmem:[#allocation69_spill] sm:$0xff] }
 0x9e8   :  { %4131 = vmatmul.f32.gmra.mxu2 %v11970_v17  ;;  %7847 = vmatmul.msk.f32.gmra.mxu3 %vm145_vm0, %v11971_v28  ;;  %v11985_v17 = vld [vmem:[#allocation71_spill] sm:$0xff] }
 0x9ea   :  { %4332 = vmatmul.f32.gmra.mxu0 %v11972_v19  ;;  %4444 = vmatmul.f32.gmra.mxu1 %v11973_v37  ;;  %v11986_v19 = vld [vmem:[#allocation66_spill] sm:$0xff] }
 0x9f0   :  { %4139 = vmatmul.f32.gmra.mxu2 %v11974_v61  ;;  %7848 = vmatmul.msk.f32.gmra.mxu3 %vm145_vm0, %v11975_v8 }
 0x9f2   :  { %4337 = vmatmul.f32.gmra.mxu0 %v11976_v49  ;;  %4450 = vmatmul.f32.gmra.mxu1 %v11977_v36 }
 0x9f8   :  { %4147 = vmatmul.f32.gmra.mxu2 %v11978_v3  ;;  %7849 = vmatmul.msk.f32.gmra.mxu3 %vm145_vm0, %v11979_v59 }
 0x9fa   :  { %4342 = vmatmul.f32.gmra.mxu0 %v11980_v57  ;;  %4456 = vmatmul.f32.gmra.mxu1 %v11981_v63 }
 0xa00   :  { %4155 = vmatmul.f32.gmra.mxu2 %v11982_v32  ;;  %7850 = vmatmul.msk.f32.gmra.mxu3 %vm145_vm0, %v11983_v42 }
 0xa02   :  { %4347 = vmatmul.f32.gmra.mxu0 %v11984_v54  ;;  %4462 = vmatmul.f32.gmra.mxu1 %v11985_v17 }
 0xa07   :  { %v4373_v22 = vpop.f32.mrf.mxu1 }
 0xa08   :  { %7851 = vmatmul.msk.f32.gmra.mxu3 %vm145_vm0, %v11986_v19  ;;  %7852 = vmatmul.msk.f32.vlgmr.msrb.gmra.mxu2 %vm145_vm0, %v8364_v5 }
 0xa0b   :  { %v4036_v37 = vpop.f32.mrf.mxu2 }
 0xa0f   :  { %v4379_v33 = vpop.f32.mrf.mxu1 }
 0xa10   :  { %7853 = vmatmul.msk.f32.gmra.mxu2 %vm145_vm0, %v11901_v44  ;;  %7868 = vmatmul.msk.f32.vlgmr.msrb.gmra.mxu3 %vm145_vm0, %v8364_v5 }
 0xa13   :  { %v4044_v61 = vpop.f32.mrf.mxu2  ;;  %v4187_v49 = vpop.f32.mrf.mxu3 }
 0xa14   :  { %v10332_v36 = vadd.f32 %v4187_v49, %v4036_v37 }
 0xa18   :  { %7854 = vmatmul.msk.f32.gmra.mxu2 %vm145_vm0, %v11935_v26  ;;  %7869 = vmatmul.msk.f32.gmra.mxu3 %vm145_vm0, %v11901_v44 }
 0xa1b   :  { %v4052_v3 = vpop.f32.mrf.mxu2  ;;  %v4191_v57 = vpop.f32.mrf.mxu3 }
 0xa1c   :  { %v10338_v63 = vadd.f32 %v4191_v57, %v4044_v61 }
 0xa20   :  { %7855 = vmatmul.msk.f32.gmra.mxu2 %vm145_vm0, %v11939_v15  ;;  %7870 = vmatmul.msk.f32.gmra.mxu3 %vm145_vm0, %v11935_v26 }
 0xa23   :  { %v4060_v32 = vpop.f32.mrf.mxu2  ;;  %v4195_v54 = vpop.f32.mrf.mxu3 }
 0xa24   :  { %v10344_v17 = vadd.f32 %v4195_v54, %v4052_v3 }
 0xa28   :  { %7856 = vmatmul.msk.f32.gmra.mxu2 %vm145_vm0, %v11943_v16  ;;  %7871 = vmatmul.msk.f32.gmra.mxu3 %vm145_vm0, %v11939_v15 }
 0xa2b   :  { %v4068_v37 = vpop.f32.mrf.mxu2  ;;  %v4199_v49 = vpop.f32.mrf.mxu3 }
 0xa2c   :  { %v10350_v61 = vadd.f32 %v4199_v49, %v4060_v32 }
 0xa30   :  { %7857 = vmatmul.msk.f32.gmra.mxu2 %vm145_vm0, %v11947_v1  ;;  %7872 = vmatmul.msk.f32.gmra.mxu3 %vm145_vm0, %v11943_v16 }
 0xa33   :  { %v4076_v57 = vpop.f32.mrf.mxu2  ;;  %v4203_v40 = vpop.f32.mrf.mxu3 }
 0xa34   :  { %v10356_v3 = vadd.f32 %v4203_v40, %v4068_v37 }
 0xa38   :  { %7858 = vmatmul.msk.f32.gmra.mxu2 %vm145_vm0, %v11951_v31  ;;  %7873 = vmatmul.msk.f32.gmra.mxu3 %vm145_vm0, %v11947_v1 }
 0xa3b   :  { %v4084_v54 = vpop.f32.mrf.mxu2  ;;  %v4207_v51 = vpop.f32.mrf.mxu3 }
 0xa3c   :  { %v10362_v32 = vadd.f32 %v4207_v51, %v4076_v57 }
 0xa40   :  { %7859 = vmatmul.msk.f32.gmra.mxu2 %vm145_vm0, %v11955_v38  ;;  %7874 = vmatmul.msk.f32.gmra.mxu3 %vm145_vm0, %v11951_v31 }
 0xa43   :  { %v4092_v49 = vpop.f32.mrf.mxu2  ;;  %v4211_v52 = vpop.f32.mrf.mxu3 }
 0xa44   :  { %v10368_v40 = vadd.f32 %v4211_v52, %v4084_v54 }
 0xa48   :  { %7860 = vmatmul.msk.f32.gmra.mxu2 %vm145_vm0, %v11959_v35  ;;  %7875 = vmatmul.msk.f32.gmra.mxu3 %vm145_vm0, %v11955_v38 }
 0xa4b   :  { %v10374_v37 = vpop.f32.mrf.mxu2  ;;  %v4215_v51 = vpop.f32.mrf.mxu3 }
 0xa4c   :  { %v10376_v57 = vadd.f32 %v4215_v51, %v4092_v49 }
 0xa50   :  { %7861 = vmatmul.msk.f32.gmra.mxu2 %vm145_vm0, %v11963_v62  ;;  %7876 = vmatmul.msk.f32.gmra.mxu3 %vm145_vm0, %v11959_v35 }
 0xa53   :  { %v10382_v14 = vpop.f32.mrf.mxu2  ;;  %v10384_v52 = vpop.f32.mrf.mxu3 }
 0xa58   :  { %7862 = vmatmul.msk.f32.gmra.mxu2 %vm145_vm0, %v11967_v21  ;;  %7877 = vmatmul.msk.f32.gmra.mxu3 %vm145_vm0, %v11963_v62  ;;  %v4273_v62 = vpop.f32.mrf.mxu0 }
 0xa59   :  { %v4274_v2 = vadd.f32 %v4273_v62, %v10332_v36 }
 0xa5b   :  { %v10390_v54 = vpop.f32.mrf.mxu2  ;;  %v10392_v49 = vpop.f32.mrf.mxu3  ;;  %v4374_v23 = vadd.f32 %v4373_v22, %v4274_v2 }
 0xa60   :  { %7863 = vmatmul.msk.f32.gmra.mxu2 %vm145_vm0, %v11971_v28  ;;  %7878 = vmatmul.msk.f32.gmra.mxu3 %vm145_vm0, %v11967_v21  ;;  %v4278_v45 = vpop.f32.mrf.mxu0 }
 0xa61   :  { %v4279_v50 = vadd.f32 %v4278_v45, %v10338_v63 }
 0xa63   :  { %v10398_v35 = vpop.f32.mrf.mxu2  ;;  %v10400_v51 = vpop.f32.mrf.mxu3  ;;  %v4380_v15 = vadd.f32 %v4379_v33, %v4279_v50 }
 0xa68   :  { %7864 = vmatmul.msk.f32.gmra.mxu2 %vm145_vm0, %v11975_v8  ;;  %7879 = vmatmul.msk.f32.gmra.mxu3 %vm145_vm0, %v11971_v28  ;;  %v4283_v30 = vpop.f32.mrf.mxu0 }
 0xa69   :  { %v4284_v39 = vadd.f32 %v4283_v30, %v10344_v17 }
 0xa6b   :  { %v10406_v55 = vpop.f32.mrf.mxu2  ;;  %v10408_v60 = vpop.f32.mrf.mxu3 }
 0xa70   :  { %7865 = vmatmul.msk.f32.gmra.mxu2 %vm145_vm0, %v11979_v59  ;;  %7880 = vmatmul.msk.f32.gmra.mxu3 %vm145_vm0, %v11975_v8  ;;  %v4385_v8 = vpop.f32.mrf.mxu1  ;;  %v4288_v56 = vpop.f32.mrf.mxu0 }
 0xa71   :  { %v4386_v22 = vadd.f32 %v4385_v8, %v4284_v39  ;;  %v4289_v45 = vadd.f32 %v4288_v56, %v10350_v61 }
 0xa73   :  { %v10414_v21 = vpop.f32.mrf.mxu2  ;;  %v10416_v24 = vpop.f32.mrf.mxu3 }
 0xa78   :  { %7866 = vmatmul.msk.f32.gmra.mxu2 %vm145_vm0, %v11983_v42  ;;  %7881 = vmatmul.msk.f32.gmra.mxu3 %vm145_vm0, %v11979_v59  ;;  %v4391_v1 = vpop.f32.mrf.mxu1  ;;  %v4293_v0 = vpop.f32.mrf.mxu0 }
 0xa79   :  { %v4392_v33 = vadd.f32 %v4391_v1, %v4289_v45 }
 0xa7b   :  { %v10422_v28 = vpop.f32.mrf.mxu2  ;;  %v10424_v38 = vpop.f32.mrf.mxu3 }
 0xa80   :  { %7867 = vmatmul.msk.f32.gmra.mxu2 %vm145_vm0, %v11986_v19  ;;  %7882 = vmatmul.msk.f32.gmra.mxu3 %vm145_vm0, %v11983_v42  ;;  %v4397_v47 = vpop.f32.mrf.mxu1  ;;  %v4298_v26 = vpop.f32.mrf.mxu0 }
 0xa81   :  { %v4299_v56 = vadd.f32 %v4298_v26, %v10362_v32 }
 0xa83   :  { %v10430_v18 = vpop.f32.mrf.mxu2  ;;  %v10432_v31 = vpop.f32.mrf.mxu3 }
 0xa88   :  { %7883 = vmatmul.msk.f32.gmra.mxu3 %vm145_vm0, %v11986_v19  ;;  %v4303_v63 = vpop.f32.mrf.mxu0 }
 0xa8b   :  { %v10436_v59 = vpop.f32.mrf.mxu3  ;;  %v4490_v29 = vpop.f32.mrf.mxu2 }
 0xa8c   :  { %v4491_v43 = vadd.f32 %v4490_v29, %v4374_v23  ;;  %v4403_v23 = vpop.f32.mrf.mxu1 }
 0xa8d   :  { %v4404_v1 = vadd.f32 %v4403_v23, %v4299_v56 }
 0xa90   :  { %v4308_v30 = vpop.f32.mrf.mxu0 }
 0xa91   :  { %v4309_v26 = vadd.f32 %v4308_v30, %v10376_v57  ;;  %v4224_v57 = vadd.f32 %v10392_v49, %v10382_v14  ;;  %v4232_v49 = vadd.f32 %v10408_v60, %v10398_v35  ;;  %v7828_v60 = vld [vmem:[%s11557_s3 + $0x98] sm:$0xff]  ;;  %v7827_v35 = vld [vmem:[%s11557_s3 + $0x90] sm:$0xff] }
 0xa93   :  { %v4494_v16 = vpop.f32.mrf.mxu2  ;;  %v4573_v42 = vpop.f32.mrf.mxu3 }
 0xa94   :  { %v4574_v48 = vadd.f32 %v4573_v42, %v4491_v43  ;;  %v4495_v4 = vadd.f32 %v4494_v16, %v4380_v15  ;;  %v4409_v15 = vpop.f32.mrf.mxu1 }
 0xa96   :  { %4636 = vst.msk [vmem:[#allocation2] sm:$0xff] %vm154_vm2, %v4574_v48 }
 0xa9b   :  { %v4498_v19 = vpop.f32.mrf.mxu2  ;;  %v4577_v34 = vpop.f32.mrf.mxu3 }
 0xa9c   :  { %v4578_v36 = vadd.f32 %v4577_v34, %v4495_v4  ;;  %v4499_v29 = vadd.f32 %v4498_v19, %v4386_v22  ;;  %v4294_v34 = vadd.f32 %v4293_v0, %v10356_v3  ;;  %v4415_v61 = vpop.f32.mrf.mxu1  ;;  %v4304_v0 = vadd.f32 %v4303_v63, %v10368_v40 }
 0xa9d   :  { %v4416_v23 = vadd.f32 %v4415_v61, %v4309_v26 }
 0xa9e   :  { %4637 = vst.msk [vmem:[#allocation2 + $0x8] sm:$0xff] %vm154_vm2, %v4578_v36  ;;  %v4398_v39 = vadd.f32 %v4397_v47, %v4294_v34  ;;  %v4313_v36 = vpop.f32.mrf.mxu0  ;;  %v4410_v47 = vadd.f32 %v4409_v15, %v4304_v0 }
 0xaa3   :  { %v4502_v2 = vpop.f32.mrf.mxu2  ;;  %v4581_v62 = vpop.f32.mrf.mxu3 }
 0xaa4   :  { %v4582_v43 = vadd.f32 %v4581_v62, %v4499_v29  ;;  %v4503_v48 = vadd.f32 %v4502_v2, %v4392_v33  ;;  %v4421_v62 = vpop.f32.mrf.mxu1 }
 0xaa6   :  { %4638 = vst.msk [vmem:[#allocation2 + $0x10] sm:$0xff] %vm154_vm2, %v4582_v43  ;;  %v4318_v32 = vpop.f32.mrf.mxu0 }
 0xaa7   :  { %v4319_v61 = vadd.f32 %v4318_v32, %v4224_v57  ;;  %v4236_v32 = vadd.f32 %v10416_v24, %v10406_v55  ;;  %v7826_v24 = vld [vmem:[%s11557_s3 + $0x88] sm:$0xff]  ;;  %v10477_v55 = vand.u32 4294901760, %v7828_v60 }
 0xaa9   :  { %4726 = vmatpush.msrb.mxu0 %v10477_v55  ;;  %5147 = vmatpush.msra.mxu3 %v10477_v55 }
 0xaab   :  { %v4506_v50 = vpop.f32.mrf.mxu2  ;;  %v4585_v16 = vpop.f32.mrf.mxu3 }
 0xaac   :  { %v4586_v4 = vadd.f32 %v4585_v16, %v4503_v48  ;;  %v4507_v17 = vadd.f32 %v4506_v50, %v4398_v39  ;;  %v4220_v50 = vadd.f32 %v10384_v52, %v10374_v37  ;;  %v4427_v16 = vpop.f32.mrf.mxu1  ;;  %v4228_v52 = vadd.f32 %v10400_v51, %v10390_v54 }
 0xaad   :  { %v4428_v37 = vadd.f32 %v4427_v16, %v4319_v61 }
 0xaae   :  { %4639 = vst.msk [vmem:[#allocation2 + $0x18] sm:$0xff] %vm154_vm2, %v4586_v4  ;;  %v4314_v4 = vadd.f32 %v4313_v36, %v4220_v50  ;;  %v4323_v15 = vpop.f32.mrf.mxu0 }
 0xab3   :  { %v4510_v8 = vpop.f32.mrf.mxu2  ;;  %v4589_v42 = vpop.f32.mrf.mxu3 }
 0xab4   :  { %v4590_v19 = vadd.f32 %v4589_v42, %v4507_v17  ;;  %v4511_v22 = vadd.f32 %v4510_v8, %v4404_v1  ;;  %v4422_v17 = vadd.f32 %v4421_v62, %v4314_v4  ;;  %v4433_v30 = vpop.f32.mrf.mxu1  ;;  %v10481_v4 = vand.u32 4294901760, %v7826_v24 }
 0xab6   :  { %4640 = vst.msk [vmem:[#allocation2 + $0x20] sm:$0xff] %vm154_vm2, %v4590_v19  ;;  %v4328_v1 = vpop.f32.mrf.mxu0 }
 0xabb   :  { %v4514_v29 = vpop.f32.mrf.mxu2  ;;  %v4593_v2 = vpop.f32.mrf.mxu3 }
 0xabc   :  { %v4594_v3 = vadd.f32 %v4593_v2, %v4511_v22  ;;  %v4515_v45 = vadd.f32 %v4514_v29, %v4410_v47  ;;  %v4324_v2 = vadd.f32 %v4323_v15, %v4228_v52 }
 0xabe   :  { %4641 = vst.msk [vmem:[#allocation2 + $0x28] sm:$0xff] %vm154_vm2, %v4594_v3  ;;  %v4439_v3 = vpop.f32.mrf.mxu1  ;;  %v4434_v14 = vadd.f32 %v4433_v30, %v4324_v2  ;;  %v4333_v62 = vpop.f32.mrf.mxu0 }
 0xabf   :  { %v4334_v16 = vadd.f32 %v4333_v62, %v4236_v32 }
 0xac3   :  { %v4518_v43 = vpop.f32.mrf.mxu2  ;;  %v4597_v33 = vpop.f32.mrf.mxu3 }
 0xac4   :  { %v4598_v48 = vadd.f32 %v4597_v33, %v4515_v45  ;;  %v4519_v40 = vadd.f32 %v4518_v43, %v4416_v23  ;;  %v4329_v33 = vadd.f32 %v4328_v1, %v4232_v49 }
 0xac6   :  { %4642 = vst.msk [vmem:[#allocation2 + $0x30] sm:$0xff] %vm154_vm2, %v4598_v48  ;;  %v4445_v54 = vpop.f32.mrf.mxu1  ;;  %v4440_v51 = vadd.f32 %v4439_v3, %v4329_v33 }
 0xac7   :  { %v4446_v15 = vadd.f32 %v4445_v54, %v4334_v16 }
 0xacb   :  { %v4522_v63 = vpop.f32.mrf.mxu2  ;;  %v4601_v34 = vpop.f32.mrf.mxu3 }
 0xacc   :  { %v4602_v39 = vadd.f32 %v4601_v34, %v4519_v40  ;;  %v4523_v8 = vadd.f32 %v4522_v63, %v4422_v17  ;;  %v4338_v63 = vpop.f32.mrf.mxu0  ;;  %v10479_v34 = vand.u32 4294901760, %v7827_v35  ;;  %v4240_v17 = vadd.f32 %v10424_v38, %v10414_v21 }
 0xace   :  { %4643 = vst.msk [vmem:[#allocation2 + $0x38] sm:$0xff] %vm154_vm2, %v4602_v39  ;;  %v7825_v39 = vld [vmem:[%s11557_s3 + $0x80] sm:$0xff]  ;;  %v4451_v30 = vpop.f32.mrf.mxu1  ;;  %4728 = vmatpush.msrb.mxu0 %v10479_v34  ;;  %5149 = vmatpush.msra.mxu3 %v10479_v34 }
 0xacf   :  { %v10488_v57 = vand.u32 4294901760, %v7825_v39 }
 0xad0   :  { %5151 = vmatpush.msra.mxu3 %v10481_v4  ;;  %4730 = vmatpush.msrb.mxu0 %v10481_v4 }
 0xad2   :  { %5153 = vmatpush.msra.mxu3 %v10488_v57  ;;  %4732 = vmatpush.msrb.mxu0 %v10488_v57 }
 0xad3   :  { %v4526_v42 = vpop.f32.mrf.mxu2  ;;  %v4605_v56 = vpop.f32.mrf.mxu3 }
 0xad4   :  { %v4606_v19 = vadd.f32 %v4605_v56, %v4523_v8  ;;  %v4527_v36 = vadd.f32 %v4526_v42, %v4428_v37  ;;  %v10492_v8 = vsub.f32 %v7828_v60, %v10477_v55  ;;  %v10495_v42 = vsub.f32 %v7827_v35, %v10479_v34 }
 0xad5   :  { %v10499_v56 = vsub.f32 %v7826_v24, %v10481_v4 }
 0xad6   :  { %4652 = vrot.lane.b32.xlu2 %v4606_v19, %s8290_s14  ;;  %v10502_v19 = vsub.f32 %v7825_v39, %v10488_v57  ;;  %v4818_v37 = vand.u32 4294901760, %v10492_v8  ;;  %v4824_v52 = vand.u32 4294901760, %v10495_v42  ;;  %v4457_v54 = vpop.f32.mrf.mxu1 }
 0xad7   :  { %v4830_v1 = vand.u32 4294901760, %v10499_v56 }
 0xad8   :  { %v4819_v2 = vsub.f32 %v10492_v8, %v4818_v37  ;;  %5070 = vmatpush.msra.mxu2 %v4818_v37  ;;  %v7822_v37 = vld [vmem:[%s11557_s3 + $0x68] sm:$0xff] }
 0xad9   :  { %v4831_v3 = vsub.f32 %v10499_v56, %v4830_v1 }
 0xada   :  { %v4820_v49 = vand.u32 4294901760, %v4819_v2  ;;  %5074 = vmatpush.msra.mxu2 %v4824_v52 }
 0xadb   :  { %v4530_v22 = vpop.f32.mrf.mxu2  ;;  %v4609_v29 = vpop.f32.mrf.mxu3  ;;  %v4832_v33 = vand.u32 4294901760, %v4831_v3 }
 0xadc   :  { %v4610_v0 = vadd.f32 %v4609_v29, %v4527_v36  ;;  %v4531_v47 = vadd.f32 %v4530_v22, %v4434_v14  ;;  %v4339_v36 = vadd.f32 %v4338_v63, %v4240_v17  ;;  %v4836_v29 = vand.u32 4294901760, %v10502_v19  ;;  %v4343_v14 = vpop.f32.mrf.mxu0  ;;  %4821 = vmatpush.msrb.mxu1 %v4820_v49  ;;  %5078 = vmatpush.msra.mxu2 %v4830_v1  ;;  %v7820_v49 = vld [vmem:[%s11557_s3 + $0x58] sm:$0xff] }
 0xade   :  { %4654 = vrot.lane.b32.xlu1 %v4610_v0, %s8290_s14  ;;  %v4825_v0 = vsub.f32 %v10495_v42, %v4824_v52  ;;  %5082 = vmatpush.msra.mxu2 %v4836_v29  ;;  %v4463_v24 = vpop.f32.mrf.mxu1 }
 0xae0   :  { %v4826_v62 = vand.u32 4294901760, %v4825_v0 }
 0xae2   :  { %4827 = vmatpush.msrb.mxu1 %v4826_v62 }
 0xae3   :  { %v4534_v45 = vpop.f32.mrf.mxu2  ;;  %v4613_v43 = vpop.f32.mrf.mxu3 }
 0xae4   :  { %v4614_v26 = vadd.f32 %v4613_v43, %v4531_v47  ;;  %v4535_v48 = vadd.f32 %v4534_v45, %v4440_v51  ;;  %v4837_v47 = vsub.f32 %v10502_v19, %v4836_v29  ;;  %v4452_v45 = vadd.f32 %v4451_v30, %v4339_v36  ;;  %4833 = vmatpush.msrb.mxu1 %v4832_v33  ;;  %v7821_v29 = vld [vmem:[%s11557_s3 + $0x60] sm:$0xff] }
 0xae5   :  { %v4244_v43 = vadd.f32 %v10432_v31, %v10422_v28  ;;  %v4248_v31 = vadd.f32 %v10436_v59, %v10430_v18  ;;  %v4348_v28 = vpop.f32.mrf.mxu0  ;;  %v7823_v18 = vld [vmem:[%s11557_s3 + $0x70] sm:$0xff]  ;;  %v4741_v33 = vand.u32 4294901760, %v7820_v49 }
 0xae6   :  { %4656 = vrot.lane.b32.xlu0 %v4614_v26, %s8290_s14  ;;  %v4838_v32 = vand.u32 4294901760, %v4837_v47 }
 0xae7   :  { %v4349_v60 = vadd.f32 %v4348_v28, %v4248_v31 }
 0xae8   :  { %4839 = vmatpush.msrb.mxu1 %v4838_v32 }
 0xae9   :  { %v4464_v17 = vadd.f32 %v4463_v24, %v4349_v60 }
 0xaeb   :  { %v4538_v23 = vpop.f32.mrf.mxu2  ;;  %v4617_v50 = vpop.f32.mrf.mxu3 }
 0xaec   :  { %v4618_v40 = vadd.f32 %v4617_v50, %v4535_v48  ;;  %v4539_v61 = vadd.f32 %v4538_v23, %v4446_v15  ;;  %v4344_v48 = vadd.f32 %v4343_v14, %v4244_v43  ;;  %v7824_v15 = vld [vmem:[%s11557_s3 + $0x78] sm:$0xff]  ;;  %v4739_v14 = vand.u32 4294901760, %v7821_v29 }
 0xaed   :  { %v10528_v30 = vand.u32 4294901760, %v7824_v15 }
 0xaee   :  { %4658 = vrot.lane.b32.xlu2 %v4618_v40, %s8290_s14  ;;  %v4458_v16 = vadd.f32 %v4457_v54, %v4344_v48  ;;  %v4859_v43 = vsub.f32 %v7821_v29, %v4739_v14 }
 0xaef   :  { %5155 = vmatpush.msra.mxu3 %v10528_v30  ;;  %4734 = vmatpush.msrb.mxu0 %v10528_v30 }
 0xaf0   :  { %v4860_v32 = vand.u32 4294901760, %v4859_v43 }
 0xaf3   :  { %v4542_v38 = vpop.f32.mrf.mxu2  ;;  %v4621_v21 = vpop.f32.mrf.mxu3 }
 0xaf4   :  { %v4622_v22 = vadd.f32 %v4621_v21, %v4539_v61  ;;  %v4543_v26 = vadd.f32 %v4542_v38, %v4452_v45  ;;  %v10534_v61 = vsub.f32 %v7824_v15, %v10528_v30  ;;  %v10537_v38 = vand.u32 4294901760, %v7823_v18 }
 0xaf6   :  { %4660 = vrot.lane.b32.xlu1 %v4622_v22, %s8290_s14  ;;  %v4842_v1 = vand.u32 4294901760, %v10534_v61  ;;  %v4847_v36 = vsub.f32 %v7823_v18, %v10537_v38  ;;  %5157 = vmatpush.msra.mxu3 %v10537_v38  ;;  %v10546_v22 = vand.u32 4294901760, %v7822_v37 }
 0xaf7   :  { %4736 = vmatpush.msrb.mxu0 %v10537_v38 }
 0xaf8   :  { %v4843_v2 = vsub.f32 %v10534_v61, %v4842_v1  ;;  %5086 = vmatpush.msra.mxu2 %v4842_v1  ;;  %v4848_v0 = vand.u32 4294901760, %v4847_v36  ;;  %v4853_v3 = vsub.f32 %v7822_v37, %v10546_v22  ;;  %5159 = vmatpush.msra.mxu3 %v10546_v22 }
 0xaf9   :  { %4738 = vmatpush.msrb.mxu0 %v10546_v22 }
 0xafa   :  { %v4844_v62 = vand.u32 4294901760, %v4843_v2  ;;  %v4849_v47 = vsub.f32 %v4847_v36, %v4848_v0  ;;  %5090 = vmatpush.msra.mxu2 %v4848_v0  ;;  %v4854_v45 = vand.u32 4294901760, %v4853_v3  ;;  %5161 = vmatpush.msra.mxu3 %v4739_v14 }
 0xafb   :  { %v4625_v51 = vpop.f32.mrf.mxu3  ;;  %v4546_v50 = vpop.f32.mrf.mxu2  ;;  %4740 = vmatpush.msrb.mxu0 %v4739_v14 }
 0xafc   :  { %v4626_v23 = vadd.f32 %v4625_v51, %v4543_v26  ;;  %v4547_v40 = vadd.f32 %v4546_v50, %v4458_v16  ;;  %v7819_v26 = vld [vmem:[%s11557_s3 + $0x50] sm:$0xff]  ;;  %4845 = vmatpush.msrb.mxu1 %v4844_v62  ;;  %v4850_v54 = vand.u32 4294901760, %v4849_v47  ;;  %v4855_v51 = vsub.f32 %v4853_v3, %v4854_v45  ;;  %5094 = vmatpush.msra.mxu2 %v4854_v45 }
 0xafd   :  { %v4743_v48 = vand.u32 4294901760, %v7819_v26  ;;  %5163 = vmatpush.msra.mxu3 %v4741_v33  ;;  %4742 = vmatpush.msrb.mxu0 %v4741_v33  ;;  %v4861_v16 = vsub.f32 %v4859_v43, %v4860_v32 }
 0xafe   :  { %4662 = vrot.lane.b32.xlu0 %v4626_v23, %s8290_s14  ;;  %v4865_v23 = vsub.f32 %v7820_v49, %v4741_v33  ;;  %4851 = vmatpush.msrb.mxu1 %v4850_v54  ;;  %v4856_v50 = vand.u32 4294901760, %v4855_v51 }
 0xaff   :  { %5098 = vmatpush.msra.mxu2 %v4860_v32  ;;  %v4871_v31 = vsub.f32 %v7819_v26, %v4743_v48  ;;  %5165 = vmatpush.msra.mxu3 %v4743_v48 }
 0xb00   :  { %v4866_v28 = vand.u32 4294901760, %v4865_v23  ;;  %4744 = vmatpush.msrb.mxu0 %v4743_v48  ;;  %4857 = vmatpush.msrb.mxu1 %v4856_v50 }
 0xb02   :  { %4917 = vmatpush.msra.mxu0 %v10492_v8  ;;  %v4867_v60 = vsub.f32 %v4865_v23, %v4866_v28  ;;  %5102 = vmatpush.msra.mxu2 %v4866_v28 }
 0xb03   :  { %v4629_v63 = vpop.f32.mrf.mxu3  ;;  %v4550_v39 = vpop.f32.mrf.mxu2 }
 0xb04   :  { %v4630_v35 = vadd.f32 %v4629_v63, %v4547_v40  ;;  %v4551_v59 = vadd.f32 %v4550_v39, %v4464_v17  ;;  %v4862_v40 = vand.u32 4294901760, %v4861_v16  ;;  %v4872_v63 = vand.u32 4294901760, %v4871_v31  ;;  %4920 = vmatpush.msra.mxu0 %v10495_v42 }
 0xb05   :  { %v4868_v24 = vand.u32 4294901760, %v4867_v60 }
 0xb06   :  { %4664 = vrot.lane.b32.xlu2 %v4630_v35, %s8290_s14  ;;  %4863 = vmatpush.msrb.mxu1 %v4862_v40  ;;  %v4873_v35 = vsub.f32 %v4871_v31, %v4872_v63 }
 0xb07   :  { %5106 = vmatpush.msra.mxu2 %v4872_v63  ;;  %4923 = vmatpush.msra.mxu0 %v10499_v56 }
 0xb08   :  { %v4874_v39 = vand.u32 4294901760, %v4873_v35  ;;  %4869 = vmatpush.msrb.mxu1 %v4868_v24 }
 0xb09   :  { %4926 = vmatpush.msra.mxu0 %v10502_v19 }
 0xb0a   :  { %4875 = vmatpush.msrb.mxu1 %v4874_v39 }
 0xb0b   :  { %v4633_v21 = vpop.f32.mrf.mxu3  ;;  %4929 = vmatpush.msra.mxu0 %v10534_v61 }
 0xb0c   :  { %v4634_v52 = vadd.f32 %v4633_v21, %v4551_v59  ;;  %4993 = vmatpush.msra.mxu1 %v10477_v55 }
 0xb0d   :  { %4932 = vmatpush.msra.mxu0 %v4847_v36 }
 0xb0e   :  { %4666 = vrot.lane.b32.xlu1 %v4634_v52, %s8290_s14  ;;  %4995 = vmatpush.msra.mxu1 %v10479_v34 }
 0xb0f   :  { %4935 = vmatpush.msra.mxu0 %v4853_v3 }
 0xb10   :  { %4997 = vmatpush.msra.mxu1 %v10481_v4 }
 0xb11   :  { %4938 = vmatpush.msra.mxu0 %v4859_v43 }
 0xb12   :  { %4999 = vmatpush.msra.mxu1 %v10488_v57 }
 0xb13   :  { %4941 = vmatpush.msra.mxu0 %v4865_v23 }
 0xb14   :  { %5001 = vmatpush.msra.mxu1 %v10528_v30 }
 0xb15   :  { %4944 = vmatpush.msra.mxu0 %v4871_v31 }
 0xb16   :  { %5003 = vmatpush.msra.mxu1 %v10537_v38 }
 0xb18   :  { %5005 = vmatpush.msra.mxu1 %v10546_v22 }
 0xb1a   :  { %5007 = vmatpush.msra.mxu1 %v4739_v14 }
 0xb1c   :  { %5009 = vmatpush.msra.mxu1 %v4741_v33 }
 0xb1e   :  { %5011 = vmatpush.msra.mxu1 %v4743_v48 }
 0xb30   :  { %v4653_v55 = vpop.permute.xlu2 %4652 }
 0xb31   :  { %4676 = vst.msk [vmem:[#allocation2] sm:$0xff] %vm952_vm3, %v4653_v55 }
 0xb38   :  { %v4684_v34 = vld [vmem:[#allocation2] sm:$0xff] }
 0xb39   :  { %v4696_v4 = vsel %vm972_vm4, %v4684_v34, 0 }
 0xb3a   :  { %v4745_v8 = vand.u32 4294901760, %v4696_v4 }
 0xb3c   :  { %v10577_v57 = vsub.f32 %v4696_v4, %v4745_v8  ;;  %4877 = vmatmul.f32.vlgmr.msrb.gmra.mxu1 %v4745_v8  ;;  %5108 = vmatmul.f32.vlgmr.msra.gmra.mxu2 %v4745_v8 }
 0xb3d   :  { %5167 = vmatmul.f32.vlgmr.msra.gmra.mxu3 %v4745_v8 }
 0xb3e   :  { %v4747_v42 = vand.u32 4294901760, %v10577_v57 }
 0xb40   :  { %v4748_v56 = vsub.f32 %v10577_v57, %v4747_v42 }
 0xb42   :  { %v4749_v19 = vand.u32 4294901760, %v4748_v56 }
 0xb44   :  { %4750 = vmatmul.f32.vlgmr.msrb.gmra.mxu0 %v4749_v19 }
 0xb48   :  { %v4659_v15 = vpop.permute.xlu2 %4658 }
 0xb49   :  { %4679 = vst.msk [vmem:[#allocation2 + $0x18] sm:$0xff] %vm952_vm3, %v4659_v15 }
 0xb50   :  { %v4655_v17 = vpop.permute.xlu1 %4654  ;;  %v4687_v21 = vld [vmem:[#allocation2 + $0x18] sm:$0xff] }
 0xb51   :  { %4677 = vst.msk [vmem:[#allocation2 + $0x8] sm:$0xff] %vm952_vm3, %v4655_v17  ;;  %v4705_v52 = vsel %vm972_vm4, %v4687_v21, 0 }
 0xb52   :  { %v4769_v3 = vand.u32 4294901760, %v4705_v52 }
 0xb54   :  { %v10599_v62 = vsub.f32 %v4705_v52, %v4769_v3 }
 0xb56   :  { %v4771_v33 = vand.u32 4294901760, %v10599_v62 }
 0xb58   :  { %v4657_v30 = vpop.permute.xlu0 %4656  ;;  %v4685_v18 = vld [vmem:[#allocation2 + $0x8] sm:$0xff]  ;;  %v4772_v26 = vsub.f32 %v10599_v62, %v4771_v33 }
 0xb59   :  { %4678 = vst.msk [vmem:[#allocation2 + $0x10] sm:$0xff] %vm952_vm3, %v4657_v30  ;;  %v4699_v59 = vsel %vm972_vm4, %v4685_v18, 0 }
 0xb5a   :  { %v4753_v61 = vand.u32 4294901760, %v4699_v59  ;;  %v4773_v48 = vand.u32 4294901760, %v4772_v26 }
 0xb5c   :  { %4881 = vmatmul.f32.gmra.mxu1 %v4753_v61  ;;  %5112 = vmatmul.f32.gmra.mxu2 %v4753_v61  ;;  %v10587_v38 = vsub.f32 %v4699_v59, %v4753_v61 }
 0xb5d   :  { %5171 = vmatmul.f32.gmra.mxu3 %v4753_v61 }
 0xb5e   :  { %v4755_v37 = vand.u32 4294901760, %v10587_v38 }
 0xb60   :  { %v4665_v1 = vpop.permute.xlu2 %4664  ;;  %v4756_v36 = vsub.f32 %v10587_v38, %v4755_v37  ;;  %v4686_v22 = vld [vmem:[#allocation2 + $0x10] sm:$0xff] }
 0xb61   :  { %4682 = vst.msk [vmem:[#allocation2 + $0x30] sm:$0xff] %vm952_vm3, %v4665_v1  ;;  %v4702_v29 = vsel %vm972_vm4, %v4686_v22, 0 }
 0xb62   :  { %v4757_v2 = vand.u32 4294901760, %v4756_v36  ;;  %v4761_v0 = vand.u32 4294901760, %v4702_v29 }
 0xb64   :  { %4758 = vmatmul.f32.gmra.mxu0 %v4757_v2  ;;  %4885 = vmatmul.f32.gmra.mxu1 %v4761_v0  ;;  %v10596_v14 = vsub.f32 %v4702_v29, %v4761_v0 }
 0xb65   :  { %5116 = vmatmul.f32.gmra.mxu2 %v4761_v0  ;;  %5175 = vmatmul.f32.gmra.mxu3 %v4761_v0 }
 0xb66   :  { %v4763_v49 = vand.u32 4294901760, %v10596_v14 }
 0xb68   :  { %v4661_v47 = vpop.permute.xlu1 %4660  ;;  %v4764_v45 = vsub.f32 %v10596_v14, %v4763_v49  ;;  %v4690_v16 = vld [vmem:[#allocation2 + $0x30] sm:$0xff] }
 0xb69   :  { %4680 = vst.msk [vmem:[#allocation2 + $0x20] sm:$0xff] %vm952_vm3, %v4661_v47  ;;  %v4714_v28 = vsel %vm972_vm4, %v4690_v16, 0  ;;  %v10646_v16 = vld [vmem:[%s11558_s4 + $0x1] ss:$0 sm:$0xff] }
 0xb6a   :  { %v4765_v43 = vand.u32 4294901760, %v4764_v45  ;;  %v4793_v39 = vand.u32 4294901760, %v4714_v28 }
 0xb6c   :  { %4766 = vmatmul.f32.gmra.mxu0 %v4765_v43  ;;  %4889 = vmatmul.f32.gmra.mxu1 %v4769_v3  ;;  %v4794_v4 = vsub.f32 %v4714_v28, %v4793_v39 }
 0xb6d   :  { %5120 = vmatmul.f32.gmra.mxu2 %v4769_v3  ;;  %5179 = vmatmul.f32.gmra.mxu3 %v4769_v3 }
 0xb6e   :  { %v4795_v15 = vand.u32 4294901760, %v4794_v4 }
 0xb70   :  { %v4663_v54 = vpop.permute.xlu0 %4662  ;;  %v4688_v51 = vld [vmem:[#allocation2 + $0x20] sm:$0xff]  ;;  %v4796_v17 = vsub.f32 %v4794_v4, %v4795_v15 }
 0xb71   :  { %4681 = vst.msk [vmem:[#allocation2 + $0x28] sm:$0xff] %vm952_vm3, %v4663_v54  ;;  %v4708_v32 = vsel %vm972_vm4, %v4688_v51, 0 }
 0xb72   :  { %v4777_v23 = vand.u32 4294901760, %v4708_v32  ;;  %v4797_v59 = vand.u32 4294901760, %v4796_v17 }
 0xb74   :  { %4774 = vmatmul.f32.gmra.mxu0 %v4773_v48  ;;  %4893 = vmatmul.f32.gmra.mxu1 %v4777_v23  ;;  %v4778_v50 = vsub.f32 %v4708_v32, %v4777_v23 }
 0xb75   :  { %5124 = vmatmul.f32.gmra.mxu2 %v4777_v23  ;;  %5183 = vmatmul.f32.gmra.mxu3 %v4777_v23 }
 0xb76   :  { %v4779_v31 = vand.u32 4294901760, %v4778_v50 }
 0xb78   :  { %v4780_v40 = vsub.f32 %v4778_v50, %v4779_v31  ;;  %v4689_v63 = vld [vmem:[#allocation2 + $0x28] sm:$0xff] }
 0xb79   :  { %v4711_v60 = vsel %vm972_vm4, %v4689_v63, 0 }
 0xb7a   :  { %v4781_v35 = vand.u32 4294901760, %v4780_v40  ;;  %v4785_v24 = vand.u32 4294901760, %v4711_v60 }
 0xb7c   :  { %4782 = vmatmul.f32.gmra.mxu0 %v4781_v35  ;;  %4897 = vmatmul.f32.gmra.mxu1 %v4785_v24  ;;  %v4786_v55 = vsub.f32 %v4711_v60, %v4785_v24 }
 0xb7d   :  { %5128 = vmatmul.f32.gmra.mxu2 %v4785_v24  ;;  %5187 = vmatmul.f32.gmra.mxu3 %v4785_v24 }
 0xb7e   :  { %v4787_v34 = vand.u32 4294901760, %v4786_v55 }
 0xb80   :  { %v4667_v8 = vpop.permute.xlu1 %4666  ;;  %v4788_v56 = vsub.f32 %v4786_v55, %v4787_v34 }
 0xb81   :  { %4683 = vst.msk [vmem:[#allocation2 + $0x38] sm:$0xff] %vm952_vm3, %v4667_v8 }
 0xb82   :  { %v4789_v19 = vand.u32 4294901760, %v4788_v56 }
 0xb84   :  { %4790 = vmatmul.f32.gmra.mxu0 %v4789_v19  ;;  %4901 = vmatmul.f32.gmra.mxu1 %v4793_v39 }
 0xb85   :  { %5132 = vmatmul.f32.gmra.mxu2 %v4793_v39  ;;  %5191 = vmatmul.f32.gmra.mxu3 %v4793_v39 }
 0xb88   :  { %v4691_v30 = vld [vmem:[#allocation2 + $0x38] sm:$0xff] }
 0xb89   :  { %v4717_v18 = vsel %vm972_vm4, %v4691_v30, 0 }
 0xb8a   :  { %v4801_v61 = vand.u32 4294901760, %v4717_v18 }
 0xb8c   :  { %4798 = vmatmul.f32.gmra.mxu0 %v4797_v59  ;;  %4905 = vmatmul.f32.gmra.mxu1 %v4801_v61  ;;  %v4802_v21 = vsub.f32 %v4717_v18, %v4801_v61 }
 0xb8d   :  { %5136 = vmatmul.f32.gmra.mxu2 %v4801_v61  ;;  %5195 = vmatmul.f32.gmra.mxu3 %v4801_v61 }
 0xb8e   :  { %v4803_v52 = vand.u32 4294901760, %v4802_v21 }
 0xb90   :  { %v4804_v1 = vsub.f32 %v4802_v21, %v4803_v52 }
 0xb92   :  { %v4805_v36 = vand.u32 4294901760, %v4804_v1 }
 0xb94   :  { %4806 = vmatmul.f32.gmra.mxu0 %v4805_v36  ;;  %5015 = vmatmul.f32.vlgmr.msra.gmra.mxu1 %v4747_v42 }
 0xb9c   :  { %4947 = vmatmul.f32.vlgmr.msra.gmra.mxu0 %v10577_v57  ;;  %5021 = vmatmul.f32.gmra.mxu1 %v4755_v37 }
 0xba4   :  { %4952 = vmatmul.f32.gmra.mxu0 %v10587_v38  ;;  %5027 = vmatmul.f32.gmra.mxu1 %v4763_v49 }
 0xbac   :  { %4957 = vmatmul.f32.gmra.mxu0 %v10596_v14  ;;  %5033 = vmatmul.f32.gmra.mxu1 %v4771_v33 }
 0xbb4   :  { %4962 = vmatmul.f32.gmra.mxu0 %v10599_v62  ;;  %5039 = vmatmul.f32.gmra.mxu1 %v4779_v31  ;;  %v7830_v62 = vld [vmem:[%s11559_s5 + $0x4] sm:$0xf] }
 0xbb5   :  { %v5248_v47 = vsel %vm154_vm2, %v7830_v62, 0 }
 0xbb6   :  { %v5265_v45 = vand.u32 4294901760, %v5248_v47 }
 0xbb8   :  { %v5348_v43 = vsub.f32 %v5248_v47, %v5265_v45  ;;  %5461 = vmatpush.xpose.msrb.mxu3 %v5265_v45  ;;  %5266 = vmatpush.xpose.msrb.mxu0 %v5265_v45 }
 0xbb9   :  { %v4878_v57 = vpop.f32.mrf.mxu1 }
 0xbba   :  { %v5349_v33 = vand.u32 4294901760, %v5348_v43  ;;  %5403 = vmatpush.xpose.msrb.mxu2 %v5348_v43 }
 0xbbc   :  { %4967 = vmatmul.f32.gmra.mxu0 %v4778_v50  ;;  %5045 = vmatmul.f32.gmra.mxu1 %v4787_v34  ;;  %v5350_v51 = vsub.f32 %v5348_v43, %v5349_v33 }
 0xbbd   :  { %5529 = vmatpush.xpose.msra.mxu0 %v5349_v33 }
 0xbbe   :  { %v5351_v32 = vand.u32 4294901760, %v5350_v51 }
 0xbbf   :  { %v5109_v50 = vpop.f32.mrf.mxu2 }
 0xbc0   :  { %5352 = vmatpush.xpose.msrb.mxu1 %v5351_v32  ;;  %v5168_v40 = vpop.f32.mrf.mxu3 }
 0xbc1   :  { %v4751_v42 = vpop.f32.mrf.mxu0 }
 0xbc2   :  { %v4752_v63 = vadd.f32 %v10646_v16, %v4751_v42 }
 0xbc4   :  { %4972 = vmatmul.f32.gmra.mxu0 %v4786_v55  ;;  %5051 = vmatmul.f32.gmra.mxu1 %v4795_v15  ;;  %v4879_v35 = vadd.f32 %v4878_v57, %v4752_v63 }
 0xbc5   :  { %5579 = vmatpush.xpose.msra.mxu1 %v5265_v45 }
 0xbcc   :  { %4977 = vmatmul.f32.gmra.mxu0 %v4794_v4  ;;  %5057 = vmatmul.f32.gmra.mxu1 %v4803_v52 }
 0xbd4   :  { %4982 = vmatmul.f32.gmra.mxu0 %v4802_v21 }
 0xbd9   :  { %v4882_v37 = vpop.f32.mrf.mxu1 }
 0xbdf   :  { %v5113_v60 = vpop.f32.mrf.mxu2 }
 0xbe0   :  { %v5172_v34 = vpop.f32.mrf.mxu3 }
 0xbe1   :  { %v4759_v38 = vpop.f32.mrf.mxu0  ;;  %v4886_v22 = vpop.f32.mrf.mxu1 }
 0xbe2   :  { %v4760_v4 = vadd.f32 %v10646_v16, %v4759_v38 }
 0xbe4   :  { %v4883_v15 = vadd.f32 %v4882_v37, %v4760_v4 }
 0xbe8   :  { %v5117_v61 = vpop.f32.mrf.mxu2  ;;  %v5176_v36 = vpop.f32.mrf.mxu3 }
 0xbe9   :  { %v4767_v29 = vpop.f32.mrf.mxu0  ;;  %v10623_v2 = vpop.f32.mrf.mxu1 }
 0xbea   :  { %v4768_v21 = vadd.f32 %v10646_v16, %v4767_v29 }
 0xbec   :  { %v4887_v62 = vadd.f32 %v4886_v22, %v4768_v21 }
 0xbf0   :  { %v5121_v63 = vpop.f32.mrf.mxu2 }
 0xbf1   :  { %v4775_v0 = vpop.f32.mrf.mxu0  ;;  %v10625_v3 = vpop.f32.mrf.mxu1 }
 0xbf2   :  { %v4776_v32 = vadd.f32 %v10646_v16, %v4775_v0 }
 0xbf4   :  { %v4891_v0 = vadd.f32 %v10623_v2, %v4776_v32 }
 0xbf9   :  { %v10627_v14 = vpop.f32.mrf.mxu0  ;;  %v10629_v49 = vpop.f32.mrf.mxu1 }
 0xc01   :  { %v10635_v26 = vpop.f32.mrf.mxu0  ;;  %v10637_v54 = vpop.f32.mrf.mxu1 }
 0xc09   :  { %v10639_v48 = vpop.f32.mrf.mxu0  ;;  %v10641_v23 = vpop.f32.mrf.mxu1 }
 0xc11   :  { %v10648_v31 = vpop.f32.mrf.mxu0  ;;  %v5016_v28 = vpop.f32.mrf.mxu1 }
 0xc19   :  { %v4948_v24 = vpop.f32.mrf.mxu0  ;;  %v5022_v39 = vpop.f32.mrf.mxu1 }
 0xc1a   :  { %v4949_v55 = vadd.f32 %v4948_v24, %v4879_v35 }
 0xc1c   :  { %v5017_v8 = vadd.f32 %v5016_v28, %v4949_v55 }
 0xc1e   :  { %v5110_v56 = vadd.f32 %v5109_v50, %v5017_v8 }
 0xc20   :  { %v10652_v19 = vadd.f32 %v5168_v40, %v5110_v56 }
 0xc21   :  { %v4953_v17 = vpop.f32.mrf.mxu0  ;;  %v5028_v30 = vpop.f32.mrf.mxu1 }
 0xc22   :  { %11987 = vst [vmem:[#allocation47_spill] sm:$0xff] %v10652_v19  ;;  %vm5199_vm3 = vcmp.ge.f32.partialorder %v10652_v19, 0.0  ;;  %v5207_v18 = vmul.f32 0.2, %v10652_v19  ;;  %v4954_v59 = vadd.f32 %v4953_v17, %v4883_v15  ;;  %v4784_v17 = vadd.f32 %v10646_v16, %v10627_v14 }
 0xc24   :  { %v5023_v52 = vadd.f32 %v5022_v39, %v4954_v59  ;;  %v5215_v1 = vsel %vm5199_vm3, %v10652_v19, %v5207_v18  ;;  %v5180_v39 = vpop.f32.mrf.mxu3  ;;  %v4895_v14 = vadd.f32 %v10625_v3, %v4784_v17 }
 0xc25   :  { %v5224_v57 = vsel %vm154_vm2, %v5215_v1, 0 }
 0xc26   :  { %v5114_v42 = vadd.f32 %v5113_v60, %v5023_v52  ;;  %v10659_v38 = vand.u32 4294901760, %v5224_v57 }
 0xc28   :  { %v10661_v37 = vadd.f32 %v5172_v34, %v5114_v42  ;;  %5354 = vmatmul.f32.vlgmr.msrb.gmra.mxu1 %v10659_v38  ;;  %v5268_v47 = vsub.f32 %v5224_v57, %v10659_v38 }
 0xc29   :  { %v4958_v45 = vpop.f32.mrf.mxu0  ;;  %v5034_v51 = vpop.f32.mrf.mxu1 }
 0xc2a   :  { %11988 = vst [vmem:[#allocation41_spill] sm:$0xff] %v10661_v37  ;;  %v4959_v43 = vadd.f32 %v4958_v45, %v4887_v62  ;;  %5406 = vmatmul.f32.vlgmr.msrb.gmra.mxu2 %v5268_v47  ;;  %v5269_v29 = vand.u32 4294901760, %v5268_v47  ;;  %vm5200_vm4 = vcmp.ge.f32.partialorder %v10661_v37, 0.0  ;;  %v5208_v33 = vmul.f32 0.2, %v10661_v37 }
 0xc2c   :  { %v5029_v50 = vadd.f32 %v5028_v30, %v4959_v43  ;;  %5465 = vmatmul.f32.vlgmr.msrb.gmra.mxu3 %v5269_v29  ;;  %v5270_v28 = vsub.f32 %v5268_v47, %v5269_v29  ;;  %v5216_v40 = vsel %vm5200_vm4, %v10661_v37, %v5208_v33  ;;  %v5184_v62 = vpop.f32.mrf.mxu3  ;;  %v4792_v33 = vadd.f32 %v10646_v16, %v10635_v26 }
 0xc2d   :  { %v5227_v22 = vsel %vm154_vm2, %v5216_v40, 0 }
 0xc2e   :  { %v5118_v60 = vadd.f32 %v5117_v61, %v5029_v50  ;;  %v5271_v35 = vand.u32 4294901760, %v5270_v28  ;;  %v10670_v24 = vand.u32 4294901760, %v5227_v22 }
 0xc30   :  { %v10672_v55 = vadd.f32 %v5176_v36, %v5118_v60  ;;  %5272 = vmatmul.f32.vlgmr.msrb.gmra.mxu0 %v5271_v35  ;;  %5358 = vmatmul.f32.gmra.mxu1 %v10670_v24  ;;  %v5276_v34 = vsub.f32 %v5227_v22, %v10670_v24  ;;  %v5125_v36 = vpop.f32.mrf.mxu2  ;;  %v4899_v35 = vadd.f32 %v10629_v49, %v4792_v33 }
 0xc31   :  { %v4963_v4 = vpop.f32.mrf.mxu0  ;;  %v5040_v61 = vpop.f32.mrf.mxu1 }
 0xc32   :  { %v4964_v8 = vadd.f32 %v4963_v4, %v4891_v0  ;;  %5411 = vmatmul.f32.gmra.mxu2 %v5276_v34  ;;  %v5277_v56 = vand.u32 4294901760, %v5276_v34  ;;  %vm5201_vm14 = vcmp.ge.f32.partialorder %v10672_v55, 0.0  ;;  %v5209_v15 = vmul.f32 0.2, %v10672_v55 }
 0xc34   :  { %v5035_v30 = vadd.f32 %v5034_v51, %v4964_v8  ;;  %5471 = vmatmul.f32.gmra.mxu3 %v5277_v56  ;;  %v5278_v18 = vsub.f32 %v5276_v34, %v5277_v56  ;;  %v5217_v59 = vsel %vm5201_vm14, %v10672_v55, %v5209_v15  ;;  %v5188_v56 = vpop.f32.mrf.mxu3  ;;  %v4800_v15 = vadd.f32 %v10646_v16, %v10639_v48 }
 0xc35   :  { %v5230_v2 = vsel %vm154_vm2, %v5217_v59, 0 }
 0xc36   :  { %v5122_v21 = vadd.f32 %v5121_v63, %v5035_v30  ;;  %v5279_v52 = vand.u32 4294901760, %v5278_v18  ;;  %v10683_v1 = vand.u32 4294901760, %v5230_v2 }
 0xc38   :  { %v10685_v57 = vadd.f32 %v5180_v39, %v5122_v21  ;;  %5280 = vmatmul.f32.gmra.mxu0 %v5279_v52  ;;  %5362 = vmatmul.f32.gmra.mxu1 %v10683_v1  ;;  %v5284_v42 = vsub.f32 %v5230_v2, %v10683_v1  ;;  %v5129_v39 = vpop.f32.mrf.mxu2  ;;  %v4903_v52 = vadd.f32 %v10637_v54, %v4800_v15 }
 0xc39   :  { %v4968_v47 = vpop.f32.mrf.mxu0  ;;  %v5046_v22 = vpop.f32.mrf.mxu1 }
 0xc3a   :  { %v4969_v45 = vadd.f32 %v4968_v47, %v4895_v14  ;;  %5416 = vmatmul.f32.gmra.mxu2 %v5284_v42  ;;  %v5285_v43 = vand.u32 4294901760, %v5284_v42  ;;  %vm5202_vm1 = vcmp.ge.f32.partialorder %v10685_v57, 0.0  ;;  %v5210_v29 = vmul.f32 0.2, %v10685_v57 }
 0xc3c   :  { %v5041_v51 = vadd.f32 %v5040_v61, %v4969_v45  ;;  %5477 = vmatmul.f32.gmra.mxu3 %v5285_v43  ;;  %v5286_v32 = vsub.f32 %v5284_v42, %v5285_v43  ;;  %v5218_v50 = vsel %vm5202_vm1, %v10685_v57, %v5210_v29  ;;  %v4808_v43 = vadd.f32 %v10646_v16, %v10648_v31 }
 0xc3d   :  { %v5233_v3 = vsel %vm154_vm2, %v5218_v50, 0 }
 0xc3e   :  { %v5126_v28 = vadd.f32 %v5125_v36, %v5041_v51  ;;  %v5287_v40 = vand.u32 4294901760, %v5286_v32  ;;  %v10696_v63 = vand.u32 4294901760, %v5233_v3  ;;  %v5192_v51 = vpop.f32.mrf.mxu3 }
 0xc40   :  { %v10698_v60 = vadd.f32 %v5184_v62, %v5126_v28  ;;  %5288 = vmatmul.f32.gmra.mxu0 %v5287_v40  ;;  %5366 = vmatmul.f32.gmra.mxu1 %v10696_v63  ;;  %v5292_v26 = vsub.f32 %v5233_v3, %v10696_v63  ;;  %v5133_v45 = vpop.f32.mrf.mxu2 }
 0xc41   :  { %v4973_v0 = vpop.f32.mrf.mxu0  ;;  %v5052_v36 = vpop.f32.mrf.mxu1 }
 0xc42   :  { %v4974_v34 = vadd.f32 %v4973_v0, %v4899_v35  ;;  %5421 = vmatmul.f32.gmra.mxu2 %v5292_v26  ;;  %v5293_v4 = vand.u32 4294901760, %v5292_v26  ;;  %vm5203_vm6 = vcmp.ge.f32.partialorder %v10698_v60, 0.0  ;;  %v5211_v8 = vmul.f32 0.2, %v10698_v60 }
 0xc44   :  { %v5047_v17 = vadd.f32 %v5046_v22, %v4974_v34  ;;  %5483 = vmatmul.f32.gmra.mxu3 %v5293_v4  ;;  %v5294_v30 = vsub.f32 %v5292_v26, %v5293_v4  ;;  %v5219_v49 = vsel %vm5203_vm6, %v10698_v60, %v5211_v8  ;;  %v4907_v22 = vadd.f32 %v10641_v23, %v4808_v43 }
 0xc45   :  { %v5236_v18 = vsel %vm154_vm2, %v5219_v49, 0 }
 0xc46   :  { %v5130_v59 = vadd.f32 %v5129_v39, %v5047_v17  ;;  %v5295_v61 = vand.u32 4294901760, %v5294_v30  ;;  %v10709_v2 = vand.u32 4294901760, %v5236_v18  ;;  %v5196_v49 = vpop.f32.mrf.mxu3 }
 0xc48   :  { %v10711_v21 = vadd.f32 %v5188_v56, %v5130_v59  ;;  %5296 = vmatmul.f32.gmra.mxu0 %v5295_v61  ;;  %5370 = vmatmul.f32.gmra.mxu1 %v10709_v2  ;;  %v5300_v48 = vsub.f32 %v5236_v18, %v10709_v2  ;;  %v5137_v56 = vpop.f32.mrf.mxu2 }
 0xc49   :  { %v4978_v14 = vpop.f32.mrf.mxu0  ;;  %v5058_v0 = vpop.f32.mrf.mxu1 }
 0xc4a   :  { %v4979_v42 = vadd.f32 %v4978_v14, %v4903_v52  ;;  %5426 = vmatmul.f32.gmra.mxu2 %v5300_v48  ;;  %v5301_v62 = vand.u32 4294901760, %v5300_v48  ;;  %vm5204_vm9 = vcmp.ge.f32.partialorder %v10711_v21, 0.0  ;;  %v5212_v47 = vmul.f32 0.2, %v10711_v21 }
 0xc4c   :  { %v5053_v29 = vadd.f32 %v5052_v36, %v4979_v42  ;;  %5489 = vmatmul.f32.gmra.mxu3 %v5301_v62  ;;  %v5302_v33 = vsub.f32 %v5300_v48, %v5301_v62  ;;  %v5220_v54 = vsel %vm5204_vm9, %v10711_v21, %v5212_v47 }
 0xc4d   :  { %v5239_v32 = vsel %vm154_vm2, %v5220_v54, 0 }
 0xc4e   :  { %v5134_v50 = vadd.f32 %v5133_v45, %v5053_v29  ;;  %v5303_v3 = vand.u32 4294901760, %v5302_v33  ;;  %v5307_v28 = vand.u32 4294901760, %v5239_v32 }
 0xc50   :  { %v10722_v40 = vadd.f32 %v5192_v51, %v5134_v50  ;;  %5304 = vmatmul.f32.gmra.mxu0 %v5303_v3  ;;  %5374 = vmatmul.f32.gmra.mxu1 %v5307_v28  ;;  %v5308_v35 = vsub.f32 %v5239_v32, %v5307_v28 }
 0xc51   :  { %v4983_v26 = vpop.f32.mrf.mxu0 }
 0xc52   :  { %v4984_v16 = vadd.f32 %v4983_v26, %v4907_v22  ;;  %5431 = vmatmul.f32.gmra.mxu2 %v5308_v35  ;;  %v5309_v31 = vand.u32 4294901760, %v5308_v35  ;;  %vm5205_vm3 = vcmp.ge.f32.partialorder %v10722_v40, 0.0  ;;  %v5213_v39 = vmul.f32 0.2, %v10722_v40 }
 0xc54   :  { %v5059_v34 = vadd.f32 %v5058_v0, %v4984_v16  ;;  %5495 = vmatmul.f32.gmra.mxu3 %v5309_v31  ;;  %v5310_v4 = vsub.f32 %v5308_v35, %v5309_v31  ;;  %v5221_v8 = vsel %vm5205_vm3, %v10722_v40, %v5213_v39 }
 0xc55   :  { %v5242_v15 = vsel %vm154_vm2, %v5221_v8, 0 }
 0xc56   :  { %v5138_v17 = vadd.f32 %v5137_v56, %v5059_v34  ;;  %v5311_v23 = vand.u32 4294901760, %v5310_v4  ;;  %v5315_v30 = vand.u32 4294901760, %v5242_v15 }
 0xc58   :  { %v10729_v18 = vadd.f32 %v5196_v49, %v5138_v17  ;;  %5312 = vmatmul.f32.gmra.mxu0 %v5311_v23  ;;  %5378 = vmatmul.f32.gmra.mxu1 %v5315_v30  ;;  %v5316_v59 = vsub.f32 %v5242_v15, %v5315_v30 }
 0xc5a   :  { %5436 = vmatmul.f32.gmra.mxu2 %v5316_v59  ;;  %v5317_v61 = vand.u32 4294901760, %v5316_v59  ;;  %vm5206_vm4 = vcmp.ge.f32.partialorder %v10729_v18, 0.0  ;;  %v5214_v52 = vmul.f32 0.2, %v10729_v18 }
 0xc5c   :  { %5501 = vmatmul.f32.gmra.mxu3 %v5317_v61  ;;  %v5318_v48 = vsub.f32 %v5316_v59, %v5317_v61  ;;  %v5222_v36 = vsel %vm5206_vm4, %v10729_v18, %v5214_v52 }
 0xc5d   :  { %v5245_v14 = vsel %vm154_vm2, %v5222_v36, 0 }
 0xc5e   :  { %v5319_v42 = vand.u32 4294901760, %v5318_v48  ;;  %v5323_v62 = vand.u32 4294901760, %v5245_v14 }
 0xc60   :  { %5320 = vmatmul.f32.gmra.mxu0 %v5319_v42  ;;  %5382 = vmatmul.f32.gmra.mxu1 %v5323_v62  ;;  %v5324_v47 = vsub.f32 %v5245_v14, %v5323_v62 }
 0xc62   :  { %5441 = vmatmul.f32.gmra.mxu2 %v5324_v47  ;;  %v5325_v45 = vand.u32 4294901760, %v5324_v47 }
 0xc64   :  { %5507 = vmatmul.f32.gmra.mxu3 %v5325_v45  ;;  %v5326_v43 = vsub.f32 %v5324_v47, %v5325_v45 }
 0xc66   :  { %v5327_v29 = vand.u32 4294901760, %v5326_v43 }
 0xc68   :  { %5328 = vmatmul.f32.gmra.mxu0 %v5327_v29  ;;  %5581 = vmatmul.f32.vlgmr.msra.gmra.mxu1 %v10659_v38 }
 0xc70   :  { %5531 = vmatmul.f32.vlgmr.msra.gmra.mxu0 %v10659_v38  ;;  %5585 = vmatmul.f32.gmra.mxu1 %v10670_v24 }
 0xc78   :  { %5535 = vmatmul.f32.gmra.mxu0 %v10670_v24  ;;  %5589 = vmatmul.f32.gmra.mxu1 %v10683_v1 }
 0xc80   :  { %5539 = vmatmul.f32.gmra.mxu0 %v10683_v1  ;;  %5593 = vmatmul.f32.gmra.mxu1 %v10696_v63 }
 0xc88   :  { %5543 = vmatmul.f32.gmra.mxu0 %v10696_v63  ;;  %5597 = vmatmul.f32.gmra.mxu1 %v10709_v2 }
 0xc90   :  { %5547 = vmatmul.f32.gmra.mxu0 %v10709_v2  ;;  %5601 = vmatmul.f32.gmra.mxu1 %v5307_v28 }
 0xc98   :  { %5551 = vmatmul.f32.gmra.mxu0 %v5307_v28  ;;  %5605 = vmatmul.f32.gmra.mxu1 %v5315_v30 }
 0xca0   :  { %5555 = vmatmul.f32.gmra.mxu0 %v5315_v30  ;;  %5609 = vmatmul.f32.gmra.mxu1 %v5323_v62 }
 0xca5   :  { %v5355_v38 = vpop.f32.mrf.mxu1 }
 0xca8   :  { %5559 = vmatmul.f32.gmra.mxu0 %v5323_v62 }
 0xcad   :  { %v5273_v24 = vpop.f32.mrf.mxu0  ;;  %v5359_v33 = vpop.f32.mrf.mxu1 }
 0xcae   :  { %v5407_v28 = vpop.f32.mrf.mxu2  ;;  %v5356_v39 = vadd.f32 %v5355_v38, %v5273_v24 }
 0xcaf   :  { %v5466_v31 = vpop.f32.mrf.mxu3 }
 0xcb0   :  { %v5408_v8 = vadd.f32 %v5407_v28, %v5356_v39 }
 0xcb2   :  { %v5467_v15 = vadd.f32 %v5466_v31, %v5408_v8 }
 0xcb5   :  { %v5281_v54 = vpop.f32.mrf.mxu0  ;;  %v5363_v51 = vpop.f32.mrf.mxu1 }
 0xcb6   :  { %v5412_v4 = vpop.f32.mrf.mxu2  ;;  %v5360_v17 = vadd.f32 %v5359_v33, %v5281_v54 }
 0xcb7   :  { %v5472_v56 = vpop.f32.mrf.mxu3 }
 0xcb8   :  { %v5413_v59 = vadd.f32 %v5412_v4, %v5360_v17 }
 0xcba   :  { %v5473_v48 = vadd.f32 %v5472_v56, %v5413_v59 }
 0xcbd   :  { %v5289_v1 = vpop.f32.mrf.mxu0  ;;  %v5367_v32 = vpop.f32.mrf.mxu1 }
 0xcbe   :  { %v5417_v52 = vpop.f32.mrf.mxu2  ;;  %v5364_v36 = vadd.f32 %v5363_v51, %v5289_v1 }
 0xcbf   :  { %v5478_v14 = vpop.f32.mrf.mxu3 }
 0xcc0   :  { %v5418_v47 = vadd.f32 %v5417_v52, %v5364_v36 }
 0xcc2   :  { %v5479_v38 = vadd.f32 %v5478_v14, %v5418_v47 }
 0xcc5   :  { %v5297_v50 = vpop.f32.mrf.mxu0  ;;  %v10745_v3 = vpop.f32.mrf.mxu1 }
 0xcc6   :  { %v5422_v29 = vpop.f32.mrf.mxu2  ;;  %v5368_v56 = vadd.f32 %v5367_v32, %v5297_v50 }
 0xcc7   :  { %v5484_v54 = vpop.f32.mrf.mxu3 }
 0xccd   :  { %v10747_v63 = vpop.f32.mrf.mxu0  ;;  %v5375_v22 = vpop.f32.mrf.mxu1 }
 0xcce   :  { %v5427_v1 = vpop.f32.mrf.mxu2  ;;  %v5372_v32 = vadd.f32 %v10745_v3, %v10747_v63 }
 0xccf   :  { %v5490_v39 = vpop.f32.mrf.mxu3 }
 0xcd0   :  { %v5428_v36 = vadd.f32 %v5427_v1, %v5372_v32 }
 0xcd5   :  { %v5313_v2 = vpop.f32.mrf.mxu0  ;;  %v10749_v35 = vpop.f32.mrf.mxu1 }
 0xcdd   :  { %v10751_v26 = vpop.f32.mrf.mxu0  ;;  %v10753_v16 = vpop.f32.mrf.mxu1 }
 0xce5   :  { %v10755_v0 = vpop.f32.mrf.mxu0  ;;  %v5582_v34 = vpop.f32.mrf.mxu1 }
 0xced   :  { %v5532_v23 = vpop.f32.mrf.mxu0  ;;  %v5586_v49 = vpop.f32.mrf.mxu1 }
 0xcee   :  { %v5533_v30 = vadd.f32 %v5532_v23, %v5467_v15  ;;  %v5432_v15 = vpop.f32.mrf.mxu2  ;;  %v5423_v23 = vadd.f32 %v5422_v29, %v5368_v56 }
 0xcf0   :  { %v10757_v61 = vadd.f32 %v5582_v34, %v5533_v30  ;;  %v5376_v34 = vadd.f32 %v5375_v22, %v5313_v2  ;;  %v5496_v30 = vpop.f32.mrf.mxu3  ;;  %v5485_v2 = vadd.f32 %v5484_v54, %v5423_v23 }
 0xcf2   :  { %11989 = vst [vmem:[#allocation44_spill] sm:$0xff] %v10757_v61  ;;  %5615 = vperm.xlu0 %8105, %v10757_v61   ;;  %v5433_v17 = vadd.f32 %v5432_v15, %v5376_v34 }
 0xcf5   :  { %v5536_v42 = vpop.f32.mrf.mxu0  ;;  %v5590_v43 = vpop.f32.mrf.mxu1 }
 0xcf6   :  { %v5537_v62 = vadd.f32 %v5536_v42, %v5473_v48  ;;  %v5491_v42 = vadd.f32 %v5490_v39, %v5428_v36  ;;  %v5437_v47 = vpop.f32.mrf.mxu2 }
 0xcf8   :  { %v10760_v45 = vadd.f32 %v5586_v49, %v5537_v62  ;;  %v5497_v49 = vadd.f32 %v5496_v30, %v5433_v17  ;;  %v5380_v62 = vadd.f32 %v10749_v35, %v10751_v26  ;;  %v5502_v29 = vpop.f32.mrf.mxu3  ;;  %v5384_v35 = vadd.f32 %v10753_v16, %v10755_v0 }
 0xcfa   :  { %11990 = vst [vmem:[#allocation51_spill] sm:$0xff] %v10760_v45  ;;  %5620 = vperm.xlu2 %8111, %v10760_v45   ;;  %8108 = vset.pattern.permute.xlu0 %v11926_v11 }
 0xcfb   :  { %5654 = vperm.xlu0 %8108, %v10757_v61  }
 0xcfd   :  { %v5540_v24 = vpop.f32.mrf.mxu0  ;;  %v5594_v51 = vpop.f32.mrf.mxu1 }
 0xcfe   :  { %v5541_v33 = vadd.f32 %v5540_v24, %v5479_v38 }
 0xd00   :  { %v10765_v28 = vadd.f32 %v5590_v43, %v5541_v33  ;;  %v5438_v43 = vadd.f32 %v5437_v47, %v5380_v62  ;;  %v5442_v33 = vpop.f32.mrf.mxu2 }
 0xd02   :  { %5625 = vperm.xlu1 %8115, %v10765_v28   ;;  %8112 = vset.pattern.permute.xlu2 %v11926_v11  ;;  %v5503_v24 = vadd.f32 %v5502_v29, %v5438_v43 }
 0xd03   :  { %5658 = vperm.xlu2 %8112, %v10760_v45   ;;  %8109 = vset.pattern.permute.xlu0 %v11925_v53 }
 0xd04   :  { %5686 = vperm.xlu0 %8109, %v10757_v61  }
 0xd05   :  { %v5544_v31 = vpop.f32.mrf.mxu0  ;;  %v5598_v4 = vpop.f32.mrf.mxu1 }
 0xd06   :  { %v5545_v52 = vadd.f32 %v5544_v31, %v5485_v2  ;;  %v5508_v31 = vpop.f32.mrf.mxu3 }
 0xd08   :  { %v10788_v14 = vadd.f32 %v5594_v51, %v5545_v52  ;;  %v5443_v51 = vadd.f32 %v5442_v33, %v5384_v35 }
 0xd0a   :  { %8116 = vset.pattern.permute.xlu1 %v11926_v11  ;;  %v5509_v34 = vadd.f32 %v5508_v31, %v5443_v51 }
 0xd0b   :  { %5662 = vperm.xlu1 %8116, %v10765_v28   ;;  %8113 = vset.pattern.permute.xlu2 %v11925_v53 }
 0xd0c   :  { %5690 = vperm.xlu2 %8113, %v10760_v45   ;;  %8110 = vset.pattern.permute.xlu0 %v11927_v7 }
 0xd0d   :  { %v5548_v8 = vpop.f32.mrf.mxu0  ;;  %5718 = vperm.xlu0 %8110, %v10757_v61   ;;  %v5602_v59 = vpop.f32.mrf.mxu1 }
 0xd0e   :  { %v5549_v3 = vadd.f32 %v5548_v8, %v5491_v42 }
 0xd10   :  { %v10796_v63 = vadd.f32 %v5598_v4, %v5549_v3 }
 0xd13   :  { %8117 = vset.pattern.permute.xlu1 %v11925_v53 }
 0xd14   :  { %5694 = vperm.xlu1 %8117, %v10765_v28   ;;  %8114 = vset.pattern.permute.xlu2 %v11927_v7 }
 0xd15   :  { %v5552_v22 = vpop.f32.mrf.mxu0  ;;  %5722 = vperm.xlu2 %8114, %v10760_v45   ;;  %8127 = vset.pattern.permute.xlu0 %v11928_v41  ;;  %v5606_v54 = vpop.f32.mrf.mxu1 }
 0xd16   :  { %v5553_v50 = vadd.f32 %v5552_v22, %v5497_v49 }
 0xd18   :  { %v10785_v48 = vadd.f32 %v5602_v59, %v5553_v50 }
 0xd1a   :  { %5640 = vperm.xlu0 %8127, %v10785_v48  }
 0xd1c   :  { %8118 = vset.pattern.permute.xlu1 %v11927_v7 }
 0xd1d   :  { %5726 = vperm.xlu1 %8118, %v10765_v28   ;;  %8119 = vset.pattern.permute.xlu2 %v11928_v41  ;;  %v5556_v38 = vpop.f32.mrf.mxu0  ;;  %v5610_v0 = vpop.f32.mrf.mxu1 }
 0xd1e   :  { %5630 = vperm.xlu2 %8119, %v10788_v14   ;;  %v5557_v26 = vadd.f32 %v5556_v38, %v5503_v24 }
 0xd20   :  { %v10819_v1 = vadd.f32 %v5606_v54, %v5557_v26 }
 0xd22   :  { %8128 = vset.pattern.permute.xlu0 %v11926_v11 }
 0xd23   :  { %5674 = vperm.xlu0 %8128, %v10785_v48  }
 0xd25   :  { %8123 = vset.pattern.permute.xlu1 %v11928_v41  ;;  %v5560_v39 = vpop.f32.mrf.mxu0 }
 0xd26   :  { %5635 = vperm.xlu1 %8123, %v10796_v63   ;;  %8120 = vset.pattern.permute.xlu2 %v11926_v11  ;;  %v5561_v16 = vadd.f32 %v5560_v39, %v5509_v34 }
 0xd27   :  { %5666 = vperm.xlu2 %8120, %v10788_v14  }
 0xd28   :  { %v10825_v4 = vadd.f32 %v5610_v0, %v5561_v16 }
 0xd2a   :  { %11991 = vst [vmem:[#allocation38_spill] sm:$0xff] %v10825_v4 }
 0xd2b   :  { %8129 = vset.pattern.permute.xlu0 %v11925_v53 }
 0xd2c   :  { %5706 = vperm.xlu0 %8129, %v10785_v48  }
 0xd2e   :  { %8124 = vset.pattern.permute.xlu1 %v11926_v11 }
 0xd2f   :  { %5670 = vperm.xlu1 %8124, %v10796_v63   ;;  %8121 = vset.pattern.permute.xlu2 %v11925_v53 }
 0xd30   :  { %5698 = vperm.xlu2 %8121, %v10788_v14  }
 0xd34   :  { %8130 = vset.pattern.permute.xlu0 %v11927_v7 }
 0xd35   :  { %5738 = vperm.xlu0 %8130, %v10785_v48  }
 0xd37   :  { %8125 = vset.pattern.permute.xlu1 %v11925_v53 }
 0xd38   :  { %5702 = vperm.xlu1 %8125, %v10796_v63   ;;  %8122 = vset.pattern.permute.xlu2 %v11927_v7 }
 0xd39   :  { %5730 = vperm.xlu2 %8122, %v10788_v14  }
 0xd3d   :  { %8140 = vset.pattern.permute.xlu0 %v11926_v11 }
 0xd40   :  { %8126 = vset.pattern.permute.xlu1 %v11927_v7 }
 0xd41   :  { %5734 = vperm.xlu1 %8126, %v10796_v63   ;;  %8131 = vset.pattern.permute.xlu2 %v11928_v41 }
 0xd42   :  { %5645 = vperm.xlu2 %8131, %v10819_v1  }
 0xd49   :  { %8135 = vset.pattern.permute.xlu1 %v11928_v41 }
 0xd4a   :  { %8132 = vset.pattern.permute.xlu2 %v11926_v11  ;;  %5650 = vperm.xlu1 %8135, %v10825_v4  }
 0xd4b   :  { %5678 = vperm.xlu2 %8132, %v10819_v1  }
 0xd52   :  { %8136 = vset.pattern.permute.xlu1 %v11926_v11 }
 0xd53   :  { %8133 = vset.pattern.permute.xlu2 %v11925_v53  ;;  %5682 = vperm.xlu1 %8136, %v10825_v4  }
 0xd54   :  { %5710 = vperm.xlu2 %8133, %v10819_v1   ;;  %v5621_v8 = vpop.permute.xlu2 %5620 }
 0xd5b   :  { %8137 = vset.pattern.permute.xlu1 %v11925_v53 }
 0xd5c   :  { %8134 = vset.pattern.permute.xlu2 %v11927_v7  ;;  %5714 = vperm.xlu1 %8137, %v10825_v4  }
 0xd5d   :  { %5742 = vperm.xlu2 %8134, %v10819_v1   ;;  %v5659_v56 = vpop.permute.xlu2 %5658 }
 0xd5e   :  { %v5750_v15 = vsel %vm145_vm0, %v5621_v8, %v5659_v56 }
 0xd64   :  { %8138 = vset.pattern.permute.xlu1 %v11927_v7  ;;  %v5616_v36 = vpop.permute.xlu0 %5615 }
 0xd65   :  { %5746 = vperm.xlu1 %8138, %v10825_v4   ;;  %8143 = vset.pattern.permute.xlu2 %v11926_v11 }
 0xd66   :  { %v5691_v17 = vpop.permute.xlu2 %5690 }
 0xd67   :  { %v5758_v23 = vsel %vm154_vm2, %v5750_v15, %v5691_v17 }
 0xd6d   :  { %8139 = vset.pattern.permute.xlu1 %v11928_v41  ;;  %v5655_v47 = vpop.permute.xlu0 %5654 }
 0xd6f   :  { %v5723_v30 = vpop.permute.xlu2 %5722 }
 0xd70   :  { %v5766_v49 = vsel %vm163_vm13, %v5758_v23, %v5723_v30 }
 0xd74   :  { %v5626_v22 = vpop.permute.xlu1 %5625 }
 0xd76   :  { %v5687_v38 = vpop.permute.xlu0 %5686 }
 0xd78   :  { %v5631_v52 = vpop.permute.xlu2 %5630 }
 0xd7d   :  { %v5663_v2 = vpop.permute.xlu1 %5662 }
 0xd7e   :  { %v5751_v32 = vsel %vm145_vm0, %v5626_v22, %v5663_v2  ;;  %v5749_v2 = vsel %vm145_vm0, %v5616_v36, %v5655_v47 }
 0xd7f   :  { %v5719_v26 = vpop.permute.xlu0 %5718 }
 0xd81   :  { %v5667_v62 = vpop.permute.xlu2 %5666 }
 0xd86   :  { %v5695_v50 = vpop.permute.xlu1 %5694 }
 0xd87   :  { %v5759_v59 = vsel %vm154_vm2, %v5751_v32, %v5695_v50 }
 0xd8a   :  { %v5699_v29 = vpop.permute.xlu2 %5698 }
 0xd8c   :  { %v5641_v54 = vpop.permute.xlu0 %5640 }
 0xd8f   :  { %v5727_v42 = vpop.permute.xlu1 %5726 }
 0xd90   :  { %v5767_v3 = vsel %vm163_vm13, %v5759_v59, %v5727_v42  ;;  %v5757_v42 = vsel %vm154_vm2, %v5749_v2, %v5687_v38 }
 0xd93   :  { %v5731_v35 = vpop.permute.xlu2 %5730 }
 0xd95   :  { %v5675_v39 = vpop.permute.xlu0 %5674 }
 0xd96   :  { %v5754_v32 = vsel %vm145_vm0, %v5641_v54, %v5675_v39 }
 0xd98   :  { %v5636_v43 = vpop.permute.xlu1 %5635 }
 0xd9c   :  { %v5646_v51 = vpop.permute.xlu2 %5645 }
 0xd9e   :  { %v5707_v0 = vpop.permute.xlu0 %5706 }
 0xd9f   :  { %v5762_v19 = vsel %vm154_vm2, %v5754_v32, %v5707_v0 }
 0xda1   :  { %v5671_v24 = vpop.permute.xlu1 %5670 }
 0xda2   :  { %v5753_v15 = vsel %vm145_vm0, %v5636_v43, %v5671_v24  ;;  %v5765_v43 = vsel %vm163_vm13, %v5757_v42, %v5719_v26  ;;  %v5752_v24 = vsel %vm145_vm0, %v5631_v52, %v5667_v62  ;;  %v11996_v62 = vld [vmem:[#allocation85_spill] sm:$0xff] }
 0xda3   :  { %v5760_v47 = vsel %vm154_vm2, %v5752_v24, %v5699_v29  ;;  %v5773_v39 = vsel %vm172_vm15, %v5765_v43, -1e+30  ;;  %vm11997_vm14 = vcmp.gt.f32.partialorder %v11996_v62, 0.5 }
 0xda4   :  { %v5774_v29 = vsel %vm11997_vm14, %v5766_v49, -1e+30  ;;  %v5781_v2 = vsel %vm2059_vm7, %v5773_v39, -inf }
 0xda5   :  { %v5679_v34 = vpop.permute.xlu2 %5678 }
 0xda6   :  { %v5755_v50 = vsel %vm145_vm0, %v5646_v51, %v5679_v34 }
 0xda7   :  { %v5739_v23 = vpop.permute.xlu0 %5738 }
 0xdaa   :  { %v5703_v33 = vpop.permute.xlu1 %5702 }
 0xdab   :  { %v5761_v30 = vsel %vm154_vm2, %v5753_v15, %v5703_v33  ;;  %v5770_v33 = vsel %vm163_vm13, %v5762_v19, %v5739_v23 }
 0xdac   :  { %v5778_v0 = vsel %vm177_vm10, %v5770_v33, -1e+30 }
 0xdad   :  { %v5787_v32 = vsel %vm2059_vm7, %v5778_v0, -inf }
 0xdae   :  { %v5711_v8 = vpop.permute.xlu2 %5710 }
 0xdaf   :  { %v5763_v37 = vsel %vm154_vm2, %v5755_v50, %v5711_v8  ;;  %v11998_v8 = vld [vmem:[#allocation82_spill] sm:$0xff] }
 0xdb3   :  { %v5735_v31 = vpop.permute.xlu1 %5734 }
 0xdb4   :  { %v5769_v59 = vsel %vm163_vm13, %v5761_v30, %v5735_v31  ;;  %v5768_v31 = vsel %vm163_vm13, %v5760_v47, %v5731_v35  ;;  %v12000_v35 = vld [vmem:[#allocation83_spill] sm:$0xff] }
 0xdb5   :  { %v5777_v51 = vsel %vm176_vm8, %v5769_v59, -1e+30  ;;  %vm11999_vm8 = vcmp.gt.f32.partialorder %v11998_v8, 0.5  ;;  %vm12001_vm1 = vcmp.gt.f32.partialorder %v12000_v35, 0.5  ;;  %v12002_v59 = vld [vmem:[#allocation88_spill] sm:$0xff] }
 0xdb6   :  { %v5785_v19 = vsel %vm2059_vm7, %v5777_v51, -inf  ;;  %v5775_v15 = vsel %vm11999_vm8, %v5767_v3, -1e+30  ;;  %v5776_v23 = vsel %vm12001_vm1, %v5768_v31, -1e+30  ;;  %vm12003_vm15 = vcmp.gt.f32.partialorder %v12002_v59, 0.5 }
 0xdb7   :  { %v5743_v22 = vpop.permute.xlu2 %5742  ;;  %v5782_v3 = vsel %vm2059_vm7, %v5774_v29, -inf  ;;  %v5783_v42 = vsel %vm2059_vm7, %v5775_v15, -inf  ;;  %v5784_v43 = vsel %vm2059_vm7, %v5776_v23, -inf  ;;  %v12007_v15 = vld [vmem:[#allocation13_spill] sm:$0xff]  ;;  %v12008_v35 = vld [vmem:[#allocation24_spill] sm:$0xff] }
 0xdb8   :  { %v5771_v36 = vsel %vm163_vm13, %v5763_v37, %v5743_v22  ;;  %v5788_v24 = vmax.f32 %v5782_v3, %v5787_v32  ;;  %v12009_v23 = vld [vmem:[#allocation21_spill] sm:$0xff]  ;;  %v12019_v3 = vld [vmem:[#allocation26_spill] sm:$0xff] }
 0xdb9   :  { %v5779_v52 = vsel %vm178_vm5, %v5771_v36, -1e+30  ;;  %vm12005_vm5 = vcmask 1041408   ;;  %v12013_v32 = vld [vmem:[#allocation25_spill] sm:$0xff] }
 0xdba   :  { %v5789_v50 = vsel %vm2059_vm7, %v5779_v52, -inf  ;;  %v12017_v59 = vld [vmem:[#allocation29_spill] sm:$0xff] }
 0xdbb   :  { %v5790_v33 = vmax.f32 %v5783_v42, %v5789_v50  ;;  %v12014_v50 = vld [vmem:[#allocation35_spill] sm:$0xff]  ;;  %v12020_v42 = vld [vmem:[#allocation36_spill] sm:$0xff] }
 0xdbc   :  { %v5651_v16 = vpop.permute.xlu1 %5650 }
 0xdc5   :  { %v5683_v56 = vpop.permute.xlu1 %5682 }
 0xdc6   :  { %v5756_v37 = vsel %vm145_vm0, %v5651_v16, %v5683_v56  ;;  %v5786_v56 = vmax.f32 %v5781_v2, %v5785_v19  ;;  %v12012_v2 = vld [vmem:[#allocation28_spill] sm:$0xff] }
 0xdc8   :  { %v5793_v47 = vmax.f32 %v5786_v56, %v5788_v24  ;;  %v12016_v56 = vld [vmem:[#allocation32_spill] sm:$0xff]  ;;  %v12023_v24 = vld [vmem:[#allocation30_spill] sm:$0xff] }
 0xdce   :  { %v5715_v17 = vpop.permute.xlu1 %5714 }
 0xdcf   :  { %v5764_v30 = vsel %vm154_vm2, %v5756_v37, %v5715_v17 }
 0xdd7   :  { %v5747_v22 = vpop.permute.xlu1 %5746 }
 0xdd8   :  { %v5772_v16 = vsel %vm163_vm13, %v5764_v30, %v5747_v22  ;;  %vm12004_vm13 = vcmask 1040384   ;;  %v12010_v30 = vld [vmem:[#allocation31_spill] sm:$0xff]  ;;  %v12011_v22 = vld [vmem:[#allocation18_spill] sm:$0xff] }
 0xdd9   :  { %v5780_v49 = vsel %vm12003_vm15, %v5772_v16, -1e+30  ;;  %v12015_v16 = vld [vmem:[#allocation22_spill] sm:$0xff] }
 0xdda   :  { %v5791_v17 = vsel %vm2059_vm7, %v5780_v49, -inf  ;;  %vm12006_vm7 = vcmask 1042432   ;;  %v12018_v49 = vld [vmem:[#allocation39_spill] sm:$0xff] }
 0xddb   :  { %v5792_v36 = vmax.f32 %v5784_v43, %v5791_v17  ;;  %v12021_v43 = vld [vmem:[#allocation33_spill] sm:$0xff]  ;;  %v12022_v17 = vld [vmem:[#allocation43_spill] sm:$0xff] }
 0xddd   :  { %v5794_v54 = vmax.f32 %v5790_v33, %v5792_v36  ;;  %v12024_v33 = vld [vmem:[#allocation40_spill] sm:$0xff]  ;;  %v12025_v36 = vld [vmem:[#allocation37_spill] sm:$0xff] }
 0xddf   :  { %v5795_v51 = vmax.f32 %v5793_v47, %v5794_v54  ;;  %v12026_v47 = vld [vmem:[#allocation34_spill] sm:$0xff] }
 0xde1   :  { %v5796_v31 = vrot.slane %v5795_v51, 4 }
 0xde3   :  { %v5797_v38 = vmax.f32 %v5795_v51, %v5796_v31 }
 0xde5   :  { %v5798_v39 = vrot.slane %v5797_v38, 2 }
 0xde7   :  { %v5799_v34 = vmax.f32 %v5797_v38, %v5798_v39 }
 0xde9   :  { %v5800_v0 = vrot.slane %v5799_v34, 1 }
 0xdeb   :  { %v5801_v26 = vmax.f32 %v5799_v34, %v5800_v0 }
 0xded   :  { %5809 = vrot.lane.b32.xlu1 %v5801_v26, %s8297_s0  ;;  %5806 = vrot.lane.b32.xlu2 %v5801_v26, %s8298_s29 }
 0xdee   :  { %5803 = vrot.lane.b32.xlu0 %v5801_v26, %s8299_s10 }
 0xdf5   :  { %7151 = vrot.lane.b32.xlu1 %v10729_v18, %s8298_s29  ;;  %7145 = vrot.lane.b32.xlu2 %v10698_v60, %s8298_s29 }
 0xdfd   :  { %7149 = vrot.lane.b32.xlu1 %v10722_v40, %s8298_s29  ;;  %7143 = vrot.lane.b32.xlu2 %v10685_v57, %s8298_s29 }
 0xe05   :  { %7147 = vrot.lane.b32.xlu1 %v10711_v21, %s8298_s29  ;;  %7141 = vrot.lane.b32.xlu2 %v10672_v55, %s8298_s29 }
 0xe47   :  { %v5807_v19 = vpop.permute.xlu2 %5806 }
 0xe5f   :  { %v5810_v18 = vpop.permute.xlu1 %5809 }
 0xe60   :  { %v5804_v52 = vpop.permute.xlu0 %5803 }
 0xe61   :  { %v5812_v37 = vsel %vm12004_vm13, %v5801_v26, %v5804_v52 }
 0xe62   :  { %v5813_v62 = vsel %vm12005_vm5, %v5812_v37, %v5807_v19 }
 0xe63   :  { %v5814_v60 = vsel %vm12006_vm7, %v5813_v62, %v5810_v18 }
 0xe64   :  { %v5816_v40 = vsel %vm145_vm0, %v5814_v60, 0 }
 0xe65   :  { %v5833_v29 = vand.u32 4294901760, %v5816_v40 }
 0xe67   :  { %5834 = vmatpush.xpose.msra.mxu2 %v5833_v29  ;;  %6029 = vmatpush.xpose.msrb.mxu1 %v5833_v29  ;;  %v5916_v57 = vsub.f32 %v5816_v40, %v5833_v29 }
 0xe69   :  { %5971 = vmatpush.xpose.msrb.mxu0 %v5916_v57  ;;  %v5917_v21 = vand.u32 4294901760, %v5916_v57 }
 0xe6a   :  { %5840 = vmatmul.f32.vlgmr.msra.gmra.mxu2 %v11857_v20  ;;  %6033 = vmatmul.f32.vlgmr.msrb.gmra.mxu1 %v11858_v9 }
 0xe6b   :  { %6097 = vmatpush.xpose.msrb.mxu2 %v5917_v21  ;;  %v5918_v55 = vsub.f32 %v5916_v57, %v5917_v21 }
 0xe6c   :  { %5974 = vmatmul.f32.vlgmr.msrb.gmra.mxu0 %v11859_v13 }
 0xe6d   :  { %v5919_v8 = vand.u32 4294901760, %v5918_v55 }
 0xe6f   :  { %5920 = vmatpush.xpose.msra.mxu3 %v5919_v8 }
 0xe72   :  { %5848 = vmatmul.f32.gmra.mxu2 %v11860_v46  ;;  %7884 = vmatmul.msk.f32.vlgmr.msra.gmra.mxu3 %vm145_vm0, %v8364_v5 }
 0xe73   :  { %6147 = vmatpush.xpose.msrb.mxu3 %v5833_v29  ;;  %6039 = vmatmul.f32.gmra.mxu1 %v11899_v10 }
 0xe74   :  { %5979 = vmatmul.f32.gmra.mxu0 %v11898_v58 }
 0xe7a   :  { %5856 = vmatmul.f32.gmra.mxu2 %v11900_v6  ;;  %7885 = vmatmul.msk.f32.gmra.mxu3 %vm145_vm0, %v11901_v44 }
 0xe7b   :  { %6045 = vmatmul.f32.gmra.mxu1 %v11933_v27 }
 0xe7c   :  { %5984 = vmatmul.f32.gmra.mxu0 %v11902_v12 }
 0xe82   :  { %5864 = vmatmul.f32.gmra.mxu2 %v11934_v25  ;;  %7886 = vmatmul.msk.f32.gmra.mxu3 %vm145_vm0, %v12007_v15 }
 0xe83   :  { %6051 = vmatmul.f32.gmra.mxu1 %v12008_v35 }
 0xe84   :  { %5989 = vmatmul.f32.gmra.mxu0 %v12009_v23 }
 0xe8a   :  { %5872 = vmatmul.f32.gmra.mxu2 %v12010_v30  ;;  %7887 = vmatmul.msk.f32.gmra.mxu3 %vm145_vm0, %v12011_v22 }
 0xe8b   :  { %6057 = vmatmul.f32.gmra.mxu1 %v12012_v2 }
 0xe8c   :  { %5994 = vmatmul.f32.gmra.mxu0 %v12013_v32 }
 0xe92   :  { %5880 = vmatmul.f32.gmra.mxu2 %v12014_v50  ;;  %7888 = vmatmul.msk.f32.gmra.mxu3 %vm145_vm0, %v12015_v16 }
 0xe93   :  { %6063 = vmatmul.f32.gmra.mxu1 %v12016_v56 }
 0xe94   :  { %5999 = vmatmul.f32.gmra.mxu0 %v12017_v59 }
 0xe9a   :  { %5888 = vmatmul.f32.gmra.mxu2 %v12018_v49  ;;  %7889 = vmatmul.msk.f32.gmra.mxu3 %vm145_vm0, %v12019_v3 }
 0xe9b   :  { %6069 = vmatmul.f32.gmra.mxu1 %v12020_v42 }
 0xe9c   :  { %6004 = vmatmul.f32.gmra.mxu0 %v12021_v43 }
 0xea2   :  { %5896 = vmatmul.f32.gmra.mxu2 %v12022_v17  ;;  %7890 = vmatmul.msk.f32.gmra.mxu3 %vm145_vm0, %v12023_v24 }
 0xea3   :  { %6075 = vmatmul.f32.gmra.mxu1 %v12024_v33 }
 0xea4   :  { %6009 = vmatmul.f32.gmra.mxu0 %v12025_v36 }
 0xeaa   :  { %7891 = vmatmul.msk.f32.gmra.mxu3 %vm145_vm0, %v12026_v47  ;;  %7892 = vmatmul.msk.f32.vlgmr.msrb.gmra.mxu2 %vm145_vm0, %v8364_v5 }
 0xeb2   :  { %7893 = vmatmul.msk.f32.gmra.mxu2 %vm145_vm0, %v11901_v44  ;;  %7900 = vmatmul.msk.f32.vlgmr.msrb.gmra.mxu3 %vm145_vm0, %v8364_v5 }
 0xeba   :  { %7894 = vmatmul.msk.f32.gmra.mxu2 %vm145_vm0, %v12007_v15  ;;  %7901 = vmatmul.msk.f32.gmra.mxu3 %vm145_vm0, %v11901_v44 }
 0xec2   :  { %7895 = vmatmul.msk.f32.gmra.mxu2 %vm145_vm0, %v12011_v22  ;;  %7902 = vmatmul.msk.f32.gmra.mxu3 %vm145_vm0, %v12007_v15 }
 0xeca   :  { %7896 = vmatmul.msk.f32.gmra.mxu2 %vm145_vm0, %v12015_v16  ;;  %7903 = vmatmul.msk.f32.gmra.mxu3 %vm145_vm0, %v12011_v22 }
 0xed2   :  { %7897 = vmatmul.msk.f32.gmra.mxu2 %vm145_vm0, %v12019_v3  ;;  %7904 = vmatmul.msk.f32.gmra.mxu3 %vm145_vm0, %v12015_v16 }
 0xeda   :  { %7898 = vmatmul.msk.f32.gmra.mxu2 %vm145_vm0, %v12023_v24  ;;  %7905 = vmatmul.msk.f32.gmra.mxu3 %vm145_vm0, %v12019_v3 }
 0xee2   :  { %7899 = vmatmul.msk.f32.gmra.mxu2 %vm145_vm0, %v12026_v47  ;;  %7906 = vmatmul.msk.f32.gmra.mxu3 %vm145_vm0, %v12023_v24 }
 0xee7   :  { %v10982_v40 = vpop.f32.mrf.mxu1 }
 0xee9   :  { %v5975_v18 = vpop.f32.mrf.mxu0 }
 0xeea   :  { %7907 = vmatmul.msk.f32.gmra.mxu3 %vm145_vm0, %v12026_v47 }
 0xeed   :  { %v5841_v54 = vpop.f32.mrf.mxu2 }
 0xef0   :  { %v6040_v55 = vpop.f32.mrf.mxu1 }
 0xef1   :  { %v5980_v21 = vpop.f32.mrf.mxu0 }
 0xef5   :  { %v5849_v51 = vpop.f32.mrf.mxu2  ;;  %v5923_v31 = vpop.f32.mrf.mxu3 }
 0xef6   :  { %v5924_v9 = vadd.f32 %v5923_v31, %v5841_v54 }
 0xef8   :  { %v6046_v7 = vpop.f32.mrf.mxu1 }
 0xef9   :  { %v5985_v41 = vpop.f32.mrf.mxu0 }
 0xefd   :  { %v5857_v38 = vpop.f32.mrf.mxu2  ;;  %v5927_v39 = vpop.f32.mrf.mxu3 }
 0xefe   :  { %v5928_v6 = vadd.f32 %v5927_v39, %v5849_v51 }
 0xf00   :  { %v6052_v17 = vpop.f32.mrf.mxu1  ;;  %v5981_v45 = vadd.f32 %v5980_v21, %v5928_v6 }
 0xf01   :  { %v5990_v33 = vpop.f32.mrf.mxu0 }
 0xf05   :  { %v5865_v34 = vpop.f32.mrf.mxu2  ;;  %v5931_v0 = vpop.f32.mrf.mxu3 }
 0xf06   :  { %v5932_v27 = vadd.f32 %v5931_v0, %v5857_v38 }
 0xf08   :  { %v6058_v49 = vpop.f32.mrf.mxu1  ;;  %v5986_v13 = vadd.f32 %v5985_v41, %v5932_v27 }
 0xf09   :  { %v5995_v42 = vpop.f32.mrf.mxu0 }
 0xf0d   :  { %v5873_v26 = vpop.f32.mrf.mxu2  ;;  %v5935_v52 = vpop.f32.mrf.mxu3 }
 0xf0e   :  { %v5936_v23 = vadd.f32 %v5935_v52, %v5865_v34 }
 0xf10   :  { %v6064_v50 = vpop.f32.mrf.mxu1  ;;  %v5991_v58 = vadd.f32 %v5990_v33, %v5936_v23 }
 0xf11   :  { %v6000_v16 = vpop.f32.mrf.mxu0 }
 0xf15   :  { %v5881_v19 = vpop.f32.mrf.mxu2  ;;  %v5939_v37 = vpop.f32.mrf.mxu3 }
 0xf16   :  { %v5940_v30 = vadd.f32 %v5939_v37, %v5873_v26  ;;  %v6053_v26 = vadd.f32 %v6052_v17, %v5991_v58 }
 0xf18   :  { %v5996_v12 = vadd.f32 %v5995_v42, %v5940_v30  ;;  %v6070_v44 = vpop.f32.mrf.mxu1  ;;  %v6047_v30 = vadd.f32 %v6046_v7, %v5986_v13 }
 0xf19   :  { %v6005_v35 = vpop.f32.mrf.mxu0 }
 0xf1a   :  { %v6059_v4 = vadd.f32 %v6058_v49, %v5996_v12 }
 0xf1d   :  { %v5889_v62 = vpop.f32.mrf.mxu2  ;;  %v5943_v60 = vpop.f32.mrf.mxu3 }
 0xf1e   :  { %v5944_v22 = vadd.f32 %v5943_v60, %v5881_v19 }
 0xf20   :  { %v6001_v25 = vadd.f32 %v6000_v16, %v5944_v22  ;;  %v5976_v16 = vadd.f32 %v5975_v18, %v5924_v9  ;;  %v6076_v41 = vpop.f32.mrf.mxu1 }
 0xf21   :  { %v6010_v34 = vpop.f32.mrf.mxu0 }
 0xf22   :  { %v6065_v5 = vadd.f32 %v6064_v50, %v6001_v25  ;;  %v6035_v58 = vadd.f32 %v10982_v40, %v5976_v16 }
 0xf25   :  { %v5897_v29 = vpop.f32.mrf.mxu2  ;;  %v5947_v57 = vpop.f32.mrf.mxu3 }
 0xf26   :  { %v5948_v15 = vadd.f32 %v5947_v57, %v5889_v62 }
 0xf28   :  { %v6006_v46 = vadd.f32 %v6005_v35, %v5948_v15  ;;  %v6041_v35 = vadd.f32 %v6040_v55, %v5981_v45 }
 0xf2a   :  { %v6071_v37 = vadd.f32 %v6070_v44, %v6006_v46 }
 0xf2d   :  { %v5951_v8 = vpop.f32.mrf.mxu3  ;;  %v10984_v11 = vpop.f32.mrf.mxu2 }
 0xf2e   :  { %v5952_v19 = vadd.f32 %v5951_v8, %v5897_v29  ;;  %v6101_v13 = vadd.f32 %v10984_v11, %v6035_v58 }
 0xf30   :  { %v6011_v23 = vadd.f32 %v6010_v34, %v5952_v19 }
 0xf35   :  { %v6104_v53 = vpop.f32.mrf.mxu2  ;;  %v10986_v47 = vpop.f32.mrf.mxu3 }
 0xf36   :  { %v6105_v44 = vadd.f32 %v6104_v53, %v6041_v35 }
 0xf3d   :  { %v6108_v36 = vpop.f32.mrf.mxu2  ;;  %v6154_v24 = vpop.f32.mrf.mxu3 }
 0xf3e   :  { %v6109_v25 = vadd.f32 %v6108_v36, %v6047_v30  ;;  %v6155_v7 = vadd.f32 %v6154_v24, %v6105_v44 }
 0xf45   :  { %v6112_v43 = vpop.f32.mrf.mxu2  ;;  %v6158_v3 = vpop.f32.mrf.mxu3 }
 0xf46   :  { %v6113_v42 = vadd.f32 %v6112_v43, %v6053_v26  ;;  %v6159_v46 = vadd.f32 %v6158_v3, %v6109_v25 }
 0xf4d   :  { %v6116_v56 = vpop.f32.mrf.mxu2  ;;  %v6162_v59 = vpop.f32.mrf.mxu3 }
 0xf4e   :  { %v6117_v52 = vadd.f32 %v6116_v56, %v6059_v4  ;;  %v6163_v27 = vadd.f32 %v6162_v59, %v6113_v42  ;;  %v12028_v59 = vld [vmem:[#allocation44_spill] sm:$0xff] }
 0xf55   :  { %v6120_v2 = vpop.f32.mrf.mxu2  ;;  %v6166_v32 = vpop.f32.mrf.mxu3 }
 0xf56   :  { %v6121_v61 = vadd.f32 %v6120_v2, %v6065_v5  ;;  %v6167_v51 = vadd.f32 %v6166_v32, %v6117_v52  ;;  %v6183_v2 = vsub.f32 %v10765_v28, %v6159_v46 }
 0xf58   :  { %v6193_v3 = vmul.f32 1.442695, %v6183_v2 }
 0xf5d   :  { %v6170_v10 = vpop.f32.mrf.mxu3  ;;  %v6124_v20 = vpop.f32.mrf.mxu2 }
 0xf5e   :  { %v6171_v22 = vadd.f32 %v6170_v10, %v6121_v61  ;;  %v6125_v38 = vadd.f32 %v6124_v20, %v6071_v37  ;;  %v6185_v10 = vsub.f32 %v10796_v63, %v6167_v51  ;;  %v6077_v20 = vadd.f32 %v6076_v41, %v6011_v23  ;;  %v12027_v63 = vld [vmem:[#allocation51_spill] sm:$0xff] }
 0xf5f   :  { %v6184_v61 = vsub.f32 %v10788_v14, %v6163_v27  ;;  %v6182_v56 = vsub.f32 %v12027_v63, %v6155_v7  ;;  %v12029_v14 = vld [vmem:[#allocation38_spill] sm:$0xff]  ;;  %v12034_v63 = vld [vmem:[#allocation80_spill] sm:$0xff] }
 0xf60   :  { %v6186_v5 = vsub.f32 %v10785_v48, %v6171_v22  ;;  %v6151_v48 = vadd.f32 %v10986_v47, %v6101_v13  ;;  %v6197_v32 = vmul.f32 1.442695, %v6185_v10 }
 0xf61   :  { %v6191_v24 = vmul.f32 1.442695, %v6182_v56  ;;  %v12035_v56 = vld [vmem:[#allocation77_spill] sm:$0xff] }
 0xf62   :  { %v6199_v45 = vmul.f32 1.442695, %v6186_v5  ;;  %v6181_v49 = vsub.f32 %v12028_v59, %v6151_v48 }
 0xf64   :  { %v6189_v33 = vmul.f32 1.442695, %v6181_v49 }
 0xf65   :  { %v6174_v15 = vpop.f32.mrf.mxu3  ;;  %v6128_v12 = vpop.f32.mrf.mxu2 }
 0xf66   :  { %v6175_v6 = vadd.f32 %v6174_v15, %v6125_v38  ;;  %v6129_v50 = vadd.f32 %v6128_v12, %v6077_v20 }
 0xf68   :  { %v6187_v9 = vsub.f32 %v10819_v1, %v6175_v6  ;;  %v6195_v1 = vmul.f32 1.442695, %v6184_v61  ;;  %v12030_v61 = vld [vmem:[#allocation75_spill] sm:$0xff] }
 0xf6a   :  { %v6201_v4 = vmul.f32 1.442695, %v6187_v9 }
 0xf6c   :  { %8201 = vpow2.f32 %v6201_v4 }
 0xf6d   :  { %v6178_v53 = vpop.f32.mrf.mxu3  ;;  %8203 = vpow2.f32 %v6199_v45 }
 0xf6e   :  { %v6179_v11 = vadd.f32 %v6178_v53, %v6129_v50  ;;  %8205 = vpow2.f32 %v6197_v32  ;;  %v12031_v32 = vld [vmem:[#allocation81_spill] sm:$0xff]  ;;  %v12032_v50 = vld [vmem:[#allocation79_spill] sm:$0xff]  ;;  %v12033_v53 = vld [vmem:[#allocation78_spill] sm:$0xff] }
 0xf6f   :  { %8207 = vpow2.f32 %v6195_v1  ;;  %v12036_v1 = vld [vmem:[#allocation84_spill] sm:$0xff] }
 0xf70   :  { %v6188_v43 = vsub.f32 %v12029_v14, %v6179_v11  ;;  %8209 = vpow2.f32 %v6193_v3  ;;  %v12037_v11 = vld [vmem:[#allocation76_spill] sm:$0xff] }
 0xf72   :  { %v10999_v17 = vpop.eup %8201  ;;  %v6203_v28 = vmul.f32 1.442695, %v6188_v43 }
 0xf73   :  { %v11001_v36 = vpop.eup %8203  ;;  %v11004_v47 = vand.u32 4294901760, %v10999_v17 }
 0xf74   :  { %8211 = vpow2.f32 %v6203_v28  ;;  %v11006_v54 = vpop.eup %8205  ;;  %v11009_v31 = vand.u32 4294901760, %v11001_v36 }
 0xf75   :  { %8213 = vpow2.f32 %v6191_v24  ;;  %v11011_v39 = vpop.eup %8207  ;;  %v11016_v18 = vand.u32 4294901760, %v11006_v54  ;;  %v11020_v62 = vsub.f32 %v10999_v17, %v11004_v47 }
 0xf76   :  { %8215 = vpow2.f32 %v6189_v33  ;;  %v11013_v0 = vpop.eup %8209  ;;  %v11028_v29 = vand.u32 4294901760, %v11011_v39  ;;  %v11032_v57 = vsub.f32 %v11001_v36, %v11009_v31 }
 0xf77   :  { %v11044_v19 = vand.u32 4294901760, %v11013_v0  ;;  %v6262_v26 = vand.u32 4294901760, %v11020_v62  ;;  %v11049_v37 = vsub.f32 %v11006_v54, %v11016_v18 }
 0xf78   :  { %v6268_v22 = vand.u32 4294901760, %v11032_v57  ;;  %v11059_v16 = vsub.f32 %v11011_v39, %v11028_v29 }
 0xf79   :  { %v6263_v51 = vsub.f32 %v11020_v62, %v6262_v26  ;;  %v6274_v38 = vand.u32 4294901760, %v11049_v37  ;;  %v11072_v23 = vsub.f32 %v11013_v0, %v11044_v19 }
 0xf7a   :  { %v11022_v60 = vpop.eup %8211  ;;  %v6269_v15 = vsub.f32 %v11032_v57, %v6268_v22  ;;  %v6280_v35 = vand.u32 4294901760, %v11059_v16 }
 0xf7b   :  { %v11025_v40 = vand.u32 4294901760, %v11022_v60  ;;  %v11034_v21 = vpop.eup %8213  ;;  %v6264_v27 = vand.u32 4294901760, %v6263_v51  ;;  %v6275_v5 = vsub.f32 %v11049_v37, %v6274_v38  ;;  %v6286_v6 = vand.u32 4294901760, %v11072_v23 }
 0xf7c   :  { %v11036_v55 = vpop.eup %8215  ;;  %v11054_v52 = vand.u32 4294901760, %v11034_v21  ;;  %v6270_v46 = vand.u32 4294901760, %v6269_v15  ;;  %v6281_v44 = vsub.f32 %v11059_v16, %v6280_v35 }
 0xf7d   :  { %6214 = vmatpush.msra.mxu0 %v11025_v40  ;;  %v11041_v8 = vsub.f32 %v11022_v60, %v11025_v40  ;;  %v11062_v30 = vand.u32 4294901760, %v11036_v55  ;;  %v6276_v9 = vand.u32 4294901760, %v6275_v5  ;;  %v6287_v13 = vsub.f32 %v11072_v23, %v6286_v6 }
 0xf7e   :  { %v6291_v41 = vsub.f32 %v11034_v21, %v11054_v52  ;;  %v6282_v12 = vand.u32 4294901760, %v6281_v44  ;;  %v12043_v44 = vld [vmem:[#allocation12_spill] sm:$0xff] }
 0xf7f   :  { %6216 = vmatpush.msra.mxu0 %v11004_v47  ;;  %v6256_v34 = vand.u32 4294901760, %v11041_v8  ;;  %v6297_v58 = vsub.f32 %v11036_v55, %v11062_v30  ;;  %v6288_v45 = vand.u32 4294901760, %v6287_v13  ;;  %v12046_v13 = vld [vmem:[#allocation10_spill] sm:$0xff] }
 0xf80   :  { %v6292_v10 = vand.u32 4294901760, %v6291_v41 }
 0xf81   :  { %6218 = vmatpush.msra.mxu0 %v11009_v31  ;;  %v6257_v42 = vsub.f32 %v11041_v8, %v6256_v34  ;;  %v6298_v20 = vand.u32 4294901760, %v6297_v58 }
 0xf82   :  { %v6293_v7 = vsub.f32 %v6291_v41, %v6292_v10 }
 0xf83   :  { %6220 = vmatpush.msra.mxu0 %v11016_v18  ;;  %v6258_v25 = vand.u32 4294901760, %v6257_v42  ;;  %v6299_v4 = vsub.f32 %v6297_v58, %v6298_v20 }
 0xf84   :  { %v6294_v48 = vand.u32 4294901760, %v6293_v7  ;;  %v12049_v7 = vld [vmem:[#allocation27_spill] sm:$0xff] }
 0xf85   :  { %6222 = vmatpush.msra.mxu0 %v11028_v29  ;;  %6259 = vmatpush.msra.mxu1 %v6258_v25  ;;  %v6300_v2 = vand.u32 4294901760, %v6299_v4  ;;  %v12038_v25 = vld [vmem:[#allocation16_spill] sm:$0xff]  ;;  %v12051_v4 = vld [vmem:[#allocation21_spill] sm:$0xff] }
 0xf87   :  { %6224 = vmatpush.msra.mxu0 %v11044_v19  ;;  %6265 = vmatpush.msra.mxu1 %v6264_v27  ;;  %v12040_v27 = vld [vmem:[#allocation14_spill] sm:$0xff] }
 0xf89   :  { %6226 = vmatpush.msra.mxu0 %v11054_v52  ;;  %6271 = vmatpush.msra.mxu1 %v6270_v46  ;;  %v12042_v46 = vld [vmem:[#allocation9_spill] sm:$0xff] }
 0xf8b   :  { %6228 = vmatpush.msra.mxu0 %v11062_v30  ;;  %6277 = vmatpush.msra.mxu1 %v6276_v9  ;;  %v12045_v9 = vld [vmem:[#allocation23_spill] sm:$0xff] }
 0xf8c   :  { %6234 = vmatmul.f32.vlgmr.msra.gmra.mxu0 %v12030_v61 }
 0xf8d   :  { %6321 = vmatpush.msrb.mxu0 %v11041_v8  ;;  %6283 = vmatpush.msra.mxu1 %v6282_v12  ;;  %v12048_v12 = vld [vmem:[#allocation20_spill] sm:$0xff] }
 0xf8f   :  { %6324 = vmatpush.msrb.mxu0 %v11020_v62  ;;  %6289 = vmatpush.msra.mxu1 %v6288_v45  ;;  %v12050_v45 = vld [vmem:[#allocation13_spill] sm:$0xff] }
 0xf91   :  { %6327 = vmatpush.msrb.mxu0 %v11032_v57  ;;  %6295 = vmatpush.msra.mxu1 %v6294_v48  ;;  %v12052_v48 = vld [vmem:[#allocation24_spill] sm:$0xff] }
 0xf93   :  { %6330 = vmatpush.msrb.mxu0 %v11049_v37  ;;  %6301 = vmatpush.msra.mxu1 %v6300_v2  ;;  %v12053_v2 = vld [vmem:[#allocation31_spill] sm:$0xff] }
 0xf94   :  { %6242 = vmatmul.f32.gmra.mxu0 %v12031_v32  ;;  %6303 = vmatmul.f32.vlgmr.msra.gmra.mxu1 %v12032_v50 }
 0xf95   :  { %6333 = vmatpush.msrb.mxu0 %v11059_v16  ;;  %6363 = vmatpush.msrb.mxu1 %v11025_v40 }
 0xf97   :  { %6336 = vmatpush.msrb.mxu0 %v11072_v23  ;;  %6365 = vmatpush.msrb.mxu1 %v11004_v47 }
 0xf99   :  { %6339 = vmatpush.msrb.mxu0 %v6291_v41  ;;  %6367 = vmatpush.msrb.mxu1 %v11009_v31  ;;  %v12039_v41 = vld [vmem:[#allocation11_spill] sm:$0xff] }
 0xf9b   :  { %6342 = vmatpush.msrb.mxu0 %v6297_v58  ;;  %6369 = vmatpush.msrb.mxu1 %v11016_v18  ;;  %v12041_v58 = vld [vmem:[#allocation19_spill] sm:$0xff] }
 0xf9c   :  { %6307 = vmatmul.f32.gmra.mxu1 %v12033_v53  ;;  %6345 = vmatmul.f32.vlgmr.msrb.gmra.mxu0 %v12034_v63 }
 0xf9d   :  { %6402 = vmatpush.msra.mxu0 %v6256_v34  ;;  %6371 = vmatpush.msrb.mxu1 %v11028_v29 }
 0xf9f   :  { %6406 = vmatpush.msra.mxu0 %v6262_v26  ;;  %6373 = vmatpush.msrb.mxu1 %v11044_v19 }
 0xfa1   :  { %6410 = vmatpush.msra.mxu0 %v6268_v22  ;;  %6375 = vmatpush.msrb.mxu1 %v11054_v52 }
 0xfa3   :  { %6414 = vmatpush.msra.mxu0 %v6274_v38  ;;  %6377 = vmatpush.msrb.mxu1 %v11062_v30 }
 0xfa4   :  { %6350 = vmatmul.f32.gmra.mxu0 %v12035_v56  ;;  %6381 = vmatmul.f32.vlgmr.msrb.gmra.mxu1 %v12036_v1 }
 0xfa5   :  { %6418 = vmatpush.msra.mxu0 %v6280_v35  ;;  %6449 = vmatpush.msra.mxu1 %v11025_v40 }
 0xfa7   :  { %6422 = vmatpush.msra.mxu0 %v6286_v6  ;;  %6451 = vmatpush.msra.mxu1 %v11004_v47 }
 0xfa9   :  { %6426 = vmatpush.msra.mxu0 %v6292_v10  ;;  %6453 = vmatpush.msra.mxu1 %v11009_v31  ;;  %v12044_v10 = vld [vmem:[#allocation15_spill] sm:$0xff] }
 0xfab   :  { %6430 = vmatpush.msra.mxu0 %v6298_v20  ;;  %6455 = vmatpush.msra.mxu1 %v11016_v18  ;;  %v12047_v20 = vld [vmem:[#allocation17_spill] sm:$0xff] }
 0xfac   :  { %6387 = vmatmul.f32.gmra.mxu1 %v12037_v11  ;;  %6432 = vmatmul.f32.vlgmr.msra.gmra.mxu0 %v12032_v50 }
 0xfad   :  { %6457 = vmatpush.msra.mxu1 %v11028_v29 }
 0xfaf   :  { %6459 = vmatpush.msra.mxu1 %v11044_v19 }
 0xfb1   :  { %6461 = vmatpush.msra.mxu1 %v11054_v52 }
 0xfb3   :  { %6463 = vmatpush.msra.mxu1 %v11062_v30 }
 0xfb4   :  { %6436 = vmatmul.f32.gmra.mxu0 %v12033_v53  ;;  %6465 = vmatmul.f32.vlgmr.msra.gmra.mxu1 %v12032_v50 }
 0xfbc   :  { %6469 = vmatmul.f32.gmra.mxu1 %v12033_v53 }
0x1009   :  { %v6235_v59 = vpop.f32.mrf.mxu0 }
0x1011   :  { %v6243_v49 = vpop.f32.mrf.mxu0  ;;  %v6304_v3 = vpop.f32.mrf.mxu1 }
0x1012   :  { %v6305_v47 = vadd.f32 %v6304_v3, %v6235_v59  ;;  %v12054_v59 = vld [vmem:[#allocation18_spill] sm:$0xff]  ;;  %v12056_v3 = vld [vmem:[#allocation28_spill] sm:$0xff] }
0x1019   :  { %v6308_v14 = vpop.f32.mrf.mxu1  ;;  %v6346_v43 = vpop.f32.mrf.mxu0 }
0x101a   :  { %v6347_v18 = vadd.f32 %v6346_v43, %v6305_v47  ;;  %v6309_v57 = vadd.f32 %v6308_v14, %v6243_v49  ;;  %v12055_v49 = vld [vmem:[#allocation25_spill] sm:$0xff]  ;;  %v12057_v14 = vld [vmem:[#allocation35_spill] sm:$0xff]  ;;  %v12058_v43 = vld [vmem:[#allocation22_spill] sm:$0xff] }
0x101b   :  { %v12062_v47 = vld [vmem:[#allocation26_spill] sm:$0xff] }
0x1021   :  { %v6351_v24 = vpop.f32.mrf.mxu0  ;;  %v6382_v28 = vpop.f32.mrf.mxu1 }
0x1022   :  { %v6383_v62 = vadd.f32 %v6382_v28, %v6347_v18  ;;  %v6352_v19 = vadd.f32 %v6351_v24, %v6309_v57  ;;  %v12059_v24 = vld [vmem:[#allocation29_spill] sm:$0xff]  ;;  %v12060_v28 = vld [vmem:[#allocation32_spill] sm:$0xff] }
0x1023   :  { %v12064_v18 = vld [vmem:[#allocation36_spill] sm:$0xff] }
0x1024   :  { %v12068_v57 = vld [vmem:[#allocation40_spill] sm:$0xff] }
0x1029   :  { %v6388_v33 = vpop.f32.mrf.mxu1  ;;  %v6433_v31 = vpop.f32.mrf.mxu0 }
0x102a   :  { %v6434_v40 = vadd.f32 %v6433_v31, %v6383_v62  ;;  %v6389_v37 = vadd.f32 %v6388_v33, %v6352_v19  ;;  %v12061_v33 = vld [vmem:[#allocation39_spill] sm:$0xff]  ;;  %v12063_v31 = vld [vmem:[#allocation33_spill] sm:$0xff] }
0x102b   :  { %v12065_v62 = vld [vmem:[#allocation43_spill] sm:$0xff]  ;;  %v7834_v19 = vld [vmem:[%s11560_s6 + $0x38] sm:$0xff] }
0x1031   :  { %v6466_v29 = vpop.f32.mrf.mxu1  ;;  %v6437_v26 = vpop.f32.mrf.mxu0 }
0x1032   :  { %v6467_v8 = vadd.f32 %v6466_v29, %v6434_v40  ;;  %v6438_v52 = vadd.f32 %v6437_v26, %v6389_v37  ;;  %v12066_v40 = vld [vmem:[#allocation30_spill] sm:$0xff]  ;;  %v12067_v29 = vld [vmem:[#allocation37_spill] sm:$0xff]  ;;  %v11178_v26 = vand.u32 4294901760, %v7834_v19 }
0x1033   :  { %v7833_v37 = vld [vmem:[%s11560_s6 + $0x30] sm:$0xff] }
0x1034   :  { %v6489_v34 = vand.u32 4294901760, %v6467_v8 }
0x1036   :  { %v6577_v16 = vsub.f32 %v6467_v8, %v6489_v34  ;;  %v12069_v8 = vld [vmem:[#allocation34_spill] sm:$0xff] }
0x1038   :  { %v6578_v38 = vand.u32 4294901760, %v6577_v16 }
0x1039   :  { %v6470_v22 = vpop.f32.mrf.mxu1 }
0x103a   :  { %v6471_v30 = vadd.f32 %v6470_v22, %v6438_v52  ;;  %v6579_v35 = vsub.f32 %v6577_v16, %v6578_v38  ;;  %v11190_v52 = vand.u32 4294901760, %v7833_v37  ;;  %v7832_v22 = vld [vmem:[%s11560_s6 + $0x28] sm:$0xff] }
0x103c   :  { %v6487_v42 = vand.u32 4294901760, %v6471_v30  ;;  %v6580_v6 = vand.u32 4294901760, %v6579_v35 }
0x103e   :  { %v6571_v51 = vsub.f32 %v6471_v30, %v6487_v42  ;;  %6488 = vmatpush.msrb.mxu0 %v6487_v42  ;;  %6691 = vmatpush.msra.mxu3 %v6487_v42  ;;  %v11200_v30 = vand.u32 4294901760, %v7832_v22 }
0x1040   :  { %v6572_v23 = vand.u32 4294901760, %v6571_v51  ;;  %6490 = vmatpush.msrb.mxu0 %v6489_v34  ;;  %6631 = vmatpush.msra.mxu2 %v6571_v51 }
0x1041   :  { %6693 = vmatpush.msra.mxu3 %v6489_v34  ;;  %6496 = vmatmul.f32.vlgmr.msrb.gmra.mxu0 %v12038_v25  ;;  %v12070_v25 = vld [vmem:[#allocation73_spill] sm:$0xff] }
0x1042   :  { %v6573_v15 = vsub.f32 %v6571_v51, %v6572_v23  ;;  %6634 = vmatpush.msra.mxu2 %v6577_v16  ;;  %6760 = vmatpush.msra.mxu0 %v6572_v23  ;;  %v11198_v16 = vsub.f32 %v7833_v37, %v11190_v52  ;;  %v11208_v51 = vsub.f32 %v7832_v22, %v11200_v30 }
0x1043   :  { %6637 = vmatmul.f32.vlgmr.msra.gmra.mxu2 %v12039_v41  ;;  %6697 = vmatmul.f32.vlgmr.msra.gmra.mxu3 %v12040_v27 }
0x1044   :  { %6764 = vmatpush.msra.mxu0 %v6578_v38  ;;  %v6574_v5 = vand.u32 4294901760, %v6573_v15  ;;  %v7443_v15 = vsel %vm154_vm2, %v12070_v25, 0 }
0x1045   :  { %v11237_v35 = vand.u32 4294901760, %v7443_v15 }
0x1046   :  { %6575 = vmatpush.msrb.mxu1 %v6574_v5  ;;  %v12071_v5 = vld [vmem:[#allocation74_spill] sm:$0xff] }
0x1047   :  { %v11240_v27 = vsub.f32 %v7443_v15, %v11237_v35 }
0x1048   :  { %6581 = vmatpush.msrb.mxu1 %v6580_v6  ;;  %v7446_v6 = vsel %vm154_vm2, %v12071_v5, 0 }
0x1049   :  { %6504 = vmatmul.f32.gmra.mxu0 %v12041_v58  ;;  %7908 = vmatmul.msk.f32.vlgmr.msrb.gmra.mxu1 %vm145_vm0, %v12042_v46  ;;  %v11247_v58 = vand.u32 4294901760, %v7446_v6 }
0x104a   :  { %6813 = vmatpush.msra.mxu1 %v6487_v42  ;;  %v7831_v42 = vld [vmem:[%s11560_s6 + $0x20] sm:$0xff] }
0x104b   :  { %6642 = vmatmul.f32.gmra.mxu2 %v12043_v44  ;;  %6703 = vmatmul.f32.gmra.mxu3 %v12044_v10  ;;  %v11210_v38 = vand.u32 4294901760, %v7831_v42  ;;  %12072 = vst [vmem:[#allocation45_spill] sm:$0xff] %v11247_v58  ;;  %v11250_v10 = vsub.f32 %v7446_v6, %v11247_v58 }
0x104c   :  { %6815 = vmatpush.msra.mxu1 %v6489_v34  ;;  %v11188_v34 = vsub.f32 %v7834_v19, %v11178_v26 }
0x104d   :  { %v11215_v23 = vsub.f32 %v7831_v42, %v11210_v38 }
0x104e   :  { %7578 = vmatpush.msrb.mxu1 %v11178_v26  ;;  %7544 = vmatpush.msrb.mxu0 %v11188_v34 }
0x1050   :  { %7580 = vmatpush.msrb.mxu1 %v11190_v52  ;;  %7547 = vmatpush.msrb.mxu0 %v11198_v16 }
0x1051   :  { %6512 = vmatmul.f32.gmra.mxu0 %v12045_v9  ;;  %7909 = vmatmul.msk.f32.gmra.mxu1 %vm145_vm0, %v12046_v13  ;;  %v11765_v9 = vand.u32 4294901760, %v11240_v27 }
0x1052   :  { %7582 = vmatpush.msrb.mxu1 %v11200_v30  ;;  %7550 = vmatpush.msrb.mxu0 %v11208_v51 }
0x1053   :  { %6647 = vmatmul.f32.gmra.mxu2 %v12047_v20  ;;  %6709 = vmatmul.f32.gmra.mxu3 %v12048_v12  ;;  %v11764_v12 = vand.u32 4294901760, %v11250_v10 }
0x1054   :  { %7584 = vmatpush.msrb.mxu1 %v11210_v38  ;;  %7553 = vmatpush.msrb.mxu0 %v11215_v23 }
0x1059   :  { %6520 = vmatmul.f32.gmra.mxu0 %v12049_v7  ;;  %7910 = vmatmul.msk.f32.gmra.mxu1 %vm145_vm0, %v12050_v45 }
0x105b   :  { %6652 = vmatmul.f32.gmra.mxu2 %v12051_v4  ;;  %6715 = vmatmul.f32.gmra.mxu3 %v12052_v48 }
0x1061   :  { %6528 = vmatmul.f32.gmra.mxu0 %v12053_v2  ;;  %7911 = vmatmul.msk.f32.gmra.mxu1 %vm145_vm0, %v12054_v59 }
0x1063   :  { %6657 = vmatmul.f32.gmra.mxu2 %v12055_v49  ;;  %6721 = vmatmul.f32.gmra.mxu3 %v12056_v3 }
0x1069   :  { %6536 = vmatmul.f32.gmra.mxu0 %v12057_v14  ;;  %7912 = vmatmul.msk.f32.gmra.mxu1 %vm145_vm0, %v12058_v43 }
0x106b   :  { %6662 = vmatmul.f32.gmra.mxu2 %v12059_v24  ;;  %6727 = vmatmul.f32.gmra.mxu3 %v12060_v28 }
0x1071   :  { %6544 = vmatmul.f32.gmra.mxu0 %v12061_v33  ;;  %7913 = vmatmul.msk.f32.gmra.mxu1 %vm145_vm0, %v12062_v47 }
0x1073   :  { %6667 = vmatmul.f32.gmra.mxu2 %v12063_v31  ;;  %6733 = vmatmul.f32.gmra.mxu3 %v12064_v18 }
0x1079   :  { %6552 = vmatmul.f32.gmra.mxu0 %v12065_v62  ;;  %7914 = vmatmul.msk.f32.gmra.mxu1 %vm145_vm0, %v12066_v40 }
0x107b   :  { %6672 = vmatmul.f32.gmra.mxu2 %v12067_v29  ;;  %6739 = vmatmul.f32.gmra.mxu3 %v12068_v57 }
0x1081   :  { %7915 = vmatmul.msk.f32.gmra.mxu1 %vm145_vm0, %v12069_v8  ;;  %7916 = vmatmul.msk.f32.vlgmr.msra.gmra.mxu0 %vm145_vm0, %v12042_v46 }
0x1089   :  { %7917 = vmatmul.msk.f32.gmra.mxu0 %vm145_vm0, %v12046_v13  ;;  %7924 = vmatmul.msk.f32.vlgmr.msra.gmra.mxu1 %vm145_vm0, %v12042_v46 }
0x1091   :  { %7918 = vmatmul.msk.f32.gmra.mxu0 %vm145_vm0, %v12050_v45  ;;  %7925 = vmatmul.msk.f32.gmra.mxu1 %vm145_vm0, %v12046_v13 }
0x1099   :  { %7919 = vmatmul.msk.f32.gmra.mxu0 %vm145_vm0, %v12054_v59  ;;  %7926 = vmatmul.msk.f32.gmra.mxu1 %vm145_vm0, %v12050_v45 }
0x10a1   :  { %7920 = vmatmul.msk.f32.gmra.mxu0 %vm145_vm0, %v12058_v43  ;;  %7927 = vmatmul.msk.f32.gmra.mxu1 %vm145_vm0, %v12054_v59 }
0x10a9   :  { %7921 = vmatmul.msk.f32.gmra.mxu0 %vm145_vm0, %v12062_v47  ;;  %7928 = vmatmul.msk.f32.gmra.mxu1 %vm145_vm0, %v12058_v43 }
0x10b1   :  { %7922 = vmatmul.msk.f32.gmra.mxu0 %vm145_vm0, %v12066_v40  ;;  %7929 = vmatmul.msk.f32.gmra.mxu1 %vm145_vm0, %v12062_v47 }
0x10b9   :  { %7923 = vmatmul.msk.f32.gmra.mxu0 %vm145_vm0, %v12069_v8  ;;  %7930 = vmatmul.msk.f32.gmra.mxu1 %vm145_vm0, %v12066_v40 }
0x10be   :  { %v6497_v41 = vpop.f32.mrf.mxu0 }
0x10bf   :  { %v6498_v62 = vadd.f32 1e-06, %v6497_v41 }
0x10c1   :  { %7931 = vmatmul.msk.f32.gmra.mxu1 %vm145_vm0, %v12069_v8  ;;  %7556 = vmatmul.f32.vlgmr.msrb.gmra.mxu0 %v11240_v27 }
0x10c6   :  { %v6505_v46 = vpop.f32.mrf.mxu0  ;;  %v6584_v44 = vpop.f32.mrf.mxu1 }
0x10c7   :  { %v6638_v43 = vpop.f32.mrf.mxu2  ;;  %v6698_v47 = vpop.f32.mrf.mxu3  ;;  %v6585_v29 = vadd.f32 %v6584_v44, %v6498_v62  ;;  %v6506_v37 = vadd.f32 1e-06, %v6505_v46 }
0x10c9   :  { %7561 = vmatmul.f32.gmra.mxu0 %v11250_v10  ;;  %7588 = vmatmul.f32.vlgmr.msrb.gmra.mxu1 %v11765_v9  ;;  %v6639_v22 = vadd.f32 %v6638_v43, %v6585_v29 }
0x10cb   :  { %v6699_v15 = vadd.f32 %v6698_v47, %v6639_v22 }
0x10ce   :  { %v6513_v13 = vpop.f32.mrf.mxu0  ;;  %v6588_v20 = vpop.f32.mrf.mxu1 }
0x10cf   :  { %v6643_v40 = vpop.f32.mrf.mxu2  ;;  %v6704_v57 = vpop.f32.mrf.mxu3  ;;  %v6589_v25 = vadd.f32 %v6588_v20, %v6506_v37 }
0x10d1   :  { %7594 = vmatmul.f32.gmra.mxu1 %v11764_v12 }
0x10d6   :  { %v6521_v7 = vpop.f32.mrf.mxu0  ;;  %v6592_v45 = vpop.f32.mrf.mxu1 }
0x10d7   :  { %v6648_v42 = vpop.f32.mrf.mxu2  ;;  %v6710_v5 = vpop.f32.mrf.mxu3  ;;  %v6522_v46 = vadd.f32 1e-06, %v6521_v7 }
0x10de   :  { %v6529_v4 = vpop.f32.mrf.mxu0  ;;  %v6596_v48 = vpop.f32.mrf.mxu1 }
0x10df   :  { %v6530_v2 = vadd.f32 1e-06, %v6529_v4  ;;  %v6653_v44 = vpop.f32.mrf.mxu2  ;;  %v6716_v20 = vpop.f32.mrf.mxu3  ;;  %v6597_v37 = vadd.f32 %v6596_v48, %v6522_v46 }
0x10e1   :  { %v6654_v7 = vadd.f32 %v6653_v44, %v6597_v37 }
0x10e6   :  { %v6537_v59 = vpop.f32.mrf.mxu0  ;;  %v6600_v49 = vpop.f32.mrf.mxu1 }
0x10e7   :  { %v11259_v3 = vadd.f32 %v6600_v49, %v6530_v2  ;;  %v6538_v14 = vadd.f32 1e-06, %v6537_v59  ;;  %v6514_v59 = vadd.f32 1e-06, %v6513_v13  ;;  %v6644_v49 = vadd.f32 %v6643_v40, %v6589_v25 }
0x10e9   :  { %v6593_v41 = vadd.f32 %v6592_v45, %v6514_v59  ;;  %v6658_v45 = vpop.f32.mrf.mxu2 }
0x10ea   :  { %v6659_v37 = vadd.f32 %v6658_v45, %v11259_v3 }
0x10eb   :  { %v6649_v43 = vadd.f32 %v6648_v42, %v6593_v41 }
0x10ed   :  { %v6711_v22 = vadd.f32 %v6710_v5, %v6649_v43  ;;  %v6722_v5 = vpop.f32.mrf.mxu3 }
0x10ee   :  { %v11261_v24 = vpop.f32.mrf.mxu0  ;;  %v6604_v28 = vpop.f32.mrf.mxu1 }
0x10ef   :  { %v11263_v33 = vadd.f32 %v6604_v28, %v6538_v14  ;;  %v6705_v28 = vadd.f32 %v6704_v57, %v6644_v49 }
0x10f6   :  { %v11265_v31 = vpop.f32.mrf.mxu0  ;;  %v11267_v18 = vpop.f32.mrf.mxu1 }
0x10fe   :  { %v11269_v8 = vpop.f32.mrf.mxu1  ;;  %v6767_v19 = vpop.f32.mrf.mxu0 }
0x10ff   :  { %v6768_v6 = vadd.f32 %v6767_v19, %v6699_v15 }
0x1106   :  { %v6771_v4 = vpop.f32.mrf.mxu0  ;;  %v6818_v2 = vpop.f32.mrf.mxu1 }
0x1107   :  { %v6819_v14 = vadd.f32 %v6818_v2, %v6768_v6  ;;  %v6772_v62 = vadd.f32 %v6771_v4, %v6705_v28 }
0x1109   :  { %8217 = vrcp.f32 %v6819_v14  ;;  %v6860_v13 = vand.u32 2147483648, %v6819_v14  ;;  %v6858_v25 = vand.u32 2147483647, %v6819_v14  ;;  %vm6854_vm6 = vweird.f32 %v6819_v14 }
0x110b   :  { %vm6859_vm3 = vcmp.eq.f32.partialorder %v6858_v25, 8.507059e+37 }
0x110e   :  { %v6775_v12 = vpop.f32.mrf.mxu0  ;;  %v6822_v9 = vpop.f32.mrf.mxu1 }
0x110f   :  { %v8218_v58 = vpop.eup %8217  ;;  %v6823_v29 = vadd.f32 %v6822_v9, %v6772_v62  ;;  %v6776_v57 = vadd.f32 %v6775_v12, %v6711_v22  ;;  %v6861_v9 = vor.u32 1.1754944e-38, %v6860_v13  ;;  %v6717_v12 = vadd.f32 %v6716_v20, %v6654_v7  ;;  %v6663_v20 = vpop.f32.mrf.mxu2 }
0x1110   :  { %v6850_v47 = vmul.f32 %v8218_v58, %v6819_v14  ;;  %vm6855_vm10 = vweird.f32 %v8218_v58 }
0x1111   :  { %8219 = vrcp.f32 %v6823_v29  ;;  %vm6856_vm9 = vmor %vm6854_vm6, %vm6855_vm10  ;;  %v6875_v14 = vand.u32 2147483648, %v6823_v29  ;;  %v6873_v44 = vand.u32 2147483647, %v6823_v29  ;;  %vm6869_vm14 = vweird.f32 %v6823_v29 }
0x1112   :  { %v6851_v19 = vsub.f32 1.0, %v6850_v47 }
0x1113   :  { %vm6874_vm1 = vcmp.eq.f32.partialorder %v6873_v44, 8.507059e+37 }
0x1114   :  { %v6852_v40 = vmul.f32 %v8218_v58, %v6851_v19 }
0x1116   :  { %v6779_v15 = vpop.f32.mrf.mxu0  ;;  %v6826_v6 = vpop.f32.mrf.mxu1  ;;  %v6853_v4 = vadd.f32 %v8218_v58, %v6852_v40 }
0x1117   :  { %v8220_v2 = vpop.eup %8219  ;;  %v6827_v42 = vadd.f32 %v6826_v6, %v6776_v57  ;;  %v6780_v46 = vadd.f32 %v6779_v15, %v6717_v12  ;;  %v6723_v15 = vadd.f32 %v6722_v5, %v6659_v37 }
0x1118   :  { %v6865_v59 = vmul.f32 %v8220_v2, %v6823_v29  ;;  %v6857_v49 = vsel %vm6856_vm9, %v8218_v58, %v6853_v4  ;;  %vm6870_vm4 = vweird.f32 %v8220_v2  ;;  %v6728_v4 = vpop.f32.mrf.mxu3 }
0x1119   :  { %8221 = vrcp.f32 %v6827_v42  ;;  %v6862_v48 = vsel %vm6859_vm3, %v6861_v9, %v6857_v49  ;;  %vm6871_vm8 = vmor %vm6869_vm14, %vm6870_vm4  ;;  %v6890_v6 = vand.u32 2147483648, %v6827_v42  ;;  %v6888_v3 = vand.u32 2147483647, %v6827_v42 }
0x111a   :  { %v6866_v41 = vsub.f32 1.0, %v6865_v59  ;;  %v11272_v28 = vmul.f32 %v11036_v55, %v6862_v48  ;;  %v6876_v55 = vor.u32 1.1754944e-38, %v6875_v14  ;;  %vm6884_vm13 = vweird.f32 %v6827_v42 }
0x111b   :  { %v6546_v48 = vadd.f32 1e-06, %v11261_v24  ;;  %vm6889_vm7 = vcmp.eq.f32.partialorder %v6888_v3, 8.507059e+37 }
0x111c   :  { %v6867_v62 = vmul.f32 %v8220_v2, %v6866_v41  ;;  %7010 = vperm.xlu0 %8140, %v11272_v28   ;;  %6971 = vperm.xlu1 %8139, %v11272_v28   ;;  %v6891_v41 = vor.u32 1.1754944e-38, %v6890_v6 }
0x111e   :  { %v6783_v58 = vpop.f32.mrf.mxu0  ;;  %v6830_v43 = vpop.f32.mrf.mxu1  ;;  %v6868_v47 = vadd.f32 %v8220_v2, %v6867_v62 }
0x111f   :  { %v8222_v19 = vpop.eup %8221  ;;  %v11277_v22 = vadd.f32 %v6830_v43, %v6780_v46  ;;  %v6784_v45 = vadd.f32 %v6783_v58, %v6723_v15  ;;  %v6609_v58 = vadd.f32 %v11267_v18, %v6546_v48  ;;  %v12075_v48 = vmov 0  }
0x1120   :  { %v6880_v13 = vmul.f32 %v8222_v19, %v6827_v42  ;;  %v6872_v40 = vsel %vm6871_vm8, %v8220_v2, %v6868_v47  ;;  %vm6885_vm15 = vweird.f32 %v8222_v19  ;;  %v6668_v42 = vpop.f32.mrf.mxu2  ;;  %v12073_v47 = vmov 2  }
0x1121   :  { %8223 = vrcp.f32 %v11277_v22  ;;  %v6877_v25 = vsel %vm6874_vm1, %v6876_v55, %v6872_v40  ;;  %vm6886_vm5 = vmor %vm6884_vm13, %vm6885_vm15  ;;  %v6734_v55 = vpop.f32.mrf.mxu3  ;;  %vm6899_vm6 = vweird.f32 %v11277_v22  ;;  %v6669_v40 = vadd.f32 %v6668_v42, %v6609_v58 }
0x1122   :  { %v6881_v57 = vsub.f32 1.0, %v6880_v13  ;;  %v11281_v29 = vmul.f32 %v11034_v21, %v6877_v25  ;;  %v6664_v21 = vadd.f32 %v6663_v20, %v11263_v33  ;;  %v6905_v33 = vand.u32 2147483648, %v11277_v22 }
0x1123   :  { %v6554_v13 = vadd.f32 1e-06, %v11265_v31 }
0x1124   :  { %v6882_v7 = vmul.f32 %v8222_v19, %v6881_v57  ;;  %7014 = vperm.xlu0 %8140, %v11281_v29   ;;  %6976 = vperm.xlu1 %8139, %v11281_v29   ;;  %v6729_v24 = vadd.f32 %v6728_v4, %v6664_v21  ;;  %v6906_v57 = vor.u32 1.1754944e-38, %v6905_v33 }
0x1125   :  { %v6613_v3 = vadd.f32 %v11269_v8, %v6554_v13 }
0x1126   :  { %v6787_v2 = vpop.f32.mrf.mxu0  ;;  %v6834_v9 = vpop.f32.mrf.mxu1  ;;  %v6883_v59 = vadd.f32 %v8222_v19, %v6882_v7 }
0x1127   :  { %v8224_v49 = vpop.eup %8223  ;;  %v11287_v5 = vadd.f32 %v6834_v9, %v6784_v45  ;;  %v6788_v37 = vadd.f32 %v6787_v2, %v6729_v24  ;;  %v6735_v45 = vadd.f32 %v6734_v55, %v6669_v40  ;;  %v12074_v9 = vmov 3  }
0x1128   :  { %v6895_v12 = vmul.f32 %v8224_v49, %v11277_v22  ;;  %v6887_v14 = vsel %vm6886_vm5, %v8222_v19, %v6883_v59  ;;  %vm6900_vm10 = vweird.f32 %v8224_v49  ;;  %v6903_v19 = vand.u32 2147483647, %v11277_v22  ;;  %v6673_v2 = vpop.f32.mrf.mxu2 }
0x1129   :  { %8225 = vrcp.f32 %v11287_v5  ;;  %v6892_v62 = vsel %vm6889_vm7, %v6891_v41, %v6887_v14  ;;  %vm6901_vm9 = vmor %vm6899_vm6, %vm6900_vm10  ;;  %v6740_v8 = vpop.f32.mrf.mxu3  ;;  %v6920_v58 = vand.u32 2147483648, %v11287_v5  ;;  %vm6914_vm14 = vweird.f32 %v11287_v5 }
0x112a   :  { %v6896_v44 = vsub.f32 1.0, %v6895_v12  ;;  %v6893_v46 = vmul.f32 %v11013_v0, %v6892_v62  ;;  %vm6904_vm3 = vcmp.eq.f32.partialorder %v6903_v19, 8.507059e+37  ;;  %v6674_v12 = vadd.f32 %v6673_v2, %v6613_v3 }
0x112b   :  { %v6918_v24 = vand.u32 2147483647, %v11287_v5  ;;  %v12076_v19 = vmov 1  }
0x112c   :  { %v6897_v43 = vmul.f32 %v8224_v49, %v6896_v44  ;;  %7018 = vperm.xlu2 %8143, %v6893_v46   ;;  %8144 = vset.pattern.permute.xlu0 %v12073_v47  ;;  %v6741_v44 = vadd.f32 %v6740_v8, %v6674_v12 }
0x112d   :  { %8141 = vset.pattern.permute.xlu1 %v12073_v47  ;;  %7050 = vperm.xlu0 %8144, %v6893_v46   ;;  %vm6919_vm1 = vcmp.eq.f32.partialorder %v6918_v24, 8.507059e+37 }
0x112e   :  { %7046 = vperm.xlu1 %8141, %v11281_v29   ;;  %v6838_v0 = vpop.f32.mrf.mxu1  ;;  %v6898_v18 = vadd.f32 %v8224_v49, %v6897_v43  ;;  %v6791_v6 = vpop.f32.mrf.mxu0 }
0x112f   :  { %v8226_v20 = vpop.eup %8225  ;;  %v11300_v25 = vadd.f32 %v6838_v0, %v6788_v37  ;;  %v6792_v59 = vadd.f32 %v6791_v6, %v6735_v45 }
0x1130   :  { %v6910_v15 = vmul.f32 %v8226_v20, %v11287_v5  ;;  %v6902_v4 = vsel %vm6901_vm9, %v8224_v49, %v6898_v18  ;;  %vm6915_vm4 = vweird.f32 %v8226_v20  ;;  %v6921_v5 = vor.u32 1.1754944e-38, %v6920_v58 }
0x1131   :  { %8227 = vrcp.f32 %v11300_v25  ;;  %v6907_v22 = vsel %vm6904_vm3, %v6906_v57, %v6902_v4  ;;  %vm11317_vm8 = vmor %vm6914_vm14, %vm6915_vm4  ;;  %vm6929_vm5 = vweird.f32 %v11300_v25 }
0x1132   :  { %v6911_v7 = vsub.f32 1.0, %v6910_v15  ;;  %v6908_v31 = vmul.f32 %v11011_v39, %v6907_v22  ;;  %v6935_v22 = vand.u32 2147483648, %v11300_v25 }
0x1134   :  { %8145 = vset.pattern.permute.xlu2 %v12074_v9  ;;  %v6912_v21 = vmul.f32 %v8226_v20, %v6911_v7  ;;  %v6936_v8 = vor.u32 1.1754944e-38, %v6935_v22 }
0x1135   :  { %7082 = vperm.xlu2 %8145, %v6893_v46   ;;  %8146 = vset.pattern.permute.xlu0 %v12075_v48 }
0x1136   :  { %8142 = vset.pattern.permute.xlu1 %v12075_v48  ;;  %v6842_v49 = vpop.f32.mrf.mxu1  ;;  %6986 = vperm.xlu0 %8146, %v6908_v31   ;;  %v6795_v39 = vpop.f32.mrf.mxu0  ;;  %v6913_v42 = vadd.f32 %v8226_v20, %v6912_v21 }
0x1137   :  { %v11309_v41 = vpop.eup %8227  ;;  %v6843_v14 = vadd.f32 %v6842_v49, %v6792_v59  ;;  %6981 = vperm.xlu1 %8142, %v6893_v46   ;;  %v6796_v43 = vadd.f32 %v6795_v39, %v6741_v44 }
0x1138   :  { %v6925_v62 = vmul.f32 %v11309_v41, %v11300_v25  ;;  %v6917_v55 = vsel %vm11317_vm8, %v8226_v20, %v6913_v42  ;;  %vm6930_vm15 = vweird.f32 %v11309_v41 }
0x1139   :  { %8229 = vrcp.f32 %v6843_v14  ;;  %v6922_v57 = vsel %vm6919_vm1, %v6921_v5, %v6917_v55  ;;  %v6950_v7 = vand.u32 2147483648, %v6843_v14  ;;  %vm6944_vm7 = vweird.f32 %v6843_v14  ;;  %vm11332_vm10 = vmor %vm6929_vm5, %vm6930_vm15 }
0x113a   :  { %v6926_v33 = vsub.f32 1.0, %v6925_v62  ;;  %v6923_v4 = vmul.f32 %v11006_v54, %v6922_v57  ;;  %v6933_v54 = vand.u32 2147483647, %v11300_v25 }
0x113b   :  { %v6951_v62 = vor.u32 1.1754944e-38, %v6950_v7 }
0x113c   :  { %v6927_v40 = vmul.f32 %v11309_v41, %v6926_v33  ;;  %vm6934_vm9 = vcmp.eq.f32.partialorder %v6933_v54, 8.507059e+37 }
0x113d   :  { %8147 = vset.pattern.permute.xlu2 %v12076_v19 }
0x113e   :  { %v6846_v37 = vpop.f32.mrf.mxu1  ;;  %7022 = vperm.xlu2 %8147, %v6908_v31   ;;  %8148 = vset.pattern.permute.xlu0 %v12073_v47  ;;  %v6928_v20 = vadd.f32 %v11309_v41, %v6927_v40 }
0x113f   :  { %v8230_v0 = vpop.eup %8229  ;;  %v6847_v18 = vadd.f32 %v6846_v37, %v6796_v43  ;;  %8149 = vset.pattern.permute.xlu1 %v12074_v9  ;;  %7054 = vperm.xlu0 %8148, %v6908_v31   ;;  %v11359_v37 = vpop.permute.xlu1 %7151 }
0x1140   :  { %v6940_v13 = vmul.f32 %v8230_v0, %v6843_v14  ;;  %7086 = vperm.xlu1 %8149, %v6908_v31   ;;  %vm6945_vm13 = vweird.f32 %v8230_v0  ;;  %v6948_v31 = vand.u32 2147483647, %v6843_v14  ;;  %v6932_v21 = vsel %vm11332_vm10, %v11309_v41, %v6928_v20 }
0x1141   :  { %8231 = vrcp.f32 %v6847_v18  ;;  %vm6946_vm6 = vmor %vm6944_vm7, %vm6945_vm13  ;;  %v6937_v42 = vsel %vm6934_vm9, %v6936_v8, %v6932_v21  ;;  %v6965_v14 = vand.u32 2147483648, %v6847_v18  ;;  %vm6959_vm14 = vweird.f32 %v6847_v18 }
0x1142   :  { %v6941_v15 = vsub.f32 1.0, %v6940_v13  ;;  %vm6949_vm3 = vcmp.eq.f32.partialorder %v6948_v31, 8.507059e+37  ;;  %v6938_v58 = vmul.f32 %v11001_v36, %v6937_v42  ;;  %v6963_v41 = vand.u32 2147483647, %v6847_v18 }
0x1143   :  { %v6966_v43 = vor.u32 1.1754944e-38, %v6965_v14 }
0x1144   :  { %v6942_v6 = vmul.f32 %v8230_v0, %v6941_v15  ;;  %vm6964_vm1 = vcmp.eq.f32.partialorder %v6963_v41, 8.507059e+37 }
0x1146   :  { %7026 = vperm.xlu2 %8147, %v6923_v4   ;;  %v6943_v3 = vadd.f32 %v8230_v0, %v6942_v6 }
0x1147   :  { %v8232_v45 = vpop.eup %8231  ;;  %8150 = vset.pattern.permute.xlu0 %v12075_v48 }
0x1148   :  { %v6955_v59 = vmul.f32 %v8232_v45, %v6847_v18  ;;  %7090 = vperm.xlu1 %8149, %v6923_v4   ;;  %6991 = vperm.xlu0 %8150, %v6923_v4   ;;  %v6947_v49 = vsel %vm6946_vm6, %v8230_v0, %v6943_v3  ;;  %vm6960_vm4 = vweird.f32 %v8232_v45  ;;  %v12082_v0 = vld [vmem:[#allocation47_spill] sm:$0xff] }
0x1149   :  { %v6952_v44 = vsel %vm6949_vm3, %v6951_v62, %v6947_v49  ;;  %vm6961_vm8 = vmor %vm6959_vm14, %vm6960_vm4 }
0x114a   :  { %v6956_v12 = vsub.f32 1.0, %v6955_v59  ;;  %v6953_v24 = vmul.f32 %v10999_v17, %v6952_v44  ;;  %v11354_v17 = vpop.permute.xlu2 %7145 }
0x114c   :  { %v6957_v39 = vmul.f32 %v8232_v45, %v6956_v12 }
0x114e   :  { %8151 = vset.pattern.permute.xlu2 %v12073_v47  ;;  %v6958_v25 = vadd.f32 %v8232_v45, %v6957_v39 }
0x114f   :  { %7058 = vperm.xlu2 %8151, %v6923_v4  }
0x1150   :  { %8153 = vset.pattern.permute.xlu1 %v12076_v19  ;;  %8159 = vset.pattern.permute.xlu0 %v12074_v9  ;;  %v6962_v33 = vsel %vm6961_vm8, %v8232_v45, %v6958_v25 }
0x1151   :  { %7030 = vperm.xlu1 %8153, %v6938_v58   ;;  %7098 = vperm.xlu0 %8159, %v6953_v24   ;;  %v6967_v46 = vsel %vm6964_vm1, %v6966_v43, %v6962_v33 }
0x1152   :  { %v6968_v36 = vmul.f32 %v11022_v60, %v6967_v46  ;;  %v12081_v60 = vld [vmem:[#allocation41_spill] sm:$0xff]  ;;  %v7144_v55 = vpop.permute.xlu2 %7143 }
0x1157   :  { %8152 = vset.pattern.permute.xlu2 %v12075_v48 }
0x1158   :  { %6996 = vperm.xlu2 %8152, %v6938_v58  }
0x1159   :  { %8155 = vset.pattern.permute.xlu1 %v12074_v9  ;;  %8160 = vset.pattern.permute.xlu0 %v12075_v48 }
0x115a   :  { %7094 = vperm.xlu1 %8155, %v6938_v58   ;;  %7006 = vperm.xlu0 %8160, %v6968_v36   ;;  %v7142_v18 = vpop.permute.xlu2 %7141 }
0x1160   :  { %8154 = vset.pattern.permute.xlu2 %v12073_v47 }
0x1161   :  { %7062 = vperm.xlu2 %8154, %v6938_v58  }
0x1162   :  { %8157 = vset.pattern.permute.xlu1 %v12076_v19  ;;  %8164 = vset.pattern.permute.xlu0 %v12074_v9 }
0x1163   :  { %7034 = vperm.xlu1 %8157, %v6953_v24   ;;  %7102 = vperm.xlu0 %8164, %v6968_v36  }
0x1169   :  { %8156 = vset.pattern.permute.xlu2 %v12075_v48  ;;  %v7150_v48 = vpop.permute.xlu1 %7149 }
0x116a   :  { %7001 = vperm.xlu2 %8156, %v6953_v24  }
0x116b   :  { %8163 = vset.pattern.permute.xlu1 %v12073_v47  ;;  %7139 = vrot.lane.b32.xlu0 %v12081_v60, %s8298_s29 }
0x116c   :  { %7070 = vperm.xlu1 %8163, %v6968_v36  }
0x1171   :  { %v7148_v5 = vpop.permute.xlu1 %7147 }
0x1172   :  { %8158 = vset.pattern.permute.xlu2 %v12073_v47 }
0x1173   :  { %7066 = vperm.xlu2 %8158, %v6953_v24  }
0x1174   :  { %7042 = vperm.xlu1 %8163, %v11272_v28  }
0x117b   :  { %8161 = vset.pattern.permute.xlu2 %v12076_v19 }
0x117c   :  { %7137 = vrot.lane.b32.xlu1 %v12082_v0, %s8298_s29  ;;  %7038 = vperm.xlu2 %8161, %v6968_v36  }
0x1184   :  { %8162 = vset.pattern.permute.xlu2 %v12074_v9 }
0x1185   :  { %7078 = vperm.xlu2 %8162, %v11281_v29  }
0x1186   :  { %v7019_v13 = vpop.permute.xlu2 %7018 }
0x118d   :  { %7074 = vperm.xlu2 %8162, %v11272_v28  }
0x118e   :  { %v7011_v47 = vpop.permute.xlu0 %7010  ;;  %v6972_v40 = vpop.permute.xlu1 %6971 }
0x118f   :  { %v11370_v57 = vsel %vm3425_vm11, %v6972_v40, %v7011_v47  ;;  %v7083_v19 = vpop.permute.xlu2 %7082 }
0x1196   :  { %v7015_v15 = vpop.permute.xlu0 %7014  ;;  %v6977_v6 = vpop.permute.xlu1 %6976 }
0x1197   :  { %v7106_v4 = vsel %vm3425_vm11, %v6977_v6, %v7015_v15 }
0x1198   :  { %v7023_v20 = vpop.permute.xlu2 %7022 }
0x119f   :  { %v7051_v22 = vpop.permute.xlu0 %7050 }
0x11a0   :  { %v7047_v7 = vpop.permute.xlu1 %7046  ;;  %v7027_v9 = vpop.permute.xlu2 %7026 }
0x11a1   :  { %v7114_v29 = vsel %vm145_vm0, %v7106_v4, %v7047_v7 }
0x11a8   :  { %v6987_v3 = vpop.permute.xlu0 %6986 }
0x11a9   :  { %v6982_v45 = vpop.permute.xlu1 %6981  ;;  %v7059_v2 = vpop.permute.xlu2 %7058  ;;  %v7108_v60 = vsel %vm3425_vm11, %v6987_v3, %v7023_v20 }
0x11aa   :  { %v7107_v28 = vsel %vm3425_vm11, %v6982_v45, %v7019_v13 }
0x11ab   :  { %v7115_v54 = vsel %vm145_vm0, %v7107_v28, %v7051_v22 }
0x11ac   :  { %v7123_v31 = vsel %vm3442_vm12, %v7115_v54, %v7083_v19 }
0x11ad   :  { %v11377_v59 = vmul.f32 %v7142_v18, %v7123_v31 }
0x11b1   :  { %v7055_v21 = vpop.permute.xlu0 %7054 }
0x11b2   :  { %v7087_v49 = vpop.permute.xlu1 %7086  ;;  %v6997_v12 = vpop.permute.xlu2 %6996  ;;  %v7116_v47 = vsel %vm145_vm0, %v7108_v60, %v7055_v21 }
0x11b3   :  { %v7124_v22 = vsel %vm3442_vm12, %v7116_v47, %v7087_v49 }
0x11b4   :  { %v7164_v3 = vmul.f32 %v7144_v55, %v7124_v22 }
0x11b6   :  { %v11406_v55 = vand.u32 4294901760, %v7164_v3 }
0x11ba   :  { %v7091_v8 = vpop.permute.xlu1 %7090  ;;  %v6992_v62 = vpop.permute.xlu0 %6991 }
0x11bb   :  { %v7063_v39 = vpop.permute.xlu2 %7062  ;;  %v7109_v41 = vsel %vm3425_vm11, %v6992_v62, %v7027_v9 }
0x11bc   :  { %v7117_v0 = vsel %vm145_vm0, %v7109_v41, %v7059_v2 }
0x11bd   :  { %v7125_v4 = vsel %vm3442_vm12, %v7117_v0, %v7091_v8 }
0x11be   :  { %v7165_v20 = vmul.f32 %v11354_v17, %v7125_v4 }
0x11c3   :  { %v7031_v42 = vpop.permute.xlu1 %7030  ;;  %v7099_v44 = vpop.permute.xlu0 %7098 }
0x11c4   :  { %v7002_v25 = vpop.permute.xlu2 %7001  ;;  %v7110_v33 = vsel %vm3425_vm11, %v6997_v12, %v7031_v42 }
0x11c5   :  { %v7118_v18 = vsel %vm145_vm0, %v7110_v33, %v7063_v39 }
0x11cc   :  { %v7095_v14 = vpop.permute.xlu1 %7094  ;;  %v7007_v24 = vpop.permute.xlu0 %7006 }
0x11cd   :  { %v7067_v58 = vpop.permute.xlu2 %7066  ;;  %v7126_v40 = vsel %vm3442_vm12, %v7118_v18, %v7095_v14 }
0x11ce   :  { %v7166_v7 = vmul.f32 %v7148_v5, %v7126_v40  ;;  %v11401_v5 = vand.u32 4294901760, %v7165_v20 }
0x11d0   :  { %v11395_v28 = vand.u32 4294901760, %v7166_v7 }
0x11d2   :  { %v11409_v8 = vsub.f32 %v7166_v7, %v11395_v28 }
0x11d4   :  { %v7232_v41 = vand.u32 4294901760, %v11409_v8 }
0x11d5   :  { %v7035_v43 = vpop.permute.xlu1 %7034  ;;  %v7103_v15 = vpop.permute.xlu0 %7102 }
0x11d6   :  { %v7111_v46 = vsel %vm3425_vm11, %v7002_v25, %v7035_v43  ;;  %v7039_v36 = vpop.permute.xlu2 %7038  ;;  %v11425_v25 = vsub.f32 %v7164_v3, %v11406_v55  ;;  %v7233_v40 = vsub.f32 %v11409_v8, %v7232_v41 }
0x11d7   :  { %v7119_v13 = vsel %vm145_vm0, %v7111_v46, %v7067_v58  ;;  %v7112_v45 = vsel %vm3425_vm11, %v7007_v24, %v7039_v36 }
0x11d8   :  { %v7127_v19 = vsel %vm3442_vm12, %v7119_v13, %v7099_v44  ;;  %v11422_v44 = vsub.f32 %v7165_v20, %v11401_v5  ;;  %v7244_v60 = vand.u32 4294901760, %v11425_v25  ;;  %v7234_v22 = vand.u32 4294901760, %v7233_v40 }
0x11d9   :  { %v7167_v6 = vmul.f32 %v7150_v48, %v7127_v19 }
0x11da   :  { %v7238_v46 = vand.u32 4294901760, %v11422_v44  ;;  %v7245_v7 = vsub.f32 %v11425_v25, %v7244_v60 }
0x11db   :  { %v11392_v9 = vand.u32 4294901760, %v7167_v6 }
0x11dc   :  { %v7239_v19 = vsub.f32 %v11422_v44, %v7238_v46 }
0x11dd   :  { %v11404_v17 = vsub.f32 %v7167_v6, %v11392_v9  ;;  %v7140_v12 = vpop.permute.xlu0 %7139 }
0x11de   :  { %v7071_v2 = vpop.permute.xlu1 %7070 }
0x11df   :  { %v7120_v54 = vsel %vm145_vm0, %v7112_v45, %v7071_v2  ;;  %v7079_v31 = vpop.permute.xlu2 %7078  ;;  %v7240_v45 = vand.u32 4294901760, %v7239_v19 }
0x11e0   :  { %v7128_v48 = vsel %vm3442_vm12, %v7120_v54, %v7103_v15  ;;  %v7122_v21 = vsel %vm3442_vm12, %v7114_v29, %v7079_v31  ;;  %v7226_v29 = vand.u32 4294901760, %v11404_v17  ;;  %v7246_v31 = vand.u32 4294901760, %v7245_v7 }
0x11e1   :  { %v7168_v49 = vmul.f32 %v11359_v37, %v7128_v48  ;;  %v7162_v39 = vmul.f32 %v7140_v12, %v7122_v21  ;;  %v11418_v37 = vand.u32 4294901760, %v11377_v59 }
0x11e2   :  { %v7227_v43 = vsub.f32 %v11404_v17, %v7226_v29 }
0x11e3   :  { %v11411_v62 = vand.u32 4294901760, %v7168_v49  ;;  %v11427_v58 = vand.u32 4294901760, %v7162_v39  ;;  %v11440_v36 = vsub.f32 %v11377_v59, %v11418_v37 }
0x11e4   :  { %v7228_v59 = vand.u32 4294901760, %v7227_v43 }
0x11e5   :  { %v11414_v42 = vsub.f32 %v7168_v49, %v11411_v62  ;;  %7178 = vmatpush.msrb.mxu2 %v11411_v62  ;;  %v11444_v0 = vsub.f32 %v7162_v39, %v11427_v58  ;;  %v7250_v15 = vand.u32 4294901760, %v11440_v36 }
0x11e6   :  { %v7043_v14 = vpop.permute.xlu1 %7042 }
0x11e7   :  { %7180 = vmatpush.msrb.mxu2 %v11392_v9  ;;  %v7220_v24 = vand.u32 4294901760, %v11414_v42  ;;  %v7113_v18 = vsel %vm145_vm0, %v11370_v57, %v7043_v14  ;;  %v7075_v13 = vpop.permute.xlu2 %7074  ;;  %v7256_v20 = vand.u32 4294901760, %v11444_v0  ;;  %v7251_v2 = vsub.f32 %v11440_v36, %v7250_v15 }
0x11e8   :  { %v7121_v57 = vsel %vm3442_vm12, %v7113_v18, %v7075_v13 }
0x11e9   :  { %7182 = vmatpush.msrb.mxu2 %v11395_v28  ;;  %v7221_v33 = vsub.f32 %v11414_v42, %v7220_v24  ;;  %v7257_v48 = vsub.f32 %v11444_v0, %v7256_v20  ;;  %v7252_v21 = vand.u32 4294901760, %v7251_v2 }
0x11eb   :  { %7184 = vmatpush.msrb.mxu2 %v11401_v5  ;;  %v7222_v47 = vand.u32 4294901760, %v7221_v33  ;;  %v7258_v12 = vand.u32 4294901760, %v7257_v48 }
0x11ed   :  { %7186 = vmatpush.msrb.mxu2 %v11406_v55  ;;  %7223 = vmatpush.msrb.mxu3 %v7222_v47  ;;  %v7589_v47 = vpop.f32.mrf.mxu1 }
0x11ee   :  { %v7138_v6 = vpop.permute.xlu1 %7137 }
0x11ef   :  { %v7161_v4 = vmul.f32 %v7138_v6, %v7121_v57  ;;  %7188 = vmatpush.msrb.mxu2 %v11418_v37  ;;  %7229 = vmatpush.msrb.mxu3 %v7228_v59 }
0x11f1   :  { %v11463_v3 = vand.u32 4294901760, %v7161_v4  ;;  %7190 = vmatpush.msrb.mxu2 %v11427_v58  ;;  %7235 = vmatpush.msrb.mxu3 %v7234_v22 }
0x11f3   :  { %v7261_v54 = vsub.f32 %v7161_v4, %v11463_v3  ;;  %7192 = vmatpush.msrb.mxu2 %v11463_v3  ;;  %7241 = vmatpush.msrb.mxu3 %v7240_v45 }
0x11f4   :  { %7198 = vmatmul.f32.vlgmr.msrb.gmra.mxu2 %v12030_v61  ;;  %v7499_v61 = vand.u32 4294901760, %v11188_v34 }
0x11f5   :  { %7285 = vmatpush.msra.mxu2 %v11414_v42  ;;  %7247 = vmatpush.msrb.mxu3 %v7246_v31  ;;  %v7262_v49 = vand.u32 4294901760, %v7261_v54  ;;  %v8300_v31 = vmov 16.0  }
0x11f6   :  { %8233 = vrcp.f32 %v8300_v31 }
0x11f7   :  { %7288 = vmatpush.msra.mxu2 %v11404_v17  ;;  %7253 = vmatpush.msrb.mxu3 %v7252_v21  ;;  %v7263_v39 = vsub.f32 %v7261_v54, %v7262_v49 }
0x11f9   :  { %7291 = vmatpush.msra.mxu2 %v11409_v8  ;;  %7259 = vmatpush.msrb.mxu3 %v7258_v12  ;;  %v7264_v14 = vand.u32 4294901760, %v7263_v39  ;;  %v7595_v12 = vpop.f32.mrf.mxu1 }
0x11fb   :  { %7294 = vmatpush.msra.mxu2 %v11422_v44  ;;  %7265 = vmatpush.msrb.mxu3 %v7264_v14 }
0x11fc   :  { %7206 = vmatmul.f32.gmra.mxu2 %v12031_v32  ;;  %7267 = vmatmul.f32.vlgmr.msrb.gmra.mxu3 %v12032_v50  ;;  %v7505_v32 = vand.u32 4294901760, %v11198_v16 }
0x11fd   :  { %7297 = vmatpush.msra.mxu2 %v11425_v25  ;;  %7327 = vmatpush.msra.mxu3 %v11411_v62 }
0x11ff   :  { %7300 = vmatpush.msra.mxu2 %v11440_v36  ;;  %7329 = vmatpush.msra.mxu3 %v11392_v9  ;;  %v7557_v36 = vpop.f32.mrf.mxu0 }
0x1201   :  { %7303 = vmatpush.msra.mxu2 %v11444_v0  ;;  %7331 = vmatpush.msra.mxu3 %v11395_v28 }
0x1203   :  { %7306 = vmatpush.msra.mxu2 %v7261_v54  ;;  %7333 = vmatpush.msra.mxu3 %v11401_v5 }
0x1204   :  { %7271 = vmatmul.f32.gmra.mxu3 %v12033_v53  ;;  %7309 = vmatmul.f32.vlgmr.msra.gmra.mxu2 %v12034_v63  ;;  %v7500_v63 = vsub.f32 %v11188_v34, %v7499_v61 }
0x1205   :  { %7366 = vmatpush.msrb.mxu2 %v7220_v24  ;;  %7335 = vmatpush.msra.mxu3 %v11406_v55 }
0x1207   :  { %7370 = vmatpush.msrb.mxu2 %v7226_v29  ;;  %7337 = vmatpush.msra.mxu3 %v11418_v37 }
0x1209   :  { %7374 = vmatpush.msrb.mxu2 %v7232_v41  ;;  %7339 = vmatpush.msra.mxu3 %v11427_v58  ;;  %v8168_v41 = vld [vmem:[%s11561_s7 + $0x1] ss:$0 sm:$0xff]  ;;  %s8301_s7 = smov [#allocation3]  }
0x120a   :  { %s7693_s11 = sshll.u32 %s8301_s7, 4  ;;  %s7694_s11 = int_to_ptr.vmem [resolvable:$true] %s7693_s11 }
0x120b   :  { %7378 = vmatpush.msrb.mxu2 %v7238_v46  ;;  %7341 = vmatpush.msra.mxu3 %v11463_v3 }
0x120c   :  { %7314 = vmatmul.f32.gmra.mxu2 %v12035_v56  ;;  %7345 = vmatmul.f32.vlgmr.msra.gmra.mxu3 %v12036_v1  ;;  %v7511_v56 = vand.u32 4294901760, %v11208_v51  ;;  %v7506_v1 = vsub.f32 %v11198_v16, %v7505_v32 }
0x120d   :  { %7382 = vmatpush.msrb.mxu2 %v7244_v60  ;;  %7413 = vmatpush.msrb.mxu3 %v11411_v62  ;;  %v12085_v62 = vld [vmem:[#allocation45_spill] sm:$0xff] }
0x120e   :  { %v7512_v34 = vsub.f32 %v11208_v51, %v7511_v56 }
0x120f   :  { %7386 = vmatpush.msrb.mxu2 %v7250_v15  ;;  %7415 = vmatpush.msrb.mxu3 %v11392_v9  ;;  %v7517_v9 = vand.u32 4294901760, %v11215_v23 }
0x1210   :  { %v7513_v17 = vand.u32 4294901760, %v7512_v34 }
0x1211   :  { %7390 = vmatpush.msrb.mxu2 %v7256_v20  ;;  %7417 = vmatpush.msrb.mxu3 %v11395_v28  ;;  %v7501_v28 = vand.u32 4294901760, %v7500_v63  ;;  %v7562_v20 = vpop.f32.mrf.mxu0 }
0x1213   :  { %7394 = vmatpush.msrb.mxu2 %v7262_v49  ;;  %7419 = vmatpush.msrb.mxu3 %v11401_v5  ;;  %v7518_v5 = vsub.f32 %v11215_v23, %v7517_v9 }
0x1214   :  { %7351 = vmatmul.f32.gmra.mxu3 %v12037_v11  ;;  %7396 = vmatmul.f32.vlgmr.msrb.gmra.mxu2 %v12032_v50  ;;  %v7507_v11 = vand.u32 4294901760, %v7506_v1  ;;  %v8234_v1 = vpop.eup %8233 }
0x1215   :  { %7461 = vmatpush.msra.mxu2 %v11178_v26  ;;  %7421 = vmatpush.msrb.mxu3 %v11406_v55  ;;  %v7519_v16 = vand.u32 4294901760, %v7518_v5  ;;  %v12083_v55 = vand.u32 4294901760, %v11240_v27  ;;  %v7680_v5 = vmul.f32 16.0, %v8234_v1  ;;  %vm7684_vm0 = vweird.f32 %v8234_v1 }
0x1217   :  { %7423 = vmatpush.msrb.mxu3 %v11418_v37  ;;  %7463 = vmatpush.msra.mxu2 %v11190_v52  ;;  %v7471_v51 = vsub.f32 %v11240_v27, %v12083_v55 }
0x1219   :  { %7425 = vmatpush.msrb.mxu3 %v11427_v58  ;;  %7465 = vmatpush.msra.mxu2 %v11200_v30  ;;  %v7472_v8 = vand.u32 4294901760, %v7471_v51  ;;  %v7681_v51 = vsub.f32 1.0, %v7680_v5 }
0x121b   :  { %7427 = vmatpush.msrb.mxu3 %v11463_v3  ;;  %7467 = vmatpush.msra.mxu2 %v11210_v38 }
0x121c   :  { %7400 = vmatmul.f32.gmra.mxu2 %v12033_v53  ;;  %7429 = vmatmul.f32.vlgmr.msrb.gmra.mxu3 %v12032_v50  ;;  %v12084_v50 = vand.u32 4294901760, %v11250_v10 }
0x121d   :  { %7502 = vmatpush.msra.mxu3 %v7501_v28  ;;  %7613 = vmatpush.msrb.mxu2 %v7499_v61 }
0x121e   :  { %v7479_v23 = vsub.f32 %v11250_v10, %v12084_v50 }
0x121f   :  { %7508 = vmatpush.msra.mxu3 %v7507_v11  ;;  %7617 = vmatpush.msrb.mxu2 %v7505_v32 }
0x1220   :  { %v7480_v27 = vand.u32 4294901760, %v7479_v23  ;;  %v7682_v23 = vmul.f32 %v8234_v1, %v7681_v51 }
0x1221   :  { %7514 = vmatpush.msra.mxu3 %v7513_v17  ;;  %7621 = vmatpush.msrb.mxu2 %v7511_v56 }
0x1223   :  { %7520 = vmatpush.msra.mxu3 %v7519_v16  ;;  %7625 = vmatpush.msrb.mxu2 %v7517_v9 }
0x1224   :  { %7433 = vmatmul.f32.gmra.mxu3 %v12033_v53  ;;  %7473 = vmatmul.f32.vlgmr.msra.gmra.mxu2 %v7472_v8 }
0x1225   :  { %7648 = vmatpush.msrb.mxu3 %v11178_v26 }
0x1227   :  { %7650 = vmatpush.msrb.mxu3 %v11190_v52 }
0x1229   :  { %7652 = vmatpush.msrb.mxu3 %v11200_v30 }
0x122b   :  { %7654 = vmatpush.msrb.mxu3 %v11210_v38 }
0x122c   :  { %7481 = vmatmul.f32.gmra.mxu2 %v7480_v27  ;;  %7522 = vmatmul.f32.vlgmr.msra.gmra.mxu3 %v11237_v35 }
0x1234   :  { %7526 = vmatmul.f32.gmra.mxu3 %v12085_v62  ;;  %7627 = vmatmul.f32.vlgmr.msrb.gmra.mxu2 %v11237_v35 }
0x123c   :  { %7631 = vmatmul.f32.gmra.mxu2 %v12085_v62  ;;  %7656 = vmatmul.f32.vlgmr.msrb.gmra.mxu3 %v11237_v35 }
0x1244   :  { %7660 = vmatmul.f32.gmra.mxu3 %v12085_v62 }
0x1277   :  { %v7199_v53 = vpop.f32.mrf.mxu2 }
0x127f   :  { %v7207_v26 = vpop.f32.mrf.mxu2  ;;  %v7268_v52 = vpop.f32.mrf.mxu3 }
0x1280   :  { %v7269_v60 = vadd.f32 %v7268_v52, %v7199_v53  ;;  %v7683_v53 = vadd.f32 %v8234_v1, %v7682_v23 }
0x1287   :  { %v7272_v30 = vpop.f32.mrf.mxu3  ;;  %v7310_v10 = vpop.f32.mrf.mxu2 }
0x1288   :  { %v7311_v18 = vadd.f32 %v7310_v10, %v7269_v60  ;;  %v7273_v4 = vadd.f32 %v7272_v30, %v7207_v26  ;;  %v7685_v30 = vsel %vm7684_vm0, %v8234_v1, %v7683_v53 }
0x128f   :  { %v7315_v38 = vpop.f32.mrf.mxu2  ;;  %v7346_v42 = vpop.f32.mrf.mxu3 }
0x1290   :  { %v7347_v59 = vadd.f32 %v7346_v42, %v7311_v18  ;;  %v7316_v45 = vadd.f32 %v7315_v38, %v7273_v4 }
0x1297   :  { %v7352_v37 = vpop.f32.mrf.mxu3  ;;  %v7397_v29 = vpop.f32.mrf.mxu2 }
0x1298   :  { %v7398_v15 = vadd.f32 %v7397_v29, %v7347_v59  ;;  %v7353_v48 = vadd.f32 %v7352_v37, %v7316_v45 }
0x129f   :  { %v7401_v44 = vpop.f32.mrf.mxu2  ;;  %v7430_v25 = vpop.f32.mrf.mxu3 }
0x12a0   :  { %v7431_v22 = vadd.f32 %v7430_v25, %v7398_v15  ;;  %v7402_v14 = vadd.f32 %v7401_v44, %v7353_v48 }
0x12a2   :  { %v7437_v21 = vmax.f32 %v7431_v22, 0.0 }
0x12a7   :  { %v7434_v58 = vpop.f32.mrf.mxu3  ;;  %v7474_v24 = vpop.f32.mrf.mxu2 }
0x12a8   :  { %v7475_v43 = vadd.f32 %v8168_v41, %v7474_v24  ;;  %v7435_v63 = vadd.f32 %v7434_v58, %v7402_v14 }
0x12aa   :  { %v7438_v34 = vmax.f32 %v7435_v63, 0.0 }
0x12af   :  { %v7482_v35 = vpop.f32.mrf.mxu2  ;;  %v7523_v33 = vpop.f32.mrf.mxu3 }
0x12b0   :  { %v7524_v46 = vadd.f32 %v7523_v33, %v7475_v43  ;;  %v7483_v19 = vadd.f32 %v8168_v41, %v7482_v35 }
0x12b2   :  { %v7558_v13 = vadd.f32 %v7557_v36, %v7524_v46 }
0x12b4   :  { %v7590_v6 = vadd.f32 %v7589_v47, %v7558_v13 }
0x12b7   :  { %v7527_v0 = vpop.f32.mrf.mxu3  ;;  %v7628_v40 = vpop.f32.mrf.mxu2 }
0x12b8   :  { %v7528_v57 = vadd.f32 %v7527_v0, %v7483_v19  ;;  %v7629_v7 = vadd.f32 %v7628_v40, %v7590_v6 }
0x12ba   :  { %v7563_v2 = vadd.f32 %v7562_v20, %v7528_v57 }
0x12bc   :  { %v7596_v61 = vadd.f32 %v7595_v12, %v7563_v2 }
0x12bf   :  { %v7657_v3 = vpop.f32.mrf.mxu3  ;;  %v7632_v39 = vpop.f32.mrf.mxu2 }
0x12c0   :  { %v7658_v54 = vadd.f32 %v7657_v3, %v7629_v7  ;;  %v7633_v56 = vadd.f32 %v7632_v39, %v7596_v61 }
0x12c2   :  { %v7664_v49 = vmax.f32 %v7658_v54, 0.0 }
0x12c4   :  { %v7666_v32 = vadd.f32 %v7664_v49, %v7437_v21 }
0x12c6   :  { %7668 = vst.msk [vmem:[#allocation3] sm:$0xff] %vm154_vm2, %v7666_v32  ;;  %v7670_v16 = vsel %vm154_vm2, %v7666_v32, 0.0 }
0x12c7   :  { %v7661_v9 = vpop.f32.mrf.mxu3 }
0x12c8   :  { %v7662_v28 = vadd.f32 %v7661_v9, %v7633_v56 }
0x12ca   :  { %v7665_v11 = vmax.f32 %v7662_v28, 0.0 }
0x12cc   :  { %v7667_v17 = vadd.f32 %v7665_v11, %v7438_v34 }
0x12ce   :  { %7669 = vst.msk [vmem:[#allocation3 + $0x8] sm:$0xff] %vm154_vm2, %v7667_v17  ;;  %v7671_v55 = vsel %vm154_vm2, %v7667_v17, 0.0  ;;  %vm7687_vm2 = vcmask 253952  }
0x12cf   :  { %v7672_v8 = vadd.f32 %v7671_v55, %v7670_v16  ;;  %7701 = dma.vmem_to_hbm [thread:$0]  %s7694_s11, 256, %s7696_s1, [#allocation4], %s8302_s30, %s8302_s30, %s8303_s15  }
0x12d1   :  { %v7673_v50 = vrot.slane %v7672_v8, 4 }
0x12d3   :  { %v7674_v27 = vadd.f32 %v7673_v50, %v7672_v8 }
0x12d5   :  { %v7675_v62 = vrot.slane %v7674_v27, 2 }
0x12d7   :  { %v7676_v26 = vadd.f32 %v7675_v62, %v7674_v27 }
0x12d9   :  { %v7677_v52 = vrot.slane %v7676_v26, 1 }
0x12db   :  { %v7678_v10 = vadd.f32 %v7677_v52, %v7676_v26 }
0x12dd   :  { %v7686_v38 = vmul.f32 %v7685_v30, %v7678_v10 }
0x12df   :  { %7688 = vst.msk [vmem:[#allocation5] sm:$0x1] %vm7687_vm2, %v7686_v38 }
0x12e0   :  { %7712 = dma.vmem_to_hbm [thread:$0]  %s7708_s16, 16, %s7710_s19, [#allocation6]  }
0x12e1   :  { %8285 = dma.done.wait [#allocation4], 256  }
0x12e2   :  { %8286 = vsyncadd [#allocation4], 4294967040 }
0x12e3   :  { %8287 = dma.done.wait [#allocation6], 16  }
0x12e4   :  { %8288 = vsyncadd [#allocation6], 4294967280 }
0x12e5   :  { %7721 = vsyncpa [#allocation4], 1 }
0x12e6   :  { %7722 = vsyncpa [#allocation6], 1 }

</bundles_post_ra>
